<compile_context>
chip_gen: v7x
topology: tpu7x:2x2x1
jax: 0.10.0
libtpu: 0.0.40
codegen_flags: <defaults>
</compile_context>

<pallas_src>
import jax
import jax.numpy as jnp
from jax import lax
from jax.experimental import pallas as pl
from jax.experimental.pallas import tpu as pltpu

NUM_CLASSES = 8
L_IN = 70                 # Linear(480) with 30 channels and pooled length 16 => L_in = 70
K = 3                     # conv kernel size
C1, C2 = 15, 30           # conv output channels
L1 = L_IN - K + 1         # 68  conv1 output length
P1 = L1 // 2              # 34  after MaxPool(2)
L2 = P1 - K + 1           # 32  conv2 output length
P2 = L2 // 2              # 16  after MaxPool(2)
FC1_IN = C2 * P2          # 480
FC1_OUT = 240
NQ = P1 // 2              # 17  length of the even/odd pooled-conv1 streams
NPH = (L_IN + 2) // 4     # 18  length of each of the 4 input phases (70 padded to 72)


# ----------------------------- fused Pallas kernel --------------------------
def cnn1d_kernel(x_ref, w1s_ref, b1s_ref, w2s_ref, b2s_ref,
                 f1w_ref, f1b_ref, f2w_ref, f2b_ref,
                 out_ref, h1e_ref, h1o_ref, flat_ref):
    """One grid step = TB samples; batch on lanes, features on sublanes."""
    tb = flat_ref.shape[1]

    # ------------- conv1 (VPU) + ReLU + MaxPool(2), fused --------------------
    # x_ref[r, j, b] = x[b, 4j + r]  (4-phase split done once in the wrapper).
    # Even/odd pooled positions are built from contiguous slices of the phases,
    # so pooling needs no strided access; max(relu(a+b),relu(c+b))=relu(max(a,c)+b).
    x0a = x_ref[0, 0:NQ, :]          # x[4q]        (17, TB)
    x1a = x_ref[1, 0:NQ, :]          # x[4q+1]
    x2a = x_ref[2, 0:NQ, :]          # x[4q+2]
    x3a = x_ref[3, 0:NQ, :]          # x[4q+3]
    x0b = x_ref[0, 1:NQ + 1, :]      # x[4q+4]
    x1b = x_ref[1, 1:NQ + 1, :]      # x[4q+5]
    for c in range(C1):
        w0 = w1s_ref[3 * c]          # SMEM scalars -> scalar x vreg FMAs
        w1 = w1s_ref[3 * c + 1]
        w2 = w1s_ref[3 * c + 2]
        bc = b1s_ref[c]
        y0 = x0a * w0 + x1a * w1 + x2a * w2      # conv pos 4q
        y1 = x1a * w0 + x2a * w1 + x3a * w2      # conv pos 4q+1
        y2 = x2a * w0 + x3a * w1 + x0b * w2      # conv pos 4q+2
        y3 = x3a * w0 + x0b * w1 + x1b * w2      # conv pos 4q+3
        h1e_ref[c] = jnp.maximum(jnp.maximum(y0, y1) + bc, 0.0)   # pooled even p=2q
        h1o_ref[c] = jnp.maximum(jnp.maximum(y2, y3) + bc, 0.0)   # pooled odd  p=2q+1

    # ------------- conv2 (VPU) + ReLU + MaxPool(2), fused with flatten -------
    # For each output channel o, accumulate 45 scalar-weight FMAs on (16, TB)
    # full-lane tiles for the even and odd conv2 positions, pool, and store the
    # (16, TB) result at rows o*16 of the (480, TB) fc-input slab (dense,
    # 8-aligned sublane store).  Row order o*16+l == PyTorch flatten c*16+l.
    def conv2_body(o, carry):
        acc_e = jnp.zeros((P2, tb), jnp.float32)
        acc_o = jnp.zeros((P2, tb), jnp.float32)
        for c in range(C1):
            he0 = h1e_ref[c, 0:P2, :]
            he1 = h1e_ref[c, 1:P2 + 1, :]
            ho0 = h1o_ref[c, 0:P2, :]
            ho1 = h1o_ref[c, 1:P2 + 1, :]
            w0 = w2s_ref[o, 3 * c]
            w1 = w2s_ref[o, 3 * c + 1]
            w2 = w2s_ref[o, 3 * c + 2]
            acc_e = acc_e + he0 * w0 + ho0 * w1 + he1 * w2    # conv2 pos 2q
            acc_o = acc_o + ho0 * w0 + he1 * w1 + ho1 * w2    # conv2 pos 2q+1
        pooled = jnp.maximum(jnp.maximum(acc_e, acc_o) + b2s_ref[o], 0.0)
        row = pl.multiple_of(o * P2, P2)
        flat_ref[pl.ds(row, P2), :] = pooled                  # (16, TB) dense store
        return carry

    lax.fori_loop(0, C2, conv2_body, 0)

    # ------------- FC1 + ReLU + Dropout(identity) + FC2 on the MXU -----------
    # fc1^T = W1 (240,480) @ flat^T (480,TB); fc2^T = W2 (8,240) @ h (240,TB).
    h = jnp.dot(f1w_ref[...], flat_ref[...], preferred_element_type=jnp.float32)
    h = jnp.maximum(h + f1b_ref[...], 0.0)                    # (240, TB)
    # TODO(synk): nn.Dropout(0.1) is identity in eval mode; training-mode RNG
    # masking (pltpu.prng_seed + prng_random_bits) is not implemented.
    out_ref[...] = (jnp.dot(f2w_ref[...], h, preferred_element_type=jnp.float32)
                    + f2b_ref[...])                           # (8, TB) dense store


# ----------------------------- wrapper ---------------------------------------
def _round_up(a, m):
    return (a + m - 1) // m * m


def cnn1d_forward(x_ncl, params):
    """x_ncl: (B, 1, 70) float32 (PyTorch NCL). Returns (B, NUM_CLASSES)."""
    (w1s, b1s, w2s, b2s, f1w, f1b, f2w, f2b) = params
    B = x_ncl.shape[0]
    x = x_ncl[:, 0, :]                                   # (B, 70)

    # Batch tile: 128 samples/step (full 128-lane vregs); pad batch to a multiple.
    TB = 128 if B >= 128 else _round_up(max(B, 8), 8)
    B_pad = _round_up(B, TB)
    x_pad = jnp.pad(x, ((0, B_pad - B), (0, 4 * NPH - L_IN)))       # (B_pad, 72)
    # 4-phase, transposed input: xph[r, j, b] = x[b, 4j + r]  -> (4, 18, B_pad)
    xph = jnp.transpose(x_pad.reshape(B_pad, NPH, 4), (2, 1, 0))

    out_t = pl.pallas_call(
        cnn1d_kernel,
        grid=(B_pad // TB,),
        in_specs=[
            pl.BlockSpec((4, NPH, TB), lambda i: (0, 0, i)),             # input phases
            pl.BlockSpec(memory_space=pltpu.MemorySpace.SMEM),           # conv1 w (45,)
            pl.BlockSpec(memory_space=pltpu.MemorySpace.SMEM),           # conv1 b (15,)
            pl.BlockSpec(memory_space=pltpu.MemorySpace.SMEM),           # conv2 w (30,45)
            pl.BlockSpec(memory_space=pltpu.MemorySpace.SMEM),           # conv2 b (30,)
            pl.BlockSpec((FC1_OUT, FC1_IN), lambda i: (0, 0)),           # fc1 w (240,480)
            pl.BlockSpec((FC1_OUT, 1), lambda i: (0, 0)),                # fc1 b (240,1)
            pl.BlockSpec((NUM_CLASSES, FC1_OUT), lambda i: (0, 0)),      # fc2 w (8,240)
            pl.BlockSpec((NUM_CLASSES, 1), lambda i: (0, 0)),            # fc2 b (8,1)
        ],
        out_specs=pl.BlockSpec((NUM_CLASSES, TB), lambda i: (0, i)),
        out_shape=jax.ShapeDtypeStruct((NUM_CLASSES, B_pad), jnp.float32),
        scratch_shapes=[
            pltpu.VMEM((C1, NQ, TB), jnp.float32),   # pooled conv1, even positions
            pltpu.VMEM((C1, NQ, TB), jnp.float32),   # pooled conv1, odd positions
            pltpu.VMEM((FC1_IN, TB), jnp.float32),   # flattened fc1 input (480, TB)
        ],
        # NOTE: constant index_maps keep the (240,480) fc1 weight resident across
        # grid steps (no per-step re-DMA); "parallel" lets v7x split steps on 2 TCs.
        compiler_params=pltpu.CompilerParams(dimension_semantics=("parallel",)),
    )(xph, w1s, b1s, w2s, b2s, f1w, f1b, f2w, f2b)

    return jnp.transpose(out_t[:, :B])                   # (B, 8)


# ----------------------------- params ----------------------------------------
def init_raw_params(key):
    """PyTorch-layout parameters."""
    ks = jax.random.split(key, 8)
    conv1_w = jax.random.normal(ks[0], (C1, 1, K), jnp.float32) * 0.1
    conv1_b = jax.random.normal(ks[1], (C1,), jnp.float32) * 0.1
    conv2_w = jax.random.normal(ks[2], (C2, C1, K), jnp.float32) * 0.1
    conv2_b = jax.random.normal(ks[3], (C2,), jnp.float32) * 0.1
    fc1_w = jax.random.normal(ks[4], (FC1_OUT, FC1_IN), jnp.float32) * 0.05
    fc1_b = jax.random.normal(ks[5], (FC1_OUT,), jnp.float32) * 0.05
    fc2_w = jax.random.normal(ks[6], (NUM_CLASSES, FC1_OUT), jnp.float32) * 0.05
    fc2_b = jax.random.normal(ks[7], (NUM_CLASSES,), jnp.float32) * 0.05
    return (conv1_w, conv1_b, conv2_w, conv2_b, fc1_w, fc1_b, fc2_w, fc2_b)


def pack_params(raw):
    """One-time repack into kernel-friendly layouts (fc weights stay as-is)."""
    (c1w, c1b, c2w, c2b, f1w, f1b, f2w, f2b) = raw
    return (c1w.reshape(C1 * K),          # (45,)   index 3c+k, SMEM scalars
            c1b,                          # (15,)
            c2w.reshape(C2, C1 * K),      # (30,45) index [o, 3c+k], SMEM scalars
            c2b,                          # (30,)
            f1w,                          # (240,480) PyTorch layout used directly
            f1b.reshape(FC1_OUT, 1),
            f2w,                          # (8,240)
            f2b.reshape(NUM_CLASSES, 1))


# ----------------------------- pure-JAX reference (self-check) ---------------
def _reference_forward(x_ncl, raw):
    (c1w, c1b, c2w, c2b, f1w, f1b, f2w, f2b) = raw
    hp = jax.lax.Precision.HIGHEST

    def conv1d(x, w, b):                    # x (B,C,L), w (O,C,K)
        kk = w.shape[2]
        lout = x.shape[2] - kk + 1
        cols = jnp.stack([x[:, :, k:k + lout] for k in range(kk)], axis=-1)
        return jnp.einsum("bclk,ock->bol", cols, w, precision=hp) + b[None, :, None]

    def pool2(x):                           # (B,C,L) -> (B,C,L//2)
        b_, c_, l_ = x.shape
        return jnp.max(x.reshape(b_, c_, l_ // 2, 2), axis=-1)

    h = pool2(jax.nn.relu(conv1d(x_ncl, c1w, c1b)))
    h = pool2(jax.nn.relu(conv1d(h, c2w, c2b)))
    flat = h.reshape(h.shape[0], -1)        # (B, 480), index c*16 + l
    h = jax.nn.relu(jnp.dot(flat, f1w.T, precision=hp) + f1b)
    return jnp.dot(h, f2w.T, precision=hp) + f2b


if __name__ == "__main__":
    key = jax.random.PRNGKey(0)
    k_x, k_p = jax.random.split(key)
    B = 256                                             # 2 grid steps of 128 samples
    x = jax.random.normal(k_x, (B, 1, L_IN), jnp.float32)
    raw = init_raw_params(k_p)
    params = pack_params(raw)

    fwd = jax.jit(lambda xx: cnn1d_forward(xx, params))
    out = fwd(x)
    jax.block_until_ready(out)
    assert out.shape == (B, NUM_CLASSES)

    ref = _reference_forward(x, raw)
    err = float(jnp.max(jnp.abs(out - ref)))
    assert jnp.allclose(out, ref, atol=1e-4, rtol=1e-4), f"mismatch vs reference, max abs err={err}"
    print("KERNEL_OK")
</pallas_src>

<mosaic_0001>
module attributes {stable_mosaic.version = 11 : i64} {
  func.func @cnn1d_kernel(%arg0: i32, %arg1: memref<4x18x128xf32, #tpu.memory_space<vmem>>, %arg2: memref<45xf32, #tpu.memory_space<smem>>, %arg3: memref<15xf32, #tpu.memory_space<smem>>, %arg4: memref<30x45xf32, #tpu.memory_space<smem>>, %arg5: memref<30xf32, #tpu.memory_space<smem>>, %arg6: memref<240x480xf32, #tpu.memory_space<vmem>>, %arg7: memref<240x1xf32, #tpu.memory_space<vmem>>, %arg8: memref<8x240xf32, #tpu.memory_space<vmem>>, %arg9: memref<8x1xf32, #tpu.memory_space<vmem>>, %arg10: memref<8x128xf32, #tpu.memory_space<vmem>>, %arg11: memref<15x17x128xf32, #tpu.memory_space<vmem>>, %arg12: memref<15x17x128xf32, #tpu.memory_space<vmem>>, %arg13: memref<480x128xf32, #tpu.memory_space<vmem>>) attributes {dimension_semantics = [#tpu.dimension_semantics<parallel>], iteration_bounds = array<i64: 2>, scalar_prefetch = 0 : i64, scratch_operands = 3 : i64, tpu.core_type = #tpu.core_type<tc>, window_params = [{transform_indices = @transform_0, window_bounds = array<i64: 4, 18, 128>}, {transform_indices = @transform_1, window_bounds = array<i64: 45>}, {transform_indices = @transform_2, window_bounds = array<i64: 15>}, {transform_indices = @transform_3, window_bounds = array<i64: 30, 45>}, {transform_indices = @transform_4, window_bounds = array<i64: 30>}, {pipeline_mode = #tpu.pipeline_mode<synchronous>, transform_indices = @transform_5, window_bounds = array<i64: 240, 480>}, {pipeline_mode = #tpu.pipeline_mode<synchronous>, transform_indices = @transform_6, window_bounds = array<i64: 240, 1>}, {pipeline_mode = #tpu.pipeline_mode<synchronous>, transform_indices = @transform_7, window_bounds = array<i64: 8, 240>}, {pipeline_mode = #tpu.pipeline_mode<synchronous>, transform_indices = @transform_8, window_bounds = array<i64: 8, 1>}, {transform_indices = @transform_9, window_bounds = array<i64: 8, 128>}]} {
    %c0 = arith.constant 0 : index
    %c0_0 = arith.constant 0 : index
    %c0_1 = arith.constant 0 : index
    %0 = vector.load %arg1[%c0, %c0_0, %c0_1] : memref<4x18x128xf32, #tpu.memory_space<vmem>>, vector<1x17x128xf32>
    %1 = vector.shape_cast %0 : vector<1x17x128xf32> to vector<17x128xf32>
    %c1 = arith.constant 1 : index
    %c0_2 = arith.constant 0 : index
    %c0_3 = arith.constant 0 : index
    %2 = vector.load %arg1[%c1, %c0_2, %c0_3] : memref<4x18x128xf32, #tpu.memory_space<vmem>>, vector<1x17x128xf32>
    %3 = vector.shape_cast %2 : vector<1x17x128xf32> to vector<17x128xf32>
    %c2 = arith.constant 2 : index
    %c0_4 = arith.constant 0 : index
    %c0_5 = arith.constant 0 : index
    %4 = vector.load %arg1[%c2, %c0_4, %c0_5] : memref<4x18x128xf32, #tpu.memory_space<vmem>>, vector<1x17x128xf32>
    %5 = vector.shape_cast %4 : vector<1x17x128xf32> to vector<17x128xf32>
    %c3 = arith.constant 3 : index
    %c0_6 = arith.constant 0 : index
    %c0_7 = arith.constant 0 : index
    %6 = vector.load %arg1[%c3, %c0_6, %c0_7] : memref<4x18x128xf32, #tpu.memory_space<vmem>>, vector<1x17x128xf32>
    %7 = vector.shape_cast %6 : vector<1x17x128xf32> to vector<17x128xf32>
    %c0_8 = arith.constant 0 : index
    %c1_9 = arith.constant 1 : index
    %c0_10 = arith.constant 0 : index
    %8 = vector.load %arg1[%c0_8, %c1_9, %c0_10] : memref<4x18x128xf32, #tpu.memory_space<vmem>>, vector<1x17x128xf32>
    %9 = vector.shape_cast %8 : vector<1x17x128xf32> to vector<17x128xf32>
    %c1_11 = arith.constant 1 : index
    %c1_12 = arith.constant 1 : index
    %c0_13 = arith.constant 0 : index
    %10 = vector.load %arg1[%c1_11, %c1_12, %c0_13] : memref<4x18x128xf32, #tpu.memory_space<vmem>>, vector<1x17x128xf32>
    %11 = vector.shape_cast %10 : vector<1x17x128xf32> to vector<17x128xf32>
    %c0_14 = arith.constant 0 : index
    %12 = memref.load %arg2[%c0_14] : memref<45xf32, #tpu.memory_space<smem>>
    %c1_15 = arith.constant 1 : index
    %13 = memref.load %arg2[%c1_15] : memref<45xf32, #tpu.memory_space<smem>>
    %c2_16 = arith.constant 2 : index
    %14 = memref.load %arg2[%c2_16] : memref<45xf32, #tpu.memory_space<smem>>
    %c0_17 = arith.constant 0 : index
    %15 = memref.load %arg3[%c0_17] : memref<15xf32, #tpu.memory_space<smem>>
    %16 = vector.broadcast %12 : f32 to vector<17x128xf32>
    %17 = arith.mulf %1, %16 : vector<17x128xf32>
    %18 = vector.broadcast %13 : f32 to vector<17x128xf32>
    %19 = arith.mulf %3, %18 : vector<17x128xf32>
    %20 = arith.addf %17, %19 : vector<17x128xf32>
    %21 = vector.broadcast %14 : f32 to vector<17x128xf32>
    %22 = arith.mulf %5, %21 : vector<17x128xf32>
    %23 = arith.addf %20, %22 : vector<17x128xf32>
    %24 = vector.broadcast %12 : f32 to vector<17x128xf32>
    %25 = arith.mulf %3, %24 : vector<17x128xf32>
    %26 = vector.broadcast %13 : f32 to vector<17x128xf32>
    %27 = arith.mulf %5, %26 : vector<17x128xf32>
    %28 = arith.addf %25, %27 : vector<17x128xf32>
    %29 = vector.broadcast %14 : f32 to vector<17x128xf32>
    %30 = arith.mulf %7, %29 : vector<17x128xf32>
    %31 = arith.addf %28, %30 : vector<17x128xf32>
    %32 = vector.broadcast %12 : f32 to vector<17x128xf32>
    %33 = arith.mulf %5, %32 : vector<17x128xf32>
    %34 = vector.broadcast %13 : f32 to vector<17x128xf32>
    %35 = arith.mulf %7, %34 : vector<17x128xf32>
    %36 = arith.addf %33, %35 : vector<17x128xf32>
    %37 = vector.broadcast %14 : f32 to vector<17x128xf32>
    %38 = arith.mulf %9, %37 : vector<17x128xf32>
    %39 = arith.addf %36, %38 : vector<17x128xf32>
    %40 = vector.broadcast %12 : f32 to vector<17x128xf32>
    %41 = arith.mulf %7, %40 : vector<17x128xf32>
    %42 = vector.broadcast %13 : f32 to vector<17x128xf32>
    %43 = arith.mulf %9, %42 : vector<17x128xf32>
    %44 = arith.addf %41, %43 : vector<17x128xf32>
    %45 = vector.broadcast %14 : f32 to vector<17x128xf32>
    %46 = arith.mulf %11, %45 : vector<17x128xf32>
    %47 = arith.addf %44, %46 : vector<17x128xf32>
    %48 = arith.maximumf %23, %31 : vector<17x128xf32>
    %49 = vector.broadcast %15 : f32 to vector<17x128xf32>
    %50 = arith.addf %48, %49 : vector<17x128xf32>
    %cst = arith.constant 0.000000e+00 : f32
    %51 = vector.broadcast %cst : f32 to vector<17x128xf32>
    %52 = arith.maximumf %50, %51 : vector<17x128xf32>
    %c0_18 = arith.constant 0 : index
    %c0_19 = arith.constant 0 : index
    %c0_20 = arith.constant 0 : index
    %53 = vector.load %arg11[%c0_18, %c0_19, %c0_20] : memref<15x17x128xf32, #tpu.memory_space<vmem>>, vector<1x17x128xf32>
    %54 = vector.shape_cast %53 : vector<1x17x128xf32> to vector<17x128xf32>
    %55 = vector.shape_cast %52 : vector<17x128xf32> to vector<1x17x128xf32>
    tpu.vector_store %arg11[%c0_18, %c0_19, %c0_20], %55 {strides = array<i32>} : memref<15x17x128xf32, #tpu.memory_space<vmem>>, vector<1x17x128xf32>,
    %56 = arith.maximumf %39, %47 : vector<17x128xf32>
    %57 = vector.broadcast %15 : f32 to vector<17x128xf32>
    %58 = arith.addf %56, %57 : vector<17x128xf32>
    %cst_21 = arith.constant 0.000000e+00 : f32
    %59 = vector.broadcast %cst_21 : f32 to vector<17x128xf32>
    %60 = arith.maximumf %58, %59 : vector<17x128xf32>
    %c0_22 = arith.constant 0 : index
    %c0_23 = arith.constant 0 : index
    %c0_24 = arith.constant 0 : index
    %61 = vector.load %arg12[%c0_22, %c0_23, %c0_24] : memref<15x17x128xf32, #tpu.memory_space<vmem>>, vector<1x17x128xf32>
    %62 = vector.shape_cast %61 : vector<1x17x128xf32> to vector<17x128xf32>
    %63 = vector.shape_cast %60 : vector<17x128xf32> to vector<1x17x128xf32>
    tpu.vector_store %arg12[%c0_22, %c0_23, %c0_24], %63 {strides = array<i32>} : memref<15x17x128xf32, #tpu.memory_space<vmem>>, vector<1x17x128xf32>,
    %c3_25 = arith.constant 3 : index
    %64 = memref.load %arg2[%c3_25] : memref<45xf32, #tpu.memory_space<smem>>
    %c4 = arith.constant 4 : index
    %65 = memref.load %arg2[%c4] : memref<45xf32, #tpu.memory_space<smem>>
    %c5 = arith.constant 5 : index
    %66 = memref.load %arg2[%c5] : memref<45xf32, #tpu.memory_space<smem>>
    %c1_26 = arith.constant 1 : index
    %67 = memref.load %arg3[%c1_26] : memref<15xf32, #tpu.memory_space<smem>>
    %68 = vector.broadcast %64 : f32 to vector<17x128xf32>
    %69 = arith.mulf %1, %68 : vector<17x128xf32>
    %70 = vector.broadcast %65 : f32 to vector<17x128xf32>
    %71 = arith.mulf %3, %70 : vector<17x128xf32>
    %72 = arith.addf %69, %71 : vector<17x128xf32>
    %73 = vector.broadcast %66 : f32 to vector<17x128xf32>
    %74 = arith.mulf %5, %73 : vector<17x128xf32>
    %75 = arith.addf %72, %74 : vector<17x128xf32>
    %76 = vector.broadcast %64 : f32 to vector<17x128xf32>
    %77 = arith.mulf %3, %76 : vector<17x128xf32>
    %78 = vector.broadcast %65 : f32 to vector<17x128xf32>
    %79 = arith.mulf %5, %78 : vector<17x128xf32>
    %80 = arith.addf %77, %79 : vector<17x128xf32>
    %81 = vector.broadcast %66 : f32 to vector<17x128xf32>
    %82 = arith.mulf %7, %81 : vector<17x128xf32>
    %83 = arith.addf %80, %82 : vector<17x128xf32>
    %84 = vector.broadcast %64 : f32 to vector<17x128xf32>
    %85 = arith.mulf %5, %84 : vector<17x128xf32>
    %86 = vector.broadcast %65 : f32 to vector<17x128xf32>
    %87 = arith.mulf %7, %86 : vector<17x128xf32>
    %88 = arith.addf %85, %87 : vector<17x128xf32>
    %89 = vector.broadcast %66 : f32 to vector<17x128xf32>
    %90 = arith.mulf %9, %89 : vector<17x128xf32>
    %91 = arith.addf %88, %90 : vector<17x128xf32>
    %92 = vector.broadcast %64 : f32 to vector<17x128xf32>
    %93 = arith.mulf %7, %92 : vector<17x128xf32>
    %94 = vector.broadcast %65 : f32 to vector<17x128xf32>
    %95 = arith.mulf %9, %94 : vector<17x128xf32>
    %96 = arith.addf %93, %95 : vector<17x128xf32>
    %97 = vector.broadcast %66 : f32 to vector<17x128xf32>
    %98 = arith.mulf %11, %97 : vector<17x128xf32>
    %99 = arith.addf %96, %98 : vector<17x128xf32>
    %100 = arith.maximumf %75, %83 : vector<17x128xf32>
    %101 = vector.broadcast %67 : f32 to vector<17x128xf32>
    %102 = arith.addf %100, %101 : vector<17x128xf32>
    %cst_27 = arith.constant 0.000000e+00 : f32
    %103 = vector.broadcast %cst_27 : f32 to vector<17x128xf32>
    %104 = arith.maximumf %102, %103 : vector<17x128xf32>
    %c1_28 = arith.constant 1 : index
    %c0_29 = arith.constant 0 : index
    %c0_30 = arith.constant 0 : index
    %105 = vector.load %arg11[%c1_28, %c0_29, %c0_30] : memref<15x17x128xf32, #tpu.memory_space<vmem>>, vector<1x17x128xf32>
    %106 = vector.shape_cast %105 : vector<1x17x128xf32> to vector<17x128xf32>
    %107 = vector.shape_cast %104 : vector<17x128xf32> to vector<1x17x128xf32>
    tpu.vector_store %arg11[%c1_28, %c0_29, %c0_30], %107 {strides = array<i32>} : memref<15x17x128xf32, #tpu.memory_space<vmem>>, vector<1x17x128xf32>,
    %108 = arith.maximumf %91, %99 : vector<17x128xf32>
    %109 = vector.broadcast %67 : f32 to vector<17x128xf32>
    %110 = arith.addf %108, %109 : vector<17x128xf32>
    %cst_31 = arith.constant 0.000000e+00 : f32
    %111 = vector.broadcast %cst_31 : f32 to vector<17x128xf32>
    %112 = arith.maximumf %110, %111 : vector<17x128xf32>
    %c1_32 = arith.constant 1 : index
    %c0_33 = arith.constant 0 : index
    %c0_34 = arith.constant 0 : index
    %113 = vector.load %arg12[%c1_32, %c0_33, %c0_34] : memref<15x17x128xf32, #tpu.memory_space<vmem>>, vector<1x17x128xf32>
    %114 = vector.shape_cast %113 : vector<1x17x128xf32> to vector<17x128xf32>
    %115 = vector.shape_cast %112 : vector<17x128xf32> to vector<1x17x128xf32>
    tpu.vector_store %arg12[%c1_32, %c0_33, %c0_34], %115 {strides = array<i32>} : memref<15x17x128xf32, #tpu.memory_space<vmem>>, vector<1x17x128xf32>,
    %c6 = arith.constant 6 : index
    %116 = memref.load %arg2[%c6] : memref<45xf32, #tpu.memory_space<smem>>
    %c7 = arith.constant 7 : index
    %117 = memref.load %arg2[%c7] : memref<45xf32, #tpu.memory_space<smem>>
    %c8 = arith.constant 8 : index
    %118 = memref.load %arg2[%c8] : memref<45xf32, #tpu.memory_space<smem>>
    %c2_35 = arith.constant 2 : index
    %119 = memref.load %arg3[%c2_35] : memref<15xf32, #tpu.memory_space<smem>>
    %120 = vector.broadcast %116 : f32 to vector<17x128xf32>
    %121 = arith.mulf %1, %120 : vector<17x128xf32>
    %122 = vector.broadcast %117 : f32 to vector<17x128xf32>
    %123 = arith.mulf %3, %122 : vector<17x128xf32>
    %124 = arith.addf %121, %123 : vector<17x128xf32>
    %125 = vector.broadcast %118 : f32 to vector<17x128xf32>
    %126 = arith.mulf %5, %125 : vector<17x128xf32>
    %127 = arith.addf %124, %126 : vector<17x128xf32>
    %128 = vector.broadcast %116 : f32 to vector<17x128xf32>
    %129 = arith.mulf %3, %128 : vector<17x128xf32>
    %130 = vector.broadcast %117 : f32 to vector<17x128xf32>
    %131 = arith.mulf %5, %130 : vector<17x128xf32>
    %132 = arith.addf %129, %131 : vector<17x128xf32>
    %133 = vector.broadcast %118 : f32 to vector<17x128xf32>
    %134 = arith.mulf %7, %133 : vector<17x128xf32>
    %135 = arith.addf %132, %134 : vector<17x128xf32>
    %136 = vector.broadcast %116 : f32 to vector<17x128xf32>
    %137 = arith.mulf %5, %136 : vector<17x128xf32>
    %138 = vector.broadcast %117 : f32 to vector<17x128xf32>
    %139 = arith.mulf %7, %138 : vector<17x128xf32>
    %140 = arith.addf %137, %139 : vector<17x128xf32>
    %141 = vector.broadcast %118 : f32 to vector<17x128xf32>
    %142 = arith.mulf %9, %141 : vector<17x128xf32>
    %143 = arith.addf %140, %142 : vector<17x128xf32>
    %144 = vector.broadcast %116 : f32 to vector<17x128xf32>
    %145 = arith.mulf %7, %144 : vector<17x128xf32>
    %146 = vector.broadcast %117 : f32 to vector<17x128xf32>
    %147 = arith.mulf %9, %146 : vector<17x128xf32>
    %148 = arith.addf %145, %147 : vector<17x128xf32>
    %149 = vector.broadcast %118 : f32 to vector<17x128xf32>
    %150 = arith.mulf %11, %149 : vector<17x128xf32>
    %151 = arith.addf %148, %150 : vector<17x128xf32>
    %152 = arith.maximumf %127, %135 : vector<17x128xf32>
    %153 = vector.broadcast %119 : f32 to vector<17x128xf32>
    %154 = arith.addf %152, %153 : vector<17x128xf32>
    %cst_36 = arith.constant 0.000000e+00 : f32
    %155 = vector.broadcast %cst_36 : f32 to vector<17x128xf32>
    %156 = arith.maximumf %154, %155 : vector<17x128xf32>
    %c2_37 = arith.constant 2 : index
    %c0_38 = arith.constant 0 : index
    %c0_39 = arith.constant 0 : index
    %157 = vector.load %arg11[%c2_37, %c0_38, %c0_39] : memref<15x17x128xf32, #tpu.memory_space<vmem>>, vector<1x17x128xf32>
    %158 = vector.shape_cast %157 : vector<1x17x128xf32> to vector<17x128xf32>
    %159 = vector.shape_cast %156 : vector<17x128xf32> to vector<1x17x128xf32>
    tpu.vector_store %arg11[%c2_37, %c0_38, %c0_39], %159 {strides = array<i32>} : memref<15x17x128xf32, #tpu.memory_space<vmem>>, vector<1x17x128xf32>,
    %160 = arith.maximumf %143, %151 : vector<17x128xf32>
    %161 = vector.broadcast %119 : f32 to vector<17x128xf32>
    %162 = arith.addf %160, %161 : vector<17x128xf32>
    %cst_40 = arith.constant 0.000000e+00 : f32
    %163 = vector.broadcast %cst_40 : f32 to vector<17x128xf32>
    %164 = arith.maximumf %162, %163 : vector<17x128xf32>
    %c2_41 = arith.constant 2 : index
    %c0_42 = arith.constant 0 : index
    %c0_43 = arith.constant 0 : index
    %165 = vector.load %arg12[%c2_41, %c0_42, %c0_43] : memref<15x17x128xf32, #tpu.memory_space<vmem>>, vector<1x17x128xf32>
    %166 = vector.shape_cast %165 : vector<1x17x128xf32> to vector<17x128xf32>
    %167 = vector.shape_cast %164 : vector<17x128xf32> to vector<1x17x128xf32>
    tpu.vector_store %arg12[%c2_41, %c0_42, %c0_43], %167 {strides = array<i32>} : memref<15x17x128xf32, #tpu.memory_space<vmem>>, vector<1x17x128xf32>,
    %c9 = arith.constant 9 : index
    %168 = memref.load %arg2[%c9] : memref<45xf32, #tpu.memory_space<smem>>
    %c10 = arith.constant 10 : index
    %169 = memref.load %arg2[%c10] : memref<45xf32, #tpu.memory_space<smem>>
    %c11 = arith.constant 11 : index
    %170 = memref.load %arg2[%c11] : memref<45xf32, #tpu.memory_space<smem>>
    %c3_44 = arith.constant 3 : index
    %171 = memref.load %arg3[%c3_44] : memref<15xf32, #tpu.memory_space<smem>>
    %172 = vector.broadcast %168 : f32 to vector<17x128xf32>
    %173 = arith.mulf %1, %172 : vector<17x128xf32>
    %174 = vector.broadcast %169 : f32 to vector<17x128xf32>
    %175 = arith.mulf %3, %174 : vector<17x128xf32>
    %176 = arith.addf %173, %175 : vector<17x128xf32>
    %177 = vector.broadcast %170 : f32 to vector<17x128xf32>
    %178 = arith.mulf %5, %177 : vector<17x128xf32>
    %179 = arith.addf %176, %178 : vector<17x128xf32>
    %180 = vector.broadcast %168 : f32 to vector<17x128xf32>
    %181 = arith.mulf %3, %180 : vector<17x128xf32>
    %182 = vector.broadcast %169 : f32 to vector<17x128xf32>
    %183 = arith.mulf %5, %182 : vector<17x128xf32>
    %184 = arith.addf %181, %183 : vector<17x128xf32>
    %185 = vector.broadcast %170 : f32 to vector<17x128xf32>
    %186 = arith.mulf %7, %185 : vector<17x128xf32>
    %187 = arith.addf %184, %186 : vector<17x128xf32>
    %188 = vector.broadcast %168 : f32 to vector<17x128xf32>
    %189 = arith.mulf %5, %188 : vector<17x128xf32>
    %190 = vector.broadcast %169 : f32 to vector<17x128xf32>
    %191 = arith.mulf %7, %190 : vector<17x128xf32>
    %192 = arith.addf %189, %191 : vector<17x128xf32>
    %193 = vector.broadcast %170 : f32 to vector<17x128xf32>
    %194 = arith.mulf %9, %193 : vector<17x128xf32>
    %195 = arith.addf %192, %194 : vector<17x128xf32>
    %196 = vector.broadcast %168 : f32 to vector<17x128xf32>
    %197 = arith.mulf %7, %196 : vector<17x128xf32>
    %198 = vector.broadcast %169 : f32 to vector<17x128xf32>
    %199 = arith.mulf %9, %198 : vector<17x128xf32>
    %200 = arith.addf %197, %199 : vector<17x128xf32>
    %201 = vector.broadcast %170 : f32 to vector<17x128xf32>
    %202 = arith.mulf %11, %201 : vector<17x128xf32>
    %203 = arith.addf %200, %202 : vector<17x128xf32>
    %204 = arith.maximumf %179, %187 : vector<17x128xf32>
    %205 = vector.broadcast %171 : f32 to vector<17x128xf32>
    %206 = arith.addf %204, %205 : vector<17x128xf32>
    %cst_45 = arith.constant 0.000000e+00 : f32
    %207 = vector.broadcast %cst_45 : f32 to vector<17x128xf32>
    %208 = arith.maximumf %206, %207 : vector<17x128xf32>
    %c3_46 = arith.constant 3 : index
    %c0_47 = arith.constant 0 : index
    %c0_48 = arith.constant 0 : index
    %209 = vector.load %arg11[%c3_46, %c0_47, %c0_48] : memref<15x17x128xf32, #tpu.memory_space<vmem>>, vector<1x17x128xf32>
    %210 = vector.shape_cast %209 : vector<1x17x128xf32> to vector<17x128xf32>
    %211 = vector.shape_cast %208 : vector<17x128xf32> to vector<1x17x128xf32>
    tpu.vector_store %arg11[%c3_46, %c0_47, %c0_48], %211 {strides = array<i32>} : memref<15x17x128xf32, #tpu.memory_space<vmem>>, vector<1x17x128xf32>,
    %212 = arith.maximumf %195, %203 : vector<17x128xf32>
    %213 = vector.broadcast %171 : f32 to vector<17x128xf32>
    %214 = arith.addf %212, %213 : vector<17x128xf32>
    %cst_49 = arith.constant 0.000000e+00 : f32
    %215 = vector.broadcast %cst_49 : f32 to vector<17x128xf32>
    %216 = arith.maximumf %214, %215 : vector<17x128xf32>
    %c3_50 = arith.constant 3 : index
    %c0_51 = arith.constant 0 : index
    %c0_52 = arith.constant 0 : index
    %217 = vector.load %arg12[%c3_50, %c0_51, %c0_52] : memref<15x17x128xf32, #tpu.memory_space<vmem>>, vector<1x17x128xf32>
    %218 = vector.shape_cast %217 : vector<1x17x128xf32> to vector<17x128xf32>
    %219 = vector.shape_cast %216 : vector<17x128xf32> to vector<1x17x128xf32>
    tpu.vector_store %arg12[%c3_50, %c0_51, %c0_52], %219 {strides = array<i32>} : memref<15x17x128xf32, #tpu.memory_space<vmem>>, vector<1x17x128xf32>,
    %c12 = arith.constant 12 : index
    %220 = memref.load %arg2[%c12] : memref<45xf32, #tpu.memory_space<smem>>
    %c13 = arith.constant 13 : index
    %221 = memref.load %arg2[%c13] : memref<45xf32, #tpu.memory_space<smem>>
    %c14 = arith.constant 14 : index
    %222 = memref.load %arg2[%c14] : memref<45xf32, #tpu.memory_space<smem>>
    %c4_53 = arith.constant 4 : index
    %223 = memref.load %arg3[%c4_53] : memref<15xf32, #tpu.memory_space<smem>>
    %224 = vector.broadcast %220 : f32 to vector<17x128xf32>
    %225 = arith.mulf %1, %224 : vector<17x128xf32>
    %226 = vector.broadcast %221 : f32 to vector<17x128xf32>
    %227 = arith.mulf %3, %226 : vector<17x128xf32>
    %228 = arith.addf %225, %227 : vector<17x128xf32>
    %229 = vector.broadcast %222 : f32 to vector<17x128xf32>
    %230 = arith.mulf %5, %229 : vector<17x128xf32>
    %231 = arith.addf %228, %230 : vector<17x128xf32>
    %232 = vector.broadcast %220 : f32 to vector<17x128xf32>
    %233 = arith.mulf %3, %232 : vector<17x128xf32>
    %234 = vector.broadcast %221 : f32 to vector<17x128xf32>
    %235 = arith.mulf %5, %234 : vector<17x128xf32>
    %236 = arith.addf %233, %235 : vector<17x128xf32>
    %237 = vector.broadcast %222 : f32 to vector<17x128xf32>
    %238 = arith.mulf %7, %237 : vector<17x128xf32>
    %239 = arith.addf %236, %238 : vector<17x128xf32>
    %240 = vector.broadcast %220 : f32 to vector<17x128xf32>
    %241 = arith.mulf %5, %240 : vector<17x128xf32>
    %242 = vector.broadcast %221 : f32 to vector<17x128xf32>
    %243 = arith.mulf %7, %242 : vector<17x128xf32>
    %244 = arith.addf %241, %243 : vector<17x128xf32>
    %245 = vector.broadcast %222 : f32 to vector<17x128xf32>
    %246 = arith.mulf %9, %245 : vector<17x128xf32>
    %247 = arith.addf %244, %246 : vector<17x128xf32>
    %248 = vector.broadcast %220 : f32 to vector<17x128xf32>
    %249 = arith.mulf %7, %248 : vector<17x128xf32>
    %250 = vector.broadcast %221 : f32 to vector<17x128xf32>
    %251 = arith.mulf %9, %250 : vector<17x128xf32>
    %252 = arith.addf %249, %251 : vector<17x128xf32>
    %253 = vector.broadcast %222 : f32 to vector<17x128xf32>
    %254 = arith.mulf %11, %253 : vector<17x128xf32>
    %255 = arith.addf %252, %254 : vector<17x128xf32>
    %256 = arith.maximumf %231, %239 : vector<17x128xf32>
    %257 = vector.broadcast %223 : f32 to vector<17x128xf32>
    %258 = arith.addf %256, %257 : vector<17x128xf32>
    %cst_54 = arith.constant 0.000000e+00 : f32
    %259 = vector.broadcast %cst_54 : f32 to vector<17x128xf32>
    %260 = arith.maximumf %258, %259 : vector<17x128xf32>
    %c4_55 = arith.constant 4 : index
    %c0_56 = arith.constant 0 : index
    %c0_57 = arith.constant 0 : index
    %261 = vector.load %arg11[%c4_55, %c0_56, %c0_57] : memref<15x17x128xf32, #tpu.memory_space<vmem>>, vector<1x17x128xf32>
    %262 = vector.shape_cast %261 : vector<1x17x128xf32> to vector<17x128xf32>
    %263 = vector.shape_cast %260 : vector<17x128xf32> to vector<1x17x128xf32>
    tpu.vector_store %arg11[%c4_55, %c0_56, %c0_57], %263 {strides = array<i32>} : memref<15x17x128xf32, #tpu.memory_space<vmem>>, vector<1x17x128xf32>,
    %264 = arith.maximumf %247, %255 : vector<17x128xf32>
    %265 = vector.broadcast %223 : f32 to vector<17x128xf32>
    %266 = arith.addf %264, %265 : vector<17x128xf32>
    %cst_58 = arith.constant 0.000000e+00 : f32
    %267 = vector.broadcast %cst_58 : f32 to vector<17x128xf32>
    %268 = arith.maximumf %266, %267 : vector<17x128xf32>
    %c4_59 = arith.constant 4 : index
    %c0_60 = arith.constant 0 : index
    %c0_61 = arith.constant 0 : index
    %269 = vector.load %arg12[%c4_59, %c0_60, %c0_61] : memref<15x17x128xf32, #tpu.memory_space<vmem>>, vector<1x17x128xf32>
    %270 = vector.shape_cast %269 : vector<1x17x128xf32> to vector<17x128xf32>
    %271 = vector.shape_cast %268 : vector<17x128xf32> to vector<1x17x128xf32>
    tpu.vector_store %arg12[%c4_59, %c0_60, %c0_61], %271 {strides = array<i32>} : memref<15x17x128xf32, #tpu.memory_space<vmem>>, vector<1x17x128xf32>,
    %c15 = arith.constant 15 : index
    %272 = memref.load %arg2[%c15] : memref<45xf32, #tpu.memory_space<smem>>
    %c16 = arith.constant 16 : index
    %273 = memref.load %arg2[%c16] : memref<45xf32, #tpu.memory_space<smem>>
    %c17 = arith.constant 17 : index
    %274 = memref.load %arg2[%c17] : memref<45xf32, #tpu.memory_space<smem>>
    %c5_62 = arith.constant 5 : index
    %275 = memref.load %arg3[%c5_62] : memref<15xf32, #tpu.memory_space<smem>>
    %276 = vector.broadcast %272 : f32 to vector<17x128xf32>
    %277 = arith.mulf %1, %276 : vector<17x128xf32>
    %278 = vector.broadcast %273 : f32 to vector<17x128xf32>
    %279 = arith.mulf %3, %278 : vector<17x128xf32>
    %280 = arith.addf %277, %279 : vector<17x128xf32>
    %281 = vector.broadcast %274 : f32 to vector<17x128xf32>
    %282 = arith.mulf %5, %281 : vector<17x128xf32>
    %283 = arith.addf %280, %282 : vector<17x128xf32>
    %284 = vector.broadcast %272 : f32 to vector<17x128xf32>
    %285 = arith.mulf %3, %284 : vector<17x128xf32>
    %286 = vector.broadcast %273 : f32 to vector<17x128xf32>
    %287 = arith.mulf %5, %286 : vector<17x128xf32>
    %288 = arith.addf %285, %287 : vector<17x128xf32>
    %289 = vector.broadcast %274 : f32 to vector<17x128xf32>
    %290 = arith.mulf %7, %289 : vector<17x128xf32>
    %291 = arith.addf %288, %290 : vector<17x128xf32>
    %292 = vector.broadcast %272 : f32 to vector<17x128xf32>
    %293 = arith.mulf %5, %292 : vector<17x128xf32>
    %294 = vector.broadcast %273 : f32 to vector<17x128xf32>
    %295 = arith.mulf %7, %294 : vector<17x128xf32>
    %296 = arith.addf %293, %295 : vector<17x128xf32>
    %297 = vector.broadcast %274 : f32 to vector<17x128xf32>
    %298 = arith.mulf %9, %297 : vector<17x128xf32>
    %299 = arith.addf %296, %298 : vector<17x128xf32>
    %300 = vector.broadcast %272 : f32 to vector<17x128xf32>
    %301 = arith.mulf %7, %300 : vector<17x128xf32>
    %302 = vector.broadcast %273 : f32 to vector<17x128xf32>
    %303 = arith.mulf %9, %302 : vector<17x128xf32>
    %304 = arith.addf %301, %303 : vector<17x128xf32>
    %305 = vector.broadcast %274 : f32 to vector<17x128xf32>
    %306 = arith.mulf %11, %305 : vector<17x128xf32>
    %307 = arith.addf %304, %306 : vector<17x128xf32>
    %308 = arith.maximumf %283, %291 : vector<17x128xf32>
    %309 = vector.broadcast %275 : f32 to vector<17x128xf32>
    %310 = arith.addf %308, %309 : vector<17x128xf32>
    %cst_63 = arith.constant 0.000000e+00 : f32
    %311 = vector.broadcast %cst_63 : f32 to vector<17x128xf32>
    %312 = arith.maximumf %310, %311 : vector<17x128xf32>
    %c5_64 = arith.constant 5 : index
    %c0_65 = arith.constant 0 : index
    %c0_66 = arith.constant 0 : index
    %313 = vector.load %arg11[%c5_64, %c0_65, %c0_66] : memref<15x17x128xf32, #tpu.memory_space<vmem>>, vector<1x17x128xf32>
    %314 = vector.shape_cast %313 : vector<1x17x128xf32> to vector<17x128xf32>
    %315 = vector.shape_cast %312 : vector<17x128xf32> to vector<1x17x128xf32>
    tpu.vector_store %arg11[%c5_64, %c0_65, %c0_66], %315 {strides = array<i32>} : memref<15x17x128xf32, #tpu.memory_space<vmem>>, vector<1x17x128xf32>,
    %316 = arith.maximumf %299, %307 : vector<17x128xf32>
    %317 = vector.broadcast %275 : f32 to vector<17x128xf32>
    %318 = arith.addf %316, %317 : vector<17x128xf32>
    %cst_67 = arith.constant 0.000000e+00 : f32
    %319 = vector.broadcast %cst_67 : f32 to vector<17x128xf32>
    %320 = arith.maximumf %318, %319 : vector<17x128xf32>
    %c5_68 = arith.constant 5 : index
    %c0_69 = arith.constant 0 : index
    %c0_70 = arith.constant 0 : index
    %321 = vector.load %arg12[%c5_68, %c0_69, %c0_70] : memref<15x17x128xf32, #tpu.memory_space<vmem>>, vector<1x17x128xf32>
    %322 = vector.shape_cast %321 : vector<1x17x128xf32> to vector<17x128xf32>
    %323 = vector.shape_cast %320 : vector<17x128xf32> to vector<1x17x128xf32>
    tpu.vector_store %arg12[%c5_68, %c0_69, %c0_70], %323 {strides = array<i32>} : memref<15x17x128xf32, #tpu.memory_space<vmem>>, vector<1x17x128xf32>,
    %c18 = arith.constant 18 : index
    %324 = memref.load %arg2[%c18] : memref<45xf32, #tpu.memory_space<smem>>
    %c19 = arith.constant 19 : index
    %325 = memref.load %arg2[%c19] : memref<45xf32, #tpu.memory_space<smem>>
    %c20 = arith.constant 20 : index
    %326 = memref.load %arg2[%c20] : memref<45xf32, #tpu.memory_space<smem>>
    %c6_71 = arith.constant 6 : index
    %327 = memref.load %arg3[%c6_71] : memref<15xf32, #tpu.memory_space<smem>>
    %328 = vector.broadcast %324 : f32 to vector<17x128xf32>
    %329 = arith.mulf %1, %328 : vector<17x128xf32>
    %330 = vector.broadcast %325 : f32 to vector<17x128xf32>
    %331 = arith.mulf %3, %330 : vector<17x128xf32>
    %332 = arith.addf %329, %331 : vector<17x128xf32>
    %333 = vector.broadcast %326 : f32 to vector<17x128xf32>
    %334 = arith.mulf %5, %333 : vector<17x128xf32>
    %335 = arith.addf %332, %334 : vector<17x128xf32>
    %336 = vector.broadcast %324 : f32 to vector<17x128xf32>
    %337 = arith.mulf %3, %336 : vector<17x128xf32>
    %338 = vector.broadcast %325 : f32 to vector<17x128xf32>
    %339 = arith.mulf %5, %338 : vector<17x128xf32>
    %340 = arith.addf %337, %339 : vector<17x128xf32>
    %341 = vector.broadcast %326 : f32 to vector<17x128xf32>
    %342 = arith.mulf %7, %341 : vector<17x128xf32>
    %343 = arith.addf %340, %342 : vector<17x128xf32>
    %344 = vector.broadcast %324 : f32 to vector<17x128xf32>
    %345 = arith.mulf %5, %344 : vector<17x128xf32>
    %346 = vector.broadcast %325 : f32 to vector<17x128xf32>
    %347 = arith.mulf %7, %346 : vector<17x128xf32>
    %348 = arith.addf %345, %347 : vector<17x128xf32>
    %349 = vector.broadcast %326 : f32 to vector<17x128xf32>
    %350 = arith.mulf %9, %349 : vector<17x128xf32>
    %351 = arith.addf %348, %350 : vector<17x128xf32>
    %352 = vector.broadcast %324 : f32 to vector<17x128xf32>
    %353 = arith.mulf %7, %352 : vector<17x128xf32>
    %354 = vector.broadcast %325 : f32 to vector<17x128xf32>
    %355 = arith.mulf %9, %354 : vector<17x128xf32>
    %356 = arith.addf %353, %355 : vector<17x128xf32>
    %357 = vector.broadcast %326 : f32 to vector<17x128xf32>
    %358 = arith.mulf %11, %357 : vector<17x128xf32>
    %359 = arith.addf %356, %358 : vector<17x128xf32>
    %360 = arith.maximumf %335, %343 : vector<17x128xf32>
    %361 = vector.broadcast %327 : f32 to vector<17x128xf32>
    %362 = arith.addf %360, %361 : vector<17x128xf32>
    %cst_72 = arith.constant 0.000000e+00 : f32
    %363 = vector.broadcast %cst_72 : f32 to vector<17x128xf32>
    %364 = arith.maximumf %362, %363 : vector<17x128xf32>
    %c6_73 = arith.constant 6 : index
    %c0_74 = arith.constant 0 : index
    %c0_75 = arith.constant 0 : index
    %365 = vector.load %arg11[%c6_73, %c0_74, %c0_75] : memref<15x17x128xf32, #tpu.memory_space<vmem>>, vector<1x17x128xf32>
    %366 = vector.shape_cast %365 : vector<1x17x128xf32> to vector<17x128xf32>
    %367 = vector.shape_cast %364 : vector<17x128xf32> to vector<1x17x128xf32>
    tpu.vector_store %arg11[%c6_73, %c0_74, %c0_75], %367 {strides = array<i32>} : memref<15x17x128xf32, #tpu.memory_space<vmem>>, vector<1x17x128xf32>,
    %368 = arith.maximumf %351, %359 : vector<17x128xf32>
    %369 = vector.broadcast %327 : f32 to vector<17x128xf32>
    %370 = arith.addf %368, %369 : vector<17x128xf32>
    %cst_76 = arith.constant 0.000000e+00 : f32
    %371 = vector.broadcast %cst_76 : f32 to vector<17x128xf32>
    %372 = arith.maximumf %370, %371 : vector<17x128xf32>
    %c6_77 = arith.constant 6 : index
    %c0_78 = arith.constant 0 : index
    %c0_79 = arith.constant 0 : index
    %373 = vector.load %arg12[%c6_77, %c0_78, %c0_79] : memref<15x17x128xf32, #tpu.memory_space<vmem>>, vector<1x17x128xf32>
    %374 = vector.shape_cast %373 : vector<1x17x128xf32> to vector<17x128xf32>
    %375 = vector.shape_cast %372 : vector<17x128xf32> to vector<1x17x128xf32>
    tpu.vector_store %arg12[%c6_77, %c0_78, %c0_79], %375 {strides = array<i32>} : memref<15x17x128xf32, #tpu.memory_space<vmem>>, vector<1x17x128xf32>,
    %c21 = arith.constant 21 : index
    %376 = memref.load %arg2[%c21] : memref<45xf32, #tpu.memory_space<smem>>
    %c22 = arith.constant 22 : index
    %377 = memref.load %arg2[%c22] : memref<45xf32, #tpu.memory_space<smem>>
    %c23 = arith.constant 23 : index
    %378 = memref.load %arg2[%c23] : memref<45xf32, #tpu.memory_space<smem>>
    %c7_80 = arith.constant 7 : index
    %379 = memref.load %arg3[%c7_80] : memref<15xf32, #tpu.memory_space<smem>>
    %380 = vector.broadcast %376 : f32 to vector<17x128xf32>
    %381 = arith.mulf %1, %380 : vector<17x128xf32>
    %382 = vector.broadcast %377 : f32 to vector<17x128xf32>
    %383 = arith.mulf %3, %382 : vector<17x128xf32>
    %384 = arith.addf %381, %383 : vector<17x128xf32>
    %385 = vector.broadcast %378 : f32 to vector<17x128xf32>
    %386 = arith.mulf %5, %385 : vector<17x128xf32>
    %387 = arith.addf %384, %386 : vector<17x128xf32>
    %388 = vector.broadcast %376 : f32 to vector<17x128xf32>
    %389 = arith.mulf %3, %388 : vector<17x128xf32>
    %390 = vector.broadcast %377 : f32 to vector<17x128xf32>
    %391 = arith.mulf %5, %390 : vector<17x128xf32>
    %392 = arith.addf %389, %391 : vector<17x128xf32>
    %393 = vector.broadcast %378 : f32 to vector<17x128xf32>
    %394 = arith.mulf %7, %393 : vector<17x128xf32>
    %395 = arith.addf %392, %394 : vector<17x128xf32>
    %396 = vector.broadcast %376 : f32 to vector<17x128xf32>
    %397 = arith.mulf %5, %396 : vector<17x128xf32>
    %398 = vector.broadcast %377 : f32 to vector<17x128xf32>
    %399 = arith.mulf %7, %398 : vector<17x128xf32>
    %400 = arith.addf %397, %399 : vector<17x128xf32>
    %401 = vector.broadcast %378 : f32 to vector<17x128xf32>
    %402 = arith.mulf %9, %401 : vector<17x128xf32>
    %403 = arith.addf %400, %402 : vector<17x128xf32>
    %404 = vector.broadcast %376 : f32 to vector<17x128xf32>
    %405 = arith.mulf %7, %404 : vector<17x128xf32>
    %406 = vector.broadcast %377 : f32 to vector<17x128xf32>
    %407 = arith.mulf %9, %406 : vector<17x128xf32>
    %408 = arith.addf %405, %407 : vector<17x128xf32>
    %409 = vector.broadcast %378 : f32 to vector<17x128xf32>
    %410 = arith.mulf %11, %409 : vector<17x128xf32>
    %411 = arith.addf %408, %410 : vector<17x128xf32>
    %412 = arith.maximumf %387, %395 : vector<17x128xf32>
    %413 = vector.broadcast %379 : f32 to vector<17x128xf32>
    %414 = arith.addf %412, %413 : vector<17x128xf32>
    %cst_81 = arith.constant 0.000000e+00 : f32
    %415 = vector.broadcast %cst_81 : f32 to vector<17x128xf32>
    %416 = arith.maximumf %414, %415 : vector<17x128xf32>
    %c7_82 = arith.constant 7 : index
    %c0_83 = arith.constant 0 : index
    %c0_84 = arith.constant 0 : index
    %417 = vector.load %arg11[%c7_82, %c0_83, %c0_84] : memref<15x17x128xf32, #tpu.memory_space<vmem>>, vector<1x17x128xf32>
    %418 = vector.shape_cast %417 : vector<1x17x128xf32> to vector<17x128xf32>
    %419 = vector.shape_cast %416 : vector<17x128xf32> to vector<1x17x128xf32>
    tpu.vector_store %arg11[%c7_82, %c0_83, %c0_84], %419 {strides = array<i32>} : memref<15x17x128xf32, #tpu.memory_space<vmem>>, vector<1x17x128xf32>,
    %420 = arith.maximumf %403, %411 : vector<17x128xf32>
    %421 = vector.broadcast %379 : f32 to vector<17x128xf32>
    %422 = arith.addf %420, %421 : vector<17x128xf32>
    %cst_85 = arith.constant 0.000000e+00 : f32
    %423 = vector.broadcast %cst_85 : f32 to vector<17x128xf32>
    %424 = arith.maximumf %422, %423 : vector<17x128xf32>
    %c7_86 = arith.constant 7 : index
    %c0_87 = arith.constant 0 : index
    %c0_88 = arith.constant 0 : index
    %425 = vector.load %arg12[%c7_86, %c0_87, %c0_88] : memref<15x17x128xf32, #tpu.memory_space<vmem>>, vector<1x17x128xf32>
    %426 = vector.shape_cast %425 : vector<1x17x128xf32> to vector<17x128xf32>
    %427 = vector.shape_cast %424 : vector<17x128xf32> to vector<1x17x128xf32>
    tpu.vector_store %arg12[%c7_86, %c0_87, %c0_88], %427 {strides = array<i32>} : memref<15x17x128xf32, #tpu.memory_space<vmem>>, vector<1x17x128xf32>,
    %c24 = arith.constant 24 : index
    %428 = memref.load %arg2[%c24] : memref<45xf32, #tpu.memory_space<smem>>
    %c25 = arith.constant 25 : index
    %429 = memref.load %arg2[%c25] : memref<45xf32, #tpu.memory_space<smem>>
    %c26 = arith.constant 26 : index
    %430 = memref.load %arg2[%c26] : memref<45xf32, #tpu.memory_space<smem>>
    %c8_89 = arith.constant 8 : index
    %431 = memref.load %arg3[%c8_89] : memref<15xf32, #tpu.memory_space<smem>>
    %432 = vector.broadcast %428 : f32 to vector<17x128xf32>
    %433 = arith.mulf %1, %432 : vector<17x128xf32>
    %434 = vector.broadcast %429 : f32 to vector<17x128xf32>
    %435 = arith.mulf %3, %434 : vector<17x128xf32>
    %436 = arith.addf %433, %435 : vector<17x128xf32>
    %437 = vector.broadcast %430 : f32 to vector<17x128xf32>
    %438 = arith.mulf %5, %437 : vector<17x128xf32>
    %439 = arith.addf %436, %438 : vector<17x128xf32>
    %440 = vector.broadcast %428 : f32 to vector<17x128xf32>
    %441 = arith.mulf %3, %440 : vector<17x128xf32>
    %442 = vector.broadcast %429 : f32 to vector<17x128xf32>
    %443 = arith.mulf %5, %442 : vector<17x128xf32>
    %444 = arith.addf %441, %443 : vector<17x128xf32>
    %445 = vector.broadcast %430 : f32 to vector<17x128xf32>
    %446 = arith.mulf %7, %445 : vector<17x128xf32>
    %447 = arith.addf %444, %446 : vector<17x128xf32>
    %448 = vector.broadcast %428 : f32 to vector<17x128xf32>
    %449 = arith.mulf %5, %448 : vector<17x128xf32>
    %450 = vector.broadcast %429 : f32 to vector<17x128xf32>
    %451 = arith.mulf %7, %450 : vector<17x128xf32>
    %452 = arith.addf %449, %451 : vector<17x128xf32>
    %453 = vector.broadcast %430 : f32 to vector<17x128xf32>
    %454 = arith.mulf %9, %453 : vector<17x128xf32>
    %455 = arith.addf %452, %454 : vector<17x128xf32>
    %456 = vector.broadcast %428 : f32 to vector<17x128xf32>
    %457 = arith.mulf %7, %456 : vector<17x128xf32>
    %458 = vector.broadcast %429 : f32 to vector<17x128xf32>
    %459 = arith.mulf %9, %458 : vector<17x128xf32>
    %460 = arith.addf %457, %459 : vector<17x128xf32>
    %461 = vector.broadcast %430 : f32 to vector<17x128xf32>
    %462 = arith.mulf %11, %461 : vector<17x128xf32>
    %463 = arith.addf %460, %462 : vector<17x128xf32>
    %464 = arith.maximumf %439, %447 : vector<17x128xf32>
    %465 = vector.broadcast %431 : f32 to vector<17x128xf32>
    %466 = arith.addf %464, %465 : vector<17x128xf32>
    %cst_90 = arith.constant 0.000000e+00 : f32
    %467 = vector.broadcast %cst_90 : f32 to vector<17x128xf32>
    %468 = arith.maximumf %466, %467 : vector<17x128xf32>
    %c8_91 = arith.constant 8 : index
    %c0_92 = arith.constant 0 : index
    %c0_93 = arith.constant 0 : index
    %469 = vector.load %arg11[%c8_91, %c0_92, %c0_93] : memref<15x17x128xf32, #tpu.memory_space<vmem>>, vector<1x17x128xf32>
    %470 = vector.shape_cast %469 : vector<1x17x128xf32> to vector<17x128xf32>
    %471 = vector.shape_cast %468 : vector<17x128xf32> to vector<1x17x128xf32>
    tpu.vector_store %arg11[%c8_91, %c0_92, %c0_93], %471 {strides = array<i32>} : memref<15x17x128xf32, #tpu.memory_space<vmem>>, vector<1x17x128xf32>,
    %472 = arith.maximumf %455, %463 : vector<17x128xf32>
    %473 = vector.broadcast %431 : f32 to vector<17x128xf32>
    %474 = arith.addf %472, %473 : vector<17x128xf32>
    %cst_94 = arith.constant 0.000000e+00 : f32
    %475 = vector.broadcast %cst_94 : f32 to vector<17x128xf32>
    %476 = arith.maximumf %474, %475 : vector<17x128xf32>
    %c8_95 = arith.constant 8 : index
    %c0_96 = arith.constant 0 : index
    %c0_97 = arith.constant 0 : index
    %477 = vector.load %arg12[%c8_95, %c0_96, %c0_97] : memref<15x17x128xf32, #tpu.memory_space<vmem>>, vector<1x17x128xf32>
    %478 = vector.shape_cast %477 : vector<1x17x128xf32> to vector<17x128xf32>
    %479 = vector.shape_cast %476 : vector<17x128xf32> to vector<1x17x128xf32>
    tpu.vector_store %arg12[%c8_95, %c0_96, %c0_97], %479 {strides = array<i32>} : memref<15x17x128xf32, #tpu.memory_space<vmem>>, vector<1x17x128xf32>,
    %c27 = arith.constant 27 : index
    %480 = memref.load %arg2[%c27] : memref<45xf32, #tpu.memory_space<smem>>
    %c28 = arith.constant 28 : index
    %481 = memref.load %arg2[%c28] : memref<45xf32, #tpu.memory_space<smem>>
    %c29 = arith.constant 29 : index
    %482 = memref.load %arg2[%c29] : memref<45xf32, #tpu.memory_space<smem>>
    %c9_98 = arith.constant 9 : index
    %483 = memref.load %arg3[%c9_98] : memref<15xf32, #tpu.memory_space<smem>>
    %484 = vector.broadcast %480 : f32 to vector<17x128xf32>
    %485 = arith.mulf %1, %484 : vector<17x128xf32>
    %486 = vector.broadcast %481 : f32 to vector<17x128xf32>
    %487 = arith.mulf %3, %486 : vector<17x128xf32>
    %488 = arith.addf %485, %487 : vector<17x128xf32>
    %489 = vector.broadcast %482 : f32 to vector<17x128xf32>
    %490 = arith.mulf %5, %489 : vector<17x128xf32>
    %491 = arith.addf %488, %490 : vector<17x128xf32>
    %492 = vector.broadcast %480 : f32 to vector<17x128xf32>
    %493 = arith.mulf %3, %492 : vector<17x128xf32>
    %494 = vector.broadcast %481 : f32 to vector<17x128xf32>
    %495 = arith.mulf %5, %494 : vector<17x128xf32>
    %496 = arith.addf %493, %495 : vector<17x128xf32>
    %497 = vector.broadcast %482 : f32 to vector<17x128xf32>
    %498 = arith.mulf %7, %497 : vector<17x128xf32>
    %499 = arith.addf %496, %498 : vector<17x128xf32>
    %500 = vector.broadcast %480 : f32 to vector<17x128xf32>
    %501 = arith.mulf %5, %500 : vector<17x128xf32>
    %502 = vector.broadcast %481 : f32 to vector<17x128xf32>
    %503 = arith.mulf %7, %502 : vector<17x128xf32>
    %504 = arith.addf %501, %503 : vector<17x128xf32>
    %505 = vector.broadcast %482 : f32 to vector<17x128xf32>
    %506 = arith.mulf %9, %505 : vector<17x128xf32>
    %507 = arith.addf %504, %506 : vector<17x128xf32>
    %508 = vector.broadcast %480 : f32 to vector<17x128xf32>
    %509 = arith.mulf %7, %508 : vector<17x128xf32>
    %510 = vector.broadcast %481 : f32 to vector<17x128xf32>
    %511 = arith.mulf %9, %510 : vector<17x128xf32>
    %512 = arith.addf %509, %511 : vector<17x128xf32>
    %513 = vector.broadcast %482 : f32 to vector<17x128xf32>
    %514 = arith.mulf %11, %513 : vector<17x128xf32>
    %515 = arith.addf %512, %514 : vector<17x128xf32>
    %516 = arith.maximumf %491, %499 : vector<17x128xf32>
    %517 = vector.broadcast %483 : f32 to vector<17x128xf32>
    %518 = arith.addf %516, %517 : vector<17x128xf32>
    %cst_99 = arith.constant 0.000000e+00 : f32
    %519 = vector.broadcast %cst_99 : f32 to vector<17x128xf32>
    %520 = arith.maximumf %518, %519 : vector<17x128xf32>
    %c9_100 = arith.constant 9 : index
    %c0_101 = arith.constant 0 : index
    %c0_102 = arith.constant 0 : index
    %521 = vector.load %arg11[%c9_100, %c0_101, %c0_102] : memref<15x17x128xf32, #tpu.memory_space<vmem>>, vector<1x17x128xf32>
    %522 = vector.shape_cast %521 : vector<1x17x128xf32> to vector<17x128xf32>
    %523 = vector.shape_cast %520 : vector<17x128xf32> to vector<1x17x128xf32>
    tpu.vector_store %arg11[%c9_100, %c0_101, %c0_102], %523 {strides = array<i32>} : memref<15x17x128xf32, #tpu.memory_space<vmem>>, vector<1x17x128xf32>,
    %524 = arith.maximumf %507, %515 : vector<17x128xf32>
    %525 = vector.broadcast %483 : f32 to vector<17x128xf32>
    %526 = arith.addf %524, %525 : vector<17x128xf32>
    %cst_103 = arith.constant 0.000000e+00 : f32
    %527 = vector.broadcast %cst_103 : f32 to vector<17x128xf32>
    %528 = arith.maximumf %526, %527 : vector<17x128xf32>
    %c9_104 = arith.constant 9 : index
    %c0_105 = arith.constant 0 : index
    %c0_106 = arith.constant 0 : index
    %529 = vector.load %arg12[%c9_104, %c0_105, %c0_106] : memref<15x17x128xf32, #tpu.memory_space<vmem>>, vector<1x17x128xf32>
    %530 = vector.shape_cast %529 : vector<1x17x128xf32> to vector<17x128xf32>
    %531 = vector.shape_cast %528 : vector<17x128xf32> to vector<1x17x128xf32>
    tpu.vector_store %arg12[%c9_104, %c0_105, %c0_106], %531 {strides = array<i32>} : memref<15x17x128xf32, #tpu.memory_space<vmem>>, vector<1x17x128xf32>,
    %c30 = arith.constant 30 : index
    %532 = memref.load %arg2[%c30] : memref<45xf32, #tpu.memory_space<smem>>
    %c31 = arith.constant 31 : index
    %533 = memref.load %arg2[%c31] : memref<45xf32, #tpu.memory_space<smem>>
    %c32 = arith.constant 32 : index
    %534 = memref.load %arg2[%c32] : memref<45xf32, #tpu.memory_space<smem>>
    %c10_107 = arith.constant 10 : index
    %535 = memref.load %arg3[%c10_107] : memref<15xf32, #tpu.memory_space<smem>>
    %536 = vector.broadcast %532 : f32 to vector<17x128xf32>
    %537 = arith.mulf %1, %536 : vector<17x128xf32>
    %538 = vector.broadcast %533 : f32 to vector<17x128xf32>
    %539 = arith.mulf %3, %538 : vector<17x128xf32>
    %540 = arith.addf %537, %539 : vector<17x128xf32>
    %541 = vector.broadcast %534 : f32 to vector<17x128xf32>
    %542 = arith.mulf %5, %541 : vector<17x128xf32>
    %543 = arith.addf %540, %542 : vector<17x128xf32>
    %544 = vector.broadcast %532 : f32 to vector<17x128xf32>
    %545 = arith.mulf %3, %544 : vector<17x128xf32>
    %546 = vector.broadcast %533 : f32 to vector<17x128xf32>
    %547 = arith.mulf %5, %546 : vector<17x128xf32>
    %548 = arith.addf %545, %547 : vector<17x128xf32>
    %549 = vector.broadcast %534 : f32 to vector<17x128xf32>
    %550 = arith.mulf %7, %549 : vector<17x128xf32>
    %551 = arith.addf %548, %550 : vector<17x128xf32>
    %552 = vector.broadcast %532 : f32 to vector<17x128xf32>
    %553 = arith.mulf %5, %552 : vector<17x128xf32>
    %554 = vector.broadcast %533 : f32 to vector<17x128xf32>
    %555 = arith.mulf %7, %554 : vector<17x128xf32>
    %556 = arith.addf %553, %555 : vector<17x128xf32>
    %557 = vector.broadcast %534 : f32 to vector<17x128xf32>
    %558 = arith.mulf %9, %557 : vector<17x128xf32>
    %559 = arith.addf %556, %558 : vector<17x128xf32>
    %560 = vector.broadcast %532 : f32 to vector<17x128xf32>
    %561 = arith.mulf %7, %560 : vector<17x128xf32>
    %562 = vector.broadcast %533 : f32 to vector<17x128xf32>
    %563 = arith.mulf %9, %562 : vector<17x128xf32>
    %564 = arith.addf %561, %563 : vector<17x128xf32>
    %565 = vector.broadcast %534 : f32 to vector<17x128xf32>
    %566 = arith.mulf %11, %565 : vector<17x128xf32>
    %567 = arith.addf %564, %566 : vector<17x128xf32>
    %568 = arith.maximumf %543, %551 : vector<17x128xf32>
    %569 = vector.broadcast %535 : f32 to vector<17x128xf32>
    %570 = arith.addf %568, %569 : vector<17x128xf32>
    %cst_108 = arith.constant 0.000000e+00 : f32
    %571 = vector.broadcast %cst_108 : f32 to vector<17x128xf32>
    %572 = arith.maximumf %570, %571 : vector<17x128xf32>
    %c10_109 = arith.constant 10 : index
    %c0_110 = arith.constant 0 : index
    %c0_111 = arith.constant 0 : index
    %573 = vector.load %arg11[%c10_109, %c0_110, %c0_111] : memref<15x17x128xf32, #tpu.memory_space<vmem>>, vector<1x17x128xf32>
    %574 = vector.shape_cast %573 : vector<1x17x128xf32> to vector<17x128xf32>
    %575 = vector.shape_cast %572 : vector<17x128xf32> to vector<1x17x128xf32>
    tpu.vector_store %arg11[%c10_109, %c0_110, %c0_111], %575 {strides = array<i32>} : memref<15x17x128xf32, #tpu.memory_space<vmem>>, vector<1x17x128xf32>,
    %576 = arith.maximumf %559, %567 : vector<17x128xf32>
    %577 = vector.broadcast %535 : f32 to vector<17x128xf32>
    %578 = arith.addf %576, %577 : vector<17x128xf32>
    %cst_112 = arith.constant 0.000000e+00 : f32
    %579 = vector.broadcast %cst_112 : f32 to vector<17x128xf32>
    %580 = arith.maximumf %578, %579 : vector<17x128xf32>
    %c10_113 = arith.constant 10 : index
    %c0_114 = arith.constant 0 : index
    %c0_115 = arith.constant 0 : index
    %581 = vector.load %arg12[%c10_113, %c0_114, %c0_115] : memref<15x17x128xf32, #tpu.memory_space<vmem>>, vector<1x17x128xf32>
    %582 = vector.shape_cast %581 : vector<1x17x128xf32> to vector<17x128xf32>
    %583 = vector.shape_cast %580 : vector<17x128xf32> to vector<1x17x128xf32>
    tpu.vector_store %arg12[%c10_113, %c0_114, %c0_115], %583 {strides = array<i32>} : memref<15x17x128xf32, #tpu.memory_space<vmem>>, vector<1x17x128xf32>,
    %c33 = arith.constant 33 : index
    %584 = memref.load %arg2[%c33] : memref<45xf32, #tpu.memory_space<smem>>
    %c34 = arith.constant 34 : index
    %585 = memref.load %arg2[%c34] : memref<45xf32, #tpu.memory_space<smem>>
    %c35 = arith.constant 35 : index
    %586 = memref.load %arg2[%c35] : memref<45xf32, #tpu.memory_space<smem>>
    %c11_116 = arith.constant 11 : index
    %587 = memref.load %arg3[%c11_116] : memref<15xf32, #tpu.memory_space<smem>>
    %588 = vector.broadcast %584 : f32 to vector<17x128xf32>
    %589 = arith.mulf %1, %588 : vector<17x128xf32>
    %590 = vector.broadcast %585 : f32 to vector<17x128xf32>
    %591 = arith.mulf %3, %590 : vector<17x128xf32>
    %592 = arith.addf %589, %591 : vector<17x128xf32>
    %593 = vector.broadcast %586 : f32 to vector<17x128xf32>
    %594 = arith.mulf %5, %593 : vector<17x128xf32>
    %595 = arith.addf %592, %594 : vector<17x128xf32>
    %596 = vector.broadcast %584 : f32 to vector<17x128xf32>
    %597 = arith.mulf %3, %596 : vector<17x128xf32>
    %598 = vector.broadcast %585 : f32 to vector<17x128xf32>
    %599 = arith.mulf %5, %598 : vector<17x128xf32>
    %600 = arith.addf %597, %599 : vector<17x128xf32>
    %601 = vector.broadcast %586 : f32 to vector<17x128xf32>
    %602 = arith.mulf %7, %601 : vector<17x128xf32>
    %603 = arith.addf %600, %602 : vector<17x128xf32>
    %604 = vector.broadcast %584 : f32 to vector<17x128xf32>
    %605 = arith.mulf %5, %604 : vector<17x128xf32>
    %606 = vector.broadcast %585 : f32 to vector<17x128xf32>
    %607 = arith.mulf %7, %606 : vector<17x128xf32>
    %608 = arith.addf %605, %607 : vector<17x128xf32>
    %609 = vector.broadcast %586 : f32 to vector<17x128xf32>
    %610 = arith.mulf %9, %609 : vector<17x128xf32>
    %611 = arith.addf %608, %610 : vector<17x128xf32>
    %612 = vector.broadcast %584 : f32 to vector<17x128xf32>
    %613 = arith.mulf %7, %612 : vector<17x128xf32>
    %614 = vector.broadcast %585 : f32 to vector<17x128xf32>
    %615 = arith.mulf %9, %614 : vector<17x128xf32>
    %616 = arith.addf %613, %615 : vector<17x128xf32>
    %617 = vector.broadcast %586 : f32 to vector<17x128xf32>
    %618 = arith.mulf %11, %617 : vector<17x128xf32>
    %619 = arith.addf %616, %618 : vector<17x128xf32>
    %620 = arith.maximumf %595, %603 : vector<17x128xf32>
    %621 = vector.broadcast %587 : f32 to vector<17x128xf32>
    %622 = arith.addf %620, %621 : vector<17x128xf32>
    %cst_117 = arith.constant 0.000000e+00 : f32
    %623 = vector.broadcast %cst_117 : f32 to vector<17x128xf32>
    %624 = arith.maximumf %622, %623 : vector<17x128xf32>
    %c11_118 = arith.constant 11 : index
    %c0_119 = arith.constant 0 : index
    %c0_120 = arith.constant 0 : index
    %625 = vector.load %arg11[%c11_118, %c0_119, %c0_120] : memref<15x17x128xf32, #tpu.memory_space<vmem>>, vector<1x17x128xf32>
    %626 = vector.shape_cast %625 : vector<1x17x128xf32> to vector<17x128xf32>
    %627 = vector.shape_cast %624 : vector<17x128xf32> to vector<1x17x128xf32>
    tpu.vector_store %arg11[%c11_118, %c0_119, %c0_120], %627 {strides = array<i32>} : memref<15x17x128xf32, #tpu.memory_space<vmem>>, vector<1x17x128xf32>,
    %628 = arith.maximumf %611, %619 : vector<17x128xf32>
    %629 = vector.broadcast %587 : f32 to vector<17x128xf32>
    %630 = arith.addf %628, %629 : vector<17x128xf32>
    %cst_121 = arith.constant 0.000000e+00 : f32
    %631 = vector.broadcast %cst_121 : f32 to vector<17x128xf32>
    %632 = arith.maximumf %630, %631 : vector<17x128xf32>
    %c11_122 = arith.constant 11 : index
    %c0_123 = arith.constant 0 : index
    %c0_124 = arith.constant 0 : index
    %633 = vector.load %arg12[%c11_122, %c0_123, %c0_124] : memref<15x17x128xf32, #tpu.memory_space<vmem>>, vector<1x17x128xf32>
    %634 = vector.shape_cast %633 : vector<1x17x128xf32> to vector<17x128xf32>
    %635 = vector.shape_cast %632 : vector<17x128xf32> to vector<1x17x128xf32>
    tpu.vector_store %arg12[%c11_122, %c0_123, %c0_124], %635 {strides = array<i32>} : memref<15x17x128xf32, #tpu.memory_space<vmem>>, vector<1x17x128xf32>,
    %c36 = arith.constant 36 : index
    %636 = memref.load %arg2[%c36] : memref<45xf32, #tpu.memory_space<smem>>
    %c37 = arith.constant 37 : index
    %637 = memref.load %arg2[%c37] : memref<45xf32, #tpu.memory_space<smem>>
    %c38 = arith.constant 38 : index
    %638 = memref.load %arg2[%c38] : memref<45xf32, #tpu.memory_space<smem>>
    %c12_125 = arith.constant 12 : index
    %639 = memref.load %arg3[%c12_125] : memref<15xf32, #tpu.memory_space<smem>>
    %640 = vector.broadcast %636 : f32 to vector<17x128xf32>
    %641 = arith.mulf %1, %640 : vector<17x128xf32>
    %642 = vector.broadcast %637 : f32 to vector<17x128xf32>
    %643 = arith.mulf %3, %642 : vector<17x128xf32>
    %644 = arith.addf %641, %643 : vector<17x128xf32>
    %645 = vector.broadcast %638 : f32 to vector<17x128xf32>
    %646 = arith.mulf %5, %645 : vector<17x128xf32>
    %647 = arith.addf %644, %646 : vector<17x128xf32>
    %648 = vector.broadcast %636 : f32 to vector<17x128xf32>
    %649 = arith.mulf %3, %648 : vector<17x128xf32>
    %650 = vector.broadcast %637 : f32 to vector<17x128xf32>
    %651 = arith.mulf %5, %650 : vector<17x128xf32>
    %652 = arith.addf %649, %651 : vector<17x128xf32>
    %653 = vector.broadcast %638 : f32 to vector<17x128xf32>
    %654 = arith.mulf %7, %653 : vector<17x128xf32>
    %655 = arith.addf %652, %654 : vector<17x128xf32>
    %656 = vector.broadcast %636 : f32 to vector<17x128xf32>
    %657 = arith.mulf %5, %656 : vector<17x128xf32>
    %658 = vector.broadcast %637 : f32 to vector<17x128xf32>
    %659 = arith.mulf %7, %658 : vector<17x128xf32>
    %660 = arith.addf %657, %659 : vector<17x128xf32>
    %661 = vector.broadcast %638 : f32 to vector<17x128xf32>
    %662 = arith.mulf %9, %661 : vector<17x128xf32>
    %663 = arith.addf %660, %662 : vector<17x128xf32>
    %664 = vector.broadcast %636 : f32 to vector<17x128xf32>
    %665 = arith.mulf %7, %664 : vector<17x128xf32>
    %666 = vector.broadcast %637 : f32 to vector<17x128xf32>
    %667 = arith.mulf %9, %666 : vector<17x128xf32>
    %668 = arith.addf %665, %667 : vector<17x128xf32>
    %669 = vector.broadcast %638 : f32 to vector<17x128xf32>
    %670 = arith.mulf %11, %669 : vector<17x128xf32>
    %671 = arith.addf %668, %670 : vector<17x128xf32>
    %672 = arith.maximumf %647, %655 : vector<17x128xf32>
    %673 = vector.broadcast %639 : f32 to vector<17x128xf32>
    %674 = arith.addf %672, %673 : vector<17x128xf32>
    %cst_126 = arith.constant 0.000000e+00 : f32
    %675 = vector.broadcast %cst_126 : f32 to vector<17x128xf32>
    %676 = arith.maximumf %674, %675 : vector<17x128xf32>
    %c12_127 = arith.constant 12 : index
    %c0_128 = arith.constant 0 : index
    %c0_129 = arith.constant 0 : index
    %677 = vector.load %arg11[%c12_127, %c0_128, %c0_129] : memref<15x17x128xf32, #tpu.memory_space<vmem>>, vector<1x17x128xf32>
    %678 = vector.shape_cast %677 : vector<1x17x128xf32> to vector<17x128xf32>
    %679 = vector.shape_cast %676 : vector<17x128xf32> to vector<1x17x128xf32>
    tpu.vector_store %arg11[%c12_127, %c0_128, %c0_129], %679 {strides = array<i32>} : memref<15x17x128xf32, #tpu.memory_space<vmem>>, vector<1x17x128xf32>,
    %680 = arith.maximumf %663, %671 : vector<17x128xf32>
    %681 = vector.broadcast %639 : f32 to vector<17x128xf32>
    %682 = arith.addf %680, %681 : vector<17x128xf32>
    %cst_130 = arith.constant 0.000000e+00 : f32
    %683 = vector.broadcast %cst_130 : f32 to vector<17x128xf32>
    %684 = arith.maximumf %682, %683 : vector<17x128xf32>
    %c12_131 = arith.constant 12 : index
    %c0_132 = arith.constant 0 : index
    %c0_133 = arith.constant 0 : index
    %685 = vector.load %arg12[%c12_131, %c0_132, %c0_133] : memref<15x17x128xf32, #tpu.memory_space<vmem>>, vector<1x17x128xf32>
    %686 = vector.shape_cast %685 : vector<1x17x128xf32> to vector<17x128xf32>
    %687 = vector.shape_cast %684 : vector<17x128xf32> to vector<1x17x128xf32>
    tpu.vector_store %arg12[%c12_131, %c0_132, %c0_133], %687 {strides = array<i32>} : memref<15x17x128xf32, #tpu.memory_space<vmem>>, vector<1x17x128xf32>,
    %c39 = arith.constant 39 : index
    %688 = memref.load %arg2[%c39] : memref<45xf32, #tpu.memory_space<smem>>
    %c40 = arith.constant 40 : index
    %689 = memref.load %arg2[%c40] : memref<45xf32, #tpu.memory_space<smem>>
    %c41 = arith.constant 41 : index
    %690 = memref.load %arg2[%c41] : memref<45xf32, #tpu.memory_space<smem>>
    %c13_134 = arith.constant 13 : index
    %691 = memref.load %arg3[%c13_134] : memref<15xf32, #tpu.memory_space<smem>>
    %692 = vector.broadcast %688 : f32 to vector<17x128xf32>
    %693 = arith.mulf %1, %692 : vector<17x128xf32>
    %694 = vector.broadcast %689 : f32 to vector<17x128xf32>
    %695 = arith.mulf %3, %694 : vector<17x128xf32>
    %696 = arith.addf %693, %695 : vector<17x128xf32>
    %697 = vector.broadcast %690 : f32 to vector<17x128xf32>
    %698 = arith.mulf %5, %697 : vector<17x128xf32>
    %699 = arith.addf %696, %698 : vector<17x128xf32>
    %700 = vector.broadcast %688 : f32 to vector<17x128xf32>
    %701 = arith.mulf %3, %700 : vector<17x128xf32>
    %702 = vector.broadcast %689 : f32 to vector<17x128xf32>
    %703 = arith.mulf %5, %702 : vector<17x128xf32>
    %704 = arith.addf %701, %703 : vector<17x128xf32>
    %705 = vector.broadcast %690 : f32 to vector<17x128xf32>
    %706 = arith.mulf %7, %705 : vector<17x128xf32>
    %707 = arith.addf %704, %706 : vector<17x128xf32>
    %708 = vector.broadcast %688 : f32 to vector<17x128xf32>
    %709 = arith.mulf %5, %708 : vector<17x128xf32>
    %710 = vector.broadcast %689 : f32 to vector<17x128xf32>
    %711 = arith.mulf %7, %710 : vector<17x128xf32>
    %712 = arith.addf %709, %711 : vector<17x128xf32>
    %713 = vector.broadcast %690 : f32 to vector<17x128xf32>
    %714 = arith.mulf %9, %713 : vector<17x128xf32>
    %715 = arith.addf %712, %714 : vector<17x128xf32>
    %716 = vector.broadcast %688 : f32 to vector<17x128xf32>
    %717 = arith.mulf %7, %716 : vector<17x128xf32>
    %718 = vector.broadcast %689 : f32 to vector<17x128xf32>
    %719 = arith.mulf %9, %718 : vector<17x128xf32>
    %720 = arith.addf %717, %719 : vector<17x128xf32>
    %721 = vector.broadcast %690 : f32 to vector<17x128xf32>
    %722 = arith.mulf %11, %721 : vector<17x128xf32>
    %723 = arith.addf %720, %722 : vector<17x128xf32>
    %724 = arith.maximumf %699, %707 : vector<17x128xf32>
    %725 = vector.broadcast %691 : f32 to vector<17x128xf32>
    %726 = arith.addf %724, %725 : vector<17x128xf32>
    %cst_135 = arith.constant 0.000000e+00 : f32
    %727 = vector.broadcast %cst_135 : f32 to vector<17x128xf32>
    %728 = arith.maximumf %726, %727 : vector<17x128xf32>
    %c13_136 = arith.constant 13 : index
    %c0_137 = arith.constant 0 : index
    %c0_138 = arith.constant 0 : index
    %729 = vector.load %arg11[%c13_136, %c0_137, %c0_138] : memref<15x17x128xf32, #tpu.memory_space<vmem>>, vector<1x17x128xf32>
    %730 = vector.shape_cast %729 : vector<1x17x128xf32> to vector<17x128xf32>
    %731 = vector.shape_cast %728 : vector<17x128xf32> to vector<1x17x128xf32>
    tpu.vector_store %arg11[%c13_136, %c0_137, %c0_138], %731 {strides = array<i32>} : memref<15x17x128xf32, #tpu.memory_space<vmem>>, vector<1x17x128xf32>,
    %732 = arith.maximumf %715, %723 : vector<17x128xf32>
    %733 = vector.broadcast %691 : f32 to vector<17x128xf32>
    %734 = arith.addf %732, %733 : vector<17x128xf32>
    %cst_139 = arith.constant 0.000000e+00 : f32
    %735 = vector.broadcast %cst_139 : f32 to vector<17x128xf32>
    %736 = arith.maximumf %734, %735 : vector<17x128xf32>
    %c13_140 = arith.constant 13 : index
    %c0_141 = arith.constant 0 : index
    %c0_142 = arith.constant 0 : index
    %737 = vector.load %arg12[%c13_140, %c0_141, %c0_142] : memref<15x17x128xf32, #tpu.memory_space<vmem>>, vector<1x17x128xf32>
    %738 = vector.shape_cast %737 : vector<1x17x128xf32> to vector<17x128xf32>
    %739 = vector.shape_cast %736 : vector<17x128xf32> to vector<1x17x128xf32>
    tpu.vector_store %arg12[%c13_140, %c0_141, %c0_142], %739 {strides = array<i32>} : memref<15x17x128xf32, #tpu.memory_space<vmem>>, vector<1x17x128xf32>,
    %c42 = arith.constant 42 : index
    %740 = memref.load %arg2[%c42] : memref<45xf32, #tpu.memory_space<smem>>
    %c43 = arith.constant 43 : index
    %741 = memref.load %arg2[%c43] : memref<45xf32, #tpu.memory_space<smem>>
    %c44 = arith.constant 44 : index
    %742 = memref.load %arg2[%c44] : memref<45xf32, #tpu.memory_space<smem>>
    %c14_143 = arith.constant 14 : index
    %743 = memref.load %arg3[%c14_143] : memref<15xf32, #tpu.memory_space<smem>>
    %744 = vector.broadcast %740 : f32 to vector<17x128xf32>
    %745 = arith.mulf %1, %744 : vector<17x128xf32>
    %746 = vector.broadcast %741 : f32 to vector<17x128xf32>
    %747 = arith.mulf %3, %746 : vector<17x128xf32>
    %748 = arith.addf %745, %747 : vector<17x128xf32>
    %749 = vector.broadcast %742 : f32 to vector<17x128xf32>
    %750 = arith.mulf %5, %749 : vector<17x128xf32>
    %751 = arith.addf %748, %750 : vector<17x128xf32>
    %752 = vector.broadcast %740 : f32 to vector<17x128xf32>
    %753 = arith.mulf %3, %752 : vector<17x128xf32>
    %754 = vector.broadcast %741 : f32 to vector<17x128xf32>
    %755 = arith.mulf %5, %754 : vector<17x128xf32>
    %756 = arith.addf %753, %755 : vector<17x128xf32>
    %757 = vector.broadcast %742 : f32 to vector<17x128xf32>
    %758 = arith.mulf %7, %757 : vector<17x128xf32>
    %759 = arith.addf %756, %758 : vector<17x128xf32>
    %760 = vector.broadcast %740 : f32 to vector<17x128xf32>
    %761 = arith.mulf %5, %760 : vector<17x128xf32>
    %762 = vector.broadcast %741 : f32 to vector<17x128xf32>
    %763 = arith.mulf %7, %762 : vector<17x128xf32>
    %764 = arith.addf %761, %763 : vector<17x128xf32>
    %765 = vector.broadcast %742 : f32 to vector<17x128xf32>
    %766 = arith.mulf %9, %765 : vector<17x128xf32>
    %767 = arith.addf %764, %766 : vector<17x128xf32>
    %768 = vector.broadcast %740 : f32 to vector<17x128xf32>
    %769 = arith.mulf %7, %768 : vector<17x128xf32>
    %770 = vector.broadcast %741 : f32 to vector<17x128xf32>
    %771 = arith.mulf %9, %770 : vector<17x128xf32>
    %772 = arith.addf %769, %771 : vector<17x128xf32>
    %773 = vector.broadcast %742 : f32 to vector<17x128xf32>
    %774 = arith.mulf %11, %773 : vector<17x128xf32>
    %775 = arith.addf %772, %774 : vector<17x128xf32>
    %776 = arith.maximumf %751, %759 : vector<17x128xf32>
    %777 = vector.broadcast %743 : f32 to vector<17x128xf32>
    %778 = arith.addf %776, %777 : vector<17x128xf32>
    %cst_144 = arith.constant 0.000000e+00 : f32
    %779 = vector.broadcast %cst_144 : f32 to vector<17x128xf32>
    %780 = arith.maximumf %778, %779 : vector<17x128xf32>
    %c14_145 = arith.constant 14 : index
    %c0_146 = arith.constant 0 : index
    %c0_147 = arith.constant 0 : index
    %781 = vector.load %arg11[%c14_145, %c0_146, %c0_147] : memref<15x17x128xf32, #tpu.memory_space<vmem>>, vector<1x17x128xf32>
    %782 = vector.shape_cast %781 : vector<1x17x128xf32> to vector<17x128xf32>
    %783 = vector.shape_cast %780 : vector<17x128xf32> to vector<1x17x128xf32>
    tpu.vector_store %arg11[%c14_145, %c0_146, %c0_147], %783 {strides = array<i32>} : memref<15x17x128xf32, #tpu.memory_space<vmem>>, vector<1x17x128xf32>,
    %784 = arith.maximumf %767, %775 : vector<17x128xf32>
    %785 = vector.broadcast %743 : f32 to vector<17x128xf32>
    %786 = arith.addf %784, %785 : vector<17x128xf32>
    %cst_148 = arith.constant 0.000000e+00 : f32
    %787 = vector.broadcast %cst_148 : f32 to vector<17x128xf32>
    %788 = arith.maximumf %786, %787 : vector<17x128xf32>
    %c14_149 = arith.constant 14 : index
    %c0_150 = arith.constant 0 : index
    %c0_151 = arith.constant 0 : index
    %789 = vector.load %arg12[%c14_149, %c0_150, %c0_151] : memref<15x17x128xf32, #tpu.memory_space<vmem>>, vector<1x17x128xf32>
    %790 = vector.shape_cast %789 : vector<1x17x128xf32> to vector<17x128xf32>
    %791 = vector.shape_cast %788 : vector<17x128xf32> to vector<1x17x128xf32>
    tpu.vector_store %arg12[%c14_149, %c0_150, %c0_151], %791 {strides = array<i32>} : memref<15x17x128xf32, #tpu.memory_space<vmem>>, vector<1x17x128xf32>,
    %c0_i32 = arith.constant 0 : i32
    %c30_i32 = arith.constant 30 : i32
    %792 = arith.addi %c0_i32, %c30_i32 : i32
    %c1_i32 = arith.constant 1 : i32
    scf.for %arg14 = %c0_i32 to %792 step %c1_i32  : i32 {
      %cst_168 = arith.constant 0.000000e+00 : f32
      %807 = vector.broadcast %cst_168 : f32 to vector<16x128xf32>
      %cst_169 = arith.constant 0.000000e+00 : f32
      %808 = vector.broadcast %cst_169 : f32 to vector<16x128xf32>
      %c0_170 = arith.constant 0 : index
      %c0_171 = arith.constant 0 : index
      %c0_172 = arith.constant 0 : index
      %809 = vector.load %arg11[%c0_170, %c0_171, %c0_172] : memref<15x17x128xf32, #tpu.memory_space<vmem>>, vector<1x16x128xf32>
      %810 = vector.shape_cast %809 : vector<1x16x128xf32> to vector<16x128xf32>
      %c0_173 = arith.constant 0 : index
      %c1_174 = arith.constant 1 : index
      %c0_175 = arith.constant 0 : index
      %811 = vector.load %arg11[%c0_173, %c1_174, %c0_175] : memref<15x17x128xf32, #tpu.memory_space<vmem>>, vector<1x16x128xf32>
      %812 = vector.shape_cast %811 : vector<1x16x128xf32> to vector<16x128xf32>
      %c0_176 = arith.constant 0 : index
      %c0_177 = arith.constant 0 : index
      %c0_178 = arith.constant 0 : index
      %813 = vector.load %arg12[%c0_176, %c0_177, %c0_178] : memref<15x17x128xf32, #tpu.memory_space<vmem>>, vector<1x16x128xf32>
      %814 = vector.shape_cast %813 : vector<1x16x128xf32> to vector<16x128xf32>
      %c0_179 = arith.constant 0 : index
      %c1_180 = arith.constant 1 : index
      %c0_181 = arith.constant 0 : index
      %815 = vector.load %arg12[%c0_179, %c1_180, %c0_181] : memref<15x17x128xf32, #tpu.memory_space<vmem>>, vector<1x16x128xf32>
      %816 = vector.shape_cast %815 : vector<1x16x128xf32> to vector<16x128xf32>
      %817 = arith.index_cast %arg14 : i32 to index
      %c0_182 = arith.constant 0 : index
      %818 = memref.load %arg4[%817, %c0_182] : memref<30x45xf32, #tpu.memory_space<smem>>
      %819 = arith.index_cast %arg14 : i32 to index
      %c1_183 = arith.constant 1 : index
      %820 = memref.load %arg4[%819, %c1_183] : memref<30x45xf32, #tpu.memory_space<smem>>
      %821 = arith.index_cast %arg14 : i32 to index
      %c2_184 = arith.constant 2 : index
      %822 = memref.load %arg4[%821, %c2_184] : memref<30x45xf32, #tpu.memory_space<smem>>
      %823 = vector.broadcast %818 : f32 to vector<16x128xf32>
      %824 = arith.mulf %810, %823 : vector<16x128xf32>
      %825 = arith.addf %807, %824 : vector<16x128xf32>
      %826 = vector.broadcast %820 : f32 to vector<16x128xf32>
      %827 = arith.mulf %814, %826 : vector<16x128xf32>
      %828 = arith.addf %825, %827 : vector<16x128xf32>
      %829 = vector.broadcast %822 : f32 to vector<16x128xf32>
      %830 = arith.mulf %812, %829 : vector<16x128xf32>
      %831 = arith.addf %828, %830 : vector<16x128xf32>
      %832 = vector.broadcast %818 : f32 to vector<16x128xf32>
      %833 = arith.mulf %814, %832 : vector<16x128xf32>
      %834 = arith.addf %808, %833 : vector<16x128xf32>
      %835 = vector.broadcast %820 : f32 to vector<16x128xf32>
      %836 = arith.mulf %812, %835 : vector<16x128xf32>
      %837 = arith.addf %834, %836 : vector<16x128xf32>
      %838 = vector.broadcast %822 : f32 to vector<16x128xf32>
      %839 = arith.mulf %816, %838 : vector<16x128xf32>
      %840 = arith.addf %837, %839 : vector<16x128xf32>
      %c1_185 = arith.constant 1 : index
      %c0_186 = arith.constant 0 : index
      %c0_187 = arith.constant 0 : index
      %841 = vector.load %arg11[%c1_185, %c0_186, %c0_187] : memref<15x17x128xf32, #tpu.memory_space<vmem>>, vector<1x16x128xf32>
      %842 = vector.shape_cast %841 : vector<1x16x128xf32> to vector<16x128xf32>
      %c1_188 = arith.constant 1 : index
      %c1_189 = arith.constant 1 : index
      %c0_190 = arith.constant 0 : index
      %843 = vector.load %arg11[%c1_188, %c1_189, %c0_190] : memref<15x17x128xf32, #tpu.memory_space<vmem>>, vector<1x16x128xf32>
      %844 = vector.shape_cast %843 : vector<1x16x128xf32> to vector<16x128xf32>
      %c1_191 = arith.constant 1 : index
      %c0_192 = arith.constant 0 : index
      %c0_193 = arith.constant 0 : index
      %845 = vector.load %arg12[%c1_191, %c0_192, %c0_193] : memref<15x17x128xf32, #tpu.memory_space<vmem>>, vector<1x16x128xf32>
      %846 = vector.shape_cast %845 : vector<1x16x128xf32> to vector<16x128xf32>
      %c1_194 = arith.constant 1 : index
      %c1_195 = arith.constant 1 : index
      %c0_196 = arith.constant 0 : index
      %847 = vector.load %arg12[%c1_194, %c1_195, %c0_196] : memref<15x17x128xf32, #tpu.memory_space<vmem>>, vector<1x16x128xf32>
      %848 = vector.shape_cast %847 : vector<1x16x128xf32> to vector<16x128xf32>
      %849 = arith.index_cast %arg14 : i32 to index
      %c3_197 = arith.constant 3 : index
      %850 = memref.load %arg4[%849, %c3_197] : memref<30x45xf32, #tpu.memory_space<smem>>
      %851 = arith.index_cast %arg14 : i32 to index
      %c4_198 = arith.constant 4 : index
      %852 = memref.load %arg4[%851, %c4_198] : memref<30x45xf32, #tpu.memory_space<smem>>
      %853 = arith.index_cast %arg14 : i32 to index
      %c5_199 = arith.constant 5 : index
      %854 = memref.load %arg4[%853, %c5_199] : memref<30x45xf32, #tpu.memory_space<smem>>
      %855 = vector.broadcast %850 : f32 to vector<16x128xf32>
      %856 = arith.mulf %842, %855 : vector<16x128xf32>
      %857 = arith.addf %831, %856 : vector<16x128xf32>
      %858 = vector.broadcast %852 : f32 to vector<16x128xf32>
      %859 = arith.mulf %846, %858 : vector<16x128xf32>
      %860 = arith.addf %857, %859 : vector<16x128xf32>
      %861 = vector.broadcast %854 : f32 to vector<16x128xf32>
      %862 = arith.mulf %844, %861 : vector<16x128xf32>
      %863 = arith.addf %860, %862 : vector<16x128xf32>
      %864 = vector.broadcast %850 : f32 to vector<16x128xf32>
      %865 = arith.mulf %846, %864 : vector<16x128xf32>
      %866 = arith.addf %840, %865 : vector<16x128xf32>
      %867 = vector.broadcast %852 : f32 to vector<16x128xf32>
      %868 = arith.mulf %844, %867 : vector<16x128xf32>
      %869 = arith.addf %866, %868 : vector<16x128xf32>
      %870 = vector.broadcast %854 : f32 to vector<16x128xf32>
      %871 = arith.mulf %848, %870 : vector<16x128xf32>
      %872 = arith.addf %869, %871 : vector<16x128xf32>
      %c2_200 = arith.constant 2 : index
      %c0_201 = arith.constant 0 : index
      %c0_202 = arith.constant 0 : index
      %873 = vector.load %arg11[%c2_200, %c0_201, %c0_202] : memref<15x17x128xf32, #tpu.memory_space<vmem>>, vector<1x16x128xf32>
      %874 = vector.shape_cast %873 : vector<1x16x128xf32> to vector<16x128xf32>
      %c2_203 = arith.constant 2 : index
      %c1_204 = arith.constant 1 : index
      %c0_205 = arith.constant 0 : index
      %875 = vector.load %arg11[%c2_203, %c1_204, %c0_205] : memref<15x17x128xf32, #tpu.memory_space<vmem>>, vector<1x16x128xf32>
      %876 = vector.shape_cast %875 : vector<1x16x128xf32> to vector<16x128xf32>
      %c2_206 = arith.constant 2 : index
      %c0_207 = arith.constant 0 : index
      %c0_208 = arith.constant 0 : index
      %877 = vector.load %arg12[%c2_206, %c0_207, %c0_208] : memref<15x17x128xf32, #tpu.memory_space<vmem>>, vector<1x16x128xf32>
      %878 = vector.shape_cast %877 : vector<1x16x128xf32> to vector<16x128xf32>
      %c2_209 = arith.constant 2 : index
      %c1_210 = arith.constant 1 : index
      %c0_211 = arith.constant 0 : index
      %879 = vector.load %arg12[%c2_209, %c1_210, %c0_211] : memref<15x17x128xf32, #tpu.memory_space<vmem>>, vector<1x16x128xf32>
      %880 = vector.shape_cast %879 : vector<1x16x128xf32> to vector<16x128xf32>
      %881 = arith.index_cast %arg14 : i32 to index
      %c6_212 = arith.constant 6 : index
      %882 = memref.load %arg4[%881, %c6_212] : memref<30x45xf32, #tpu.memory_space<smem>>
      %883 = arith.index_cast %arg14 : i32 to index
      %c7_213 = arith.constant 7 : index
      %884 = memref.load %arg4[%883, %c7_213] : memref<30x45xf32, #tpu.memory_space<smem>>
      %885 = arith.index_cast %arg14 : i32 to index
      %c8_214 = arith.constant 8 : index
      %886 = memref.load %arg4[%885, %c8_214] : memref<30x45xf32, #tpu.memory_space<smem>>
      %887 = vector.broadcast %882 : f32 to vector<16x128xf32>
      %888 = arith.mulf %874, %887 : vector<16x128xf32>
      %889 = arith.addf %863, %888 : vector<16x128xf32>
      %890 = vector.broadcast %884 : f32 to vector<16x128xf32>
      %891 = arith.mulf %878, %890 : vector<16x128xf32>
      %892 = arith.addf %889, %891 : vector<16x128xf32>
      %893 = vector.broadcast %886 : f32 to vector<16x128xf32>
      %894 = arith.mulf %876, %893 : vector<16x128xf32>
      %895 = arith.addf %892, %894 : vector<16x128xf32>
      %896 = vector.broadcast %882 : f32 to vector<16x128xf32>
      %897 = arith.mulf %878, %896 : vector<16x128xf32>
      %898 = arith.addf %872, %897 : vector<16x128xf32>
      %899 = vector.broadcast %884 : f32 to vector<16x128xf32>
      %900 = arith.mulf %876, %899 : vector<16x128xf32>
      %901 = arith.addf %898, %900 : vector<16x128xf32>
      %902 = vector.broadcast %886 : f32 to vector<16x128xf32>
      %903 = arith.mulf %880, %902 : vector<16x128xf32>
      %904 = arith.addf %901, %903 : vector<16x128xf32>
      %c3_215 = arith.constant 3 : index
      %c0_216 = arith.constant 0 : index
      %c0_217 = arith.constant 0 : index
      %905 = vector.load %arg11[%c3_215, %c0_216, %c0_217] : memref<15x17x128xf32, #tpu.memory_space<vmem>>, vector<1x16x128xf32>
      %906 = vector.shape_cast %905 : vector<1x16x128xf32> to vector<16x128xf32>
      %c3_218 = arith.constant 3 : index
      %c1_219 = arith.constant 1 : index
      %c0_220 = arith.constant 0 : index
      %907 = vector.load %arg11[%c3_218, %c1_219, %c0_220] : memref<15x17x128xf32, #tpu.memory_space<vmem>>, vector<1x16x128xf32>
      %908 = vector.shape_cast %907 : vector<1x16x128xf32> to vector<16x128xf32>
      %c3_221 = arith.constant 3 : index
      %c0_222 = arith.constant 0 : index
      %c0_223 = arith.constant 0 : index
      %909 = vector.load %arg12[%c3_221, %c0_222, %c0_223] : memref<15x17x128xf32, #tpu.memory_space<vmem>>, vector<1x16x128xf32>
      %910 = vector.shape_cast %909 : vector<1x16x128xf32> to vector<16x128xf32>
      %c3_224 = arith.constant 3 : index
      %c1_225 = arith.constant 1 : index
      %c0_226 = arith.constant 0 : index
      %911 = vector.load %arg12[%c3_224, %c1_225, %c0_226] : memref<15x17x128xf32, #tpu.memory_space<vmem>>, vector<1x16x128xf32>
      %912 = vector.shape_cast %911 : vector<1x16x128xf32> to vector<16x128xf32>
      %913 = arith.index_cast %arg14 : i32 to index
      %c9_227 = arith.constant 9 : index
      %914 = memref.load %arg4[%913, %c9_227] : memref<30x45xf32, #tpu.memory_space<smem>>
      %915 = arith.index_cast %arg14 : i32 to index
      %c10_228 = arith.constant 10 : index
      %916 = memref.load %arg4[%915, %c10_228] : memref<30x45xf32, #tpu.memory_space<smem>>
      %917 = arith.index_cast %arg14 : i32 to index
      %c11_229 = arith.constant 11 : index
      %918 = memref.load %arg4[%917, %c11_229] : memref<30x45xf32, #tpu.memory_space<smem>>
      %919 = vector.broadcast %914 : f32 to vector<16x128xf32>
      %920 = arith.mulf %906, %919 : vector<16x128xf32>
      %921 = arith.addf %895, %920 : vector<16x128xf32>
      %922 = vector.broadcast %916 : f32 to vector<16x128xf32>
      %923 = arith.mulf %910, %922 : vector<16x128xf32>
      %924 = arith.addf %921, %923 : vector<16x128xf32>
      %925 = vector.broadcast %918 : f32 to vector<16x128xf32>
      %926 = arith.mulf %908, %925 : vector<16x128xf32>
      %927 = arith.addf %924, %926 : vector<16x128xf32>
      %928 = vector.broadcast %914 : f32 to vector<16x128xf32>
      %929 = arith.mulf %910, %928 : vector<16x128xf32>
      %930 = arith.addf %904, %929 : vector<16x128xf32>
      %931 = vector.broadcast %916 : f32 to vector<16x128xf32>
      %932 = arith.mulf %908, %931 : vector<16x128xf32>
      %933 = arith.addf %930, %932 : vector<16x128xf32>
      %934 = vector.broadcast %918 : f32 to vector<16x128xf32>
      %935 = arith.mulf %912, %934 : vector<16x128xf32>
      %936 = arith.addf %933, %935 : vector<16x128xf32>
      %c4_230 = arith.constant 4 : index
      %c0_231 = arith.constant 0 : index
      %c0_232 = arith.constant 0 : index
      %937 = vector.load %arg11[%c4_230, %c0_231, %c0_232] : memref<15x17x128xf32, #tpu.memory_space<vmem>>, vector<1x16x128xf32>
      %938 = vector.shape_cast %937 : vector<1x16x128xf32> to vector<16x128xf32>
      %c4_233 = arith.constant 4 : index
      %c1_234 = arith.constant 1 : index
      %c0_235 = arith.constant 0 : index
      %939 = vector.load %arg11[%c4_233, %c1_234, %c0_235] : memref<15x17x128xf32, #tpu.memory_space<vmem>>, vector<1x16x128xf32>
      %940 = vector.shape_cast %939 : vector<1x16x128xf32> to vector<16x128xf32>
      %c4_236 = arith.constant 4 : index
      %c0_237 = arith.constant 0 : index
      %c0_238 = arith.constant 0 : index
      %941 = vector.load %arg12[%c4_236, %c0_237, %c0_238] : memref<15x17x128xf32, #tpu.memory_space<vmem>>, vector<1x16x128xf32>
      %942 = vector.shape_cast %941 : vector<1x16x128xf32> to vector<16x128xf32>
      %c4_239 = arith.constant 4 : index
      %c1_240 = arith.constant 1 : index
      %c0_241 = arith.constant 0 : index
      %943 = vector.load %arg12[%c4_239, %c1_240, %c0_241] : memref<15x17x128xf32, #tpu.memory_space<vmem>>, vector<1x16x128xf32>
      %944 = vector.shape_cast %943 : vector<1x16x128xf32> to vector<16x128xf32>
      %945 = arith.index_cast %arg14 : i32 to index
      %c12_242 = arith.constant 12 : index
      %946 = memref.load %arg4[%945, %c12_242] : memref<30x45xf32, #tpu.memory_space<smem>>
      %947 = arith.index_cast %arg14 : i32 to index
      %c13_243 = arith.constant 13 : index
      %948 = memref.load %arg4[%947, %c13_243] : memref<30x45xf32, #tpu.memory_space<smem>>
      %949 = arith.index_cast %arg14 : i32 to index
      %c14_244 = arith.constant 14 : index
      %950 = memref.load %arg4[%949, %c14_244] : memref<30x45xf32, #tpu.memory_space<smem>>
      %951 = vector.broadcast %946 : f32 to vector<16x128xf32>
      %952 = arith.mulf %938, %951 : vector<16x128xf32>
      %953 = arith.addf %927, %952 : vector<16x128xf32>
      %954 = vector.broadcast %948 : f32 to vector<16x128xf32>
      %955 = arith.mulf %942, %954 : vector<16x128xf32>
      %956 = arith.addf %953, %955 : vector<16x128xf32>
      %957 = vector.broadcast %950 : f32 to vector<16x128xf32>
      %958 = arith.mulf %940, %957 : vector<16x128xf32>
      %959 = arith.addf %956, %958 : vector<16x128xf32>
      %960 = vector.broadcast %946 : f32 to vector<16x128xf32>
      %961 = arith.mulf %942, %960 : vector<16x128xf32>
      %962 = arith.addf %936, %961 : vector<16x128xf32>
      %963 = vector.broadcast %948 : f32 to vector<16x128xf32>
      %964 = arith.mulf %940, %963 : vector<16x128xf32>
      %965 = arith.addf %962, %964 : vector<16x128xf32>
      %966 = vector.broadcast %950 : f32 to vector<16x128xf32>
      %967 = arith.mulf %944, %966 : vector<16x128xf32>
      %968 = arith.addf %965, %967 : vector<16x128xf32>
      %c5_245 = arith.constant 5 : index
      %c0_246 = arith.constant 0 : index
      %c0_247 = arith.constant 0 : index
      %969 = vector.load %arg11[%c5_245, %c0_246, %c0_247] : memref<15x17x128xf32, #tpu.memory_space<vmem>>, vector<1x16x128xf32>
      %970 = vector.shape_cast %969 : vector<1x16x128xf32> to vector<16x128xf32>
      %c5_248 = arith.constant 5 : index
      %c1_249 = arith.constant 1 : index
      %c0_250 = arith.constant 0 : index
      %971 = vector.load %arg11[%c5_248, %c1_249, %c0_250] : memref<15x17x128xf32, #tpu.memory_space<vmem>>, vector<1x16x128xf32>
      %972 = vector.shape_cast %971 : vector<1x16x128xf32> to vector<16x128xf32>
      %c5_251 = arith.constant 5 : index
      %c0_252 = arith.constant 0 : index
      %c0_253 = arith.constant 0 : index
      %973 = vector.load %arg12[%c5_251, %c0_252, %c0_253] : memref<15x17x128xf32, #tpu.memory_space<vmem>>, vector<1x16x128xf32>
      %974 = vector.shape_cast %973 : vector<1x16x128xf32> to vector<16x128xf32>
      %c5_254 = arith.constant 5 : index
      %c1_255 = arith.constant 1 : index
      %c0_256 = arith.constant 0 : index
      %975 = vector.load %arg12[%c5_254, %c1_255, %c0_256] : memref<15x17x128xf32, #tpu.memory_space<vmem>>, vector<1x16x128xf32>
      %976 = vector.shape_cast %975 : vector<1x16x128xf32> to vector<16x128xf32>
      %977 = arith.index_cast %arg14 : i32 to index
      %c15_257 = arith.constant 15 : index
      %978 = memref.load %arg4[%977, %c15_257] : memref<30x45xf32, #tpu.memory_space<smem>>
      %979 = arith.index_cast %arg14 : i32 to index
      %c16_258 = arith.constant 16 : index
      %980 = memref.load %arg4[%979, %c16_258] : memref<30x45xf32, #tpu.memory_space<smem>>
      %981 = arith.index_cast %arg14 : i32 to index
      %c17_259 = arith.constant 17 : index
      %982 = memref.load %arg4[%981, %c17_259] : memref<30x45xf32, #tpu.memory_space<smem>>
      %983 = vector.broadcast %978 : f32 to vector<16x128xf32>
      %984 = arith.mulf %970, %983 : vector<16x128xf32>
      %985 = arith.addf %959, %984 : vector<16x128xf32>
      %986 = vector.broadcast %980 : f32 to vector<16x128xf32>
      %987 = arith.mulf %974, %986 : vector<16x128xf32>
      %988 = arith.addf %985, %987 : vector<16x128xf32>
      %989 = vector.broadcast %982 : f32 to vector<16x128xf32>
      %990 = arith.mulf %972, %989 : vector<16x128xf32>
      %991 = arith.addf %988, %990 : vector<16x128xf32>
      %992 = vector.broadcast %978 : f32 to vector<16x128xf32>
      %993 = arith.mulf %974, %992 : vector<16x128xf32>
      %994 = arith.addf %968, %993 : vector<16x128xf32>
      %995 = vector.broadcast %980 : f32 to vector<16x128xf32>
      %996 = arith.mulf %972, %995 : vector<16x128xf32>
      %997 = arith.addf %994, %996 : vector<16x128xf32>
      %998 = vector.broadcast %982 : f32 to vector<16x128xf32>
      %999 = arith.mulf %976, %998 : vector<16x128xf32>
      %1000 = arith.addf %997, %999 : vector<16x128xf32>
      %c6_260 = arith.constant 6 : index
      %c0_261 = arith.constant 0 : index
      %c0_262 = arith.constant 0 : index
      %1001 = vector.load %arg11[%c6_260, %c0_261, %c0_262] : memref<15x17x128xf32, #tpu.memory_space<vmem>>, vector<1x16x128xf32>
      %1002 = vector.shape_cast %1001 : vector<1x16x128xf32> to vector<16x128xf32>
      %c6_263 = arith.constant 6 : index
      %c1_264 = arith.constant 1 : index
      %c0_265 = arith.constant 0 : index
      %1003 = vector.load %arg11[%c6_263, %c1_264, %c0_265] : memref<15x17x128xf32, #tpu.memory_space<vmem>>, vector<1x16x128xf32>
      %1004 = vector.shape_cast %1003 : vector<1x16x128xf32> to vector<16x128xf32>
      %c6_266 = arith.constant 6 : index
      %c0_267 = arith.constant 0 : index
      %c0_268 = arith.constant 0 : index
      %1005 = vector.load %arg12[%c6_266, %c0_267, %c0_268] : memref<15x17x128xf32, #tpu.memory_space<vmem>>, vector<1x16x128xf32>
      %1006 = vector.shape_cast %1005 : vector<1x16x128xf32> to vector<16x128xf32>
      %c6_269 = arith.constant 6 : index
      %c1_270 = arith.constant 1 : index
      %c0_271 = arith.constant 0 : index
      %1007 = vector.load %arg12[%c6_269, %c1_270, %c0_271] : memref<15x17x128xf32, #tpu.memory_space<vmem>>, vector<1x16x128xf32>
      %1008 = vector.shape_cast %1007 : vector<1x16x128xf32> to vector<16x128xf32>
      %1009 = arith.index_cast %arg14 : i32 to index
      %c18_272 = arith.constant 18 : index
      %1010 = memref.load %arg4[%1009, %c18_272] : memref<30x45xf32, #tpu.memory_space<smem>>
      %1011 = arith.index_cast %arg14 : i32 to index
      %c19_273 = arith.constant 19 : index
      %1012 = memref.load %arg4[%1011, %c19_273] : memref<30x45xf32, #tpu.memory_space<smem>>
      %1013 = arith.index_cast %arg14 : i32 to index
      %c20_274 = arith.constant 20 : index
      %1014 = memref.load %arg4[%1013, %c20_274] : memref<30x45xf32, #tpu.memory_space<smem>>
      %1015 = vector.broadcast %1010 : f32 to vector<16x128xf32>
      %1016 = arith.mulf %1002, %1015 : vector<16x128xf32>
      %1017 = arith.addf %991, %1016 : vector<16x128xf32>
      %1018 = vector.broadcast %1012 : f32 to vector<16x128xf32>
      %1019 = arith.mulf %1006, %1018 : vector<16x128xf32>
      %1020 = arith.addf %1017, %1019 : vector<16x128xf32>
      %1021 = vector.broadcast %1014 : f32 to vector<16x128xf32>
      %1022 = arith.mulf %1004, %1021 : vector<16x128xf32>
      %1023 = arith.addf %1020, %1022 : vector<16x128xf32>
      %1024 = vector.broadcast %1010 : f32 to vector<16x128xf32>
      %1025 = arith.mulf %1006, %1024 : vector<16x128xf32>
      %1026 = arith.addf %1000, %1025 : vector<16x128xf32>
      %1027 = vector.broadcast %1012 : f32 to vector<16x128xf32>
      %1028 = arith.mulf %1004, %1027 : vector<16x128xf32>
      %1029 = arith.addf %1026, %1028 : vector<16x128xf32>
      %1030 = vector.broadcast %1014 : f32 to vector<16x128xf32>
      %1031 = arith.mulf %1008, %1030 : vector<16x128xf32>
      %1032 = arith.addf %1029, %1031 : vector<16x128xf32>
      %c7_275 = arith.constant 7 : index
      %c0_276 = arith.constant 0 : index
      %c0_277 = arith.constant 0 : index
      %1033 = vector.load %arg11[%c7_275, %c0_276, %c0_277] : memref<15x17x128xf32, #tpu.memory_space<vmem>>, vector<1x16x128xf32>
      %1034 = vector.shape_cast %1033 : vector<1x16x128xf32> to vector<16x128xf32>
      %c7_278 = arith.constant 7 : index
      %c1_279 = arith.constant 1 : index
      %c0_280 = arith.constant 0 : index
      %1035 = vector.load %arg11[%c7_278, %c1_279, %c0_280] : memref<15x17x128xf32, #tpu.memory_space<vmem>>, vector<1x16x128xf32>
      %1036 = vector.shape_cast %1035 : vector<1x16x128xf32> to vector<16x128xf32>
      %c7_281 = arith.constant 7 : index
      %c0_282 = arith.constant 0 : index
      %c0_283 = arith.constant 0 : index
      %1037 = vector.load %arg12[%c7_281, %c0_282, %c0_283] : memref<15x17x128xf32, #tpu.memory_space<vmem>>, vector<1x16x128xf32>
      %1038 = vector.shape_cast %1037 : vector<1x16x128xf32> to vector<16x128xf32>
      %c7_284 = arith.constant 7 : index
      %c1_285 = arith.constant 1 : index
      %c0_286 = arith.constant 0 : index
      %1039 = vector.load %arg12[%c7_284, %c1_285, %c0_286] : memref<15x17x128xf32, #tpu.memory_space<vmem>>, vector<1x16x128xf32>
      %1040 = vector.shape_cast %1039 : vector<1x16x128xf32> to vector<16x128xf32>
      %1041 = arith.index_cast %arg14 : i32 to index
      %c21_287 = arith.constant 21 : index
      %1042 = memref.load %arg4[%1041, %c21_287] : memref<30x45xf32, #tpu.memory_space<smem>>
      %1043 = arith.index_cast %arg14 : i32 to index
      %c22_288 = arith.constant 22 : index
      %1044 = memref.load %arg4[%1043, %c22_288] : memref<30x45xf32, #tpu.memory_space<smem>>
      %1045 = arith.index_cast %arg14 : i32 to index
      %c23_289 = arith.constant 23 : index
      %1046 = memref.load %arg4[%1045, %c23_289] : memref<30x45xf32, #tpu.memory_space<smem>>
      %1047 = vector.broadcast %1042 : f32 to vector<16x128xf32>
      %1048 = arith.mulf %1034, %1047 : vector<16x128xf32>
      %1049 = arith.addf %1023, %1048 : vector<16x128xf32>
      %1050 = vector.broadcast %1044 : f32 to vector<16x128xf32>
      %1051 = arith.mulf %1038, %1050 : vector<16x128xf32>
      %1052 = arith.addf %1049, %1051 : vector<16x128xf32>
      %1053 = vector.broadcast %1046 : f32 to vector<16x128xf32>
      %1054 = arith.mulf %1036, %1053 : vector<16x128xf32>
      %1055 = arith.addf %1052, %1054 : vector<16x128xf32>
      %1056 = vector.broadcast %1042 : f32 to vector<16x128xf32>
      %1057 = arith.mulf %1038, %1056 : vector<16x128xf32>
      %1058 = arith.addf %1032, %1057 : vector<16x128xf32>
      %1059 = vector.broadcast %1044 : f32 to vector<16x128xf32>
      %1060 = arith.mulf %1036, %1059 : vector<16x128xf32>
      %1061 = arith.addf %1058, %1060 : vector<16x128xf32>
      %1062 = vector.broadcast %1046 : f32 to vector<16x128xf32>
      %1063 = arith.mulf %1040, %1062 : vector<16x128xf32>
      %1064 = arith.addf %1061, %1063 : vector<16x128xf32>
      %c8_290 = arith.constant 8 : index
      %c0_291 = arith.constant 0 : index
      %c0_292 = arith.constant 0 : index
      %1065 = vector.load %arg11[%c8_290, %c0_291, %c0_292] : memref<15x17x128xf32, #tpu.memory_space<vmem>>, vector<1x16x128xf32>
      %1066 = vector.shape_cast %1065 : vector<1x16x128xf32> to vector<16x128xf32>
      %c8_293 = arith.constant 8 : index
      %c1_294 = arith.constant 1 : index
      %c0_295 = arith.constant 0 : index
      %1067 = vector.load %arg11[%c8_293, %c1_294, %c0_295] : memref<15x17x128xf32, #tpu.memory_space<vmem>>, vector<1x16x128xf32>
      %1068 = vector.shape_cast %1067 : vector<1x16x128xf32> to vector<16x128xf32>
      %c8_296 = arith.constant 8 : index
      %c0_297 = arith.constant 0 : index
      %c0_298 = arith.constant 0 : index
      %1069 = vector.load %arg12[%c8_296, %c0_297, %c0_298] : memref<15x17x128xf32, #tpu.memory_space<vmem>>, vector<1x16x128xf32>
      %1070 = vector.shape_cast %1069 : vector<1x16x128xf32> to vector<16x128xf32>
      %c8_299 = arith.constant 8 : index
      %c1_300 = arith.constant 1 : index
      %c0_301 = arith.constant 0 : index
      %1071 = vector.load %arg12[%c8_299, %c1_300, %c0_301] : memref<15x17x128xf32, #tpu.memory_space<vmem>>, vector<1x16x128xf32>
      %1072 = vector.shape_cast %1071 : vector<1x16x128xf32> to vector<16x128xf32>
      %1073 = arith.index_cast %arg14 : i32 to index
      %c24_302 = arith.constant 24 : index
      %1074 = memref.load %arg4[%1073, %c24_302] : memref<30x45xf32, #tpu.memory_space<smem>>
      %1075 = arith.index_cast %arg14 : i32 to index
      %c25_303 = arith.constant 25 : index
      %1076 = memref.load %arg4[%1075, %c25_303] : memref<30x45xf32, #tpu.memory_space<smem>>
      %1077 = arith.index_cast %arg14 : i32 to index
      %c26_304 = arith.constant 26 : index
      %1078 = memref.load %arg4[%1077, %c26_304] : memref<30x45xf32, #tpu.memory_space<smem>>
      %1079 = vector.broadcast %1074 : f32 to vector<16x128xf32>
      %1080 = arith.mulf %1066, %1079 : vector<16x128xf32>
      %1081 = arith.addf %1055, %1080 : vector<16x128xf32>
      %1082 = vector.broadcast %1076 : f32 to vector<16x128xf32>
      %1083 = arith.mulf %1070, %1082 : vector<16x128xf32>
      %1084 = arith.addf %1081, %1083 : vector<16x128xf32>
      %1085 = vector.broadcast %1078 : f32 to vector<16x128xf32>
      %1086 = arith.mulf %1068, %1085 : vector<16x128xf32>
      %1087 = arith.addf %1084, %1086 : vector<16x128xf32>
      %1088 = vector.broadcast %1074 : f32 to vector<16x128xf32>
      %1089 = arith.mulf %1070, %1088 : vector<16x128xf32>
      %1090 = arith.addf %1064, %1089 : vector<16x128xf32>
      %1091 = vector.broadcast %1076 : f32 to vector<16x128xf32>
      %1092 = arith.mulf %1068, %1091 : vector<16x128xf32>
      %1093 = arith.addf %1090, %1092 : vector<16x128xf32>
      %1094 = vector.broadcast %1078 : f32 to vector<16x128xf32>
      %1095 = arith.mulf %1072, %1094 : vector<16x128xf32>
      %1096 = arith.addf %1093, %1095 : vector<16x128xf32>
      %c9_305 = arith.constant 9 : index
      %c0_306 = arith.constant 0 : index
      %c0_307 = arith.constant 0 : index
      %1097 = vector.load %arg11[%c9_305, %c0_306, %c0_307] : memref<15x17x128xf32, #tpu.memory_space<vmem>>, vector<1x16x128xf32>
      %1098 = vector.shape_cast %1097 : vector<1x16x128xf32> to vector<16x128xf32>
      %c9_308 = arith.constant 9 : index
      %c1_309 = arith.constant 1 : index
      %c0_310 = arith.constant 0 : index
      %1099 = vector.load %arg11[%c9_308, %c1_309, %c0_310] : memref<15x17x128xf32, #tpu.memory_space<vmem>>, vector<1x16x128xf32>
      %1100 = vector.shape_cast %1099 : vector<1x16x128xf32> to vector<16x128xf32>
      %c9_311 = arith.constant 9 : index
      %c0_312 = arith.constant 0 : index
      %c0_313 = arith.constant 0 : index
      %1101 = vector.load %arg12[%c9_311, %c0_312, %c0_313] : memref<15x17x128xf32, #tpu.memory_space<vmem>>, vector<1x16x128xf32>
      %1102 = vector.shape_cast %1101 : vector<1x16x128xf32> to vector<16x128xf32>
      %c9_314 = arith.constant 9 : index
      %c1_315 = arith.constant 1 : index
      %c0_316 = arith.constant 0 : index
      %1103 = vector.load %arg12[%c9_314, %c1_315, %c0_316] : memref<15x17x128xf32, #tpu.memory_space<vmem>>, vector<1x16x128xf32>
      %1104 = vector.shape_cast %1103 : vector<1x16x128xf32> to vector<16x128xf32>
      %1105 = arith.index_cast %arg14 : i32 to index
      %c27_317 = arith.constant 27 : index
      %1106 = memref.load %arg4[%1105, %c27_317] : memref<30x45xf32, #tpu.memory_space<smem>>
      %1107 = arith.index_cast %arg14 : i32 to index
      %c28_318 = arith.constant 28 : index
      %1108 = memref.load %arg4[%1107, %c28_318] : memref<30x45xf32, #tpu.memory_space<smem>>
      %1109 = arith.index_cast %arg14 : i32 to index
      %c29_319 = arith.constant 29 : index
      %1110 = memref.load %arg4[%1109, %c29_319] : memref<30x45xf32, #tpu.memory_space<smem>>
      %1111 = vector.broadcast %1106 : f32 to vector<16x128xf32>
      %1112 = arith.mulf %1098, %1111 : vector<16x128xf32>
      %1113 = arith.addf %1087, %1112 : vector<16x128xf32>
      %1114 = vector.broadcast %1108 : f32 to vector<16x128xf32>
      %1115 = arith.mulf %1102, %1114 : vector<16x128xf32>
      %1116 = arith.addf %1113, %1115 : vector<16x128xf32>
      %1117 = vector.broadcast %1110 : f32 to vector<16x128xf32>
      %1118 = arith.mulf %1100, %1117 : vector<16x128xf32>
      %1119 = arith.addf %1116, %1118 : vector<16x128xf32>
      %1120 = vector.broadcast %1106 : f32 to vector<16x128xf32>
      %1121 = arith.mulf %1102, %1120 : vector<16x128xf32>
      %1122 = arith.addf %1096, %1121 : vector<16x128xf32>
      %1123 = vector.broadcast %1108 : f32 to vector<16x128xf32>
      %1124 = arith.mulf %1100, %1123 : vector<16x128xf32>
      %1125 = arith.addf %1122, %1124 : vector<16x128xf32>
      %1126 = vector.broadcast %1110 : f32 to vector<16x128xf32>
      %1127 = arith.mulf %1104, %1126 : vector<16x128xf32>
      %1128 = arith.addf %1125, %1127 : vector<16x128xf32>
      %c10_320 = arith.constant 10 : index
      %c0_321 = arith.constant 0 : index
      %c0_322 = arith.constant 0 : index
      %1129 = vector.load %arg11[%c10_320, %c0_321, %c0_322] : memref<15x17x128xf32, #tpu.memory_space<vmem>>, vector<1x16x128xf32>
      %1130 = vector.shape_cast %1129 : vector<1x16x128xf32> to vector<16x128xf32>
      %c10_323 = arith.constant 10 : index
      %c1_324 = arith.constant 1 : index
      %c0_325 = arith.constant 0 : index
      %1131 = vector.load %arg11[%c10_323, %c1_324, %c0_325] : memref<15x17x128xf32, #tpu.memory_space<vmem>>, vector<1x16x128xf32>
      %1132 = vector.shape_cast %1131 : vector<1x16x128xf32> to vector<16x128xf32>
      %c10_326 = arith.constant 10 : index
      %c0_327 = arith.constant 0 : index
      %c0_328 = arith.constant 0 : index
      %1133 = vector.load %arg12[%c10_326, %c0_327, %c0_328] : memref<15x17x128xf32, #tpu.memory_space<vmem>>, vector<1x16x128xf32>
      %1134 = vector.shape_cast %1133 : vector<1x16x128xf32> to vector<16x128xf32>
      %c10_329 = arith.constant 10 : index
      %c1_330 = arith.constant 1 : index
      %c0_331 = arith.constant 0 : index
      %1135 = vector.load %arg12[%c10_329, %c1_330, %c0_331] : memref<15x17x128xf32, #tpu.memory_space<vmem>>, vector<1x16x128xf32>
      %1136 = vector.shape_cast %1135 : vector<1x16x128xf32> to vector<16x128xf32>
      %1137 = arith.index_cast %arg14 : i32 to index
      %c30_332 = arith.constant 30 : index
      %1138 = memref.load %arg4[%1137, %c30_332] : memref<30x45xf32, #tpu.memory_space<smem>>
      %1139 = arith.index_cast %arg14 : i32 to index
      %c31_333 = arith.constant 31 : index
      %1140 = memref.load %arg4[%1139, %c31_333] : memref<30x45xf32, #tpu.memory_space<smem>>
      %1141 = arith.index_cast %arg14 : i32 to index
      %c32_334 = arith.constant 32 : index
      %1142 = memref.load %arg4[%1141, %c32_334] : memref<30x45xf32, #tpu.memory_space<smem>>
      %1143 = vector.broadcast %1138 : f32 to vector<16x128xf32>
      %1144 = arith.mulf %1130, %1143 : vector<16x128xf32>
      %1145 = arith.addf %1119, %1144 : vector<16x128xf32>
      %1146 = vector.broadcast %1140 : f32 to vector<16x128xf32>
      %1147 = arith.mulf %1134, %1146 : vector<16x128xf32>
      %1148 = arith.addf %1145, %1147 : vector<16x128xf32>
      %1149 = vector.broadcast %1142 : f32 to vector<16x128xf32>
      %1150 = arith.mulf %1132, %1149 : vector<16x128xf32>
      %1151 = arith.addf %1148, %1150 : vector<16x128xf32>
      %1152 = vector.broadcast %1138 : f32 to vector<16x128xf32>
      %1153 = arith.mulf %1134, %1152 : vector<16x128xf32>
      %1154 = arith.addf %1128, %1153 : vector<16x128xf32>
      %1155 = vector.broadcast %1140 : f32 to vector<16x128xf32>
      %1156 = arith.mulf %1132, %1155 : vector<16x128xf32>
      %1157 = arith.addf %1154, %1156 : vector<16x128xf32>
      %1158 = vector.broadcast %1142 : f32 to vector<16x128xf32>
      %1159 = arith.mulf %1136, %1158 : vector<16x128xf32>
      %1160 = arith.addf %1157, %1159 : vector<16x128xf32>
      %c11_335 = arith.constant 11 : index
      %c0_336 = arith.constant 0 : index
      %c0_337 = arith.constant 0 : index
      %1161 = vector.load %arg11[%c11_335, %c0_336, %c0_337] : memref<15x17x128xf32, #tpu.memory_space<vmem>>, vector<1x16x128xf32>
      %1162 = vector.shape_cast %1161 : vector<1x16x128xf32> to vector<16x128xf32>
      %c11_338 = arith.constant 11 : index
      %c1_339 = arith.constant 1 : index
      %c0_340 = arith.constant 0 : index
      %1163 = vector.load %arg11[%c11_338, %c1_339, %c0_340] : memref<15x17x128xf32, #tpu.memory_space<vmem>>, vector<1x16x128xf32>
      %1164 = vector.shape_cast %1163 : vector<1x16x128xf32> to vector<16x128xf32>
      %c11_341 = arith.constant 11 : index
      %c0_342 = arith.constant 0 : index
      %c0_343 = arith.constant 0 : index
      %1165 = vector.load %arg12[%c11_341, %c0_342, %c0_343] : memref<15x17x128xf32, #tpu.memory_space<vmem>>, vector<1x16x128xf32>
      %1166 = vector.shape_cast %1165 : vector<1x16x128xf32> to vector<16x128xf32>
      %c11_344 = arith.constant 11 : index
      %c1_345 = arith.constant 1 : index
      %c0_346 = arith.constant 0 : index
      %1167 = vector.load %arg12[%c11_344, %c1_345, %c0_346] : memref<15x17x128xf32, #tpu.memory_space<vmem>>, vector<1x16x128xf32>
      %1168 = vector.shape_cast %1167 : vector<1x16x128xf32> to vector<16x128xf32>
      %1169 = arith.index_cast %arg14 : i32 to index
      %c33_347 = arith.constant 33 : index
      %1170 = memref.load %arg4[%1169, %c33_347] : memref<30x45xf32, #tpu.memory_space<smem>>
      %1171 = arith.index_cast %arg14 : i32 to index
      %c34_348 = arith.constant 34 : index
      %1172 = memref.load %arg4[%1171, %c34_348] : memref<30x45xf32, #tpu.memory_space<smem>>
      %1173 = arith.index_cast %arg14 : i32 to index
      %c35_349 = arith.constant 35 : index
      %1174 = memref.load %arg4[%1173, %c35_349] : memref<30x45xf32, #tpu.memory_space<smem>>
      %1175 = vector.broadcast %1170 : f32 to vector<16x128xf32>
      %1176 = arith.mulf %1162, %1175 : vector<16x128xf32>
      %1177 = arith.addf %1151, %1176 : vector<16x128xf32>
      %1178 = vector.broadcast %1172 : f32 to vector<16x128xf32>
      %1179 = arith.mulf %1166, %1178 : vector<16x128xf32>
      %1180 = arith.addf %1177, %1179 : vector<16x128xf32>
      %1181 = vector.broadcast %1174 : f32 to vector<16x128xf32>
      %1182 = arith.mulf %1164, %1181 : vector<16x128xf32>
      %1183 = arith.addf %1180, %1182 : vector<16x128xf32>
      %1184 = vector.broadcast %1170 : f32 to vector<16x128xf32>
      %1185 = arith.mulf %1166, %1184 : vector<16x128xf32>
      %1186 = arith.addf %1160, %1185 : vector<16x128xf32>
      %1187 = vector.broadcast %1172 : f32 to vector<16x128xf32>
      %1188 = arith.mulf %1164, %1187 : vector<16x128xf32>
      %1189 = arith.addf %1186, %1188 : vector<16x128xf32>
      %1190 = vector.broadcast %1174 : f32 to vector<16x128xf32>
      %1191 = arith.mulf %1168, %1190 : vector<16x128xf32>
      %1192 = arith.addf %1189, %1191 : vector<16x128xf32>
      %c12_350 = arith.constant 12 : index
      %c0_351 = arith.constant 0 : index
      %c0_352 = arith.constant 0 : index
      %1193 = vector.load %arg11[%c12_350, %c0_351, %c0_352] : memref<15x17x128xf32, #tpu.memory_space<vmem>>, vector<1x16x128xf32>
      %1194 = vector.shape_cast %1193 : vector<1x16x128xf32> to vector<16x128xf32>
      %c12_353 = arith.constant 12 : index
      %c1_354 = arith.constant 1 : index
      %c0_355 = arith.constant 0 : index
      %1195 = vector.load %arg11[%c12_353, %c1_354, %c0_355] : memref<15x17x128xf32, #tpu.memory_space<vmem>>, vector<1x16x128xf32>
      %1196 = vector.shape_cast %1195 : vector<1x16x128xf32> to vector<16x128xf32>
      %c12_356 = arith.constant 12 : index
      %c0_357 = arith.constant 0 : index
      %c0_358 = arith.constant 0 : index
      %1197 = vector.load %arg12[%c12_356, %c0_357, %c0_358] : memref<15x17x128xf32, #tpu.memory_space<vmem>>, vector<1x16x128xf32>
      %1198 = vector.shape_cast %1197 : vector<1x16x128xf32> to vector<16x128xf32>
      %c12_359 = arith.constant 12 : index
      %c1_360 = arith.constant 1 : index
      %c0_361 = arith.constant 0 : index
      %1199 = vector.load %arg12[%c12_359, %c1_360, %c0_361] : memref<15x17x128xf32, #tpu.memory_space<vmem>>, vector<1x16x128xf32>
      %1200 = vector.shape_cast %1199 : vector<1x16x128xf32> to vector<16x128xf32>
      %1201 = arith.index_cast %arg14 : i32 to index
      %c36_362 = arith.constant 36 : index
      %1202 = memref.load %arg4[%1201, %c36_362] : memref<30x45xf32, #tpu.memory_space<smem>>
      %1203 = arith.index_cast %arg14 : i32 to index
      %c37_363 = arith.constant 37 : index
      %1204 = memref.load %arg4[%1203, %c37_363] : memref<30x45xf32, #tpu.memory_space<smem>>
      %1205 = arith.index_cast %arg14 : i32 to index
      %c38_364 = arith.constant 38 : index
      %1206 = memref.load %arg4[%1205, %c38_364] : memref<30x45xf32, #tpu.memory_space<smem>>
      %1207 = vector.broadcast %1202 : f32 to vector<16x128xf32>
      %1208 = arith.mulf %1194, %1207 : vector<16x128xf32>
      %1209 = arith.addf %1183, %1208 : vector<16x128xf32>
      %1210 = vector.broadcast %1204 : f32 to vector<16x128xf32>
      %1211 = arith.mulf %1198, %1210 : vector<16x128xf32>
      %1212 = arith.addf %1209, %1211 : vector<16x128xf32>
      %1213 = vector.broadcast %1206 : f32 to vector<16x128xf32>
      %1214 = arith.mulf %1196, %1213 : vector<16x128xf32>
      %1215 = arith.addf %1212, %1214 : vector<16x128xf32>
      %1216 = vector.broadcast %1202 : f32 to vector<16x128xf32>
      %1217 = arith.mulf %1198, %1216 : vector<16x128xf32>
      %1218 = arith.addf %1192, %1217 : vector<16x128xf32>
      %1219 = vector.broadcast %1204 : f32 to vector<16x128xf32>
      %1220 = arith.mulf %1196, %1219 : vector<16x128xf32>
      %1221 = arith.addf %1218, %1220 : vector<16x128xf32>
      %1222 = vector.broadcast %1206 : f32 to vector<16x128xf32>
      %1223 = arith.mulf %1200, %1222 : vector<16x128xf32>
      %1224 = arith.addf %1221, %1223 : vector<16x128xf32>
      %c13_365 = arith.constant 13 : index
      %c0_366 = arith.constant 0 : index
      %c0_367 = arith.constant 0 : index
      %1225 = vector.load %arg11[%c13_365, %c0_366, %c0_367] : memref<15x17x128xf32, #tpu.memory_space<vmem>>, vector<1x16x128xf32>
      %1226 = vector.shape_cast %1225 : vector<1x16x128xf32> to vector<16x128xf32>
      %c13_368 = arith.constant 13 : index
      %c1_369 = arith.constant 1 : index
      %c0_370 = arith.constant 0 : index
      %1227 = vector.load %arg11[%c13_368, %c1_369, %c0_370] : memref<15x17x128xf32, #tpu.memory_space<vmem>>, vector<1x16x128xf32>
      %1228 = vector.shape_cast %1227 : vector<1x16x128xf32> to vector<16x128xf32>
      %c13_371 = arith.constant 13 : index
      %c0_372 = arith.constant 0 : index
      %c0_373 = arith.constant 0 : index
      %1229 = vector.load %arg12[%c13_371, %c0_372, %c0_373] : memref<15x17x128xf32, #tpu.memory_space<vmem>>, vector<1x16x128xf32>
      %1230 = vector.shape_cast %1229 : vector<1x16x128xf32> to vector<16x128xf32>
      %c13_374 = arith.constant 13 : index
      %c1_375 = arith.constant 1 : index
      %c0_376 = arith.constant 0 : index
      %1231 = vector.load %arg12[%c13_374, %c1_375, %c0_376] : memref<15x17x128xf32, #tpu.memory_space<vmem>>, vector<1x16x128xf32>
      %1232 = vector.shape_cast %1231 : vector<1x16x128xf32> to vector<16x128xf32>
      %1233 = arith.index_cast %arg14 : i32 to index
      %c39_377 = arith.constant 39 : index
      %1234 = memref.load %arg4[%1233, %c39_377] : memref<30x45xf32, #tpu.memory_space<smem>>
      %1235 = arith.index_cast %arg14 : i32 to index
      %c40_378 = arith.constant 40 : index
      %1236 = memref.load %arg4[%1235, %c40_378] : memref<30x45xf32, #tpu.memory_space<smem>>
      %1237 = arith.index_cast %arg14 : i32 to index
      %c41_379 = arith.constant 41 : index
      %1238 = memref.load %arg4[%1237, %c41_379] : memref<30x45xf32, #tpu.memory_space<smem>>
      %1239 = vector.broadcast %1234 : f32 to vector<16x128xf32>
      %1240 = arith.mulf %1226, %1239 : vector<16x128xf32>
      %1241 = arith.addf %1215, %1240 : vector<16x128xf32>
      %1242 = vector.broadcast %1236 : f32 to vector<16x128xf32>
      %1243 = arith.mulf %1230, %1242 : vector<16x128xf32>
      %1244 = arith.addf %1241, %1243 : vector<16x128xf32>
      %1245 = vector.broadcast %1238 : f32 to vector<16x128xf32>
      %1246 = arith.mulf %1228, %1245 : vector<16x128xf32>
      %1247 = arith.addf %1244, %1246 : vector<16x128xf32>
      %1248 = vector.broadcast %1234 : f32 to vector<16x128xf32>
      %1249 = arith.mulf %1230, %1248 : vector<16x128xf32>
      %1250 = arith.addf %1224, %1249 : vector<16x128xf32>
      %1251 = vector.broadcast %1236 : f32 to vector<16x128xf32>
      %1252 = arith.mulf %1228, %1251 : vector<16x128xf32>
      %1253 = arith.addf %1250, %1252 : vector<16x128xf32>
      %1254 = vector.broadcast %1238 : f32 to vector<16x128xf32>
      %1255 = arith.mulf %1232, %1254 : vector<16x128xf32>
      %1256 = arith.addf %1253, %1255 : vector<16x128xf32>
      %c14_380 = arith.constant 14 : index
      %c0_381 = arith.constant 0 : index
      %c0_382 = arith.constant 0 : index
      %1257 = vector.load %arg11[%c14_380, %c0_381, %c0_382] : memref<15x17x128xf32, #tpu.memory_space<vmem>>, vector<1x16x128xf32>
      %1258 = vector.shape_cast %1257 : vector<1x16x128xf32> to vector<16x128xf32>
      %c14_383 = arith.constant 14 : index
      %c1_384 = arith.constant 1 : index
      %c0_385 = arith.constant 0 : index
      %1259 = vector.load %arg11[%c14_383, %c1_384, %c0_385] : memref<15x17x128xf32, #tpu.memory_space<vmem>>, vector<1x16x128xf32>
      %1260 = vector.shape_cast %1259 : vector<1x16x128xf32> to vector<16x128xf32>
      %c14_386 = arith.constant 14 : index
      %c0_387 = arith.constant 0 : index
      %c0_388 = arith.constant 0 : index
      %1261 = vector.load %arg12[%c14_386, %c0_387, %c0_388] : memref<15x17x128xf32, #tpu.memory_space<vmem>>, vector<1x16x128xf32>
      %1262 = vector.shape_cast %1261 : vector<1x16x128xf32> to vector<16x128xf32>
      %c14_389 = arith.constant 14 : index
      %c1_390 = arith.constant 1 : index
      %c0_391 = arith.constant 0 : index
      %1263 = vector.load %arg12[%c14_389, %c1_390, %c0_391] : memref<15x17x128xf32, #tpu.memory_space<vmem>>, vector<1x16x128xf32>
      %1264 = vector.shape_cast %1263 : vector<1x16x128xf32> to vector<16x128xf32>
      %1265 = arith.index_cast %arg14 : i32 to index
      %c42_392 = arith.constant 42 : index
      %1266 = memref.load %arg4[%1265, %c42_392] : memref<30x45xf32, #tpu.memory_space<smem>>
      %1267 = arith.index_cast %arg14 : i32 to index
      %c43_393 = arith.constant 43 : index
      %1268 = memref.load %arg4[%1267, %c43_393] : memref<30x45xf32, #tpu.memory_space<smem>>
      %1269 = arith.index_cast %arg14 : i32 to index
      %c44_394 = arith.constant 44 : index
      %1270 = memref.load %arg4[%1269, %c44_394] : memref<30x45xf32, #tpu.memory_space<smem>>
      %1271 = vector.broadcast %1266 : f32 to vector<16x128xf32>
      %1272 = arith.mulf %1258, %1271 : vector<16x128xf32>
      %1273 = arith.addf %1247, %1272 : vector<16x128xf32>
      %1274 = vector.broadcast %1268 : f32 to vector<16x128xf32>
      %1275 = arith.mulf %1262, %1274 : vector<16x128xf32>
      %1276 = arith.addf %1273, %1275 : vector<16x128xf32>
      %1277 = vector.broadcast %1270 : f32 to vector<16x128xf32>
      %1278 = arith.mulf %1260, %1277 : vector<16x128xf32>
      %1279 = arith.addf %1276, %1278 : vector<16x128xf32>
      %1280 = vector.broadcast %1266 : f32 to vector<16x128xf32>
      %1281 = arith.mulf %1262, %1280 : vector<16x128xf32>
      %1282 = arith.addf %1256, %1281 : vector<16x128xf32>
      %1283 = vector.broadcast %1268 : f32 to vector<16x128xf32>
      %1284 = arith.mulf %1260, %1283 : vector<16x128xf32>
      %1285 = arith.addf %1282, %1284 : vector<16x128xf32>
      %1286 = vector.broadcast %1270 : f32 to vector<16x128xf32>
      %1287 = arith.mulf %1264, %1286 : vector<16x128xf32>
      %1288 = arith.addf %1285, %1287 : vector<16x128xf32>
      %1289 = arith.maximumf %1279, %1288 : vector<16x128xf32>
      %1290 = arith.index_cast %arg14 : i32 to index
      %1291 = memref.load %arg5[%1290] : memref<30xf32, #tpu.memory_space<smem>>
      %1292 = vector.broadcast %1291 : f32 to vector<16x128xf32>
      %1293 = arith.addf %1289, %1292 : vector<16x128xf32>
      %cst_395 = arith.constant 0.000000e+00 : f32
      %1294 = vector.broadcast %cst_395 : f32 to vector<16x128xf32>
      %1295 = arith.maximumf %1293, %1294 : vector<16x128xf32>
      %c16_i32 = arith.constant 16 : i32
      %1296 = arith.muli %arg14, %c16_i32 : i32
      %1297 = tpu.assume_multiple %1296, 16 : i32
      %1298 = arith.index_cast %1297 : i32 to index
      %c0_396 = arith.constant 0 : index
      %1299 = vector.load %arg13[%1298, %c0_396] : memref<480x128xf32, #tpu.memory_space<vmem>>, vector<16x128xf32>
      tpu.vector_store %arg13[%1298, %c0_396], %1295 {strides = array<i32>} : memref<480x128xf32, #tpu.memory_space<vmem>>, vector<16x128xf32>,
    }
    %c30_i32_152 = arith.constant 30 : i32
    %c0_153 = arith.constant 0 : index
    %c0_154 = arith.constant 0 : index
    %793 = vector.load %arg6[%c0_153, %c0_154] : memref<240x480xf32, #tpu.memory_space<vmem>>, vector<240x480xf32>
    %c0_155 = arith.constant 0 : index
    %c0_156 = arith.constant 0 : index
    %794 = vector.load %arg13[%c0_155, %c0_156] : memref<480x128xf32, #tpu.memory_space<vmem>>, vector<480x128xf32>
    %cst_157 = arith.constant dense<0.000000e+00> : vector<240x128xf32>
    %795 = tpu.matmul %793, %794, %cst_157 {dimension_numbers = #tpu.dot_dimension_numbers<[1], [0], [0], [1], [0, 0, 1, 1], [], []>} : vector<240x480xf32>, vector<480x128xf32>, vector<240x128xf32> -> vector<240x128xf32>
    %c0_158 = arith.constant 0 : index
    %c0_159 = arith.constant 0 : index
    %796 = vector.load %arg7[%c0_158, %c0_159] : memref<240x1xf32, #tpu.memory_space<vmem>>, vector<240x1xf32>
    %797 = vector.broadcast %796 : vector<240x1xf32> to vector<240x128xf32>
    %798 = arith.addf %795, %797 : vector<240x128xf32>
    %cst_160 = arith.constant 0.000000e+00 : f32
    %799 = vector.broadcast %cst_160 : f32 to vector<240x128xf32>
    %800 = arith.maximumf %798, %799 : vector<240x128xf32>
    %c0_161 = arith.constant 0 : index
    %c0_162 = arith.constant 0 : index
    %801 = vector.load %arg8[%c0_161, %c0_162] : memref<8x240xf32, #tpu.memory_space<vmem>>, vector<8x240xf32>
    %cst_163 = arith.constant dense<0.000000e+00> : vector<8x128xf32>
    %802 = tpu.matmul %801, %800, %cst_163 {dimension_numbers = #tpu.dot_dimension_numbers<[1], [0], [0], [1], [0, 0, 1, 1], [], []>} : vector<8x240xf32>, vector<240x128xf32>, vector<8x128xf32> -> vector<8x128xf32>
    %c0_164 = arith.constant 0 : index
    %c0_165 = arith.constant 0 : index
    %803 = vector.load %arg9[%c0_164, %c0_165] : memref<8x1xf32, #tpu.memory_space<vmem>>, vector<8x1xf32>
    %804 = vector.broadcast %803 : vector<8x1xf32> to vector<8x128xf32>
    %805 = arith.addf %802, %804 : vector<8x128xf32>
    %c0_166 = arith.constant 0 : index
    %c0_167 = arith.constant 0 : index
    %806 = vector.load %arg10[%c0_166, %c0_167] : memref<8x128xf32, #tpu.memory_space<vmem>>, vector<8x128xf32>
    tpu.vector_store %arg10[%c0_166, %c0_167], %805 {strides = array<i32>} : memref<8x128xf32, #tpu.memory_space<vmem>>, vector<8x128xf32>,
    return
  }
  func.func @transform_0(%arg0: i32) -> (i32, i32, i32) {
    %c0_i32 = arith.constant 0 : i32
    %c0_i32_0 = arith.constant 0 : i32
    %c0_i32_1 = arith.constant 0 : i32
    return %c0_i32, %c0_i32_0, %arg0 : i32, i32, i32
  }
  func.func @transform_1(%arg0: i32) -> i32 {
    %c0_i32 = arith.constant 0 : i32
    %c0_i32_0 = arith.constant 0 : i32
    return %c0_i32 : i32
  }
  func.func @transform_2(%arg0: i32) -> i32 {
    %c0_i32 = arith.constant 0 : i32
    %c0_i32_0 = arith.constant 0 : i32
    return %c0_i32 : i32
  }
  func.func @transform_3(%arg0: i32) -> (i32, i32) {
    %c0_i32 = arith.constant 0 : i32
    %c0_i32_0 = arith.constant 0 : i32
    %c0_i32_1 = arith.constant 0 : i32
    return %c0_i32, %c0_i32_0 : i32, i32
  }
  func.func @transform_4(%arg0: i32) -> i32 {
    %c0_i32 = arith.constant 0 : i32
    %c0_i32_0 = arith.constant 0 : i32
    return %c0_i32 : i32
  }
  func.func @transform_5(%arg0: i32) -> (i32, i32) {
    %c0_i32 = arith.constant 0 : i32
    %c0_i32_0 = arith.constant 0 : i32
    %c0_i32_1 = arith.constant 0 : i32
    return %c0_i32, %c0_i32_0 : i32, i32
  }
  func.func @transform_6(%arg0: i32) -> (i32, i32) {
    %c0_i32 = arith.constant 0 : i32
    %c0_i32_0 = arith.constant 0 : i32
    %c0_i32_1 = arith.constant 0 : i32
    return %c0_i32, %c0_i32_0 : i32, i32
  }
  func.func @transform_7(%arg0: i32) -> (i32, i32) {
    %c0_i32 = arith.constant 0 : i32
    %c0_i32_0 = arith.constant 0 : i32
    %c0_i32_1 = arith.constant 0 : i32
    return %c0_i32, %c0_i32_0 : i32, i32
  }
  func.func @transform_8(%arg0: i32) -> (i32, i32) {
    %c0_i32 = arith.constant 0 : i32
    %c0_i32_0 = arith.constant 0 : i32
    %c0_i32_1 = arith.constant 0 : i32
    return %c0_i32, %c0_i32_0 : i32, i32
  }
  func.func @transform_9(%arg0: i32) -> (i32, i32) {
    %c0_i32 = arith.constant 0 : i32
    %c0_i32_0 = arith.constant 0 : i32
    return %c0_i32, %arg0 : i32, i32
  }
}

</mosaic_0001>

<bundles_post_ra>
// kernel: _lambda_.1
= control target key start
LH: loop header
LB: loop body
LE: loop exit
PB: predicated region body
PF: predicated region fallthrough
CT: control target
= control target key end

     0   :  { %s6925_s0 = inlined_call_operand.vmem [shape: f32[4,18,256], index: 0, kind: input, shape index: {}]   ;;  %s6926_s1 = inlined_call_operand.vmem [shape: f32[45], index: 1, kind: input, shape index: {}]   ;;  %s6927_s2 = inlined_call_operand.vmem [shape: f32[15], index: 2, kind: input, shape index: {}]   ;;  %s6928_s3 = inlined_call_operand.hbm [shape: f32[30,45], index: 3, kind: input, shape index: {}]   ;;  %s6929_s4 = inlined_call_operand.vmem [shape: f32[30], index: 4, kind: input, shape index: {}]   ;;  %s6930_s5 = inlined_call_operand.vmem [shape: f32[240,480], index: 5, kind: input, shape index: {}]   ;;  %s6931_s6 = inlined_call_operand.vmem [shape: f32[240,1], index: 6, kind: input, shape index: {}]   ;;  %s6932_s7 = inlined_call_operand.hbm [shape: f32[8,240], index: 7, kind: input, shape index: {}]   ;;  %s6933_s8 = inlined_call_operand.vmem [shape: f32[8,1], index: 8, kind: input, shape index: {}]   ;;  %s6934_s9 = inlined_call_operand.hbm [shape: f32[8,256], index: 9, kind: output, shape index: {}]  }
   0x1   :  { %6940 = sst [smem:[#allocation25_spill]] %s6926_s1 }
   0x2   :  { %6941 = sst [smem:[#allocation26_spill]] %s6927_s2 }
   0x3   :  { %14 = vsyncpa [#allocation10], 0 }
   0x4   :  { %15 = vsyncpa [#allocation12], 0 }
   0x5   :  { %16 = vsyncpa [#allocation9], 0 }
   0x6   :  { %17 = vsyncpa [#allocation7], 0 }
   0x7   :  { %18 = vsyncpa [#allocation8], 0 }
   0x8   :  { %20 = vsyncpa [#allocation8 + $0x1], 0  ;;  %s4369_s30 = smov 0   ;;  %s4371_s10 = smov 0  }
   0x9   :  { %s4373_s11 = smov 0   ;;  %s4375_s12 = smov 0  }
   0xa LB: > { %s4390_s13 = sadd.s32 4294967295, %s4303_s12   ;;  %s3671_s14 = sadd.s32 4294967294, %s4303_s12   ;;  %s4303_s12 = sphi %s4375_s12, %s6967_s12   ;;  %s4299_s11 = sphi %s4373_s11, %s6971_s11   ;;  %s4295_s10 = sphi %s4371_s10, %s6970_s10   ;;  %s4291_s30 = sphi %s4369_s30, %s6969_s30  }
   0xb   : > { %s4394_s15 = sadd.s32 1, %s4303_s12   ;;  %s33_s16 = sadd.s32 1, %s4299_s11 }
   0xc   : > { %6942 = sst [smem:[#allocation23_spill]] %s4394_s15  ;;  %s30_s17 = ssub.s32 %s4303_s12, %s4394_s15 }
   0xd   : > { %p40_p0 = scmp.ne.s32.totalorder %s4299_s11, %s4295_s10  ;;  %p31_p1 = scmp.eq.s32.totalorder %s30_s17, 0 }
   0xe   : > { %p41_p2 = scmp.eq.s32.totalorder %s4303_s12, 0  ;;  %p238_p3 = scmp.eq.s32.totalorder %s4390_s13, 1 }
   0xf   : > { %p243_p4 = scmp.ne.s32.totalorder %s4295_s10, %s4291_s30  ;;  %p244_p7 = scmp.eq.s32.totalorder %s3671_s14, 1 }
  0x10   : > { %s4406_s18 = scalar_select %p31_p1, %s4299_s11, %s33_s16  }
  0x11   : > { %p4408_p5 = por %p41_p2, %p40_p0  ;;  %p4412_p6 = por %p238_p3, %p40_p0 }
  0x12   : > { %6943 = sst [smem:[#allocation24_spill]] %s4406_s18  ;;  %p3672_p8 = scmp.ge.s32.totalorder %s4303_s12, 1 }
  0x13   : > { %s6944_s19 = scalar_select %p4408_p5, 1, 0 }
  0x14   : > { %s6945_s20 = scalar_select %p4412_p6, 1, 0 }
  0x15   : > { %p251_p9 = scmp.lt.s32.totalorder %s4303_s12, 3  ;;  %p4418_p10 = por %p244_p7, %p243_p4 }
  0x16   : > { %p6935_p11 = scmp.eq.s32.totalorder %s4390_s13, 0  ;;  %s6948_s2 = sld [smem:[#allocation26_spill]] }
  0x17   : > { %s6946_s21 = scalar_select %p4418_p10, 1, 0 }
  0x18   : > { %p4423_p12 = pnand %p3672_p8, %p251_p9  ;;  %s6949_s1 = sld [smem:[#allocation25_spill]] }
  0x1a   : > { %s6947_s22 = scalar_select %p4423_p12, 1, 0 }
  0x1b   : > { %p4013_p13 = pneg %p4423_p12 }
  0x1c   : > { %s275_s25 = sshll.u32 %s6948_s2, 4  ;;  %s276_s25 = int_to_ptr.vmem [resolvable:$true] %s275_s25 }
  0x1d   : > { %p4437_p0 = pnand %p6935_p11, %p4013_p13  ;;  %s4131_s23 = scalar_lea.vmem %s276_s25, 16 }
  0x1e   : > { %s264_s28 = sshll.u32 %s6949_s1, 4  ;;  %p4132_p1 = scmp.ne.s32.totalorder %s276_s25, %s4131_s23  ;;  %s265_s28 = int_to_ptr.vmem [resolvable:$true] %s264_s28 }
  0x1f   : > { %p4446_p2 = pneg %p4437_p0  ;;  %p4139_p7 = scmp.lt.s32.totalorder %s276_s25, %s276_s25 }
  0x20   : > { %p4140_p8 = scmp.lt.s32.totalorder %s4131_s23, %s4131_s23 }
  0x21   : > { %p4134_p3 = pnand %p4446_p2, %p4132_p1 }
  0x22   : > { %p4141_p9 = por %p4140_p8, %p4139_p7 }
  0x23   : > { %p4135_p4 = pneg %p4134_p3 }
  0x25   : > { %p4142_p13 = pnand %p4141_p9, %p4135_p4 }
  0x27   : > { %4145 = shalt.err (!%p4142_p13)
}
  0x28   : > { %s4309_s26 = smov [#allocation11]   ;;  %s4146_s27 = scalar_lea.vmem %s265_s28, 16 }
  0x29   : > { %4019 = dma.vmem_to_smem (!%p4437_p0), %s276_s25, 16, %s4309_s26, [#allocation12]  }
  0x2a   : > { %p4147_p11 = scmp.ne.s32.totalorder %s265_s28, %s4146_s27  ;;  %p4154_p12 = scmp.lt.s32.totalorder %s265_s28, %s265_s28 }
  0x2b   : > { %p4155_p5 = scmp.lt.s32.totalorder %s4146_s27, %s4146_s27 }
  0x2c   : > { %p4149_p10 = pnand %p4147_p11, %p4446_p2 }
  0x2d   : > { %p4156_p1 = por %p4155_p5, %p4154_p12 }
  0x2e   : > { %p4150_p6 = pneg %p4149_p10 }
  0x30   : > { %p4157_p3 = pnand %p4156_p1, %p4150_p6 }
  0x32   : > { %4160 = shalt.err (!%p4157_p3)
}
  0x33   : > { %s4310_s14 = smov [#allocation6]   ;;  %s4161_s17 = scalar_lea.hbm %s6928_s3, 512 }
  0x34   : > { %4016 = dma.vmem_to_smem (!%p4437_p0), %s265_s28, 16, %s4310_s14, [#allocation10]  }
  0x35   : > { %p4162_p4 = scmp.ne.s32.totalorder %s6928_s3, %s4161_s17  ;;  %p4168_p5 = scmp.lt.u32.totalorder %s4161_s17, %s6928_s3 }
  0x37   : > { %p4164_p10 = pnand %p4162_p4, %p4446_p2 }
  0x39   : > { %p4165_p11 = pneg %p4164_p10 }
  0x3b   : > { %p4170_p6 = pnand %p4168_p5, %p4165_p11 }
  0x3d   : > { %4173 = shalt.err (!%p4170_p6)
}
  0x3e   : > { %s4311_s2 = smov [#allocation13]   ;;  %s4312_s28 = smov 128  }
  0x3f   : > { %s4313_s14 = smov 8   ;;  %s6952_s18 = sshll.u32 %s6929_s4, 4  ;;  %s298_s18 = int_to_ptr.vmem [resolvable:$true] %s6952_s18 }
  0x40   : > { %4022 = dma.hbm_to_smem (!%p4437_p0), %s6928_s3, 512, %s4311_s2, [#allocation9], %s4312_s28, %s4312_s28, %s4313_s14  }
  0x41   : > { %s4174_s15 = scalar_lea.vmem %s298_s18, 16  ;;  %p4182_p9 = scmp.lt.s32.totalorder %s298_s18, %s298_s18 }
  0x42   : > { %p4175_p12 = scmp.ne.s32.totalorder %s298_s18, %s4174_s15  ;;  %p4183_p13 = scmp.lt.s32.totalorder %s4174_s15, %s4174_s15 }
  0x44   : > { %p4177_p7 = pnand %p4175_p12, %p4446_p2  ;;  %p4184_p1 = por %p4183_p13, %p4182_p9 }
  0x46   : > { %p4178_p8 = pneg %p4177_p7 }
  0x48   : > { %p4185_p3 = pnand %p4184_p1, %p4178_p8 }
  0x4a   : > { %4188 = shalt.err (!%p4185_p3)
}
  0x4b   : > { %s4314_s1 = smov [#allocation14]   ;;  %s4315_s2 = smov [#allocation15]  }
  0x4c   : > { %4025 = dma.vmem_to_smem (!%p4437_p0), %s298_s18, 16, %s4314_s1, [#allocation12]  }
  0x4d   : > { %s314_s17 = sshll.u32 %s4315_s2, 4  ;;  %s4189_s14 = scalar_lea.hbm %s6932_s7, 256  ;;  %s315_s17 = int_to_ptr.vmem [resolvable:$true] %s314_s17 }
  0x4e   : > { %p4190_p4 = scmp.ne.s32.totalorder %s6932_s7, %s4189_s14  ;;  %p4196_p5 = scmp.lt.u32.totalorder %s4189_s14, %s6932_s7 }
  0x50   : > { %p4192_p10 = pnand %p4190_p4, %p4446_p2 }
  0x52   : > { %p4193_p11 = pneg %p4192_p10 }
  0x54   : > { %p4198_p6 = pnand %p4196_p5, %p4193_p11 }
  0x56   : > { %4201 = shalt.err (!%p4198_p6)
}
  0x57   : > { %s4202_s18 = scalar_lea.vmem %s315_s17, 256  ;;  %p4210_p9 = scmp.lt.s32.totalorder %s315_s17, %s315_s17 }
  0x58   : > { %p4203_p12 = scmp.ne.s32.totalorder %s315_s17, %s4202_s18  ;;  %p4211_p13 = scmp.lt.s32.totalorder %s4202_s18, %s4202_s18 }
  0x5a   : > { %p4205_p7 = pnand %p4203_p12, %p4446_p2  ;;  %p4212_p1 = por %p4211_p13, %p4210_p9 }
  0x5c   : > { %p4206_p8 = pneg %p4205_p7 }
  0x5e   : > { %p4213_p3 = pnand %p4212_p1, %p4206_p8 }
  0x60   : > { %4216 = shalt.err (!%p4213_p3)
}
  0x61   : > { %4028 = dma.hbm_to_vmem [thread:$0]  (!%p4437_p0), %s6932_s7, 256, %s315_s17, [#allocation7]  }
  0x62   : > { %p3678_p4 = scmp.ge.s32.totalorder %s4303_s12, 2 }
  0x63   : > { %p6953_p10 = scmp.ne.s32.totalorder (!%p3678_p4), %s6944_s19, 0 }
  0x64   : > { %324 = sbr.rel (%p3678_p4) target bundleno = 117 (0x75), region = 48 }
  0x6b   : > { %327 = sbr.rel (!%p6953_p10) target bundleno = 117 (0x75), region = 52  ;;  %s329_s24 = sand.u32 (%p6953_p10), 1, %s4299_s11  }
  0x6c   : > { %s3679_s2 = sshll.u32 (%p6953_p10), %s4303_s12, 3  ;;  %s3989_s27 = smul.u32 (%p6953_p10), 96, %s329_s24 }
  0x6d   : > { %s333_s29 = scalar_lea.vmem (%p6953_p10), %s6925_s0, %s3679_s2 }
  0x6e   : > { %v383_v0 = vld [vmem:[%s333_s29] sm:$0xff] (%p6953_p10)  ;;  %v385_v1 = vld [vmem:[%s333_s29 + $0x10] sm:$0xff] (%p6953_p10)  ;;  %s331_s17 = scalar_lea.vmem (%p6953_p10), [#allocation5], %s3989_s27 }
  0x6f   : > { %v387_v2 = vld [vmem:[%s333_s29 + $0x20] sm:$0xff] (%p6953_p10)  ;;  %v389_v3 = vld [vmem:[%s333_s29 + $0x30] sm:$0xff] (%p6953_p10)  ;;  %384 = vst [vmem:[%s331_s17] sm:$0xff] (%p6953_p10), %v383_v0  ;;  %386 = vst [vmem:[%s331_s17 + $0x8] sm:$0xff] (%p6953_p10), %v385_v1 }
  0x70   : > { %v391_v4 = vld [vmem:[%s333_s29 + $0x40] sm:$0xff] (%p6953_p10)  ;;  %v393_v5 = vld [vmem:[%s333_s29 + $0x50] sm:$0xff] (%p6953_p10)  ;;  %388 = vst [vmem:[%s331_s17 + $0x10] sm:$0xff] (%p6953_p10), %v387_v2  ;;  %390 = vst [vmem:[%s331_s17 + $0x18] sm:$0xff] (%p6953_p10), %v389_v3 }
  0x71   : > { %392 = vst [vmem:[%s331_s17 + $0x20] sm:$0xff] (%p6953_p10), %v391_v4  ;;  %394 = vst [vmem:[%s331_s17 + $0x28] sm:$0xff] (%p6953_p10), %v393_v5  ;;  %v395_v6 = vld [vmem:[%s333_s29 + $0x60] sm:$0xff] (%p6953_p10)  ;;  %v397_v7 = vld [vmem:[%s333_s29 + $0x70] sm:$0xff] (%p6953_p10) }
  0x72   : > { %v399_v8 = vld [vmem:[%s333_s29 + $0x80] sm:$0xff]  ;;  %396 = vst [vmem:[%s331_s17 + $0x30] sm:$0xff] %v395_v6  ;;  %398 = vst [vmem:[%s331_s17 + $0x38] sm:$0xff] %v397_v7  ;;  %v401_v9 = vld [vmem:[%s333_s29 + $0x90] sm:$0xff] }
  0x73   : > { %400 = vst [vmem:[%s331_s17 + $0x40] sm:$0xff] %v399_v8  ;;  %v403_v10 = vld [vmem:[%s333_s29 + $0xa0] sm:$0xff]  ;;  %v405_v11 = vld [vmem:[%s333_s29 + $0xb0] sm:$0xff]  ;;  %402 = vst [vmem:[%s331_s17 + $0x48] sm:$0xff] %v401_v9 }
  0x74   : > { %404 = vst [vmem:[%s331_s17 + $0x50] sm:$0xff] %v403_v10  ;;  %406 = vst [vmem:[%s331_s17 + $0x58] sm:$0xff] %v405_v11 }
  0x75 PF: > { %p6954_p0 = scmp.ne.s32.totalorder %s6947_s22, 0 }
  0x76   : > { %s4513_s19 = sand.u32 (!%p6954_p0), 1, %s4295_s10   ;;  %p6955_p2 = scmp.eq.s32.totalorder (!%p6954_p0), %s4390_s13, 0 }
  0x77   : > { %415 = sbr.rel (%p6954_p0) target bundleno = 1223 (0x4c7), region = 90 }
  0x78   : > { %s3990_s16 = smul.u32 (!%p6954_p0), 96, %s4513_s19 }
  0x7a   : > { %s4516_s23 = scalar_lea.vmem (!%p6954_p0), [#allocation5], %s3990_s16 }
  0x7e   : > { %4266 = dma.done.wait (%p6955_p2), [#allocation10], 16   ;;  %p6956_p11 = pmov %p6955_p2 }
  0x7f   : > { %p6957_p5 = pmov %p6955_p2 }
  0x80   : > { %4268 = vsyncadd (%p6956_p11), [#allocation10], 4294967280 }
  0x81   : > { %4270 = dma.done.wait (%p6957_p5), [#allocation12], 16   ;;  %p6958_p6 = pmov %p6955_p2 }
  0x82   : > { %p6959_p12 = pmov %p6955_p2 }
  0x83   : > { %4272 = vsyncadd (%p6958_p6), [#allocation12], 4294967280 }
  0x84   : > { %4274 = dma.done.wait (%p6959_p12), [#allocation9], 512   ;;  %p6960_p7 = pmov %p6955_p2 }
  0x85   : > { %p6961_p8 = pmov %p6955_p2 }
  0x86   : > { %4276 = vsyncadd (%p6960_p7), [#allocation9], 4294966784 }
  0x87   : > { %4278 = dma.done.wait (%p6961_p8), [#allocation12], 16   ;;  %p6962_p9 = pmov %p6955_p2 }
  0x88   : > { %p6963_p13 = pmov %p6955_p2 }
  0x89   : > { %4280 = vsyncadd (%p6962_p9), [#allocation12], 4294967280 }
  0x8a   : > { %4282 = dma.done.wait (%p6963_p13), [#allocation7], 256   ;;  %p6964_p1 = pmov %p6955_p2 }
  0x8c   : > { %4284 = vsyncadd (%p6964_p1), [#allocation7], 4294967040 }
  0x8d   : > { %444 = sfence }
  0x8e   : > { %s3686_s22 = sshll.u32 %s4513_s19, 3  ;;  %s495_s15 = sld [smem:[#allocation6]]  ;;  %v4540_v12 = vld [vmem:[%s4516_s23] sm:$0xff]  ;;  %v4543_v13 = vld [vmem:[%s4516_s23 + $0x18] sm:$0xff]  ;;  %v4546_v14 = vld [vmem:[%s4516_s23 + $0x8] sm:$0xff] }
  0x8f   : > { %s3699_s25 = sld [smem:[#allocation6 + $0x1]]  ;;  %s3700_s18 = sld [smem:[#allocation6 + $0x2]]  ;;  %v4549_v15 = vld [vmem:[%s4516_s23 + $0x30] sm:$0xff]  ;;  %v4554_v17 = vld [vmem:[%s4516_s23 + $0x20] sm:$0xff]  ;;  %v4557_v18 = vld [vmem:[%s4516_s23 + $0x48] sm:$0xff] }
  0x90   : > { %s498_s26 = sld [smem:[#allocation11]]  ;;  %v4566_v22 = vld [vmem:[%s4516_s23 + $0x38] sm:$0xff]  ;;  %v4579_v28 = vld [vmem:[%s4516_s23 + $0x10] sm:$0x1]  ;;  %v4582_v29 = vld [vmem:[%s4516_s23 + $0x28] sm:$0x1] }
  0x91   : > { %v4593_v36 = vld [vmem:[%s4516_s23 + $0x50] sm:$0xff]  ;;  %v4600_v39 = vld [vmem:[%s4516_s23 + $0x40] sm:$0x1]  ;;  %v4611_v49 = vld [vmem:[%s4516_s23 + $0x58] sm:$0x1]  ;;  %s4636_s1 = sld [smem:[#allocation6 + $0x3]] }
  0x92   : > { %v4618_v53 = vld [vmem:[%s4516_s23 + $0x1] sm:$0xff]  ;;  %v4623_v57 = vld [vmem:[%s4516_s23 + $0x19] sm:$0xff]  ;;  %v4641_v6 = vld [vmem:[%s4516_s23 + $0x9] sm:$0xff]  ;;  %s4645_s24 = sld [smem:[#allocation6 + $0x4]]  ;;  %s4653_s2 = sld [smem:[#allocation6 + $0x5]] }
  0x93   : > { %v4649_v11 = vld [vmem:[%s4516_s23 + $0x21] sm:$0xff]  ;;  %s4664_s27 = sld [smem:[#allocation11 + $0x1]]  ;;  %s4746_s28 = sld [smem:[#allocation6 + $0x6]] }
  0x94   : > { %v4551_v16 = vstv %s495_s15  ;;  %s4748_s14 = sld [smem:[#allocation6 + $0x7]]  ;;  %s4759_s29 = sld [smem:[#allocation6 + $0x8]] }
  0x95   : > { %v500_v19 = vmul.f32 %v4551_v16, %v4540_v12  ;;  %v4561_v20 = vstv %s3699_s25  ;;  %v517_v21 = vmul.f32 %v4543_v13, %v4551_v16  ;;  %v501_v23 = vmul.f32 %v4551_v16, %v4546_v14  ;;  %s4769_s17 = sld [smem:[#allocation11 + $0x2]]  ;;  %s4844_s16 = sld [smem:[#allocation6 + $0x9]] }
  0x96   : > { %v504_v24 = vmul.f32 %v4543_v13, %v4561_v20  ;;  %v4572_v25 = vstv %s3700_s18  ;;  %v520_v26 = vmul.f32 %v4549_v15, %v4561_v20  ;;  %v4576_v27 = vstv %s498_s26  ;;  %s4848_s15 = sld [smem:[#allocation6 + $0xa]]  ;;  %s4855_s25 = sld [smem:[#allocation6 + $0xb]] }
  0x97   : > { %v511_v30 = vmul.f32 %v4549_v15, %v4572_v25  ;;  %v526_v31 = vmul.f32 %v4557_v18, %v4572_v25  ;;  %v505_v32 = vmul.f32 %v4554_v17, %v4561_v20  ;;  %v512_v33 = vmul.f32 %v4566_v22, %v4572_v25  ;;  %s4863_s18 = sld [smem:[#allocation11 + $0x3]]  ;;  %s4942_s26 = sld [smem:[#allocation6 + $0xc]] }
  0x98   : > { %v507_v34 = vadd.f32 %v504_v24, %v500_v19  ;;  %v523_v35 = vadd.f32 %v520_v26, %v517_v21  ;;  %v518_v37 = vmul.f32 %v4554_v17, %v4551_v16  ;;  %v521_v38 = vmul.f32 %v4566_v22, %v4561_v20 }
  0x99   : > { %v508_v40 = vadd.f32 %v505_v32, %v501_v23  ;;  %v527_v41 = vmul.f32 %v4593_v36, %v4572_v25  ;;  %v502_v42 = vmul.f32 %v4551_v16, %v4579_v28  ;;  %v506_v43 = vmul.f32 %v4582_v29, %v4561_v20 }
  0x9a   : > { %v514_v44 = vadd.f32 %v511_v30, %v507_v34  ;;  %v529_v45 = vadd.f32 %v526_v31, %v523_v35  ;;  %v524_v46 = vadd.f32 %v521_v38, %v518_v37  ;;  %v513_v47 = vmul.f32 %v4600_v39, %v4572_v25  ;;  %v4662_v34 = vld [vmem:[%s4516_s23 + $0x11] sm:$0x1]  ;;  %v4670_v38 = vld [vmem:[%s4516_s23 + $0x29] sm:$0x1] }
  0x9b   : > { %v515_v48 = vadd.f32 %v512_v33, %v508_v40  ;;  %v509_v50 = vadd.f32 %v506_v43, %v502_v42  ;;  %v519_v51 = vmul.f32 %v4582_v29, %v4551_v16  ;;  %v522_v52 = vmul.f32 %v4600_v39, %v4561_v20 }
  0x9c   : > { %v562_v54 = vmax.f32 %v514_v44, %v529_v45  ;;  %v530_v55 = vadd.f32 %v527_v41, %v524_v46  ;;  %v528_v56 = vmul.f32 %v4611_v49, %v4572_v25  ;;  %v532_v58 = vmul.f32 %v4549_v15, %v4551_v16 }
  0x9d   : > { %v516_v59 = vadd.f32 %v513_v47, %v509_v50  ;;  %v525_v60 = vadd.f32 %v522_v52, %v519_v51  ;;  %v535_v61 = vmul.f32 %v4557_v18, %v4561_v20  ;;  %v541_v62 = vmul.f32 %v4572_v25, %v4618_v53 }
  0x9e   : > { %v566_v63 = vadd.f32 %v4576_v27, %v562_v54  ;;  %v563_v0 = vmax.f32 %v515_v48, %v530_v55  ;;  %v547_v1 = vmul.f32 %v4557_v18, %v4551_v16  ;;  %v550_v2 = vmul.f32 %v4561_v20, %v4618_v53 }
  0x9f   : > { %v531_v3 = vadd.f32 %v528_v56, %v525_v60  ;;  %v538_v4 = vadd.f32 %v535_v61, %v532_v58  ;;  %v556_v5 = vmul.f32 %v4623_v57, %v4572_v25  ;;  %v533_v7 = vmul.f32 %v4566_v22, %v4551_v16 }
  0xa0   : > { %v569_v8 = vmax.f32 %v566_v63, 0.0  ;;  %v567_v9 = vadd.f32 %v4576_v27, %v563_v0  ;;  %v553_v10 = vadd.f32 %v550_v2, %v547_v1  ;;  %v536_v19 = vmul.f32 %v4593_v36, %v4561_v20 }
  0xa1   : > { %v564_v21 = vmax.f32 %v516_v59, %v531_v3  ;;  %v544_v23 = vadd.f32 %v541_v62, %v538_v4  ;;  %v542_v24 = vmul.f32 %v4572_v25, %v4641_v6  ;;  %v548_v26 = vmul.f32 %v4593_v36, %v4551_v16 }
  0xa2   : > { %572 = vst [vmem:[#allocation2] sm:$0xff] %v569_v8  ;;  %v570_v30 = vmax.f32 %v567_v9, 0.0  ;;  %v559_v31 = vadd.f32 %v556_v5, %v553_v10  ;;  %v539_v32 = vadd.f32 %v536_v19, %v533_v7  ;;  %v551_v33 = vmul.f32 %v4561_v20, %v4641_v6 }
  0xa3   : > { %v568_v35 = vadd.f32 %v4576_v27, %v564_v21  ;;  %v557_v37 = vmul.f32 %v4649_v11, %v4572_v25  ;;  %v534_v40 = vmul.f32 %v4600_v39, %v4551_v16  ;;  %v537_v41 = vmul.f32 %v4611_v49, %v4561_v20 }
  0xa4   : > { %573 = vst [vmem:[#allocation2 + $0x8] sm:$0xff] %v570_v30  ;;  %v575_v42 = vmax.f32 %v544_v23, %v559_v31  ;;  %v545_v43 = vadd.f32 %v542_v24, %v539_v32  ;;  %v554_v44 = vadd.f32 %v551_v33, %v548_v26  ;;  %v543_v45 = vmul.f32 %v4572_v25, %v4662_v34 }
  0xa5   : > { %v571_v46 = vmax.f32 %v568_v35, 0.0  ;;  %v540_v47 = vadd.f32 %v537_v41, %v534_v40  ;;  %v549_v48 = vmul.f32 %v4611_v49, %v4551_v16  ;;  %v552_v50 = vmul.f32 %v4561_v20, %v4662_v34 }
  0xa6   : > { %v578_v51 = vadd.f32 %v575_v42, %v4576_v27  ;;  %v560_v52 = vadd.f32 %v557_v37, %v554_v44  ;;  %v558_v54 = vmul.f32 %v4670_v38, %v4572_v25  ;;  %v4686_v55 = vstv %s4636_s1  ;;  %s4944_s1 = sld [smem:[#allocation6 + $0xd]] }
  0xa7   : > { %574 = vst [vmem:[#allocation2 + $0x10] sm:$0x1] %v571_v46  ;;  %v546_v56 = vadd.f32 %v543_v45, %v540_v47  ;;  %v555_v58 = vadd.f32 %v552_v50, %v549_v48  ;;  %v592_v59 = vmul.f32 %v4686_v55, %v4540_v12  ;;  %v4691_v60 = vstv %s4645_s24  ;;  %s4955_s24 = sld [smem:[#allocation6 + $0xe]] }
  0xa8   : > { %v581_v16 = vmax.f32 %v578_v51, 0.0  ;;  %v576_v61 = vmax.f32 %v545_v43, %v560_v52  ;;  %v596_v20 = vmul.f32 %v4543_v13, %v4691_v60  ;;  %v4696_v62 = vstv %s4653_s2  ;;  %s4965_s2 = sld [smem:[#allocation11 + $0x4]] }
  0xa9   : > { %v561_v63 = vadd.f32 %v558_v54, %v555_v58  ;;  %v603_v25 = vmul.f32 %v4549_v15, %v4696_v62  ;;  %v609_v0 = vmul.f32 %v4543_v13, %v4686_v55  ;;  %v612_v1 = vmul.f32 %v4549_v15, %v4691_v60 }
  0xaa   : > { %584 = vst [vmem:[#allocation3] sm:$0xff] %v581_v16  ;;  %v579_v2 = vadd.f32 %v576_v61, %v4576_v27  ;;  %v599_v3 = vadd.f32 %v596_v20, %v592_v59  ;;  %v618_v4 = vmul.f32 %v4557_v18, %v4696_v62  ;;  %v4708_v5 = vstv %s4664_s27  ;;  %s5040_s27 = sld [smem:[#allocation6 + $0xf]] }
  0xab   : > { %v577_v7 = vmax.f32 %v546_v56, %v561_v63  ;;  %v615_v8 = vadd.f32 %v612_v1, %v609_v0  ;;  %v593_v9 = vmul.f32 %v4686_v55, %v4546_v14  ;;  %v597_v10 = vmul.f32 %v4554_v17, %v4691_v60 }
  0xac   : > { %v582_v19 = vmax.f32 %v579_v2, 0.0  ;;  %v606_v21 = vadd.f32 %v603_v25, %v599_v3  ;;  %v604_v23 = vmul.f32 %v4566_v22, %v4696_v62  ;;  %v610_v24 = vmul.f32 %v4554_v17, %v4686_v55 }
  0xad   : > { %v580_v26 = vadd.f32 %v577_v7, %v4576_v27  ;;  %v621_v30 = vadd.f32 %v618_v4, %v615_v8  ;;  %v600_v31 = vadd.f32 %v597_v10, %v593_v9  ;;  %v613_v32 = vmul.f32 %v4566_v22, %v4691_v60 }
  0xae   : > { %585 = vst [vmem:[#allocation3 + $0x8] sm:$0xff] %v582_v19  ;;  %v619_v33 = vmul.f32 %v4593_v36, %v4696_v62  ;;  %v594_v35 = vmul.f32 %v4686_v55, %v4579_v28  ;;  %v598_v37 = vmul.f32 %v4582_v29, %v4691_v60  ;;  %v605_v40 = vmul.f32 %v4600_v39, %v4696_v62 }
  0xaf   : > { %v583_v41 = vmax.f32 %v580_v26, 0.0  ;;  %v654_v27 = vmax.f32 %v606_v21, %v621_v30  ;;  %v607_v42 = vadd.f32 %v604_v23, %v600_v31  ;;  %v616_v43 = vadd.f32 %v613_v32, %v610_v24 }
  0xb0   : > { %v601_v44 = vadd.f32 %v598_v37, %v594_v35  ;;  %v611_v45 = vmul.f32 %v4582_v29, %v4686_v55  ;;  %v614_v46 = vmul.f32 %v4600_v39, %v4691_v60  ;;  %v620_v47 = vmul.f32 %v4611_v49, %v4696_v62 }
  0xb1   : > { %586 = vst [vmem:[#allocation3 + $0x10] sm:$0x1] %v583_v41  ;;  %v658_v48 = vadd.f32 %v4708_v5, %v654_v27  ;;  %v622_v50 = vadd.f32 %v619_v33, %v616_v43  ;;  %v624_v51 = vmul.f32 %v4549_v15, %v4686_v55  ;;  %v627_v52 = vmul.f32 %v4557_v18, %v4691_v60 }
  0xb2   : > { %v608_v54 = vadd.f32 %v605_v40, %v601_v44  ;;  %v617_v56 = vadd.f32 %v614_v46, %v611_v45  ;;  %v633_v58 = vmul.f32 %v4696_v62, %v4618_v53  ;;  %v639_v59 = vmul.f32 %v4557_v18, %v4686_v55 }
  0xb3   : > { %v661_v16 = vmax.f32 %v658_v48, 0.0  ;;  %v655_v61 = vmax.f32 %v607_v42, %v622_v50  ;;  %v630_v20 = vadd.f32 %v627_v52, %v624_v51  ;;  %v642_v63 = vmul.f32 %v4691_v60, %v4618_v53 }
  0xb4   : > { %v623_v25 = vadd.f32 %v620_v47, %v617_v56  ;;  %v648_v0 = vmul.f32 %v4623_v57, %v4696_v62  ;;  %v625_v1 = vmul.f32 %v4566_v22, %v4686_v55  ;;  %v628_v2 = vmul.f32 %v4593_v36, %v4691_v60 }
  0xb5   : > { %665 = vst [vmem:[#allocation2 + $0x18] sm:$0xff] %v661_v16  ;;  %v659_v3 = vadd.f32 %v4708_v5, %v655_v61  ;;  %v636_v4 = vadd.f32 %v633_v58, %v630_v20  ;;  %v645_v7 = vadd.f32 %v642_v63, %v639_v59  ;;  %v634_v8 = vmul.f32 %v4696_v62, %v4641_v6 }
  0xb6   : > { %v656_v9 = vmax.f32 %v608_v54, %v623_v25  ;;  %v631_v10 = vadd.f32 %v628_v2, %v625_v1  ;;  %v640_v19 = vmul.f32 %v4593_v36, %v4686_v55  ;;  %v643_v21 = vmul.f32 %v4691_v60, %v4641_v6 }
  0xb7   : > { %v662_v23 = vmax.f32 %v659_v3, 0.0  ;;  %v651_v24 = vadd.f32 %v648_v0, %v645_v7  ;;  %v649_v26 = vmul.f32 %v4649_v11, %v4696_v62  ;;  %v626_v30 = vmul.f32 %v4600_v39, %v4686_v55 }
  0xb8   : > { %v660_v31 = vadd.f32 %v4708_v5, %v656_v9  ;;  %v637_v32 = vadd.f32 %v634_v8, %v631_v10  ;;  %v646_v33 = vadd.f32 %v643_v21, %v640_v19  ;;  %v629_v35 = vmul.f32 %v4611_v49, %v4691_v60 }
  0xb9   : > { %666 = vst [vmem:[#allocation2 + $0x20] sm:$0xff] %v662_v23  ;;  %v668_v37 = vmax.f32 %v636_v4, %v651_v24  ;;  %v635_v40 = vmul.f32 %v4696_v62, %v4662_v34  ;;  %v641_v41 = vmul.f32 %v4611_v49, %v4686_v55  ;;  %v644_v27 = vmul.f32 %v4691_v60, %v4662_v34 }
  0xba   : > { %v663_v42 = vmax.f32 %v660_v31, 0.0  ;;  %v652_v43 = vadd.f32 %v649_v26, %v646_v33  ;;  %v632_v44 = vadd.f32 %v629_v35, %v626_v30  ;;  %v650_v45 = vmul.f32 %v4670_v38, %v4696_v62 }
  0xbb   : > { %v671_v46 = vadd.f32 %v668_v37, %v4708_v5  ;;  %v647_v47 = vadd.f32 %v644_v27, %v641_v41  ;;  %v4784_v48 = vstv %s4746_s28  ;;  %v4787_v50 = vstv %s4748_s14  ;;  %s5044_s28 = sld [smem:[#allocation6 + $0x10]]  ;;  %s5051_s14 = sld [smem:[#allocation6 + $0x11]] }
  0xbc   : > { %667 = vst [vmem:[#allocation2 + $0x28] sm:$0x1] %v663_v42  ;;  %v669_v55 = vmax.f32 %v637_v32, %v652_v43  ;;  %v638_v51 = vadd.f32 %v635_v40, %v632_v44  ;;  %v686_v60 = vmul.f32 %v4784_v48, %v4540_v12  ;;  %v690_v52 = vmul.f32 %v4543_v13, %v4787_v50 }
  0xbd   : > { %v674_v54 = vmax.f32 %v671_v46, 0.0  ;;  %v653_v56 = vadd.f32 %v650_v45, %v647_v47  ;;  %v4794_v62 = vstv %s4759_s29  ;;  %v703_v58 = vmul.f32 %v4543_v13, %v4784_v48  ;;  %s5059_s29 = sld [smem:[#allocation11 + $0x5]] }
  0xbe   : > { %v672_v59 = vadd.f32 %v669_v55, %v4708_v5  ;;  %v693_v16 = vadd.f32 %v690_v52, %v686_v60  ;;  %v697_v61 = vmul.f32 %v4549_v15, %v4794_v62  ;;  %v706_v20 = vmul.f32 %v4549_v15, %v4787_v50 }
  0xbf   : > { %678 = vst [vmem:[#allocation3 + $0x18] sm:$0xff] %v674_v54  ;;  %v670_v63 = vmax.f32 %v638_v51, %v653_v56  ;;  %v712_v25 = vmul.f32 %v4557_v18, %v4794_v62  ;;  %v4806_v0 = vstv %s4769_s17  ;;  %v687_v1 = vmul.f32 %v4784_v48, %v4546_v14  ;;  %s5138_s17 = sld [smem:[#allocation6 + $0x12]] }
  0xc0   : > { %v675_v2 = vmax.f32 %v672_v59, 0.0  ;;  %v700_v3 = vadd.f32 %v697_v61, %v693_v16  ;;  %v709_v4 = vadd.f32 %v706_v20, %v703_v58  ;;  %v691_v7 = vmul.f32 %v4554_v17, %v4787_v50 }
  0xc1   : > { %v673_v8 = vadd.f32 %v670_v63, %v4708_v5  ;;  %v698_v9 = vmul.f32 %v4566_v22, %v4794_v62  ;;  %v704_v10 = vmul.f32 %v4554_v17, %v4784_v48  ;;  %v707_v19 = vmul.f32 %v4566_v22, %v4787_v50 }
  0xc2   : > { %679 = vst [vmem:[#allocation3 + $0x20] sm:$0xff] %v675_v2  ;;  %v715_v21 = vadd.f32 %v712_v25, %v709_v4  ;;  %v694_v23 = vadd.f32 %v691_v7, %v687_v1  ;;  %v713_v24 = vmul.f32 %v4593_v36, %v4794_v62  ;;  %v688_v26 = vmul.f32 %v4784_v48, %v4579_v28 }
  0xc3   : > { %v676_v30 = vmax.f32 %v673_v8, 0.0  ;;  %v710_v5 = vadd.f32 %v707_v19, %v704_v10  ;;  %v692_v31 = vmul.f32 %v4582_v29, %v4787_v50  ;;  %v699_v32 = vmul.f32 %v4600_v39, %v4794_v62 }
  0xc4   : > { %v748_v33 = vmax.f32 %v700_v3, %v715_v21  ;;  %v701_v35 = vadd.f32 %v698_v9, %v694_v23  ;;  %v705_v37 = vmul.f32 %v4582_v29, %v4784_v48  ;;  %v708_v40 = vmul.f32 %v4600_v39, %v4787_v50 }
  0xc5   : > { %680 = vst [vmem:[#allocation3 + $0x28] sm:$0x1] %v676_v30  ;;  %v716_v41 = vadd.f32 %v713_v24, %v710_v5  ;;  %v695_v27 = vadd.f32 %v692_v31, %v688_v26  ;;  %v714_v42 = vmul.f32 %v4611_v49, %v4794_v62  ;;  %v718_v43 = vmul.f32 %v4549_v15, %v4784_v48 }
  0xc6   : > { %v752_v44 = vadd.f32 %v4806_v0, %v748_v33  ;;  %v711_v45 = vadd.f32 %v708_v40, %v705_v37  ;;  %v721_v46 = vmul.f32 %v4557_v18, %v4787_v50  ;;  %v727_v47 = vmul.f32 %v4794_v62, %v4618_v53 }
  0xc7   : > { %v749_v55 = vmax.f32 %v701_v35, %v716_v41  ;;  %v702_v51 = vadd.f32 %v699_v32, %v695_v27  ;;  %v733_v60 = vmul.f32 %v4557_v18, %v4784_v48  ;;  %v736_v52 = vmul.f32 %v4787_v50, %v4618_v53 }
  0xc8   : > { %v755_v54 = vmax.f32 %v752_v44, 0.0  ;;  %v717_v56 = vadd.f32 %v714_v42, %v711_v45  ;;  %v724_v58 = vadd.f32 %v721_v46, %v718_v43  ;;  %v742_v59 = vmul.f32 %v4623_v57, %v4794_v62 }
  0xc9   : > { %v753_v16 = vadd.f32 %v4806_v0, %v749_v55  ;;  %v739_v61 = vadd.f32 %v736_v52, %v733_v60  ;;  %v719_v20 = vmul.f32 %v4566_v22, %v4784_v48  ;;  %v722_v63 = vmul.f32 %v4593_v36, %v4787_v50 }
  0xca   : > { %759 = vst [vmem:[#allocation2 + $0x30] sm:$0xff] %v755_v54  ;;  %v750_v25 = vmax.f32 %v702_v51, %v717_v56  ;;  %v730_v1 = vadd.f32 %v727_v47, %v724_v58  ;;  %v728_v2 = vmul.f32 %v4794_v62, %v4641_v6  ;;  %v734_v3 = vmul.f32 %v4593_v36, %v4784_v48 }
  0xcb   : > { %v756_v4 = vmax.f32 %v753_v16, 0.0  ;;  %v745_v7 = vadd.f32 %v742_v59, %v739_v61  ;;  %v725_v8 = vadd.f32 %v722_v63, %v719_v20  ;;  %v737_v9 = vmul.f32 %v4787_v50, %v4641_v6 }
  0xcc   : > { %v754_v10 = vadd.f32 %v4806_v0, %v750_v25  ;;  %v743_v19 = vmul.f32 %v4649_v11, %v4794_v62  ;;  %v720_v21 = vmul.f32 %v4600_v39, %v4784_v48  ;;  %v723_v23 = vmul.f32 %v4611_v49, %v4787_v50 }
  0xcd   : > { %760 = vst [vmem:[#allocation2 + $0x38] sm:$0xff] %v756_v4  ;;  %v762_v24 = vmax.f32 %v730_v1, %v745_v7  ;;  %v731_v26 = vadd.f32 %v728_v2, %v725_v8  ;;  %v740_v30 = vadd.f32 %v737_v9, %v734_v3  ;;  %v729_v5 = vmul.f32 %v4794_v62, %v4662_v34 }
  0xce   : > { %v757_v31 = vmax.f32 %v754_v10, 0.0  ;;  %v726_v32 = vadd.f32 %v723_v23, %v720_v21  ;;  %v735_v33 = vmul.f32 %v4611_v49, %v4784_v48  ;;  %v738_v35 = vmul.f32 %v4787_v50, %v4662_v34 }
  0xcf   : > { %v765_v37 = vadd.f32 %v762_v24, %v4806_v0  ;;  %v746_v40 = vadd.f32 %v743_v19, %v740_v30  ;;  %v744_v41 = vmul.f32 %v4670_v38, %v4794_v62  ;;  %v4882_v27 = vstv %s4844_s16  ;;  %s5140_s16 = sld [smem:[#allocation6 + $0x13]] }
  0xd0   : > { %761 = vst [vmem:[#allocation2 + $0x40] sm:$0x1] %v757_v31  ;;  %v732_v42 = vadd.f32 %v729_v5, %v726_v32  ;;  %v741_v43 = vadd.f32 %v738_v35, %v735_v33  ;;  %v780_v44 = vmul.f32 %v4882_v27, %v4540_v12  ;;  %v4887_v45 = vstv %s4848_s15  ;;  %s5154_s15 = sld [smem:[#allocation6 + $0x14]] }
  0xd1   : > { %v768_v48 = vmax.f32 %v765_v37, 0.0  ;;  %v763_v46 = vmax.f32 %v731_v26, %v746_v40  ;;  %v784_v50 = vmul.f32 %v4543_v13, %v4887_v45  ;;  %v4892_v47 = vstv %s4855_s25  ;;  %s5167_s25 = sld [smem:[#allocation11 + $0x6]] }
  0xd2   : > { %v747_v55 = vadd.f32 %v744_v41, %v741_v43  ;;  %v791_v62 = vmul.f32 %v4549_v15, %v4892_v47  ;;  %v797_v51 = vmul.f32 %v4543_v13, %v4882_v27  ;;  %v800_v60 = vmul.f32 %v4549_v15, %v4887_v45 }
  0xd3   : > { %772 = vst [vmem:[#allocation3 + $0x30] sm:$0xff] %v768_v48  ;;  %v766_v52 = vadd.f32 %v763_v46, %v4806_v0  ;;  %v787_v54 = vadd.f32 %v784_v50, %v780_v44  ;;  %v806_v56 = vmul.f32 %v4557_v18, %v4892_v47  ;;  %v4904_v58 = vstv %s4863_s18  ;;  %s5275_s18 = sld [smem:[#allocation6 + $0x15]] }
  0xd4   : > { %v764_v59 = vmax.f32 %v732_v42, %v747_v55  ;;  %v803_v16 = vadd.f32 %v800_v60, %v797_v51  ;;  %v781_v61 = vmul.f32 %v4882_v27, %v4546_v14  ;;  %v785_v20 = vmul.f32 %v4554_v17, %v4887_v45 }
  0xd5   : > { %v769_v63 = vmax.f32 %v766_v52, 0.0  ;;  %v794_v25 = vadd.f32 %v791_v62, %v787_v54  ;;  %v792_v1 = vmul.f32 %v4566_v22, %v4892_v47  ;;  %v798_v2 = vmul.f32 %v4554_v17, %v4882_v27 }
  0xd6   : > { %v767_v3 = vadd.f32 %v764_v59, %v4806_v0  ;;  %v809_v4 = vadd.f32 %v806_v56, %v803_v16  ;;  %v788_v7 = vadd.f32 %v785_v20, %v781_v61  ;;  %v801_v8 = vmul.f32 %v4566_v22, %v4887_v45 }
  0xd7   : > { %773 = vst [vmem:[#allocation3 + $0x38] sm:$0xff] %v769_v63  ;;  %v807_v9 = vmul.f32 %v4593_v36, %v4892_v47  ;;  %v782_v10 = vmul.f32 %v4882_v27, %v4579_v28  ;;  %v786_v19 = vmul.f32 %v4582_v29, %v4887_v45  ;;  %v793_v21 = vmul.f32 %v4600_v39, %v4892_v47 }
  0xd8   : > { %v770_v23 = vmax.f32 %v767_v3, 0.0  ;;  %v842_v0 = vmax.f32 %v794_v25, %v809_v4  ;;  %v795_v24 = vadd.f32 %v792_v1, %v788_v7  ;;  %v804_v26 = vadd.f32 %v801_v8, %v798_v2 }
  0xd9   : > { %v789_v30 = vadd.f32 %v786_v19, %v782_v10  ;;  %v799_v5 = vmul.f32 %v4582_v29, %v4882_v27  ;;  %v802_v31 = vmul.f32 %v4600_v39, %v4887_v45  ;;  %v808_v32 = vmul.f32 %v4611_v49, %v4892_v47 }
  0xda   : > { %774 = vst [vmem:[#allocation3 + $0x40] sm:$0x1] %v770_v23  ;;  %v846_v33 = vadd.f32 %v4904_v58, %v842_v0  ;;  %v810_v35 = vadd.f32 %v807_v9, %v804_v26  ;;  %v812_v37 = vmul.f32 %v4549_v15, %v4882_v27  ;;  %v815_v40 = vmul.f32 %v4557_v18, %v4887_v45 }
  0xdb   : > { %v796_v41 = vadd.f32 %v793_v21, %v789_v30  ;;  %v805_v42 = vadd.f32 %v802_v31, %v799_v5  ;;  %v821_v43 = vmul.f32 %v4892_v47, %v4618_v53  ;;  %v827_v44 = vmul.f32 %v4557_v18, %v4882_v27 }
  0xdc   : > { %v849_v48 = vmax.f32 %v846_v33, 0.0  ;;  %v843_v46 = vmax.f32 %v795_v24, %v810_v35  ;;  %v818_v50 = vadd.f32 %v815_v40, %v812_v37  ;;  %v830_v55 = vmul.f32 %v4887_v45, %v4618_v53 }
  0xdd   : > { %v811_v62 = vadd.f32 %v808_v32, %v805_v42  ;;  %v836_v51 = vmul.f32 %v4623_v57, %v4892_v47  ;;  %v813_v60 = vmul.f32 %v4566_v22, %v4882_v27  ;;  %v816_v52 = vmul.f32 %v4593_v36, %v4887_v45 }
  0xde   : > { %853 = vst [vmem:[#allocation2 + $0x48] sm:$0xff] %v849_v48  ;;  %v847_v54 = vadd.f32 %v4904_v58, %v843_v46  ;;  %v824_v56 = vadd.f32 %v821_v43, %v818_v50  ;;  %v833_v59 = vadd.f32 %v830_v55, %v827_v44  ;;  %v822_v16 = vmul.f32 %v4892_v47, %v4641_v6 }
  0xdf   : > { %v844_v61 = vmax.f32 %v796_v41, %v811_v62  ;;  %v819_v20 = vadd.f32 %v816_v52, %v813_v60  ;;  %v828_v63 = vmul.f32 %v4593_v36, %v4882_v27  ;;  %v831_v25 = vmul.f32 %v4887_v45, %v4641_v6 }
  0xe0   : > { %v850_v1 = vmax.f32 %v847_v54, 0.0  ;;  %v839_v2 = vadd.f32 %v836_v51, %v833_v59  ;;  %v837_v3 = vmul.f32 %v4649_v11, %v4892_v47  ;;  %v814_v4 = vmul.f32 %v4600_v39, %v4882_v27 }
  0xe1   : > { %v848_v7 = vadd.f32 %v4904_v58, %v844_v61  ;;  %v825_v8 = vadd.f32 %v822_v16, %v819_v20  ;;  %v834_v9 = vadd.f32 %v831_v25, %v828_v63  ;;  %v817_v10 = vmul.f32 %v4611_v49, %v4887_v45 }
  0xe2   : > { %854 = vst [vmem:[#allocation2 + $0x50] sm:$0xff] %v850_v1  ;;  %v856_v19 = vmax.f32 %v824_v56, %v839_v2  ;;  %v823_v21 = vmul.f32 %v4892_v47, %v4662_v34  ;;  %v829_v23 = vmul.f32 %v4611_v49, %v4882_v27  ;;  %v832_v0 = vmul.f32 %v4887_v45, %v4662_v34 }
  0xe3   : > { %v851_v24 = vmax.f32 %v848_v7, 0.0  ;;  %v840_v26 = vadd.f32 %v837_v3, %v834_v9  ;;  %v820_v30 = vadd.f32 %v817_v10, %v814_v4  ;;  %v838_v5 = vmul.f32 %v4670_v38, %v4892_v47 }
  0xe4   : > { %v859_v31 = vadd.f32 %v856_v19, %v4904_v58  ;;  %v835_v32 = vadd.f32 %v832_v0, %v829_v23  ;;  %v4980_v33 = vstv %s4942_s26  ;;  %v4983_v35 = vstv %s4944_s1  ;;  %s5282_s26 = sld [smem:[#allocation6 + $0x16]]  ;;  %s5289_s1 = sld [smem:[#allocation6 + $0x17]] }
  0xe5   : > { %855 = vst [vmem:[#allocation2 + $0x58] sm:$0x1] %v851_v24  ;;  %v857_v27 = vmax.f32 %v825_v8, %v840_v26  ;;  %v826_v37 = vadd.f32 %v823_v21, %v820_v30  ;;  %v874_v45 = vmul.f32 %v4980_v33, %v4540_v12  ;;  %v878_v40 = vmul.f32 %v4543_v13, %v4983_v35 }
  0xe6   : > { %v862_v41 = vmax.f32 %v859_v31, 0.0  ;;  %v841_v42 = vadd.f32 %v838_v5, %v835_v32  ;;  %v4990_v47 = vstv %s4955_s24  ;;  %v891_v43 = vmul.f32 %v4543_v13, %v4980_v33  ;;  %s5300_s24 = sld [smem:[#allocation11 + $0x7]] }
  0xe7   : > { %v860_v44 = vadd.f32 %v857_v27, %v4904_v58  ;;  %v881_v48 = vadd.f32 %v878_v40, %v874_v45  ;;  %v885_v46 = vmul.f32 %v4549_v15, %v4990_v47  ;;  %v894_v50 = vmul.f32 %v4549_v15, %v4983_v35 }
  0xe8   : > { %866 = vst [vmem:[#allocation3 + $0x48] sm:$0xff] %v862_v41  ;;  %v858_v55 = vmax.f32 %v826_v37, %v841_v42  ;;  %v900_v62 = vmul.f32 %v4557_v18, %v4990_v47  ;;  %v5002_v51 = vstv %s4965_s2  ;;  %v875_v60 = vmul.f32 %v4980_v33, %v4546_v14  ;;  %s5388_s2 = sld [smem:[#allocation6 + $0x18]] }
  0xe9   : > { %v863_v52 = vmax.f32 %v860_v44, 0.0  ;;  %v888_v54 = vadd.f32 %v885_v46, %v881_v48  ;;  %v897_v56 = vadd.f32 %v894_v50, %v891_v43  ;;  %v879_v59 = vmul.f32 %v4554_v17, %v4983_v35 }
  0xea   : > { %v861_v16 = vadd.f32 %v858_v55, %v4904_v58  ;;  %v886_v61 = vmul.f32 %v4566_v22, %v4990_v47  ;;  %v892_v20 = vmul.f32 %v4554_v17, %v4980_v33  ;;  %v895_v63 = vmul.f32 %v4566_v22, %v4983_v35 }
  0xeb   : > { %867 = vst [vmem:[#allocation3 + $0x50] sm:$0xff] %v863_v52  ;;  %v903_v25 = vadd.f32 %v900_v62, %v897_v56  ;;  %v882_v1 = vadd.f32 %v879_v59, %v875_v60  ;;  %v901_v2 = vmul.f32 %v4593_v36, %v4990_v47  ;;  %v876_v3 = vmul.f32 %v4980_v33, %v4579_v28 }
  0xec   : > { %v864_v4 = vmax.f32 %v861_v16, 0.0  ;;  %v898_v58 = vadd.f32 %v895_v63, %v892_v20  ;;  %v880_v7 = vmul.f32 %v4582_v29, %v4983_v35  ;;  %v887_v8 = vmul.f32 %v4600_v39, %v4990_v47 }
  0xed   : > { %v936_v9 = vmax.f32 %v888_v54, %v903_v25  ;;  %v889_v10 = vadd.f32 %v886_v61, %v882_v1  ;;  %v893_v19 = vmul.f32 %v4582_v29, %v4980_v33  ;;  %v896_v21 = vmul.f32 %v4600_v39, %v4983_v35 }
  0xee   : > { %868 = vst [vmem:[#allocation3 + $0x58] sm:$0x1] %v864_v4  ;;  %v904_v23 = vadd.f32 %v901_v2, %v898_v58  ;;  %v883_v0 = vadd.f32 %v880_v7, %v876_v3  ;;  %v902_v24 = vmul.f32 %v4611_v49, %v4990_v47  ;;  %v906_v26 = vmul.f32 %v4549_v15, %v4980_v33 }
  0xef   : > { %v940_v30 = vadd.f32 %v5002_v51, %v936_v9  ;;  %v899_v5 = vadd.f32 %v896_v21, %v893_v19  ;;  %v909_v31 = vmul.f32 %v4557_v18, %v4983_v35  ;;  %v915_v32 = vmul.f32 %v4990_v47, %v4618_v53 }
  0xf0   : > { %v937_v27 = vmax.f32 %v889_v10, %v904_v23  ;;  %v890_v37 = vadd.f32 %v887_v8, %v883_v0  ;;  %v921_v45 = vmul.f32 %v4557_v18, %v4980_v33  ;;  %v924_v40 = vmul.f32 %v4983_v35, %v4618_v53 }
  0xf1   : > { %v943_v41 = vmax.f32 %v940_v30, 0.0  ;;  %v905_v42 = vadd.f32 %v902_v24, %v899_v5  ;;  %v912_v43 = vadd.f32 %v909_v31, %v906_v26  ;;  %v930_v44 = vmul.f32 %v4623_v57, %v4990_v47 }
  0xf2   : > { %v941_v48 = vadd.f32 %v5002_v51, %v937_v27  ;;  %v927_v46 = vadd.f32 %v924_v40, %v921_v45  ;;  %v907_v50 = vmul.f32 %v4566_v22, %v4980_v33  ;;  %v910_v55 = vmul.f32 %v4593_v36, %v4983_v35 }
  0xf3   : > { %947 = vst [vmem:[#allocation2 + $0x60] sm:$0xff] %v943_v41  ;;  %v938_v62 = vmax.f32 %v890_v37, %v905_v42  ;;  %v918_v60 = vadd.f32 %v915_v32, %v912_v43  ;;  %v916_v52 = vmul.f32 %v4990_v47, %v4641_v6  ;;  %v922_v54 = vmul.f32 %v4593_v36, %v4980_v33 }
  0xf4   : > { %v944_v56 = vmax.f32 %v941_v48, 0.0  ;;  %v933_v59 = vadd.f32 %v930_v44, %v927_v46  ;;  %v913_v16 = vadd.f32 %v910_v55, %v907_v50  ;;  %v925_v61 = vmul.f32 %v4983_v35, %v4641_v6 }
  0xf5   : > { %v942_v20 = vadd.f32 %v5002_v51, %v938_v62  ;;  %v931_v63 = vmul.f32 %v4649_v11, %v4990_v47  ;;  %v908_v25 = vmul.f32 %v4600_v39, %v4980_v33  ;;  %v911_v1 = vmul.f32 %v4611_v49, %v4983_v35 }
  0xf6   : > { %948 = vst [vmem:[#allocation2 + $0x68] sm:$0xff] %v944_v56  ;;  %v950_v2 = vmax.f32 %v918_v60, %v933_v59  ;;  %v919_v3 = vadd.f32 %v916_v52, %v913_v16  ;;  %v928_v4 = vadd.f32 %v925_v61, %v922_v54  ;;  %v917_v58 = vmul.f32 %v4990_v47, %v4662_v34 }
  0xf7   : > { %v945_v7 = vmax.f32 %v942_v20, 0.0  ;;  %v914_v8 = vadd.f32 %v911_v1, %v908_v25  ;;  %v923_v9 = vmul.f32 %v4611_v49, %v4980_v33  ;;  %v926_v10 = vmul.f32 %v4983_v35, %v4662_v34 }
  0xf8   : > { %v953_v19 = vadd.f32 %v950_v2, %v5002_v51  ;;  %v934_v21 = vadd.f32 %v931_v63, %v928_v4  ;;  %v932_v23 = vmul.f32 %v4670_v38, %v4990_v47  ;;  %v5078_v0 = vstv %s5040_s27  ;;  %s5390_s27 = sld [smem:[#allocation6 + $0x19]] }
  0xf9   : > { %949 = vst [vmem:[#allocation2 + $0x70] sm:$0x1] %v945_v7  ;;  %v920_v24 = vadd.f32 %v917_v58, %v914_v8  ;;  %v929_v26 = vadd.f32 %v926_v10, %v923_v9  ;;  %v968_v30 = vmul.f32 %v5078_v0, %v4540_v12  ;;  %v5083_v5 = vstv %s5044_s28  ;;  %s5401_s28 = sld [smem:[#allocation6 + $0x1a]] }
  0xfa   : > { %v956_v33 = vmax.f32 %v953_v19, 0.0  ;;  %v951_v31 = vmax.f32 %v919_v3, %v934_v21  ;;  %v972_v35 = vmul.f32 %v4543_v13, %v5083_v5  ;;  %v5088_v32 = vstv %s5051_s14  ;;  %s5411_s14 = sld [smem:[#allocation11 + $0x8]] }
  0xfb   : > { %v935_v27 = vadd.f32 %v932_v23, %v929_v26  ;;  %v979_v47 = vmul.f32 %v4549_v15, %v5088_v32  ;;  %v985_v37 = vmul.f32 %v4543_v13, %v5078_v0  ;;  %v988_v45 = vmul.f32 %v4549_v15, %v5083_v5 }
  0xfc   : > { %960 = vst [vmem:[#allocation3 + $0x60] sm:$0xff] %v956_v33  ;;  %v954_v12 = vadd.f32 %v951_v31, %v5002_v51  ;;  %v975_v40 = vadd.f32 %v972_v35, %v968_v30  ;;  %v994_v41 = vmul.f32 %v4557_v18, %v5088_v32  ;;  %v5100_v42 = vstv %s5059_s29  ;;  %s5486_s29 = sld [smem:[#allocation6 + $0x1b]] }
  0xfd   : > { %v952_v43 = vmax.f32 %v920_v24, %v935_v27  ;;  %v991_v44 = vadd.f32 %v988_v45, %v985_v37  ;;  %v969_v48 = vmul.f32 %v5078_v0, %v4546_v14  ;;  %v973_v13 = vmul.f32 %v4554_v17, %v5083_v5  ;;  %v5145_v24 = vld [vmem:[%s4516_s23 + $0x38] sm:$0xff] }
  0xfe   : > { %v957_v46 = vmax.f32 %v954_v12, 0.0  ;;  %v982_v50 = vadd.f32 %v979_v47, %v975_v40  ;;  %v980_v55 = vmul.f32 %v4566_v22, %v5088_v32  ;;  %v986_v62 = vmul.f32 %v4554_v17, %v5078_v0  ;;  %v5163_v40 = vld [vmem:[%s4516_s23 + $0x40] sm:$0x1] }
  0xff   : > { %v955_v60 = vadd.f32 %v952_v43, %v5002_v51  ;;  %v997_v52 = vadd.f32 %v994_v41, %v991_v44  ;;  %v976_v54 = vadd.f32 %v973_v13, %v969_v48  ;;  %v989_v56 = vmul.f32 %v4566_v22, %v5083_v5  ;;  %v5175_v13 = vld [vmem:[%s4516_s23 + $0x58] sm:$0x1] }
 0x100   : > { %961 = vst [vmem:[#allocation3 + $0x68] sm:$0xff] %v957_v46  ;;  %v995_v14 = vmul.f32 %v4593_v36, %v5088_v32  ;;  %v970_v59 = vmul.f32 %v5078_v0, %v4579_v28  ;;  %v974_v16 = vmul.f32 %v4582_v29, %v5083_v5  ;;  %v981_v17 = vmul.f32 %v4600_v39, %v5088_v32 }
 0x101   : > { %v958_v61 = vmax.f32 %v955_v60, 0.0  ;;  %v1030_v51 = vmax.f32 %v982_v50, %v997_v52  ;;  %v983_v20 = vadd.f32 %v980_v55, %v976_v54  ;;  %v992_v63 = vadd.f32 %v989_v56, %v986_v62 }
 0x102   : > { %v977_v25 = vadd.f32 %v974_v16, %v970_v59  ;;  %v987_v22 = vmul.f32 %v4582_v29, %v5078_v0  ;;  %v990_v1 = vmul.f32 %v4600_v39, %v5083_v5  ;;  %v996_v28 = vmul.f32 %v4611_v49, %v5088_v32  ;;  %v5196_v16 = vld [vmem:[%s4516_s23 + $0x18] sm:$0xff] }
 0x103   : > { %962 = vst [vmem:[#allocation3 + $0x70] sm:$0x1] %v958_v61  ;;  %v1034_v2 = vadd.f32 %v5100_v42, %v1030_v51  ;;  %v998_v3 = vadd.f32 %v995_v14, %v992_v63  ;;  %v1000_v4 = vmul.f32 %v4549_v15, %v5078_v0  ;;  %v1003_v58 = vmul.f32 %v4557_v18, %v5083_v5 }
 0x104   : > { %v984_v7 = vadd.f32 %v981_v17, %v977_v25  ;;  %v993_v8 = vadd.f32 %v990_v1, %v987_v22  ;;  %v1009_v29 = vmul.f32 %v5088_v32, %v4618_v53  ;;  %v1015_v39 = vmul.f32 %v4557_v18, %v5078_v0  ;;  %v5207_v25 = vld [vmem:[%s4516_s23 + $0x30] sm:$0xff] }
 0x105   : > { %v1037_v9 = vmax.f32 %v1034_v2, 0.0  ;;  %v1031_v10 = vmax.f32 %v983_v20, %v998_v3  ;;  %v1006_v19 = vadd.f32 %v1003_v58, %v1000_v4  ;;  %v1018_v21 = vmul.f32 %v5083_v5, %v4618_v53  ;;  %v5214_v2 = vld [vmem:[%s4516_s23 + $0x48] sm:$0xff] }
 0x106   : > { %v999_v15 = vadd.f32 %v996_v28, %v993_v8  ;;  %v1024_v23 = vmul.f32 %v4623_v57, %v5088_v32  ;;  %v1001_v18 = vmul.f32 %v5145_v24, %v5078_v0  ;;  %v1004_v26 = vmul.f32 %v4593_v36, %v5083_v5  ;;  %v5222_v58 = vld [vmem:[%s4516_s23 + $0x8] sm:$0xff] }
 0x107   : > { %1041 = vst [vmem:[#allocation2 + $0x78] sm:$0xff] %v1037_v9  ;;  %v1035_v53 = vadd.f32 %v5100_v42, %v1031_v10  ;;  %v1012_v30 = vadd.f32 %v1009_v29, %v1006_v19  ;;  %v1021_v33 = vadd.f32 %v1018_v21, %v1015_v39  ;;  %v1010_v31 = vmul.f32 %v5088_v32, %v4641_v6  ;;  %v5227_v9 = vld [vmem:[%s4516_s23 + $0x20] sm:$0xff] }
 0x108   : > { %v1032_v57 = vmax.f32 %v984_v7, %v999_v15  ;;  %v1007_v35 = vadd.f32 %v1004_v26, %v1001_v18  ;;  %v1016_v27 = vmul.f32 %v4593_v36, %v5078_v0  ;;  %v1019_v47 = vmul.f32 %v5083_v5, %v4641_v6 }
 0x109   : > { %v1038_v37 = vmax.f32 %v1035_v53, 0.0  ;;  %v1027_v45 = vadd.f32 %v1024_v23, %v1021_v33  ;;  %v1025_v12 = vmul.f32 %v4649_v11, %v5088_v32  ;;  %v1002_v41 = vmul.f32 %v5163_v40, %v5078_v0  ;;  %v5239_v53 = vld [vmem:[%s4516_s23 + $0x50] sm:$0xff] }
 0x10a   : > { %v1036_v43 = vadd.f32 %v5100_v42, %v1032_v57  ;;  %v1013_v44 = vadd.f32 %v1010_v31, %v1007_v35  ;;  %v1022_v36 = vadd.f32 %v1019_v47, %v1016_v27  ;;  %v1005_v6 = vmul.f32 %v4611_v49, %v5083_v5  ;;  %v5244_v33 = vld [vmem:[%s4516_s23 + $0x10] sm:$0x1]  ;;  %v5249_v35 = vld [vmem:[%s4516_s23 + $0x28] sm:$0x1] }
 0x10b   : > { %1042 = vst [vmem:[#allocation2 + $0x80] sm:$0xff] %v1038_v37  ;;  %v1044_v48 = vmax.f32 %v1012_v30, %v1027_v45  ;;  %v1011_v11 = vmul.f32 %v5088_v32, %v4662_v34  ;;  %v1017_v46 = vmul.f32 %v5175_v13, %v5078_v0  ;;  %v1020_v50 = vmul.f32 %v5083_v5, %v4662_v34  ;;  %v5191_v34 = vld [vmem:[%s4516_s23] sm:$0xff] }
 0x10c   : > { %v1039_v55 = vmax.f32 %v1036_v43, 0.0  ;;  %v1028_v62 = vadd.f32 %v1025_v12, %v1022_v36  ;;  %v1008_v60 = vadd.f32 %v1005_v6, %v1002_v41  ;;  %v1026_v49 = vmul.f32 %v4670_v38, %v5088_v32 }
 0x10d   : > { %v1047_v52 = vadd.f32 %v1044_v48, %v5100_v42  ;;  %v1023_v54 = vadd.f32 %v1020_v50, %v1017_v46  ;;  %v5185_v56 = vstv %s5138_s17  ;;  %v5188_v14 = vstv %s5140_s16  ;;  %v5267_v50 = vld [vmem:[%s4516_s23 + $0x1] sm:$0xff]  ;;  %s5490_s17 = sld [smem:[#allocation6 + $0x1c]]  ;;  %s5497_s16 = sld [smem:[#allocation6 + $0x1d]] }
 0x10e   : > { %1043 = vst [vmem:[#allocation2 + $0x88] sm:$0x1] %v1039_v55  ;;  %v1045_v0 = vmax.f32 %v1013_v44, %v1028_v62  ;;  %v1014_v59 = vadd.f32 %v1011_v11, %v1008_v60  ;;  %v1062_v5 = vmul.f32 %v5191_v34, %v5185_v56  ;;  %v1066_v38 = vmul.f32 %v5196_v16, %v5188_v14 }
 0x10f   : > { %v1050_v32 = vmax.f32 %v1047_v52, 0.0  ;;  %v1029_v17 = vadd.f32 %v1026_v49, %v1023_v54  ;;  %v5201_v61 = vstv %s5154_s15  ;;  %v1079_v51 = vmul.f32 %v5196_v16, %v5185_v56  ;;  %s5505_s15 = sld [smem:[#allocation11 + $0x9]] }
 0x110   : > { %v1048_v20 = vadd.f32 %v1045_v0, %v5100_v42  ;;  %v1069_v63 = vadd.f32 %v1066_v38, %v1062_v5  ;;  %v1073_v22 = vmul.f32 %v5207_v25, %v5201_v61  ;;  %v1082_v1 = vmul.f32 %v5207_v25, %v5188_v14  ;;  %v5278_v5 = vld [vmem:[%s4516_s23 + $0x19] sm:$0xff] }
 0x111   : > { %1054 = vst [vmem:[#allocation3 + $0x78] sm:$0xff] %v1050_v32  ;;  %v1046_v28 = vmax.f32 %v1014_v59, %v1029_v17  ;;  %v1088_v3 = vmul.f32 %v5214_v2, %v5201_v61  ;;  %v5219_v4 = vstv %s5167_s25  ;;  %v1063_v7 = vmul.f32 %v5222_v58, %v5185_v56  ;;  %s5584_s25 = sld [smem:[#allocation6 + $0x1e]] }
 0x112   : > { %v1051_v8 = vmax.f32 %v1048_v20, 0.0  ;;  %v1076_v29 = vadd.f32 %v1073_v22, %v1069_v63  ;;  %v1085_v39 = vadd.f32 %v1082_v1, %v1079_v51  ;;  %v1067_v10 = vmul.f32 %v5227_v9, %v5188_v14  ;;  %v5292_v1 = vld [vmem:[%s4516_s23 + $0x9] sm:$0xff] }
 0x113   : > { %v1049_v19 = vadd.f32 %v1046_v28, %v5100_v42  ;;  %v1074_v21 = vmul.f32 %v5145_v24, %v5201_v61  ;;  %v1080_v15 = vmul.f32 %v5227_v9, %v5185_v56  ;;  %v1083_v23 = vmul.f32 %v5145_v24, %v5188_v14 }
 0x114   : > { %1055 = vst [vmem:[#allocation3 + $0x80] sm:$0xff] %v1051_v8  ;;  %v1091_v18 = vadd.f32 %v1088_v3, %v1085_v39  ;;  %v1070_v26 = vadd.f32 %v1067_v10, %v1063_v7  ;;  %v1089_v30 = vmul.f32 %v5239_v53, %v5201_v61  ;;  %v1064_v42 = vmul.f32 %v5244_v33, %v5185_v56 }
 0x115   : > { %v1052_v31 = vmax.f32 %v1049_v19, 0.0  ;;  %v1086_v57 = vadd.f32 %v1083_v23, %v1080_v15  ;;  %v1068_v27 = vmul.f32 %v5249_v35, %v5188_v14  ;;  %v1075_v47 = vmul.f32 %v5163_v40, %v5201_v61  ;;  %v5304_v19 = vld [vmem:[%s4516_s23 + $0x21] sm:$0xff] }
 0x116   : > { %v1124_v37 = vmax.f32 %v1076_v29, %v1091_v18  ;;  %v1077_v45 = vadd.f32 %v1074_v21, %v1070_v26  ;;  %v1081_v12 = vmul.f32 %v5249_v35, %v5185_v56  ;;  %v1084_v41 = vmul.f32 %v5163_v40, %v5188_v14 }
 0x117   : > { %1056 = vst [vmem:[#allocation3 + $0x88] sm:$0x1] %v1052_v31  ;;  %v1092_v43 = vadd.f32 %v1089_v30, %v1086_v57  ;;  %v1071_v44 = vadd.f32 %v1068_v27, %v1064_v42  ;;  %v1090_v36 = vmul.f32 %v5175_v13, %v5201_v61  ;;  %v1094_v6 = vmul.f32 %v5207_v25, %v5185_v56  ;;  %v5313_v42 = vld [vmem:[%s4516_s23 + $0x11] sm:$0x1] }
 0x118   : > { %v1128_v48 = vadd.f32 %v5219_v4, %v1124_v37  ;;  %v1087_v11 = vadd.f32 %v1084_v41, %v1081_v12  ;;  %v1097_v46 = vmul.f32 %v5214_v2, %v5188_v14  ;;  %v1103_v55 = vmul.f32 %v5267_v50, %v5201_v61  ;;  %v5323_v41 = vld [vmem:[%s4516_s23 + $0x29] sm:$0x1] }
 0x119   : > { %v1125_v62 = vmax.f32 %v1077_v45, %v1092_v43  ;;  %v1078_v60 = vadd.f32 %v1075_v47, %v1071_v44  ;;  %v1109_v49 = vmul.f32 %v5214_v2, %v5185_v56  ;;  %v1112_v52 = vmul.f32 %v5267_v50, %v5188_v14 }
 0x11a   : > { %v1131_v54 = vmax.f32 %v1128_v48, 0.0  ;;  %v1093_v0 = vadd.f32 %v1090_v36, %v1087_v11  ;;  %v1100_v59 = vadd.f32 %v1097_v46, %v1094_v6  ;;  %v1118_v38 = vmul.f32 %v5278_v5, %v5201_v61 }
 0x11b   : > { %v1129_v32 = vadd.f32 %v5219_v4, %v1125_v62  ;;  %v1115_v17 = vadd.f32 %v1112_v52, %v1109_v49  ;;  %v1095_v51 = vmul.f32 %v5145_v24, %v5185_v56  ;;  %v1098_v20 = vmul.f32 %v5239_v53, %v5188_v14 }
 0x11c   : > { %1135 = vst [vmem:[#allocation2 + $0x90] sm:$0xff] %v1131_v54  ;;  %v1126_v63 = vmax.f32 %v1078_v60, %v1093_v0  ;;  %v1106_v22 = vadd.f32 %v1103_v55, %v1100_v59  ;;  %v1104_v28 = vmul.f32 %v5292_v1, %v5201_v61  ;;  %v1110_v3 = vmul.f32 %v5239_v53, %v5185_v56 }
 0x11d   : > { %v1132_v7 = vmax.f32 %v1129_v32, 0.0  ;;  %v1121_v8 = vadd.f32 %v1118_v38, %v1115_v17  ;;  %v1101_v29 = vadd.f32 %v1098_v20, %v1095_v51  ;;  %v1113_v39 = vmul.f32 %v5292_v1, %v5188_v14 }
 0x11e   : > { %v1130_v10 = vadd.f32 %v5219_v4, %v1126_v63  ;;  %v1119_v21 = vmul.f32 %v5304_v19, %v5201_v61  ;;  %v1096_v15 = vmul.f32 %v5163_v40, %v5185_v56  ;;  %v1099_v23 = vmul.f32 %v5175_v13, %v5188_v14 }
 0x11f   : > { %1136 = vst [vmem:[#allocation2 + $0x98] sm:$0xff] %v1132_v7  ;;  %v1138_v18 = vmax.f32 %v1106_v22, %v1121_v8  ;;  %v1107_v26 = vadd.f32 %v1104_v28, %v1101_v29  ;;  %v1116_v30 = vadd.f32 %v1113_v39, %v1110_v3  ;;  %v1105_v31 = vmul.f32 %v5313_v42, %v5201_v61 }
 0x120   : > { %v1133_v57 = vmax.f32 %v1130_v10, 0.0  ;;  %v1102_v27 = vadd.f32 %v1099_v23, %v1096_v15  ;;  %v1111_v47 = vmul.f32 %v5175_v13, %v5185_v56  ;;  %v1114_v37 = vmul.f32 %v5313_v42, %v5188_v14 }
 0x121   : > { %v1141_v45 = vadd.f32 %v1138_v18, %v5219_v4  ;;  %v1122_v12 = vadd.f32 %v1119_v21, %v1116_v30  ;;  %v1120_v43 = vmul.f32 %v5323_v41, %v5201_v61  ;;  %v5328_v44 = vstv %s5275_s18  ;;  %s5586_s18 = sld [smem:[#allocation6 + $0x1f]] }
 0x122   : > { %1137 = vst [vmem:[#allocation2 + $0xa0] sm:$0x1] %v1133_v57  ;;  %v1108_v36 = vadd.f32 %v1105_v31, %v1102_v27  ;;  %v1117_v6 = vadd.f32 %v1114_v37, %v1111_v47  ;;  %v1156_v56 = vmul.f32 %v5191_v34, %v5328_v44  ;;  %v5333_v48 = vstv %s5282_s26  ;;  %s5597_s26 = sld [smem:[#allocation6 + $0x20]] }
 0x123   : > { %v1144_v14 = vmax.f32 %v1141_v45, 0.0  ;;  %v1139_v11 = vmax.f32 %v1107_v26, %v1122_v12  ;;  %v1160_v46 = vmul.f32 %v5196_v16, %v5333_v48  ;;  %v5338_v55 = vstv %s5289_s1  ;;  %s5607_s1 = sld [smem:[#allocation11 + $0xa]] }
 0x124   : > { %v1123_v62 = vadd.f32 %v1120_v43, %v1117_v6  ;;  %v1167_v61 = vmul.f32 %v5207_v25, %v5338_v55  ;;  %v1173_v60 = vmul.f32 %v5196_v16, %v5328_v44  ;;  %v1176_v49 = vmul.f32 %v5207_v25, %v5333_v48 }
 0x125   : > { %1148 = vst [vmem:[#allocation3 + $0x90] sm:$0xff] %v1144_v14  ;;  %v1142_v52 = vadd.f32 %v1139_v11, %v5219_v4  ;;  %v1163_v54 = vadd.f32 %v1160_v46, %v1156_v56  ;;  %v1182_v0 = vmul.f32 %v5214_v2, %v5338_v55  ;;  %v5350_v59 = vstv %s5300_s24  ;;  %s5682_s24 = sld [smem:[#allocation6 + $0x21]] }
 0x126   : > { %v1140_v38 = vmax.f32 %v1108_v36, %v1123_v62  ;;  %v1179_v32 = vadd.f32 %v1176_v49, %v1173_v60  ;;  %v1157_v17 = vmul.f32 %v5222_v58, %v5328_v44  ;;  %v1161_v51 = vmul.f32 %v5227_v9, %v5333_v48 }
 0x127   : > { %v1145_v20 = vmax.f32 %v1142_v52, 0.0  ;;  %v1170_v63 = vadd.f32 %v1167_v61, %v1163_v54  ;;  %v1168_v22 = vmul.f32 %v5145_v24, %v5338_v55  ;;  %v1174_v28 = vmul.f32 %v5227_v9, %v5328_v44 }
 0x128   : > { %v1143_v3 = vadd.f32 %v1140_v38, %v5219_v4  ;;  %v1185_v7 = vadd.f32 %v1182_v0, %v1179_v32  ;;  %v1164_v8 = vadd.f32 %v1161_v51, %v1157_v17  ;;  %v1177_v29 = vmul.f32 %v5145_v24, %v5333_v48 }
 0x129   : > { %1149 = vst [vmem:[#allocation3 + $0x98] sm:$0xff] %v1145_v20  ;;  %v1183_v39 = vmul.f32 %v5239_v53, %v5338_v55  ;;  %v1158_v10 = vmul.f32 %v5244_v33, %v5328_v44  ;;  %v1162_v21 = vmul.f32 %v5249_v35, %v5333_v48  ;;  %v1169_v15 = vmul.f32 %v5163_v40, %v5338_v55 }
 0x12a   : > { %v1146_v23 = vmax.f32 %v1143_v3, 0.0  ;;  %v1218_v4 = vmax.f32 %v1170_v63, %v1185_v7  ;;  %v1171_v18 = vadd.f32 %v1168_v22, %v1164_v8  ;;  %v1180_v26 = vadd.f32 %v1177_v29, %v1174_v28 }
 0x12b   : > { %v1165_v30 = vadd.f32 %v1162_v21, %v1158_v10  ;;  %v1175_v31 = vmul.f32 %v5249_v35, %v5328_v44  ;;  %v1178_v57 = vmul.f32 %v5163_v40, %v5333_v48  ;;  %v1184_v27 = vmul.f32 %v5175_v13, %v5338_v55 }
 0x12c   : > { %1150 = vst [vmem:[#allocation3 + $0xa0] sm:$0x1] %v1146_v23  ;;  %v1222_v47 = vadd.f32 %v5350_v59, %v1218_v4  ;;  %v1186_v37 = vadd.f32 %v1183_v39, %v1180_v26  ;;  %v1188_v45 = vmul.f32 %v5207_v25, %v5328_v44  ;;  %v1191_v12 = vmul.f32 %v5214_v2, %v5333_v48 }
 0x12d   : > { %v1172_v43 = vadd.f32 %v1169_v15, %v1165_v30  ;;  %v1181_v36 = vadd.f32 %v1178_v57, %v1175_v31  ;;  %v1197_v6 = vmul.f32 %v5267_v50, %v5338_v55  ;;  %v1203_v56 = vmul.f32 %v5214_v2, %v5328_v44 }
 0x12e   : > { %v1225_v14 = vmax.f32 %v1222_v47, 0.0  ;;  %v1219_v11 = vmax.f32 %v1171_v18, %v1186_v37  ;;  %v1194_v46 = vadd.f32 %v1191_v12, %v1188_v45  ;;  %v1206_v62 = vmul.f32 %v5267_v50, %v5333_v48 }
 0x12f   : > { %v1187_v61 = vadd.f32 %v1184_v27, %v1181_v36  ;;  %v1212_v60 = vmul.f32 %v5278_v5, %v5338_v55  ;;  %v1189_v49 = vmul.f32 %v5145_v24, %v5328_v44  ;;  %v1192_v52 = vmul.f32 %v5239_v53, %v5333_v48 }
 0x130   : > { %1229 = vst [vmem:[#allocation2 + $0xa8] sm:$0xff] %v1225_v14  ;;  %v1223_v54 = vadd.f32 %v5350_v59, %v1219_v11  ;;  %v1200_v0 = vadd.f32 %v1197_v6, %v1194_v46  ;;  %v1209_v38 = vadd.f32 %v1206_v62, %v1203_v56  ;;  %v1198_v32 = vmul.f32 %v5292_v1, %v5338_v55 }
 0x131   : > { %v1220_v17 = vmax.f32 %v1172_v43, %v1187_v61  ;;  %v1195_v51 = vadd.f32 %v1192_v52, %v1189_v49  ;;  %v1204_v20 = vmul.f32 %v5239_v53, %v5328_v44  ;;  %v1207_v63 = vmul.f32 %v5292_v1, %v5333_v48 }
 0x132   : > { %v1226_v22 = vmax.f32 %v1223_v54, 0.0  ;;  %v1215_v28 = vadd.f32 %v1212_v60, %v1209_v38  ;;  %v1213_v3 = vmul.f32 %v5304_v19, %v5338_v55  ;;  %v1190_v7 = vmul.f32 %v5163_v40, %v5328_v44 }
 0x133   : > { %v1224_v8 = vadd.f32 %v5350_v59, %v1220_v17  ;;  %v1201_v29 = vadd.f32 %v1198_v32, %v1195_v51  ;;  %v1210_v39 = vadd.f32 %v1207_v63, %v1204_v20  ;;  %v1193_v10 = vmul.f32 %v5175_v13, %v5333_v48 }
 0x134   : > { %1230 = vst [vmem:[#allocation2 + $0xb0] sm:$0xff] %v1226_v22  ;;  %v1232_v21 = vmax.f32 %v1200_v0, %v1215_v28  ;;  %v1199_v15 = vmul.f32 %v5313_v42, %v5338_v55  ;;  %v1205_v23 = vmul.f32 %v5175_v13, %v5328_v44  ;;  %v1208_v4 = vmul.f32 %v5313_v42, %v5333_v48 }
 0x135   : > { %v1227_v18 = vmax.f32 %v1224_v8, 0.0  ;;  %v1216_v26 = vadd.f32 %v1213_v3, %v1210_v39  ;;  %v1196_v30 = vadd.f32 %v1193_v10, %v1190_v7  ;;  %v1214_v31 = vmul.f32 %v5323_v41, %v5338_v55 }
 0x136   : > { %v1235_v57 = vadd.f32 %v1232_v21, %v5350_v59  ;;  %v1211_v27 = vadd.f32 %v1208_v4, %v1205_v23  ;;  %v5426_v47 = vstv %s5388_s2  ;;  %v5429_v37 = vstv %s5390_s27  ;;  %s5686_s2 = sld [smem:[#allocation6 + $0x22]]  ;;  %s5693_s27 = sld [smem:[#allocation6 + $0x23]] }
 0x137   : > { %1231 = vst [vmem:[#allocation2 + $0xb8] sm:$0x1] %v1227_v18  ;;  %v1233_v44 = vmax.f32 %v1201_v29, %v1216_v26  ;;  %v1202_v45 = vadd.f32 %v1199_v15, %v1196_v30  ;;  %v1250_v48 = vmul.f32 %v5191_v34, %v5426_v47  ;;  %v1254_v12 = vmul.f32 %v5196_v16, %v5429_v37 }
 0x138   : > { %v1238_v43 = vmax.f32 %v1235_v57, 0.0  ;;  %v1217_v36 = vadd.f32 %v1214_v31, %v1211_v27  ;;  %v5436_v55 = vstv %s5401_s28  ;;  %v1267_v6 = vmul.f32 %v5196_v16, %v5426_v47  ;;  %s5701_s28 = sld [smem:[#allocation11 + $0xb]] }
 0x139   : > { %v1236_v56 = vadd.f32 %v1233_v44, %v5350_v59  ;;  %v1257_v14 = vadd.f32 %v1254_v12, %v1250_v48  ;;  %v1261_v11 = vmul.f32 %v5207_v25, %v5436_v55  ;;  %v1270_v46 = vmul.f32 %v5207_v25, %v5429_v37 }
 0x13a   : > { %1242 = vst [vmem:[#allocation3 + $0xa8] sm:$0xff] %v1238_v43  ;;  %v1234_v62 = vmax.f32 %v1202_v45, %v1217_v36  ;;  %v1276_v61 = vmul.f32 %v5214_v2, %v5436_v55  ;;  %v5448_v60 = vstv %s5411_s14  ;;  %v1251_v49 = vmul.f32 %v5222_v58, %v5426_v47  ;;  %s5786_s14 = sld [smem:[#allocation6 + $0x24]] }
 0x13b   : > { %v1239_v52 = vmax.f32 %v1236_v56, 0.0  ;;  %v1264_v54 = vadd.f32 %v1261_v11, %v1257_v14  ;;  %v1273_v0 = vadd.f32 %v1270_v46, %v1267_v6  ;;  %v1255_v38 = vmul.f32 %v5227_v9, %v5429_v37 }
 0x13c   : > { %v1237_v32 = vadd.f32 %v1234_v62, %v5350_v59  ;;  %v1262_v17 = vmul.f32 %v5145_v24, %v5436_v55  ;;  %v1268_v51 = vmul.f32 %v5227_v9, %v5426_v47  ;;  %v1271_v20 = vmul.f32 %v5145_v24, %v5429_v37 }
 0x13d   : > { %1243 = vst [vmem:[#allocation3 + $0xb0] sm:$0xff] %v1239_v52  ;;  %v1279_v63 = vadd.f32 %v1276_v61, %v1273_v0  ;;  %v1258_v22 = vadd.f32 %v1255_v38, %v1251_v49  ;;  %v1277_v28 = vmul.f32 %v5239_v53, %v5436_v55  ;;  %v1252_v3 = vmul.f32 %v5244_v33, %v5426_v47 }
 0x13e   : > { %v1240_v7 = vmax.f32 %v1237_v32, 0.0  ;;  %v1274_v59 = vadd.f32 %v1271_v20, %v1268_v51  ;;  %v1256_v8 = vmul.f32 %v5249_v35, %v5429_v37  ;;  %v1263_v29 = vmul.f32 %v5163_v40, %v5436_v55 }
 0x13f   : > { %v1312_v39 = vmax.f32 %v1264_v54, %v1279_v63  ;;  %v1265_v10 = vadd.f32 %v1262_v17, %v1258_v22  ;;  %v1269_v21 = vmul.f32 %v5249_v35, %v5426_v47  ;;  %v1272_v15 = vmul.f32 %v5163_v40, %v5429_v37 }
 0x140   : > { %1244 = vst [vmem:[#allocation3 + $0xb8] sm:$0x1] %v1240_v7  ;;  %v1280_v23 = vadd.f32 %v1277_v28, %v1274_v59  ;;  %v1259_v4 = vadd.f32 %v1256_v8, %v1252_v3  ;;  %v1278_v18 = vmul.f32 %v5175_v13, %v5436_v55  ;;  %v1282_v26 = vmul.f32 %v5207_v25, %v5426_v47 }
 0x141   : > { %v1316_v30 = vadd.f32 %v5448_v60, %v1312_v39  ;;  %v1275_v31 = vadd.f32 %v1272_v15, %v1269_v21  ;;  %v1285_v57 = vmul.f32 %v5214_v2, %v5429_v37  ;;  %v1291_v27 = vmul.f32 %v5267_v50, %v5436_v55 }
 0x142   : > { %v1313_v44 = vmax.f32 %v1265_v10, %v1280_v23  ;;  %v1266_v45 = vadd.f32 %v1263_v29, %v1259_v4  ;;  %v1297_v48 = vmul.f32 %v5214_v2, %v5426_v47  ;;  %v1300_v12 = vmul.f32 %v5267_v50, %v5429_v37 }
 0x143   : > { %v1319_v43 = vmax.f32 %v1316_v30, 0.0  ;;  %v1281_v36 = vadd.f32 %v1278_v18, %v1275_v31  ;;  %v1288_v6 = vadd.f32 %v1285_v57, %v1282_v26  ;;  %v1306_v56 = vmul.f32 %v5278_v5, %v5436_v55 }
 0x144   : > { %v1317_v14 = vadd.f32 %v5448_v60, %v1313_v44  ;;  %v1303_v11 = vadd.f32 %v1300_v12, %v1297_v48  ;;  %v1283_v46 = vmul.f32 %v5145_v24, %v5426_v47  ;;  %v1286_v62 = vmul.f32 %v5239_v53, %v5429_v37 }
 0x145   : > { %1323 = vst [vmem:[#allocation2 + $0xc0] sm:$0xff] %v1319_v43  ;;  %v1314_v61 = vmax.f32 %v1266_v45, %v1281_v36  ;;  %v1294_v49 = vadd.f32 %v1291_v27, %v1288_v6  ;;  %v1292_v52 = vmul.f32 %v5292_v1, %v5436_v55  ;;  %v1298_v54 = vmul.f32 %v5239_v53, %v5426_v47 }
 0x146   : > { %v1320_v0 = vmax.f32 %v1317_v14, 0.0  ;;  %v1309_v38 = vadd.f32 %v1306_v56, %v1303_v11  ;;  %v1289_v32 = vadd.f32 %v1286_v62, %v1283_v46  ;;  %v1301_v17 = vmul.f32 %v5292_v1, %v5429_v37 }
 0x147   : > { %v1318_v51 = vadd.f32 %v5448_v60, %v1314_v61  ;;  %v1307_v20 = vmul.f32 %v5304_v19, %v5436_v55  ;;  %v1284_v63 = vmul.f32 %v5163_v40, %v5426_v47  ;;  %v1287_v22 = vmul.f32 %v5175_v13, %v5429_v37 }
 0x148   : > { %1324 = vst [vmem:[#allocation2 + $0xc8] sm:$0xff] %v1320_v0  ;;  %v1326_v28 = vmax.f32 %v1294_v49, %v1309_v38  ;;  %v1295_v3 = vadd.f32 %v1292_v52, %v1289_v32  ;;  %v1304_v7 = vadd.f32 %v1301_v17, %v1298_v54  ;;  %v1293_v59 = vmul.f32 %v5313_v42, %v5436_v55 }
 0x149   : > { %v1321_v8 = vmax.f32 %v1318_v51, 0.0  ;;  %v1290_v29 = vadd.f32 %v1287_v22, %v1284_v63  ;;  %v1299_v39 = vmul.f32 %v5175_v13, %v5426_v47  ;;  %v1302_v10 = vmul.f32 %v5313_v42, %v5429_v37 }
 0x14a   : > { %v1329_v21 = vadd.f32 %v1326_v28, %v5448_v60  ;;  %v1310_v15 = vadd.f32 %v1307_v20, %v1304_v7  ;;  %v1308_v23 = vmul.f32 %v5323_v41, %v5436_v55  ;;  %v5524_v4 = vstv %s5486_s29  ;;  %s5788_s29 = sld [smem:[#allocation6 + $0x25]] }
 0x14b   : > { %1325 = vst [vmem:[#allocation2 + $0xd0] sm:$0x1] %v1321_v8  ;;  %v1296_v18 = vadd.f32 %v1293_v59, %v1290_v29  ;;  %v1305_v26 = vadd.f32 %v1302_v10, %v1299_v39  ;;  %v1344_v30 = vmul.f32 %v5191_v34, %v5524_v4  ;;  %v5529_v31 = vstv %s5490_s17  ;;  %s5799_s17 = sld [smem:[#allocation6 + $0x26]] }
 0x14c   : > { %v1332_v47 = vmax.f32 %v1329_v21, 0.0  ;;  %v1327_v57 = vmax.f32 %v1295_v3, %v1310_v15  ;;  %v1348_v37 = vmul.f32 %v5196_v16, %v5529_v31  ;;  %v5534_v27 = vstv %s5497_s16  ;;  %s5809_s16 = sld [smem:[#allocation11 + $0xc]] }
 0x14d   : > { %v1311_v44 = vadd.f32 %v1308_v23, %v1305_v26  ;;  %v1355_v55 = vmul.f32 %v5207_v25, %v5534_v27  ;;  %v1361_v45 = vmul.f32 %v5196_v16, %v5524_v4  ;;  %v1364_v48 = vmul.f32 %v5207_v25, %v5529_v31 }
 0x14e   : > { %1336 = vst [vmem:[#allocation3 + $0xc0] sm:$0xff] %v1332_v47  ;;  %v1330_v12 = vadd.f32 %v1327_v57, %v5448_v60  ;;  %v1351_v43 = vadd.f32 %v1348_v37, %v1344_v30  ;;  %v1370_v36 = vmul.f32 %v5214_v2, %v5534_v27  ;;  %v5546_v6 = vstv %s5505_s15  ;;  %s5917_s15 = sld [smem:[#allocation6 + $0x27]] }
 0x14f   : > { %v1328_v56 = vmax.f32 %v1296_v18, %v1311_v44  ;;  %v1367_v14 = vadd.f32 %v1364_v48, %v1361_v45  ;;  %v1345_v11 = vmul.f32 %v5222_v58, %v5524_v4  ;;  %v1349_v46 = vmul.f32 %v5227_v9, %v5529_v31 }
 0x150   : > { %v1333_v62 = vmax.f32 %v1330_v12, 0.0  ;;  %v1358_v61 = vadd.f32 %v1355_v55, %v1351_v43  ;;  %v1356_v49 = vmul.f32 %v5145_v24, %v5534_v27  ;;  %v1362_v52 = vmul.f32 %v5227_v9, %v5524_v4 }
 0x151   : > { %v1331_v54 = vadd.f32 %v1328_v56, %v5448_v60  ;;  %v1373_v0 = vadd.f32 %v1370_v36, %v1367_v14  ;;  %v1352_v38 = vadd.f32 %v1349_v46, %v1345_v11  ;;  %v1365_v32 = vmul.f32 %v5145_v24, %v5529_v31 }
 0x152   : > { %1337 = vst [vmem:[#allocation3 + $0xc8] sm:$0xff] %v1333_v62  ;;  %v1371_v17 = vmul.f32 %v5239_v53, %v5534_v27  ;;  %v1346_v51 = vmul.f32 %v5244_v33, %v5524_v4  ;;  %v1350_v20 = vmul.f32 %v5249_v35, %v5529_v31  ;;  %v1357_v63 = vmul.f32 %v5163_v40, %v5534_v27 }
 0x153   : > { %v1334_v22 = vmax.f32 %v1331_v54, 0.0  ;;  %v1406_v60 = vmax.f32 %v1358_v61, %v1373_v0  ;;  %v1359_v28 = vadd.f32 %v1356_v49, %v1352_v38  ;;  %v1368_v3 = vadd.f32 %v1365_v32, %v1362_v52 }
 0x154   : > { %v1353_v7 = vadd.f32 %v1350_v20, %v1346_v51  ;;  %v1363_v59 = vmul.f32 %v5249_v35, %v5524_v4  ;;  %v1366_v8 = vmul.f32 %v5163_v40, %v5529_v31  ;;  %v1372_v29 = vmul.f32 %v5175_v13, %v5534_v27 }
 0x155   : > { %1338 = vst [vmem:[#allocation3 + $0xd0] sm:$0x1] %v1334_v22  ;;  %v1410_v39 = vadd.f32 %v5546_v6, %v1406_v60  ;;  %v1374_v10 = vadd.f32 %v1371_v17, %v1368_v3  ;;  %v1376_v21 = vmul.f32 %v5207_v25, %v5524_v4  ;;  %v1379_v15 = vmul.f32 %v5214_v2, %v5529_v31 }
 0x156   : > { %v1360_v23 = vadd.f32 %v1357_v63, %v1353_v7  ;;  %v1369_v18 = vadd.f32 %v1366_v8, %v1363_v59  ;;  %v1385_v26 = vmul.f32 %v5267_v50, %v5534_v27  ;;  %v1391_v30 = vmul.f32 %v5214_v2, %v5524_v4 }
 0x157   : > { %v1413_v47 = vmax.f32 %v1410_v39, 0.0  ;;  %v1407_v57 = vmax.f32 %v1359_v28, %v1374_v10  ;;  %v1382_v37 = vadd.f32 %v1379_v15, %v1376_v21  ;;  %v1394_v44 = vmul.f32 %v5267_v50, %v5529_v31 }
 0x158   : > { %v1375_v55 = vadd.f32 %v1372_v29, %v1369_v18  ;;  %v1400_v45 = vmul.f32 %v5278_v5, %v5534_v27  ;;  %v1377_v48 = vmul.f32 %v5145_v24, %v5524_v4  ;;  %v1380_v12 = vmul.f32 %v5239_v53, %v5529_v31 }
 0x159   : > { %1417 = vst [vmem:[#allocation2 + $0xd8] sm:$0xff] %v1413_v47  ;;  %v1411_v43 = vadd.f32 %v5546_v6, %v1407_v57  ;;  %v1388_v36 = vadd.f32 %v1385_v26, %v1382_v37  ;;  %v1397_v56 = vadd.f32 %v1394_v44, %v1391_v30  ;;  %v1386_v14 = vmul.f32 %v5292_v1, %v5534_v27 }
 0x15a   : > { %v1408_v11 = vmax.f32 %v1360_v23, %v1375_v55  ;;  %v1383_v46 = vadd.f32 %v1380_v12, %v1377_v48  ;;  %v1392_v62 = vmul.f32 %v5239_v53, %v5524_v4  ;;  %v1395_v61 = vmul.f32 %v5292_v1, %v5529_v31 }
 0x15b   : > { %v1414_v49 = vmax.f32 %v1411_v43, 0.0  ;;  %v1403_v52 = vadd.f32 %v1400_v45, %v1397_v56  ;;  %v1401_v54 = vmul.f32 %v5304_v19, %v5534_v27  ;;  %v1378_v0 = vmul.f32 %v5163_v40, %v5524_v4 }
 0x15c   : > { %v1412_v38 = vadd.f32 %v5546_v6, %v1408_v11  ;;  %v1389_v32 = vadd.f32 %v1386_v14, %v1383_v46  ;;  %v1398_v17 = vadd.f32 %v1395_v61, %v1392_v62  ;;  %v1381_v51 = vmul.f32 %v5175_v13, %v5529_v31 }
 0x15d   : > { %1418 = vst [vmem:[#allocation2 + $0xe0] sm:$0xff] %v1414_v49  ;;  %v1420_v20 = vmax.f32 %v1388_v36, %v1403_v52  ;;  %v1387_v63 = vmul.f32 %v5313_v42, %v5534_v27  ;;  %v1393_v22 = vmul.f32 %v5175_v13, %v5524_v4  ;;  %v1396_v60 = vmul.f32 %v5313_v42, %v5529_v31 }
 0x15e   : > { %v1415_v28 = vmax.f32 %v1412_v38, 0.0  ;;  %v1404_v3 = vadd.f32 %v1401_v54, %v1398_v17  ;;  %v1384_v7 = vadd.f32 %v1381_v51, %v1378_v0  ;;  %v1402_v59 = vmul.f32 %v5323_v41, %v5534_v27 }
 0x15f   : > { %v1423_v8 = vadd.f32 %v1420_v20, %v5546_v6  ;;  %v1399_v29 = vadd.f32 %v1396_v60, %v1393_v22  ;;  %v5622_v39 = vstv %s5584_s25  ;;  %v5625_v10 = vstv %s5586_s18  ;;  %s5924_s25 = sld [smem:[#allocation6 + $0x28]]  ;;  %s5931_s18 = sld [smem:[#allocation6 + $0x29]] }
 0x160   : > { %1419 = vst [vmem:[#allocation2 + $0xe8] sm:$0x1] %v1415_v28  ;;  %v1421_v4 = vmax.f32 %v1389_v32, %v1404_v3  ;;  %v1390_v21 = vadd.f32 %v1387_v63, %v1384_v7  ;;  %v1438_v31 = vmul.f32 %v5191_v34, %v5622_v39  ;;  %v1442_v15 = vmul.f32 %v5196_v16, %v5625_v10 }
 0x161   : > { %v1426_v23 = vmax.f32 %v1423_v8, 0.0  ;;  %v1405_v18 = vadd.f32 %v1402_v59, %v1399_v29  ;;  %v5632_v27 = vstv %s5597_s26  ;;  %v1455_v26 = vmul.f32 %v5196_v16, %v5622_v39  ;;  %s5942_s26 = sld [smem:[#allocation11 + $0xd]] }
 0x162   : > { %v1424_v30 = vadd.f32 %v1421_v4, %v5546_v6  ;;  %v1445_v47 = vadd.f32 %v1442_v15, %v1438_v31  ;;  %v1449_v57 = vmul.f32 %v5207_v25, %v5632_v27  ;;  %v1458_v37 = vmul.f32 %v5207_v25, %v5625_v10 }
 0x163   : > { %1430 = vst [vmem:[#allocation3 + $0xd8] sm:$0xff] %v1426_v23  ;;  %v1422_v44 = vmax.f32 %v1390_v21, %v1405_v18  ;;  %v1464_v55 = vmul.f32 %v5214_v2, %v5632_v27  ;;  %v5644_v45 = vstv %s5607_s1  ;;  %v1439_v48 = vmul.f32 %v5222_v58, %v5622_v39  ;;  %s6032_s1 = sld [smem:[#allocation6 + $0x2b]] }
 0x164   : > { %v1427_v12 = vmax.f32 %v1424_v30, 0.0  ;;  %v1452_v43 = vadd.f32 %v1449_v57, %v1445_v47  ;;  %v1461_v36 = vadd.f32 %v1458_v37, %v1455_v26  ;;  %v1443_v56 = vmul.f32 %v5227_v9, %v5625_v10 }
 0x165   : > { %v1425_v14 = vadd.f32 %v1422_v44, %v5546_v6  ;;  %v1450_v11 = vmul.f32 %v5145_v24, %v5632_v27  ;;  %v1456_v46 = vmul.f32 %v5227_v9, %v5622_v39  ;;  %v1459_v62 = vmul.f32 %v5145_v24, %v5625_v10 }
 0x166   : > { %1431 = vst [vmem:[#allocation3 + $0xe0] sm:$0xff] %v1427_v12  ;;  %v1467_v61 = vadd.f32 %v1464_v55, %v1461_v36  ;;  %v1446_v49 = vadd.f32 %v1443_v56, %v1439_v48  ;;  %v1465_v52 = vmul.f32 %v5239_v53, %v5632_v27  ;;  %v1440_v54 = vmul.f32 %v5244_v33, %v5622_v39 }
 0x167   : > { %v1428_v0 = vmax.f32 %v1425_v14, 0.0  ;;  %v1462_v6 = vadd.f32 %v1459_v62, %v1456_v46  ;;  %v1444_v38 = vmul.f32 %v5249_v35, %v5625_v10  ;;  %v1451_v32 = vmul.f32 %v5163_v40, %v5632_v27 }
 0x168   : > { %v1500_v17 = vmax.f32 %v1452_v43, %v1467_v61  ;;  %v1453_v51 = vadd.f32 %v1450_v11, %v1446_v49  ;;  %v1457_v20 = vmul.f32 %v5249_v35, %v5622_v39  ;;  %v1460_v63 = vmul.f32 %v5163_v40, %v5625_v10 }
 0x169   : > { %1432 = vst [vmem:[#allocation3 + $0xe8] sm:$0x1] %v1428_v0  ;;  %v1468_v22 = vadd.f32 %v1465_v52, %v1462_v6  ;;  %v1447_v60 = vadd.f32 %v1444_v38, %v1440_v54  ;;  %v1466_v28 = vmul.f32 %v5175_v13, %v5632_v27  ;;  %v1470_v3 = vmul.f32 %v5207_v25, %v5622_v39 }
 0x16a   : > { %v1504_v7 = vadd.f32 %v5644_v45, %v1500_v17  ;;  %v1463_v59 = vadd.f32 %v1460_v63, %v1457_v20  ;;  %v1473_v8 = vmul.f32 %v5214_v2, %v5625_v10  ;;  %v1479_v29 = vmul.f32 %v5267_v50, %v5632_v27 }
 0x16b   : > { %v1501_v4 = vmax.f32 %v1453_v51, %v1468_v22  ;;  %v1454_v21 = vadd.f32 %v1451_v32, %v1447_v60  ;;  %v1485_v31 = vmul.f32 %v5214_v2, %v5622_v39  ;;  %v1488_v15 = vmul.f32 %v5267_v50, %v5625_v10 }
 0x16c   : > { %v1507_v23 = vmax.f32 %v1504_v7, 0.0  ;;  %v1469_v18 = vadd.f32 %v1466_v28, %v1463_v59  ;;  %v1476_v26 = vadd.f32 %v1473_v8, %v1470_v3  ;;  %v1494_v30 = vmul.f32 %v5278_v5, %v5632_v27 }
 0x16d   : > { %v1505_v47 = vadd.f32 %v5644_v45, %v1501_v4  ;;  %v1491_v57 = vadd.f32 %v1488_v15, %v1485_v31  ;;  %v1471_v37 = vmul.f32 %v5145_v24, %v5622_v39  ;;  %v1474_v44 = vmul.f32 %v5239_v53, %v5625_v10 }
 0x16e   : > { %1511 = vst [vmem:[#allocation2 + $0xf0] sm:$0xff] %v1507_v23  ;;  %v1502_v55 = vmax.f32 %v1454_v21, %v1469_v18  ;;  %v1482_v48 = vadd.f32 %v1479_v29, %v1476_v26  ;;  %v1480_v12 = vmul.f32 %v5292_v1, %v5632_v27  ;;  %v1486_v43 = vmul.f32 %v5239_v53, %v5622_v39 }
 0x16f   : > { %v1508_v36 = vmax.f32 %v1505_v47, 0.0  ;;  %v1497_v56 = vadd.f32 %v1494_v30, %v1491_v57  ;;  %v1477_v14 = vadd.f32 %v1474_v44, %v1471_v37  ;;  %v1489_v24 = vmul.f32 %v5292_v1, %v5625_v10  ;;  %v5749_v37 = vld [vmem:[%s4516_s23 + $0x38] sm:$0xff] }
 0x170   : > { %v1506_v11 = vadd.f32 %v5644_v45, %v1502_v55  ;;  %v1495_v46 = vmul.f32 %v5304_v19, %v5632_v27  ;;  %v1472_v62 = vmul.f32 %v5163_v40, %v5622_v39  ;;  %v1475_v61 = vmul.f32 %v5175_v13, %v5625_v10 }
 0x171   : > { %1512 = vst [vmem:[#allocation2 + $0xf8] sm:$0xff] %v1508_v36  ;;  %v1514_v49 = vmax.f32 %v1482_v48, %v1497_v56  ;;  %v1483_v52 = vadd.f32 %v1480_v12, %v1477_v14  ;;  %v1492_v54 = vadd.f32 %v1489_v24, %v1486_v43  ;;  %v1481_v0 = vmul.f32 %v5313_v42, %v5632_v27 }
 0x172   : > { %v1509_v6 = vmax.f32 %v1506_v11, 0.0  ;;  %v1478_v38 = vadd.f32 %v1475_v61, %v1472_v62  ;;  %v1487_v32 = vmul.f32 %v5175_v13, %v5622_v39  ;;  %v1490_v17 = vmul.f32 %v5313_v42, %v5625_v10 }
 0x173   : > { %v1517_v51 = vadd.f32 %v1514_v49, %v5644_v45  ;;  %v1498_v20 = vadd.f32 %v1495_v46, %v1492_v54  ;;  %v1496_v63 = vmul.f32 %v5323_v41, %v5632_v27  ;;  %v5720_v22 = vstv %s5682_s24  ;;  %v5769_v49 = vld [vmem:[%s4516_s23 + $0x40] sm:$0x1]  ;;  %s6043_s24 = sld [smem:[#allocation6 + $0x2c]] }
 0x174   : > { %1513 = vst [vmem:[#allocation2 + $0x100] sm:$0x1] %v1509_v6  ;;  %v1484_v60 = vadd.f32 %v1481_v0, %v1478_v38  ;;  %v1493_v28 = vadd.f32 %v1490_v17, %v1487_v32  ;;  %v1532_v3 = vmul.f32 %v5191_v34, %v5720_v22  ;;  %v5725_v7 = vstv %s5686_s2  ;;  %s6053_s2 = sld [smem:[#allocation11 + $0xe]] }
 0x175   : > { %v1520_v39 = vmax.f32 %v1517_v51, 0.0  ;;  %v1515_v59 = vmax.f32 %v1483_v52, %v1498_v20  ;;  %v1536_v10 = vmul.f32 %v5196_v16, %v5725_v7  ;;  %v5730_v8 = vstv %s5693_s27  ;;  %s6161_s27 = scalar_lea.vmem [#allocation16], %s3686_s22 }
 0x176   : > { %v1499_v27 = vadd.f32 %v1496_v63, %v1493_v28  ;;  %v1543_v29 = vmul.f32 %v5207_v25, %v5730_v8  ;;  %v1549_v4 = vmul.f32 %v5196_v16, %v5720_v22  ;;  %v1552_v34 = vmul.f32 %v5207_v25, %v5725_v7 }
 0x177   : > { %1524 = vst [vmem:[#allocation3 + $0xf0] sm:$0xff] %v1520_v39  ;;  %v1518_v21 = vadd.f32 %v1515_v59, %v5644_v45  ;;  %v1539_v31 = vadd.f32 %v1536_v10, %v1532_v3  ;;  %v1558_v15 = vmul.f32 %v5214_v2, %v5730_v8  ;;  %v5742_v23 = vstv %s5701_s28  ;;  %s6163_s28 = smov 0  }
 0x178   : > { %v1516_v18 = vmax.f32 %v1484_v60, %v1499_v27  ;;  %v1555_v26 = vadd.f32 %v1552_v34, %v1549_v4  ;;  %v1533_v30 = vmul.f32 %v5222_v58, %v5720_v22  ;;  %v1537_v16 = vmul.f32 %v5227_v9, %v5725_v7 }
 0x179   : > { %v1521_v47 = vmax.f32 %v1518_v21, 0.0  ;;  %v1546_v57 = vadd.f32 %v1543_v29, %v1539_v31  ;;  %v1544_v44 = vmul.f32 %v5749_v37, %v5730_v8  ;;  %v1550_v55 = vmul.f32 %v5227_v9, %v5720_v22 }
 0x17a   : > { %v1519_v48 = vadd.f32 %v1516_v18, %v5644_v45  ;;  %v1561_v12 = vadd.f32 %v1558_v15, %v1555_v26  ;;  %v1540_v43 = vadd.f32 %v1537_v16, %v1533_v30  ;;  %v1553_v58 = vmul.f32 %v5749_v37, %v5725_v7 }
 0x17b   : > { %1525 = vst [vmem:[#allocation3 + $0xf8] sm:$0xff] %v1521_v47  ;;  %v1559_v36 = vmul.f32 %v5239_v53, %v5730_v8  ;;  %v1534_v56 = vmul.f32 %v5244_v33, %v5720_v22  ;;  %v1538_v14 = vmul.f32 %v5249_v35, %v5725_v7  ;;  %v1545_v9 = vmul.f32 %v5163_v40, %v5730_v8 }
 0x17c   : > { %v1522_v24 = vmax.f32 %v1519_v48, 0.0  ;;  %v1594_v45 = vmax.f32 %v1546_v57, %v1561_v12  ;;  %v1547_v11 = vadd.f32 %v1544_v44, %v1540_v43  ;;  %v1556_v46 = vadd.f32 %v1553_v58, %v1550_v55 }
 0x17d   : > { %v1541_v62 = vadd.f32 %v1538_v14, %v1534_v56  ;;  %v1551_v61 = vmul.f32 %v5249_v35, %v5720_v22  ;;  %v1554_v52 = vmul.f32 %v5769_v49, %v5725_v7  ;;  %v1560_v33 = vmul.f32 %v5175_v13, %v5730_v8  ;;  %v5838_v14 = vld [vmem:[%s4516_s23 + $0x18] sm:$0xff] }
 0x17e   : > { %1526 = vst [vmem:[#allocation3 + $0x100] sm:$0x1] %v1522_v24  ;;  %v1598_v54 = vadd.f32 %v5742_v23, %v1594_v45  ;;  %v1562_v40 = vadd.f32 %v1559_v36, %v1556_v46  ;;  %v1564_v0 = vmul.f32 %v5207_v25, %v5720_v22  ;;  %v1567_v6 = vmul.f32 %v5214_v2, %v5725_v7 }
 0x17f   : > { %v1548_v38 = vadd.f32 %v1545_v9, %v1541_v62  ;;  %v1557_v35 = vadd.f32 %v1554_v52, %v1551_v61  ;;  %v1573_v32 = vmul.f32 %v5267_v50, %v5730_v8  ;;  %v1579_v17 = vmul.f32 %v5214_v2, %v5720_v22  ;;  %v5849_v62 = vld [vmem:[%s4516_s23 + $0x30] sm:$0xff] }
 0x180   : > { %v1601_v51 = vmax.f32 %v1598_v54, 0.0  ;;  %v1595_v13 = vmax.f32 %v1547_v11, %v1562_v40  ;;  %v1570_v20 = vadd.f32 %v1567_v6, %v1564_v0  ;;  %v1582_v63 = vmul.f32 %v5267_v50, %v5725_v7  ;;  %v5856_v54 = vld [vmem:[%s4516_s23 + $0x48] sm:$0xff] }
 0x181   : > { %v1563_v25 = vadd.f32 %v1560_v33, %v1557_v35  ;;  %v1588_v60 = vmul.f32 %v5278_v5, %v5730_v8  ;;  %v1565_v28 = vmul.f32 %v5749_v37, %v5720_v22  ;;  %v1568_v2 = vmul.f32 %v5239_v53, %v5725_v7  ;;  %v5864_v6 = vld [vmem:[%s4516_s23 + $0x8] sm:$0xff] }
 0x182   : > { %1605 = vst [vmem:[#allocation2 + $0x108] sm:$0xff] %v1601_v51  ;;  %v1599_v3 = vadd.f32 %v5742_v23, %v1595_v13  ;;  %v1576_v39 = vadd.f32 %v1573_v32, %v1570_v20  ;;  %v1585_v50 = vadd.f32 %v1582_v63, %v1579_v17  ;;  %v1574_v59 = vmul.f32 %v5292_v1, %v5730_v8  ;;  %v5869_v51 = vld [vmem:[%s4516_s23 + $0x20] sm:$0xff] }
 0x183   : > { %v1596_v10 = vmax.f32 %v1548_v38, %v1563_v25  ;;  %v1571_v27 = vadd.f32 %v1568_v2, %v1565_v28  ;;  %v1580_v5 = vmul.f32 %v5239_v53, %v5720_v22  ;;  %v1583_v29 = vmul.f32 %v5292_v1, %v5725_v7  ;;  %v5813_v53 = vld [vmem:[%s4516_s23 + $0x58] sm:$0x1] }
 0x184   : > { %v1602_v4 = vmax.f32 %v1599_v3, 0.0  ;;  %v1591_v34 = vadd.f32 %v1588_v60, %v1585_v50  ;;  %v1589_v21 = vmul.f32 %v5304_v19, %v5730_v8  ;;  %v1566_v31 = vmul.f32 %v5769_v49, %v5720_v22  ;;  %v5881_v3 = vld [vmem:[%s4516_s23 + $0x50] sm:$0xff] }
 0x185   : > { %v1600_v15 = vadd.f32 %v5742_v23, %v1596_v10  ;;  %v1577_v18 = vadd.f32 %v1574_v59, %v1571_v27  ;;  %v1586_v26 = vadd.f32 %v1583_v29, %v1580_v5  ;;  %v1569_v1 = vmul.f32 %v5813_v53, %v5725_v7  ;;  %v5886_v50 = vld [vmem:[%s4516_s23 + $0x10] sm:$0x1]  ;;  %v5891_v27 = vld [vmem:[%s4516_s23 + $0x28] sm:$0x1] }
 0x186   : > { %1606 = vst [vmem:[#allocation2 + $0x110] sm:$0xff] %v1602_v4  ;;  %v1608_v30 = vmax.f32 %v1576_v39, %v1591_v34  ;;  %v1575_v19 = vmul.f32 %v5313_v42, %v5730_v8  ;;  %v1581_v16 = vmul.f32 %v5813_v53, %v5720_v22  ;;  %v1584_v47 = vmul.f32 %v5313_v42, %v5725_v7  ;;  %v5833_v42 = vld [vmem:[%s4516_s23] sm:$0xff] }
 0x187   : > { %v1603_v57 = vmax.f32 %v1600_v15, 0.0  ;;  %v1592_v44 = vadd.f32 %v1589_v21, %v1586_v26  ;;  %v1572_v55 = vadd.f32 %v1569_v1, %v1566_v31  ;;  %v1590_v48 = vmul.f32 %v5323_v41, %v5730_v8 }
 0x188   : > { %v1611_v12 = vadd.f32 %v1608_v30, %v5742_v23  ;;  %v1587_v43 = vadd.f32 %v1584_v47, %v1581_v16  ;;  %v5827_v58 = vstv %s5786_s14  ;;  %v5830_v36 = vstv %s5788_s29  ;;  %v5909_v47 = vld [vmem:[%s4516_s23 + $0x1] sm:$0xff] }
 0x189   : > { %1607 = vst [vmem:[#allocation2 + $0x118] sm:$0x1] %v1603_v57  ;;  %v1609_v22 = vmax.f32 %v1577_v18, %v1592_v44  ;;  %v1578_v56 = vadd.f32 %v1575_v19, %v1572_v55  ;;  %v1626_v7 = vmul.f32 %v5833_v42, %v5827_v58  ;;  %v1630_v41 = vmul.f32 %v5838_v14, %v5830_v36 }
 0x18a   : > { %v1614_v8 = vmax.f32 %v1611_v12, 0.0  ;;  %v1593_v9 = vadd.f32 %v1590_v48, %v1587_v43  ;;  %v5843_v24 = vstv %s5799_s17  ;;  %v1643_v45 = vmul.f32 %v5838_v14, %v5827_v58 }
 0x18b   : > { %v1612_v11 = vadd.f32 %v1609_v22, %v5742_v23  ;;  %v1633_v46 = vadd.f32 %v1630_v41, %v1626_v7  ;;  %v1637_v61 = vmul.f32 %v5849_v62, %v5843_v24  ;;  %v1646_v52 = vmul.f32 %v5849_v62, %v5830_v36  ;;  %v5920_v7 = vld [vmem:[%s4516_s23 + $0x19] sm:$0xff] }
 0x18c   : > { %1618 = vst [vmem:[#allocation3 + $0x108] sm:$0xff] %v1614_v8  ;;  %v1610_v33 = vmax.f32 %v1578_v56, %v1593_v9  ;;  %v1652_v40 = vmul.f32 %v5856_v54, %v5843_v24  ;;  %v5861_v0 = vstv %s5809_s16  ;;  %v1627_v38 = vmul.f32 %v5864_v6, %v5827_v58 }
 0x18d   : > { %v1615_v35 = vmax.f32 %v1612_v11, 0.0  ;;  %v1640_v32 = vadd.f32 %v1637_v61, %v1633_v46  ;;  %v1649_v17 = vadd.f32 %v1646_v52, %v1643_v45  ;;  %v1631_v13 = vmul.f32 %v5869_v51, %v5830_v36  ;;  %v5934_v52 = vld [vmem:[%s4516_s23 + $0x9] sm:$0xff] }
 0x18e   : > { %v1613_v20 = vadd.f32 %v1610_v33, %v5742_v23  ;;  %v1638_v63 = vmul.f32 %v5749_v37, %v5843_v24  ;;  %v1644_v25 = vmul.f32 %v5869_v51, %v5827_v58  ;;  %v1647_v60 = vmul.f32 %v5749_v37, %v5830_v36 }
 0x18f   : > { %1619 = vst [vmem:[#allocation3 + $0x110] sm:$0xff] %v1615_v35  ;;  %v1655_v28 = vadd.f32 %v1652_v40, %v1649_v17  ;;  %v1634_v2 = vadd.f32 %v1631_v13, %v1627_v38  ;;  %v1653_v39 = vmul.f32 %v5881_v3, %v5843_v24  ;;  %v1628_v23 = vmul.f32 %v5886_v50, %v5827_v58 }
 0x190   : > { %v1616_v59 = vmax.f32 %v1613_v20, 0.0  ;;  %v1650_v10 = vadd.f32 %v1647_v60, %v1644_v25  ;;  %v1632_v5 = vmul.f32 %v5891_v27, %v5830_v36  ;;  %v1639_v29 = vmul.f32 %v5769_v49, %v5843_v24  ;;  %v5946_v20 = vld [vmem:[%s4516_s23 + $0x21] sm:$0xff] }
 0x191   : > { %v1688_v4 = vmax.f32 %v1640_v32, %v1655_v28  ;;  %v1641_v34 = vadd.f32 %v1638_v63, %v1634_v2  ;;  %v1645_v21 = vmul.f32 %v5891_v27, %v5827_v58  ;;  %v1648_v31 = vmul.f32 %v5769_v49, %v5830_v36 }
 0x192   : > { %1620 = vst [vmem:[#allocation3 + $0x118] sm:$0x1] %v1616_v59  ;;  %v1656_v15 = vadd.f32 %v1653_v39, %v1650_v10  ;;  %v1635_v18 = vadd.f32 %v1632_v5, %v1628_v23  ;;  %v1654_v26 = vmul.f32 %v5813_v53, %v5843_v24  ;;  %v1658_v1 = vmul.f32 %v5849_v62, %v5827_v58  ;;  %v5955_v23 = vld [vmem:[%s4516_s23 + $0x11] sm:$0x1] }
 0x193   : > { %v1692_v30 = vadd.f32 %v5861_v0, %v1688_v4  ;;  %v1651_v19 = vadd.f32 %v1648_v31, %v1645_v21  ;;  %v1661_v16 = vmul.f32 %v5856_v54, %v5830_v36  ;;  %v1667_v57 = vmul.f32 %v5909_v47, %v5843_v24  ;;  %v5965_v31 = vld [vmem:[%s4516_s23 + $0x29] sm:$0x1]  ;;  %s6030_s23 = sld [smem:[#allocation6 + $0x2a]] }
 0x194   : > { %v1689_v44 = vmax.f32 %v1641_v34, %v1656_v15  ;;  %v1642_v55 = vadd.f32 %v1639_v29, %v1635_v18  ;;  %v1673_v48 = vmul.f32 %v5856_v54, %v5827_v58  ;;  %v1676_v12 = vmul.f32 %v5909_v47, %v5830_v36 }
 0x195   : > { %v1695_v43 = vmax.f32 %v1692_v30, 0.0  ;;  %v1657_v22 = vadd.f32 %v1654_v26, %v1651_v19  ;;  %v1664_v56 = vadd.f32 %v1661_v16, %v1658_v1  ;;  %v1682_v41 = vmul.f32 %v5920_v7, %v5843_v24 }
 0x196   : > { %v1693_v8 = vadd.f32 %v5861_v0, %v1689_v44  ;;  %v1679_v9 = vadd.f32 %v1676_v12, %v1673_v48  ;;  %v1659_v45 = vmul.f32 %v5749_v37, %v5827_v58  ;;  %v1662_v11 = vmul.f32 %v5881_v3, %v5830_v36 }
 0x197   : > { %1699 = vst [vmem:[#allocation2 + $0x120] sm:$0xff] %v1695_v43  ;;  %v1690_v46 = vmax.f32 %v1642_v55, %v1657_v22  ;;  %v1670_v61 = vadd.f32 %v1667_v57, %v1664_v56  ;;  %v1668_v33 = vmul.f32 %v5934_v52, %v5843_v24  ;;  %v1674_v40 = vmul.f32 %v5881_v3, %v5827_v58 }
 0x198   : > { %v1696_v38 = vmax.f32 %v1693_v8, 0.0  ;;  %v1685_v35 = vadd.f32 %v1682_v41, %v1679_v9  ;;  %v1665_v32 = vadd.f32 %v1662_v11, %v1659_v45  ;;  %v1677_v17 = vmul.f32 %v5934_v52, %v5830_v36 }
 0x199   : > { %v1694_v13 = vadd.f32 %v5861_v0, %v1690_v46  ;;  %v1683_v63 = vmul.f32 %v5946_v20, %v5843_v24  ;;  %v1660_v25 = vmul.f32 %v5769_v49, %v5827_v58  ;;  %v1663_v60 = vmul.f32 %v5813_v53, %v5830_v36 }
 0x19a   : > { %1700 = vst [vmem:[#allocation2 + $0x128] sm:$0xff] %v1696_v38  ;;  %v1702_v28 = vmax.f32 %v1670_v61, %v1685_v35  ;;  %v1671_v2 = vadd.f32 %v1668_v33, %v1665_v32  ;;  %v1680_v39 = vadd.f32 %v1677_v17, %v1674_v40  ;;  %v1669_v59 = vmul.f32 %v5955_v23, %v5843_v24 }
 0x19b   : > { %v1697_v10 = vmax.f32 %v1694_v13, 0.0  ;;  %v1666_v5 = vadd.f32 %v1663_v60, %v1660_v25  ;;  %v1675_v29 = vmul.f32 %v5813_v53, %v5827_v58  ;;  %v1678_v4 = vmul.f32 %v5955_v23, %v5830_v36 }
 0x19c   : > { %v1705_v34 = vadd.f32 %v1702_v28, %v5861_v0  ;;  %v1686_v21 = vadd.f32 %v1683_v63, %v1680_v39  ;;  %v1684_v15 = vmul.f32 %v5965_v31, %v5843_v24  ;;  %v5970_v18 = vstv %s5917_s15 }
 0x19d   : > { %1701 = vst [vmem:[#allocation2 + $0x130] sm:$0x1] %v1697_v10  ;;  %v1672_v26 = vadd.f32 %v1669_v59, %v1666_v5  ;;  %v1681_v1 = vadd.f32 %v1678_v4, %v1675_v29  ;;  %v1720_v58 = vmul.f32 %v5833_v42, %v5970_v18  ;;  %v5975_v30 = vstv %s5924_s25 }
 0x19e   : > { %v1708_v36 = vmax.f32 %v1705_v34, 0.0  ;;  %v1703_v19 = vmax.f32 %v1671_v2, %v1686_v21  ;;  %v1724_v16 = vmul.f32 %v5838_v14, %v5975_v30  ;;  %v5980_v57 = vstv %s5931_s18 }
 0x19f   : > { %v1687_v44 = vadd.f32 %v1684_v15, %v1681_v1  ;;  %v1731_v24 = vmul.f32 %v5849_v62, %v5980_v57  ;;  %v1737_v55 = vmul.f32 %v5838_v14, %v5970_v18  ;;  %v1740_v48 = vmul.f32 %v5849_v62, %v5975_v30 }
 0x1a0   : > { %1712 = vst [vmem:[#allocation3 + $0x120] sm:$0xff] %v1708_v36  ;;  %v1706_v12 = vadd.f32 %v1703_v19, %v5861_v0  ;;  %v1727_v43 = vadd.f32 %v1724_v16, %v1720_v58  ;;  %v1746_v22 = vmul.f32 %v5856_v54, %v5980_v57  ;;  %v5992_v56 = vstv %s5942_s26 }
 0x1a1   : > { %v1704_v41 = vmax.f32 %v1672_v26, %v1687_v44  ;;  %v1743_v8 = vadd.f32 %v1740_v48, %v1737_v55  ;;  %v1721_v9 = vmul.f32 %v5864_v6, %v5970_v18  ;;  %v1725_v45 = vmul.f32 %v5869_v51, %v5975_v30 }
 0x1a2   : > { %v1709_v11 = vmax.f32 %v1706_v12, 0.0  ;;  %v1734_v46 = vadd.f32 %v1731_v24, %v1727_v43  ;;  %v1732_v61 = vmul.f32 %v5749_v37, %v5980_v57  ;;  %v1738_v33 = vmul.f32 %v5869_v51, %v5970_v18 }
 0x1a3   : > { %v1707_v40 = vadd.f32 %v1704_v41, %v5861_v0  ;;  %v1749_v38 = vadd.f32 %v1746_v22, %v1743_v8  ;;  %v1728_v35 = vadd.f32 %v1725_v45, %v1721_v9  ;;  %v1741_v32 = vmul.f32 %v5749_v37, %v5975_v30 }
 0x1a4   : > { %1713 = vst [vmem:[#allocation3 + $0x128] sm:$0xff] %v1709_v11  ;;  %v1747_v17 = vmul.f32 %v5881_v3, %v5980_v57  ;;  %v1722_v13 = vmul.f32 %v5886_v50, %v5970_v18  ;;  %v1726_v63 = vmul.f32 %v5891_v27, %v5975_v30  ;;  %v1733_v25 = vmul.f32 %v5769_v49, %v5980_v57 }
 0x1a5   : > { %v1710_v60 = vmax.f32 %v1707_v40, 0.0  ;;  %v1782_v0 = vmax.f32 %v1734_v46, %v1749_v38  ;;  %v1735_v28 = vadd.f32 %v1732_v61, %v1728_v35  ;;  %v1744_v2 = vadd.f32 %v1741_v32, %v1738_v33 }
 0x1a6   : > { %v1729_v39 = vadd.f32 %v1726_v63, %v1722_v13  ;;  %v1739_v59 = vmul.f32 %v5891_v27, %v5970_v18  ;;  %v1742_v10 = vmul.f32 %v5769_v49, %v5975_v30  ;;  %v1748_v5 = vmul.f32 %v5813_v53, %v5980_v57 }
 0x1a7   : > { %1714 = vst [vmem:[#allocation3 + $0x130] sm:$0x1] %v1710_v60  ;;  %v1786_v29 = vadd.f32 %v5992_v56, %v1782_v0  ;;  %v1750_v4 = vadd.f32 %v1747_v17, %v1744_v2  ;;  %v1752_v34 = vmul.f32 %v5849_v62, %v5970_v18  ;;  %v1755_v21 = vmul.f32 %v5856_v54, %v5975_v30 }
 0x1a8   : > { %v1736_v15 = vadd.f32 %v1733_v25, %v1729_v39  ;;  %v1745_v26 = vadd.f32 %v1742_v10, %v1739_v59  ;;  %v1761_v1 = vmul.f32 %v5909_v47, %v5980_v57  ;;  %v1767_v58 = vmul.f32 %v5856_v54, %v5970_v18 }
 0x1a9   : > { %v1789_v36 = vmax.f32 %v1786_v29, 0.0  ;;  %v1783_v19 = vmax.f32 %v1735_v28, %v1750_v4  ;;  %v1758_v16 = vadd.f32 %v1755_v21, %v1752_v34  ;;  %v1770_v44 = vmul.f32 %v5909_v47, %v5975_v30 }
 0x1aa   : > { %v1751_v24 = vadd.f32 %v1748_v5, %v1745_v26  ;;  %v1776_v55 = vmul.f32 %v5920_v7, %v5980_v57  ;;  %v1753_v48 = vmul.f32 %v5749_v37, %v5970_v18  ;;  %v1756_v12 = vmul.f32 %v5881_v3, %v5975_v30 }
 0x1ab   : > { %1793 = vst [vmem:[#allocation2 + $0x138] sm:$0xff] %v1789_v36  ;;  %v1787_v43 = vadd.f32 %v5992_v56, %v1783_v19  ;;  %v1764_v22 = vadd.f32 %v1761_v1, %v1758_v16  ;;  %v1773_v41 = vadd.f32 %v1770_v44, %v1767_v58  ;;  %v1762_v8 = vmul.f32 %v5934_v52, %v5980_v57 }
 0x1ac   : > { %v1784_v9 = vmax.f32 %v1736_v15, %v1751_v24  ;;  %v1759_v45 = vadd.f32 %v1756_v12, %v1753_v48  ;;  %v1768_v11 = vmul.f32 %v5881_v3, %v5970_v18  ;;  %v1771_v46 = vmul.f32 %v5934_v52, %v5975_v30 }
 0x1ad   : > { %v1790_v61 = vmax.f32 %v1787_v43, 0.0  ;;  %v1779_v33 = vadd.f32 %v1776_v55, %v1773_v41  ;;  %v1777_v40 = vmul.f32 %v5946_v20, %v5980_v57  ;;  %v1754_v38 = vmul.f32 %v5769_v49, %v5970_v18 }
 0x1ae   : > { %v1788_v35 = vadd.f32 %v5992_v56, %v1784_v9  ;;  %v1765_v32 = vadd.f32 %v1762_v8, %v1759_v45  ;;  %v1774_v17 = vadd.f32 %v1771_v46, %v1768_v11  ;;  %v1757_v13 = vmul.f32 %v5813_v53, %v5975_v30 }
 0x1af   : > { %1794 = vst [vmem:[#allocation2 + $0x140] sm:$0xff] %v1790_v61  ;;  %v1796_v63 = vmax.f32 %v1764_v22, %v1779_v33  ;;  %v1763_v25 = vmul.f32 %v5955_v23, %v5980_v57  ;;  %v1769_v60 = vmul.f32 %v5813_v53, %v5970_v18  ;;  %v1772_v0 = vmul.f32 %v5955_v23, %v5975_v30 }
 0x1b0   : > { %v1791_v28 = vmax.f32 %v1788_v35, 0.0  ;;  %v1780_v2 = vadd.f32 %v1777_v40, %v1774_v17  ;;  %v1760_v39 = vadd.f32 %v1757_v13, %v1754_v38  ;;  %v1778_v59 = vmul.f32 %v5965_v31, %v5980_v57 }
 0x1b1   : > { %v1799_v10 = vadd.f32 %v1796_v63, %v5992_v56  ;;  %v1775_v5 = vadd.f32 %v1772_v0, %v1769_v60  ;;  %v6068_v29 = vstv %s6030_s23  ;;  %v6071_v4 = vstv %s6032_s1 }
 0x1b2   : > { %1795 = vst [vmem:[#allocation2 + $0x148] sm:$0x1] %v1791_v28  ;;  %v1797_v18 = vmax.f32 %v1765_v32, %v1780_v2  ;;  %v1766_v34 = vadd.f32 %v1763_v25, %v1760_v39  ;;  %v1814_v30 = vmul.f32 %v5833_v42, %v6068_v29  ;;  %v1818_v21 = vmul.f32 %v5838_v14, %v6071_v4 }
 0x1b3   : > { %v1802_v15 = vmax.f32 %v1799_v10, 0.0  ;;  %v1781_v26 = vadd.f32 %v1778_v59, %v1775_v5  ;;  %v6078_v57 = vstv %s6043_s24  ;;  %v1831_v1 = vmul.f32 %v5838_v14, %v6068_v29 }
 0x1b4   : > { %v1800_v58 = vadd.f32 %v1797_v18, %v5992_v56  ;;  %v1821_v36 = vadd.f32 %v1818_v21, %v1814_v30  ;;  %v1825_v19 = vmul.f32 %v5849_v62, %v6078_v57  ;;  %v1834_v16 = vmul.f32 %v5849_v62, %v6071_v4 }
 0x1b5   : > { %1806 = vst [vmem:[#allocation3 + $0x138] sm:$0xff] %v1802_v15  ;;  %v1798_v42 = vmax.f32 %v1766_v34, %v1781_v26  ;;  %v1840_v44 = vmul.f32 %v5856_v54, %v6078_v57  ;;  %v6090_v24 = vstv %s6053_s2  ;;  %v1815_v55 = vmul.f32 %v5864_v6, %v6068_v29 }
 0x1b6   : > { %v1803_v14 = vmax.f32 %v1800_v58, 0.0  ;;  %v1828_v48 = vadd.f32 %v1825_v19, %v1821_v36  ;;  %v1837_v12 = vadd.f32 %v1834_v16, %v1831_v1  ;;  %v1819_v43 = vmul.f32 %v5869_v51, %v6071_v4 }
 0x1b7   : > { %v1801_v22 = vadd.f32 %v1798_v42, %v5992_v56  ;;  %v1826_v41 = vmul.f32 %v5749_v37, %v6078_v57  ;;  %v1832_v8 = vmul.f32 %v5869_v51, %v6068_v29  ;;  %v1835_v9 = vmul.f32 %v5749_v37, %v6071_v4 }
 0x1b8   : > { %1807 = vst [vmem:[#allocation3 + $0x140] sm:$0xff] %v1803_v14  ;;  %v1843_v45 = vadd.f32 %v1840_v44, %v1837_v12  ;;  %v1822_v6 = vadd.f32 %v1819_v43, %v1815_v55  ;;  %v1841_v11 = vmul.f32 %v5881_v3, %v6078_v57  ;;  %v1816_v46 = vmul.f32 %v5886_v50, %v6068_v29 }
 0x1b9   : > { %v1804_v61 = vmax.f32 %v1801_v22, 0.0  ;;  %v1838_v56 = vadd.f32 %v1835_v9, %v1832_v8  ;;  %v1820_v33 = vmul.f32 %v5891_v27, %v6071_v4  ;;  %v1827_v51 = vmul.f32 %v5769_v49, %v6078_v57 }
 0x1ba   : > { %v1876_v40 = vmax.f32 %v1828_v48, %v1843_v45  ;;  %v1829_v38 = vadd.f32 %v1826_v41, %v1822_v6  ;;  %v1833_v35 = vmul.f32 %v5891_v27, %v6068_v29  ;;  %v1836_v32 = vmul.f32 %v5769_v49, %v6071_v4 }
 0x1bb   : > { %1808 = vst [vmem:[#allocation3 + $0x148] sm:$0x1] %v1804_v61  ;;  %v1844_v17 = vadd.f32 %v1841_v11, %v1838_v56  ;;  %v1823_v13 = vadd.f32 %v1820_v33, %v1816_v46  ;;  %v1842_v50 = vmul.f32 %v5813_v53, %v6078_v57  ;;  %v1846_v63 = vmul.f32 %v5849_v62, %v6068_v29 }
 0x1bc   : > { %v1880_v25 = vadd.f32 %v6090_v24, %v1876_v40  ;;  %v1839_v60 = vadd.f32 %v1836_v32, %v1833_v35  ;;  %v1849_v0 = vmul.f32 %v5856_v54, %v6071_v4  ;;  %v1855_v27 = vmul.f32 %v5909_v47, %v6078_v57 }
 0x1bd   : > { %v1877_v28 = vmax.f32 %v1829_v38, %v1844_v17  ;;  %v1830_v2 = vadd.f32 %v1827_v51, %v1823_v13  ;;  %v1861_v39 = vmul.f32 %v5856_v54, %v6068_v29  ;;  %v1864_v59 = vmul.f32 %v5909_v47, %v6071_v4 }
 0x1be   : > { %v1883_v10 = vmax.f32 %v1880_v25, 0.0  ;;  %v1845_v5 = vadd.f32 %v1842_v50, %v1839_v60  ;;  %v1852_v62 = vadd.f32 %v1849_v0, %v1846_v63  ;;  %v1870_v18 = vmul.f32 %v5920_v7, %v6078_v57 }
 0x1bf   : > { %v1881_v34 = vadd.f32 %v6090_v24, %v1877_v28  ;;  %v1867_v30 = vadd.f32 %v1864_v59, %v1861_v39  ;;  %v1847_v21 = vmul.f32 %v5749_v37, %v6068_v29  ;;  %v1850_v15 = vmul.f32 %v5881_v3, %v6071_v4 }
 0x1c0   : > { %1887 = vst [vmem:[#allocation2 + $0x150] sm:$0xff] %v1883_v10  ;;  %v1878_v54 = vmax.f32 %v1830_v2, %v1845_v5  ;;  %v1858_v26 = vadd.f32 %v1855_v27, %v1852_v62  ;;  %v1856_v47 = vmul.f32 %v5934_v52, %v6078_v57  ;;  %v1862_v1 = vmul.f32 %v5881_v3, %v6068_v29 }
 0x1c1   : > { %v1884_v58 = vmax.f32 %v1881_v34, 0.0  ;;  %v1873_v7 = vadd.f32 %v1870_v18, %v1867_v30  ;;  %v1853_v36 = vadd.f32 %v1850_v15, %v1847_v21  ;;  %v1865_v19 = vmul.f32 %v5934_v52, %v6071_v4 }
 0x1c2   : > { %v1882_v37 = vadd.f32 %v6090_v24, %v1878_v54  ;;  %v1871_v16 = vmul.f32 %v5946_v20, %v6078_v57  ;;  %v1848_v42 = vmul.f32 %v5769_v49, %v6068_v29  ;;  %v1851_v44 = vmul.f32 %v5813_v53, %v6071_v4 }
 0x1c3   : > { %1888 = vst [vmem:[#allocation2 + $0x158] sm:$0xff] %v1884_v58  ;;  %v1890_v55 = vmax.f32 %v1858_v26, %v1873_v7  ;;  %v1859_v3 = vadd.f32 %v1856_v47, %v1853_v36  ;;  %v1868_v14 = vadd.f32 %v1865_v19, %v1862_v1  ;;  %v1857_v48 = vmul.f32 %v5955_v23, %v6078_v57 }
 0x1c4   : > { %v1885_v12 = vmax.f32 %v1882_v37, 0.0  ;;  %v1854_v52 = vadd.f32 %v1851_v44, %v1848_v42  ;;  %v1863_v43 = vmul.f32 %v5813_v53, %v6068_v29  ;;  %v1866_v20 = vmul.f32 %v5955_v23, %v6071_v4 }
 0x1c5   : > { %v1893_v49 = vadd.f32 %v1890_v55, %v6090_v24  ;;  %v1874_v22 = vadd.f32 %v1871_v16, %v1868_v14  ;;  %v1872_v41 = vmul.f32 %v5965_v31, %v6078_v57 }
 0x1c6   : > { %1889 = vst [vmem:[#allocation2 + $0x160] sm:$0x1] %v1885_v12  ;;  %v1860_v8 = vadd.f32 %v1857_v48, %v1854_v52  ;;  %v1869_v9 = vadd.f32 %v1866_v20, %v1863_v43 }
 0x1c7   : > { %v1896_v45 = vmax.f32 %v1893_v49, 0.0  ;;  %v1891_v6 = vmax.f32 %v1859_v3, %v1874_v22 }
 0x1c8   : > { %v1875_v11 = vadd.f32 %v1872_v41, %v1869_v9 }
 0x1c9   : > { %1900 = vst [vmem:[#allocation3 + $0x150] sm:$0xff] %v1896_v45  ;;  %v1894_v46 = vadd.f32 %v1891_v6, %v6090_v24 }
 0x1ca   : > { %v1892_v53 = vmax.f32 %v1860_v8, %v1875_v11 }
 0x1cb   : > { %v1897_v29 = vmax.f32 %v1894_v46, 0.0 }
 0x1cc   : > { %v1895_v23 = vadd.f32 %v1892_v53, %v6090_v24 }
 0x1cd   : > { %1901 = vst [vmem:[#allocation3 + $0x158] sm:$0xff] %v1897_v29 }
 0x1ce   : > { %v1898_v4 = vmax.f32 %v1895_v23, 0.0 }
 0x1d0   : > { %1902 = vst [vmem:[#allocation3 + $0x160] sm:$0x1] %v1898_v4 }
 0x1d1 LB: >> { %s6169_s14 = sshll.u32 %s4307_s28, 7  ;;  %v1909_v31 = vld [vmem:[#allocation2] sm:$0xff]  ;;  %v1910_v57 = vld [vmem:[#allocation2 + $0x8] sm:$0xff]  ;;  %v1914_v61 = vld [vmem:[#allocation3 + $0x8] sm:$0xff]  ;;  %s4307_s28 = sphi %s6163_s28, %s1908_s28  }
 0x1d2   : >> { %s1918_s29 = sld [smem:[#allocation13 + %s6169_s14]]  ;;  %s1919_s17 = sadd.s32 1, %s6169_s14  ;;  %v1913_v24 = vld [vmem:[#allocation3] sm:$0xff]  ;;  %v1916_v38 = vld [vmem:[#allocation3 + $0x9] sm:$0xff]  ;;  %v1951_v59 = vld [vmem:[#allocation2 + $0x20] sm:$0xff] }
 0x1d3   : >> { %s1920_s22 = sld [smem:[#allocation13 + %s1919_s17]]  ;;  %s1921_s16 = sadd.s32 2, %s6169_s14  ;;  %v1911_v56 = vld [vmem:[#allocation2 + $0x1] sm:$0xff]  ;;  %v1912_v33 = vld [vmem:[#allocation2 + $0x9] sm:$0xff]  ;;  %v1950_v39 = vld [vmem:[#allocation2 + $0x18] sm:$0xff] }
 0x1d4   : >> { %s1922_s15 = sld [smem:[#allocation13 + %s1921_s16]]  ;;  %s1958_s25 = sadd.s32 3, %s6169_s14  ;;  %v1915_v40 = vld [vmem:[#allocation3 + $0x1] sm:$0xff]  ;;  %v1954_v21 = vld [vmem:[#allocation3 + $0x18] sm:$0xff]  ;;  %v1992_v11 = vld [vmem:[#allocation2 + $0x38] sm:$0xff] }
 0x1d5   : >> { %s6175_s18 = sld [smem:[#allocation13 + %s1958_s25]]  ;;  %s1960_s26 = sadd.s32 4, %s6169_s14  ;;  %v1952_v1 = vld [vmem:[#allocation2 + $0x19] sm:$0xff]  ;;  %v1955_v58 = vld [vmem:[#allocation3 + $0x20] sm:$0xff]  ;;  %v1991_v41 = vld [vmem:[#allocation2 + $0x30] sm:$0xff] }
 0x1d6   : >> { %s6178_s23 = sld [smem:[#allocation13 + %s1960_s26]]  ;;  %s1962_s1 = sadd.s32 5, %s6169_s14  ;;  %v1953_v16 = vld [vmem:[#allocation2 + $0x21] sm:$0xff]  ;;  %v1957_v3 = vld [vmem:[#allocation3 + $0x21] sm:$0xff] }
 0x1d7   : >> { %s6181_s24 = sld [smem:[#allocation13 + %s1962_s1]]  ;;  %s1999_s2 = sadd.s32 6, %s6169_s14  ;;  %v1956_v55 = vld [vmem:[#allocation3 + $0x19] sm:$0xff] }
 0x1d8   : >> { %v1923_v51 = vstv %s1918_s29  ;;  %s2001_s17 = sadd.s32 7, %s6169_s14  ;;  %s2003_s16 = sadd.s32 8, %s6169_s14 }
 0x1d9   : >> { %v1924_v35 = vmul.f32 %v1923_v51, %v1909_v31  ;;  %v1925_v32 = vmul.f32 %v1923_v51, %v1910_v57  ;;  %v1928_v17 = vstv %s1920_s22  ;;  %v1938_v13 = vmul.f32 %v1923_v51, %v1913_v24  ;;  %s6186_s29 = sld [smem:[#allocation13 + %s1999_s2]]  ;;  %s2040_s25 = sadd.s32 9, %s6169_s14 }
 0x1da   : >> { %v1929_v50 = vmul.f32 %v1928_v17, %v1913_v24  ;;  %v1930_v63 = vmul.f32 %v1928_v17, %v1914_v61  ;;  %v1933_v25 = vstv %s1922_s15  ;;  %v1939_v60 = vmul.f32 %v1923_v51, %v1914_v61  ;;  %s6190_s22 = sld [smem:[#allocation13 + %s2001_s17]]  ;;  %v1996_v51 = vld [vmem:[#allocation3 + $0x38] sm:$0xff]  ;;  %s2081_s2 = sadd.s32 12, %s6169_s14 }
 0x1db   : >> { %v1934_v0 = vmul.f32 %v1933_v25, %v1911_v56  ;;  %v1935_v27 = vmul.f32 %v1933_v25, %v1912_v33  ;;  %v1942_v28 = vmul.f32 %v1928_v17, %v1911_v56  ;;  %v1943_v2 = vmul.f32 %v1928_v17, %v1912_v33  ;;  %s6192_s15 = sld [smem:[#allocation13 + %s2003_s16]]  ;;  %v1993_v56 = vld [vmem:[#allocation2 + $0x31] sm:$0xff]  ;;  %v1994_v17 = vld [vmem:[#allocation2 + $0x39] sm:$0xff]  ;;  %s2083_s17 = sadd.s32 13, %s6169_s14 }
 0x1dc   : >> { %v1931_v10 = vadd.f32 %v1929_v50, %v1924_v35  ;;  %v1932_v5 = vadd.f32 %v1930_v63, %v1925_v32  ;;  %v1946_v62 = vmul.f32 %v1933_v25, %v1915_v40  ;;  %v1947_v18 = vmul.f32 %v1933_v25, %v1916_v38  ;;  %s6197_s26 = sld [smem:[#allocation13 + %s2040_s25]]  ;;  %v1995_v33 = vld [vmem:[#allocation3 + $0x30] sm:$0xff]  ;;  %v1998_v50 = vld [vmem:[#allocation3 + $0x39] sm:$0xff]  ;;  %s2085_s16 = sadd.s32 14, %s6169_s14 }
 0x1dd   : >> { %v1944_v34 = vadd.f32 %v1942_v28, %v1938_v13  ;;  %v1945_v30 = vadd.f32 %v1943_v2, %v1939_v60  ;;  %v1964_v15 = vstv %s6175_s18  ;;  %v1969_v54 = vstv %s6178_s23  ;;  %s2042_s18 = sadd.s32 10, %s6169_s14  ;;  %s2044_s23 = sadd.s32 11, %s6169_s14  ;;  %v1997_v13 = vld [vmem:[#allocation3 + $0x31] sm:$0xff] }
 0x1de   : >> { %v1936_v26 = vadd.f32 %v1934_v0, %v1931_v10  ;;  %v1937_v47 = vadd.f32 %v1935_v27, %v1932_v5  ;;  %v1965_v7 = vmul.f32 %v1964_v15, %v1950_v39  ;;  %v1966_v36 = vmul.f32 %v1964_v15, %v1951_v59  ;;  %s6201_s1 = sld [smem:[#allocation13 + %s2042_s18]]  ;;  %s2122_s25 = sadd.s32 15, %s6169_s14 }
 0x1df   : >> { %v1948_v19 = vadd.f32 %v1946_v62, %v1944_v34  ;;  %v1949_v37 = vadd.f32 %v1947_v18, %v1945_v30  ;;  %v1970_v42 = vmul.f32 %v1969_v54, %v1954_v21  ;;  %v1971_v44 = vmul.f32 %v1969_v54, %v1955_v58  ;;  %v2032_v62 = vld [vmem:[#allocation2 + $0x48] sm:$0xff]  ;;  %v2033_v18 = vld [vmem:[#allocation2 + $0x50] sm:$0xff]  ;;  %s2124_s18 = sadd.s32 16, %s6169_s14 }
 0x1e0   : >> { %v1967_v14 = vadd.f32 %v1965_v7, %v1936_v26  ;;  %v1968_v48 = vadd.f32 %v1966_v36, %v1937_v47  ;;  %v1974_v12 = vstv %s6181_s24  ;;  %v1979_v52 = vmul.f32 %v1964_v15, %v1954_v21  ;;  %s6205_s24 = sld [smem:[#allocation13 + %s2044_s23]]  ;;  %v2037_v36 = vld [vmem:[#allocation3 + $0x50] sm:$0xff] }
 0x1e1   : >> { %v1975_v43 = vmul.f32 %v1974_v12, %v1952_v1  ;;  %v1976_v20 = vmul.f32 %v1974_v12, %v1953_v16  ;;  %v1980_v49 = vmul.f32 %v1964_v15, %v1955_v58  ;;  %v1983_v22 = vmul.f32 %v1969_v54, %v1952_v1  ;;  %v2036_v1 = vld [vmem:[#allocation3 + $0x48] sm:$0xff]  ;;  %s6222_s23 = sld [smem:[#allocation13 + %s2122_s25]]  ;;  %s2204_s25 = sadd.s32 21, %s6169_s14 }
 0x1e2   : >> { %v1972_v8 = vadd.f32 %v1970_v42, %v1967_v14  ;;  %v1973_v9 = vadd.f32 %v1971_v44, %v1968_v48  ;;  %v1981_v45 = vadd.f32 %v1979_v52, %v1948_v19  ;;  %v1984_v6 = vmul.f32 %v1969_v54, %v1953_v16  ;;  %v2035_v48 = vld [vmem:[#allocation2 + $0x51] sm:$0xff]  ;;  %v2039_v52 = vld [vmem:[#allocation3 + $0x51] sm:$0xff] }
 0x1e3   : >> { %v1982_v46 = vadd.f32 %v1980_v49, %v1949_v37  ;;  %v1987_v53 = vmul.f32 %v1974_v12, %v1956_v55  ;;  %v1988_v29 = vmul.f32 %v1974_v12, %v1957_v3  ;;  %v2005_v23 = vstv %s6186_s29  ;;  %s6210_s29 = sld [smem:[#allocation13 + %s2081_s2]]  ;;  %v2034_v55 = vld [vmem:[#allocation2 + $0x49] sm:$0xff]  ;;  %v2038_v12 = vld [vmem:[#allocation3 + $0x49] sm:$0xff]  ;;  %s2163_s2 = sadd.s32 18, %s6169_s14 }
 0x1e4   : >> { %v1977_v4 = vadd.f32 %v1975_v43, %v1972_v8  ;;  %v1978_v31 = vadd.f32 %v1976_v20, %v1973_v9  ;;  %v1985_v57 = vadd.f32 %v1983_v22, %v1981_v45  ;;  %v2006_v24 = vmul.f32 %v2005_v23, %v1991_v41 }
 0x1e5   : >> { %v1986_v61 = vadd.f32 %v1984_v6, %v1982_v46  ;;  %v2007_v40 = vmul.f32 %v2005_v23, %v1992_v11  ;;  %v2010_v38 = vstv %s6190_s22  ;;  %v2015_v35 = vstv %s6192_s15  ;;  %s6213_s22 = sld [smem:[#allocation13 + %s2083_s17]]  ;;  %s2165_s17 = sadd.s32 19, %s6169_s14 }
 0x1e6   : >> { %v1989_v32 = vadd.f32 %v1987_v53, %v1985_v57  ;;  %v2008_v63 = vadd.f32 %v2006_v24, %v1977_v4  ;;  %v2011_v25 = vmul.f32 %v2010_v38, %v1995_v33  ;;  %v2012_v60 = vmul.f32 %v2010_v38, %v1996_v51  ;;  %s6216_s15 = sld [smem:[#allocation13 + %s2085_s16]]  ;;  %s2167_s16 = sadd.s32 20, %s6169_s14 }
 0x1e7   : >> { %v1990_v0 = vadd.f32 %v1988_v29, %v1986_v61  ;;  %v2009_v27 = vadd.f32 %v2007_v40, %v1978_v31  ;;  %v2016_v28 = vmul.f32 %v2015_v35, %v1993_v56  ;;  %v2017_v2 = vmul.f32 %v2015_v35, %v1994_v17  ;;  %v2073_v29 = vld [vmem:[#allocation2 + $0x60] sm:$0xff] }
 0x1e8   : >> { %v2013_v39 = vadd.f32 %v2011_v25, %v2008_v63  ;;  %v2020_v59 = vmul.f32 %v2005_v23, %v1995_v33  ;;  %v2021_v10 = vmul.f32 %v2005_v23, %v1996_v51  ;;  %v2024_v5 = vmul.f32 %v2010_v38, %v1993_v56  ;;  %v2074_v23 = vld [vmem:[#allocation2 + $0x68] sm:$0xff] }
 0x1e9   : >> { %v2014_v34 = vadd.f32 %v2012_v60, %v2009_v27  ;;  %v2025_v30 = vmul.f32 %v2010_v38, %v1994_v17  ;;  %v2028_v21 = vmul.f32 %v2015_v35, %v1997_v13  ;;  %v2029_v15 = vmul.f32 %v2015_v35, %v1998_v50  ;;  %v2077_v38 = vld [vmem:[#allocation3 + $0x60] sm:$0xff]  ;;  %v2078_v35 = vld [vmem:[#allocation3 + $0x68] sm:$0xff] }
 0x1ea   : >> { %v2018_v54 = vadd.f32 %v2016_v28, %v2013_v39  ;;  %v2022_v26 = vadd.f32 %v2020_v59, %v1989_v32  ;;  %v2023_v47 = vadd.f32 %v2021_v10, %v1990_v0  ;;  %v2046_v58 = vstv %s6197_s26  ;;  %s2126_s26 = sadd.s32 17, %s6169_s14  ;;  %v2075_v63 = vld [vmem:[#allocation2 + $0x61] sm:$0xff]  ;;  %v2076_v25 = vld [vmem:[#allocation2 + $0x69] sm:$0xff]  ;;  %v2080_v39 = vld [vmem:[#allocation3 + $0x69] sm:$0xff] }
 0x1eb   : >> { %v2019_v7 = vadd.f32 %v2017_v2, %v2014_v34  ;;  %v2047_v19 = vmul.f32 %v2046_v58, %v2032_v62  ;;  %v2048_v37 = vmul.f32 %v2046_v58, %v2033_v18  ;;  %v2051_v16 = vstv %s6201_s1  ;;  %s6224_s1 = sld [smem:[#allocation13 + %s2124_s18]]  ;;  %v2079_v2 = vld [vmem:[#allocation3 + $0x61] sm:$0xff]  ;;  %s2206_s18 = sadd.s32 22, %s6169_s14 }
 0x1ec   : >> { %v2026_v42 = vadd.f32 %v2024_v5, %v2022_v26  ;;  %v2027_v44 = vadd.f32 %v2025_v30, %v2023_v47  ;;  %v2052_v3 = vmul.f32 %v2051_v16, %v2036_v1  ;;  %v2053_v14 = vmul.f32 %v2051_v16, %v2037_v36  ;;  %v2114_v47 = vld [vmem:[#allocation2 + $0x78] sm:$0xff] }
 0x1ed   : >> { %v2049_v43 = vadd.f32 %v2047_v19, %v2018_v54  ;;  %v2050_v20 = vadd.f32 %v2048_v37, %v2019_v7  ;;  %v2056_v49 = vstv %s6205_s24  ;;  %v2061_v22 = vmul.f32 %v2046_v58, %v2036_v1  ;;  %s6228_s24 = sld [smem:[#allocation13 + %s2126_s26]]  ;;  %v2115_v1 = vld [vmem:[#allocation2 + $0x80] sm:$0xff] }
 0x1ee   : >> { %v2030_v41 = vadd.f32 %v2028_v21, %v2026_v42  ;;  %v2031_v8 = vadd.f32 %v2029_v15, %v2027_v44  ;;  %v2057_v9 = vmul.f32 %v2056_v49, %v2034_v55  ;;  %v2058_v45 = vmul.f32 %v2056_v49, %v2035_v48  ;;  %v2118_v37 = vld [vmem:[#allocation3 + $0x78] sm:$0xff]  ;;  %s6245_s26 = sld [smem:[#allocation13 + %s2204_s25]]  ;;  %s2286_s25 = sadd.s32 27, %s6169_s14 }
 0x1ef   : >> { %v2054_v6 = vadd.f32 %v2052_v3, %v2049_v43  ;;  %v2055_v11 = vadd.f32 %v2053_v14, %v2050_v20  ;;  %v2062_v46 = vmul.f32 %v2046_v58, %v2037_v36  ;;  %v2065_v53 = vmul.f32 %v2051_v16, %v2034_v55  ;;  %v2117_v20 = vld [vmem:[#allocation2 + $0x81] sm:$0xff] }
 0x1f0   : >> { %v2063_v4 = vadd.f32 %v2061_v22, %v2030_v41  ;;  %v2066_v31 = vmul.f32 %v2051_v16, %v2035_v48  ;;  %v2069_v57 = vmul.f32 %v2056_v49, %v2038_v12  ;;  %v2070_v24 = vmul.f32 %v2056_v49, %v2039_v52  ;;  %v2116_v48 = vld [vmem:[#allocation2 + $0x79] sm:$0xff]  ;;  %v2119_v12 = vld [vmem:[#allocation3 + $0x80] sm:$0xff] }
 0x1f1   : >> { %v2059_v61 = vadd.f32 %v2057_v9, %v2054_v6  ;;  %v2060_v56 = vadd.f32 %v2058_v45, %v2055_v11  ;;  %v2064_v33 = vadd.f32 %v2062_v46, %v2031_v8  ;;  %v2087_v51 = vstv %s6210_s29  ;;  %s6234_s29 = sld [smem:[#allocation13 + %s2163_s2]]  ;;  %v2120_v6 = vld [vmem:[#allocation3 + $0x79] sm:$0xff]  ;;  %v2121_v11 = vld [vmem:[#allocation3 + $0x81] sm:$0xff]  ;;  %s2245_s2 = sadd.s32 24, %s6169_s14 }
 0x1f2   : >> { %v2067_v40 = vadd.f32 %v2065_v53, %v2063_v4  ;;  %v2088_v32 = vmul.f32 %v2087_v51, %v2073_v29  ;;  %v2089_v17 = vmul.f32 %v2087_v51, %v2074_v23  ;;  %v2092_v13 = vstv %s6213_s22  ;;  %s6238_s22 = sld [smem:[#allocation13 + %s2165_s17]]  ;;  %s2247_s17 = sadd.s32 25, %s6169_s14 }
 0x1f3   : >> { %v2068_v50 = vadd.f32 %v2066_v31, %v2064_v33  ;;  %v2093_v60 = vmul.f32 %v2092_v13, %v2077_v38  ;;  %v2094_v0 = vmul.f32 %v2092_v13, %v2078_v35  ;;  %v2097_v27 = vstv %s6216_s15  ;;  %s6240_s15 = sld [smem:[#allocation13 + %s2167_s16]]  ;;  %s2249_s16 = sadd.s32 26, %s6169_s14 }
 0x1f4   : >> { %v2071_v28 = vadd.f32 %v2069_v57, %v2067_v40  ;;  %v2090_v59 = vadd.f32 %v2088_v32, %v2059_v61  ;;  %v2091_v10 = vadd.f32 %v2089_v17, %v2060_v56  ;;  %v2098_v5 = vmul.f32 %v2097_v27, %v2075_v63  ;;  %v2155_v57 = vld [vmem:[#allocation2 + $0x90] sm:$0xff] }
 0x1f5   : >> { %v2072_v62 = vadd.f32 %v2070_v24, %v2068_v50  ;;  %v2099_v18 = vmul.f32 %v2097_v27, %v2076_v25  ;;  %v2102_v34 = vmul.f32 %v2087_v51, %v2077_v38  ;;  %v2103_v30 = vmul.f32 %v2087_v51, %v2078_v35  ;;  %v2156_v51 = vld [vmem:[#allocation2 + $0x98] sm:$0xff] }
 0x1f6   : >> { %v2095_v21 = vadd.f32 %v2093_v60, %v2090_v59  ;;  %v2096_v15 = vadd.f32 %v2094_v0, %v2091_v10  ;;  %v2106_v54 = vmul.f32 %v2092_v13, %v2075_v63  ;;  %v2107_v26 = vmul.f32 %v2092_v13, %v2076_v25  ;;  %v2157_v60 = vld [vmem:[#allocation2 + $0x91] sm:$0xff]  ;;  %v2158_v10 = vld [vmem:[#allocation2 + $0x99] sm:$0xff] }
 0x1f7   : >> { %v2104_v58 = vadd.f32 %v2102_v34, %v2071_v28  ;;  %v2105_v7 = vadd.f32 %v2103_v30, %v2072_v62  ;;  %v2110_v36 = vmul.f32 %v2097_v27, %v2079_v2  ;;  %v2111_v19 = vmul.f32 %v2097_v27, %v2080_v39  ;;  %v2159_v0 = vld [vmem:[#allocation3 + $0x90] sm:$0xff]  ;;  %v2160_v27 = vld [vmem:[#allocation3 + $0x98] sm:$0xff] }
 0x1f8   : >> { %v2100_v16 = vadd.f32 %v2098_v5, %v2095_v21  ;;  %v2101_v42 = vadd.f32 %v2099_v18, %v2096_v15  ;;  %v2128_v44 = vstv %s6222_s23  ;;  %v2133_v55 = vstv %s6224_s1  ;;  %s2208_s23 = sadd.s32 23, %s6169_s14  ;;  %s6249_s1 = sld [smem:[#allocation13 + %s2206_s18]]  ;;  %v2161_v5 = vld [vmem:[#allocation3 + $0x91] sm:$0xff]  ;;  %v2162_v62 = vld [vmem:[#allocation3 + $0x99] sm:$0xff] }
 0x1f9   : >> { %v2108_v3 = vadd.f32 %v2106_v54, %v2104_v58  ;;  %v2109_v14 = vadd.f32 %v2107_v26, %v2105_v7  ;;  %v2129_v52 = vmul.f32 %v2128_v44, %v2114_v47  ;;  %v2130_v43 = vmul.f32 %v2128_v44, %v2115_v1  ;;  %s2288_s18 = sadd.s32 28, %s6169_s14 }
 0x1fa   : >> { %v2134_v49 = vmul.f32 %v2133_v55, %v2118_v37  ;;  %v2135_v22 = vmul.f32 %v2133_v55, %v2119_v12  ;;  %v2138_v41 = vstv %s6228_s24  ;;  %v2143_v8 = vmul.f32 %v2128_v44, %v2118_v37  ;;  %s6253_s24 = sld [smem:[#allocation13 + %s2208_s23]] }
 0x1fb   : >> { %v2112_v9 = vadd.f32 %v2110_v36, %v2108_v3  ;;  %v2113_v45 = vadd.f32 %v2111_v19, %v2109_v14  ;;  %v2131_v46 = vadd.f32 %v2129_v52, %v2100_v16  ;;  %v2132_v53 = vadd.f32 %v2130_v43, %v2101_v42  ;;  %v2196_v36 = vld [vmem:[#allocation2 + $0xa8] sm:$0xff]  ;;  %v2197_v19 = vld [vmem:[#allocation2 + $0xb0] sm:$0xff]  ;;  %v2201_v43 = vld [vmem:[#allocation3 + $0xb0] sm:$0xff]  ;;  %s6270_s23 = sld [smem:[#allocation13 + %s2286_s25]]  ;;  %s2368_s25 = sadd.s32 33, %s6169_s14 }
 0x1fc   : >> { %v2139_v29 = vmul.f32 %v2138_v41, %v2116_v48  ;;  %v2140_v23 = vmul.f32 %v2138_v41, %v2117_v20  ;;  %v2144_v4 = vmul.f32 %v2128_v44, %v2119_v12  ;;  %v2147_v31 = vmul.f32 %v2133_v55, %v2116_v48  ;;  %v2200_v48 = vld [vmem:[#allocation3 + $0xa8] sm:$0xff] }
 0x1fd   : >> { %v2136_v24 = vadd.f32 %v2134_v49, %v2131_v46  ;;  %v2137_v61 = vadd.f32 %v2135_v22, %v2132_v53  ;;  %v2145_v56 = vadd.f32 %v2143_v8, %v2112_v9  ;;  %v2148_v33 = vmul.f32 %v2133_v55, %v2117_v20  ;;  %v2198_v9 = vld [vmem:[#allocation2 + $0xa9] sm:$0xff]  ;;  %v2202_v46 = vld [vmem:[#allocation3 + $0xa9] sm:$0xff]  ;;  %v2203_v53 = vld [vmem:[#allocation3 + $0xb1] sm:$0xff] }
 0x1fe   : >> { %v2146_v40 = vadd.f32 %v2144_v4, %v2113_v45  ;;  %v2151_v38 = vmul.f32 %v2138_v41, %v2120_v6  ;;  %v2152_v35 = vmul.f32 %v2138_v41, %v2121_v11  ;;  %v2169_v32 = vstv %s6234_s29  ;;  %s6258_s29 = sld [smem:[#allocation13 + %s2245_s2]]  ;;  %v2199_v11 = vld [vmem:[#allocation2 + $0xb1] sm:$0xff]  ;;  %s2327_s2 = sadd.s32 30, %s6169_s14 }
 0x1ff   : >> { %v2141_v17 = vadd.f32 %v2139_v29, %v2136_v24  ;;  %v2142_v13 = vadd.f32 %v2140_v23, %v2137_v61  ;;  %v2149_v50 = vadd.f32 %v2147_v31, %v2145_v56  ;;  %v2170_v63 = vmul.f32 %v2169_v32, %v2155_v57 }
 0x200   : >> { %v2150_v25 = vadd.f32 %v2148_v33, %v2146_v40  ;;  %v2171_v28 = vmul.f32 %v2169_v32, %v2156_v51  ;;  %v2174_v2 = vstv %s6238_s22  ;;  %v2179_v39 = vstv %s6240_s15  ;;  %s6261_s22 = sld [smem:[#allocation13 + %s2247_s17]]  ;;  %s2329_s17 = sadd.s32 31, %s6169_s14 }
 0x201   : >> { %v2153_v59 = vadd.f32 %v2151_v38, %v2149_v50  ;;  %v2172_v18 = vadd.f32 %v2170_v63, %v2141_v17  ;;  %v2175_v34 = vmul.f32 %v2174_v2, %v2159_v0  ;;  %v2176_v30 = vmul.f32 %v2174_v2, %v2160_v27  ;;  %s6264_s15 = sld [smem:[#allocation13 + %s2249_s16]]  ;;  %s2331_s16 = sadd.s32 32, %s6169_s14 }
 0x202   : >> { %v2154_v21 = vadd.f32 %v2152_v35, %v2150_v25  ;;  %v2173_v15 = vadd.f32 %v2171_v28, %v2142_v13  ;;  %v2180_v54 = vmul.f32 %v2179_v39, %v2157_v60  ;;  %v2181_v26 = vmul.f32 %v2179_v39, %v2158_v10  ;;  %v2237_v35 = vld [vmem:[#allocation2 + $0xc0] sm:$0xff] }
 0x203   : >> { %v2177_v47 = vadd.f32 %v2175_v34, %v2172_v18  ;;  %v2184_v1 = vmul.f32 %v2169_v32, %v2159_v0  ;;  %v2185_v58 = vmul.f32 %v2169_v32, %v2160_v27  ;;  %v2188_v7 = vmul.f32 %v2174_v2, %v2157_v60  ;;  %v2238_v32 = vld [vmem:[#allocation2 + $0xc8] sm:$0xff] }
 0x204   : >> { %v2178_v37 = vadd.f32 %v2176_v30, %v2173_v15  ;;  %v2189_v16 = vmul.f32 %v2174_v2, %v2158_v10  ;;  %v2192_v42 = vmul.f32 %v2179_v39, %v2161_v5  ;;  %v2193_v44 = vmul.f32 %v2179_v39, %v2162_v62  ;;  %v2241_v2 = vld [vmem:[#allocation3 + $0xc0] sm:$0xff]  ;;  %v2242_v39 = vld [vmem:[#allocation3 + $0xc8] sm:$0xff] }
 0x205   : >> { %v2182_v55 = vadd.f32 %v2180_v54, %v2177_v47  ;;  %v2186_v3 = vadd.f32 %v2184_v1, %v2153_v59  ;;  %v2187_v14 = vadd.f32 %v2185_v58, %v2154_v21  ;;  %v2210_v12 = vstv %s6245_s26  ;;  %s2290_s26 = sadd.s32 29, %s6169_s14  ;;  %v2239_v18 = vld [vmem:[#allocation2 + $0xc1] sm:$0xff]  ;;  %v2240_v34 = vld [vmem:[#allocation2 + $0xc9] sm:$0xff]  ;;  %v2244_v47 = vld [vmem:[#allocation3 + $0xc9] sm:$0xff] }
 0x206   : >> { %v2183_v52 = vadd.f32 %v2181_v26, %v2178_v37  ;;  %v2211_v20 = vmul.f32 %v2210_v12, %v2196_v36  ;;  %v2212_v49 = vmul.f32 %v2210_v12, %v2197_v19  ;;  %v2215_v22 = vstv %s6249_s1  ;;  %s6272_s1 = sld [smem:[#allocation13 + %s2288_s18]]  ;;  %v2243_v26 = vld [vmem:[#allocation3 + $0xc1] sm:$0xff]  ;;  %s2370_s18 = sadd.s32 34, %s6169_s14 }
 0x207   : >> { %v2190_v41 = vadd.f32 %v2188_v7, %v2186_v3  ;;  %v2191_v8 = vadd.f32 %v2189_v16, %v2187_v14  ;;  %v2216_v45 = vmul.f32 %v2215_v22, %v2200_v48  ;;  %v2217_v6 = vmul.f32 %v2215_v22, %v2201_v43  ;;  %v2278_v14 = vld [vmem:[#allocation2 + $0xd8] sm:$0xff] }
 0x208   : >> { %v2213_v29 = vadd.f32 %v2211_v20, %v2182_v55  ;;  %v2214_v23 = vadd.f32 %v2212_v49, %v2183_v52  ;;  %v2220_v4 = vstv %s6253_s24  ;;  %v2225_v31 = vmul.f32 %v2210_v12, %v2200_v48  ;;  %s6276_s24 = sld [smem:[#allocation13 + %s2290_s26]]  ;;  %v2279_v48 = vld [vmem:[#allocation2 + $0xe0] sm:$0xff] }
 0x209   : >> { %v2194_v57 = vadd.f32 %v2192_v42, %v2190_v41  ;;  %v2195_v24 = vadd.f32 %v2193_v44, %v2191_v8  ;;  %v2221_v61 = vmul.f32 %v2220_v4, %v2198_v9  ;;  %v2222_v56 = vmul.f32 %v2220_v4, %v2199_v11  ;;  %v2282_v49 = vld [vmem:[#allocation3 + $0xd8] sm:$0xff]  ;;  %s6293_s26 = sld [smem:[#allocation13 + %s2368_s25]]  ;;  %s2450_s25 = sadd.s32 39, %s6169_s14 }
 0x20a   : >> { %v2218_v33 = vadd.f32 %v2216_v45, %v2213_v29  ;;  %v2219_v51 = vadd.f32 %v2217_v6, %v2214_v23  ;;  %v2226_v40 = vmul.f32 %v2210_v12, %v2201_v43  ;;  %v2229_v38 = vmul.f32 %v2215_v22, %v2198_v9  ;;  %v2281_v23 = vld [vmem:[#allocation2 + $0xe1] sm:$0xff] }
 0x20b   : >> { %v2227_v17 = vadd.f32 %v2225_v31, %v2194_v57  ;;  %v2230_v13 = vmul.f32 %v2215_v22, %v2199_v11  ;;  %v2233_v50 = vmul.f32 %v2220_v4, %v2202_v46  ;;  %v2234_v63 = vmul.f32 %v2220_v4, %v2203_v53  ;;  %v2280_v11 = vld [vmem:[#allocation2 + $0xd9] sm:$0xff]  ;;  %v2283_v46 = vld [vmem:[#allocation3 + $0xe0] sm:$0xff] }
 0x20c   : >> { %v2223_v25 = vadd.f32 %v2221_v61, %v2218_v33  ;;  %v2224_v60 = vadd.f32 %v2222_v56, %v2219_v51  ;;  %v2228_v0 = vadd.f32 %v2226_v40, %v2195_v24  ;;  %v2251_v27 = vstv %s6258_s29  ;;  %s6282_s29 = sld [smem:[#allocation13 + %s2327_s2]]  ;;  %v2284_v33 = vld [vmem:[#allocation3 + $0xd9] sm:$0xff]  ;;  %v2285_v51 = vld [vmem:[#allocation3 + $0xe1] sm:$0xff]  ;;  %s2409_s2 = sadd.s32 36, %s6169_s14 }
 0x20d   : >> { %v2231_v28 = vadd.f32 %v2229_v38, %v2227_v17  ;;  %v2252_v59 = vmul.f32 %v2251_v27, %v2237_v35  ;;  %v2253_v10 = vmul.f32 %v2251_v27, %v2238_v32  ;;  %v2256_v5 = vstv %s6261_s22  ;;  %s6286_s22 = sld [smem:[#allocation13 + %s2329_s17]]  ;;  %s2411_s17 = sadd.s32 37, %s6169_s14 }
 0x20e   : >> { %v2232_v62 = vadd.f32 %v2230_v13, %v2228_v0  ;;  %v2257_v30 = vmul.f32 %v2256_v5, %v2241_v2  ;;  %v2258_v21 = vmul.f32 %v2256_v5, %v2242_v39  ;;  %v2261_v15 = vstv %s6264_s15  ;;  %s6288_s15 = sld [smem:[#allocation13 + %s2331_s16]]  ;;  %s2413_s16 = sadd.s32 38, %s6169_s14 }
 0x20f   : >> { %v2235_v54 = vadd.f32 %v2233_v50, %v2231_v28  ;;  %v2254_v1 = vadd.f32 %v2252_v59, %v2223_v25  ;;  %v2255_v58 = vadd.f32 %v2253_v10, %v2224_v60  ;;  %v2262_v7 = vmul.f32 %v2261_v15, %v2239_v18  ;;  %v2319_v50 = vld [vmem:[#allocation2 + $0xf0] sm:$0xff] }
 0x210   : >> { %v2236_v36 = vadd.f32 %v2234_v63, %v2232_v62  ;;  %v2263_v19 = vmul.f32 %v2261_v15, %v2240_v34  ;;  %v2266_v37 = vmul.f32 %v2251_v27, %v2241_v2  ;;  %v2267_v16 = vmul.f32 %v2251_v27, %v2242_v39  ;;  %v2320_v27 = vld [vmem:[#allocation2 + $0xf8] sm:$0xff] }
 0x211   : >> { %v2259_v42 = vadd.f32 %v2257_v30, %v2254_v1  ;;  %v2260_v44 = vadd.f32 %v2258_v21, %v2255_v58  ;;  %v2270_v55 = vmul.f32 %v2256_v5, %v2239_v18  ;;  %v2271_v3 = vmul.f32 %v2256_v5, %v2240_v34  ;;  %v2321_v30 = vld [vmem:[#allocation2 + $0xf1] sm:$0xff]  ;;  %v2322_v58 = vld [vmem:[#allocation2 + $0xf9] sm:$0xff] }
 0x212   : >> { %v2268_v12 = vadd.f32 %v2266_v37, %v2235_v54  ;;  %v2269_v52 = vadd.f32 %v2267_v16, %v2236_v36  ;;  %v2274_v43 = vmul.f32 %v2261_v15, %v2243_v26  ;;  %v2275_v20 = vmul.f32 %v2261_v15, %v2244_v47  ;;  %v2323_v21 = vld [vmem:[#allocation3 + $0xf0] sm:$0xff]  ;;  %v2324_v15 = vld [vmem:[#allocation3 + $0xf8] sm:$0xff] }
 0x213   : >> { %v2264_v22 = vadd.f32 %v2262_v7, %v2259_v42  ;;  %v2265_v41 = vadd.f32 %v2263_v19, %v2260_v44  ;;  %v2292_v8 = vstv %s6270_s23  ;;  %v2297_v9 = vstv %s6272_s1  ;;  %s2372_s23 = sadd.s32 35, %s6169_s14  ;;  %s6297_s1 = sld [smem:[#allocation13 + %s2370_s18]]  ;;  %v2325_v7 = vld [vmem:[#allocation3 + $0xf1] sm:$0xff]  ;;  %v2326_v36 = vld [vmem:[#allocation3 + $0xf9] sm:$0xff] }
 0x214   : >> { %v2272_v45 = vadd.f32 %v2270_v55, %v2268_v12  ;;  %v2273_v6 = vadd.f32 %v2271_v3, %v2269_v52  ;;  %v2293_v53 = vmul.f32 %v2292_v8, %v2278_v14  ;;  %v2294_v29 = vmul.f32 %v2292_v8, %v2279_v48  ;;  %s2452_s18 = sadd.s32 40, %s6169_s14 }
 0x215   : >> { %v2298_v4 = vmul.f32 %v2297_v9, %v2282_v49  ;;  %v2299_v31 = vmul.f32 %v2297_v9, %v2283_v46  ;;  %v2302_v57 = vstv %s6276_s24  ;;  %v2307_v24 = vmul.f32 %v2292_v8, %v2282_v49  ;;  %s6301_s24 = sld [smem:[#allocation13 + %s2372_s23]] }
 0x216   : >> { %v2276_v61 = vadd.f32 %v2274_v43, %v2272_v45  ;;  %v2277_v56 = vadd.f32 %v2275_v20, %v2273_v6  ;;  %v2295_v40 = vadd.f32 %v2293_v53, %v2264_v22  ;;  %v2296_v38 = vadd.f32 %v2294_v29, %v2265_v41  ;;  %v2360_v43 = vld [vmem:[#allocation2 + $0x108] sm:$0xff]  ;;  %v2361_v20 = vld [vmem:[#allocation2 + $0x110] sm:$0xff]  ;;  %v2365_v29 = vld [vmem:[#allocation3 + $0x110] sm:$0xff]  ;;  %s6318_s23 = sld [smem:[#allocation13 + %s2450_s25]]  ;;  %s3758_s25 = sshll.u32 %s4307_s28, 4 }
 0x217   : >> { %v2303_v35 = vmul.f32 %v2302_v57, %v2280_v11  ;;  %v2304_v32 = vmul.f32 %v2302_v57, %v2281_v23  ;;  %v2308_v17 = vmul.f32 %v2292_v8, %v2283_v46  ;;  %v2311_v13 = vmul.f32 %v2297_v9, %v2280_v11  ;;  %v2364_v11 = vld [vmem:[#allocation3 + $0x108] sm:$0xff] }
 0x218   : >> { %v2300_v63 = vadd.f32 %v2298_v4, %v2295_v40  ;;  %v2301_v25 = vadd.f32 %v2299_v31, %v2296_v38  ;;  %v2309_v60 = vadd.f32 %v2307_v24, %v2276_v61  ;;  %v2312_v0 = vmul.f32 %v2297_v9, %v2281_v23  ;;  %v2362_v61 = vld [vmem:[#allocation2 + $0x109] sm:$0xff]  ;;  %v2366_v40 = vld [vmem:[#allocation3 + $0x109] sm:$0xff]  ;;  %v2367_v38 = vld [vmem:[#allocation3 + $0x111] sm:$0xff] }
 0x219   : >> { %v2310_v28 = vadd.f32 %v2308_v17, %v2277_v56  ;;  %v2315_v2 = vmul.f32 %v2302_v57, %v2284_v33  ;;  %v2316_v39 = vmul.f32 %v2302_v57, %v2285_v51  ;;  %v2333_v59 = vstv %s6282_s29  ;;  %s6306_s29 = sld [smem:[#allocation13 + %s2409_s2]]  ;;  %v2363_v51 = vld [vmem:[#allocation2 + $0x111] sm:$0xff]  ;;  %s2491_s2 = sadd.s32 42, %s6169_s14 }
 0x21a   : >> { %v2305_v10 = vadd.f32 %v2303_v35, %v2300_v63  ;;  %v2306_v5 = vadd.f32 %v2304_v32, %v2301_v25  ;;  %v2313_v62 = vadd.f32 %v2311_v13, %v2309_v60  ;;  %v2334_v18 = vmul.f32 %v2333_v59, %v2319_v50 }
 0x21b   : >> { %v2314_v34 = vadd.f32 %v2312_v0, %v2310_v28  ;;  %v2335_v54 = vmul.f32 %v2333_v59, %v2320_v27  ;;  %v2338_v26 = vstv %s6286_s22  ;;  %v2343_v47 = vstv %s6288_s15  ;;  %s6309_s22 = sld [smem:[#allocation13 + %s2411_s17]]  ;;  %s2493_s17 = sadd.s32 43, %s6169_s14 }
 0x21c   : >> { %v2317_v1 = vadd.f32 %v2315_v2, %v2313_v62  ;;  %v2336_v19 = vadd.f32 %v2334_v18, %v2305_v10  ;;  %v2339_v37 = vmul.f32 %v2338_v26, %v2323_v21  ;;  %v2340_v16 = vmul.f32 %v2338_v26, %v2324_v15  ;;  %s6312_s15 = sld [smem:[#allocation13 + %s2413_s16]]  ;;  %s2495_s16 = sadd.s32 44, %s6169_s14 }
 0x21d   : >> { %v2318_v42 = vadd.f32 %v2316_v39, %v2314_v34  ;;  %v2337_v44 = vadd.f32 %v2335_v54, %v2306_v5  ;;  %v2344_v55 = vmul.f32 %v2343_v47, %v2321_v30  ;;  %v2345_v3 = vmul.f32 %v2343_v47, %v2322_v58  ;;  %v2401_v39 = vld [vmem:[#allocation2 + $0x120] sm:$0xff] }
 0x21e   : >> { %v2341_v14 = vadd.f32 %v2339_v37, %v2336_v19  ;;  %v2348_v48 = vmul.f32 %v2333_v59, %v2323_v21  ;;  %v2349_v12 = vmul.f32 %v2333_v59, %v2324_v15  ;;  %v2352_v52 = vmul.f32 %v2338_v26, %v2321_v30  ;;  %v2402_v59 = vld [vmem:[#allocation2 + $0x128] sm:$0xff] }
 0x21f   : >> { %v2342_v49 = vadd.f32 %v2340_v16, %v2337_v44  ;;  %v2353_v22 = vmul.f32 %v2338_v26, %v2322_v58  ;;  %v2356_v41 = vmul.f32 %v2343_v47, %v2325_v7  ;;  %v2357_v8 = vmul.f32 %v2343_v47, %v2326_v36  ;;  %v2405_v26 = vld [vmem:[#allocation3 + $0x120] sm:$0xff]  ;;  %v2406_v47 = vld [vmem:[#allocation3 + $0x128] sm:$0xff] }
 0x220   : >> { %v2346_v9 = vadd.f32 %v2344_v55, %v2341_v14  ;;  %v2350_v45 = vadd.f32 %v2348_v48, %v2317_v1  ;;  %v2351_v6 = vadd.f32 %v2349_v12, %v2318_v42  ;;  %v2374_v46 = vstv %s6293_s26  ;;  %s2454_s26 = sadd.s32 41, %s6169_s14  ;;  %v2403_v19 = vld [vmem:[#allocation2 + $0x121] sm:$0xff]  ;;  %v2404_v37 = vld [vmem:[#allocation2 + $0x129] sm:$0xff]  ;;  %v2408_v14 = vld [vmem:[#allocation3 + $0x129] sm:$0xff]  ;;  %s6334_s14 = sld [smem:[#allocation13 + %s2493_s17]] }
 0x221   : >> { %v2347_v53 = vadd.f32 %v2345_v3, %v2342_v49  ;;  %v2375_v23 = vmul.f32 %v2374_v46, %v2360_v43  ;;  %v2376_v4 = vmul.f32 %v2374_v46, %v2361_v20  ;;  %v2379_v31 = vstv %s6297_s1  ;;  %s6320_s1 = sld [smem:[#allocation13 + %s2452_s18]]  ;;  %v2407_v3 = vld [vmem:[#allocation3 + $0x121] sm:$0xff]  ;;  %s2533_s18 = scalar_lea.vmem [#allocation4], %s3758_s25 }
 0x222   : >> { %v2354_v57 = vadd.f32 %v2352_v52, %v2350_v45  ;;  %v2355_v24 = vadd.f32 %v2353_v22, %v2351_v6  ;;  %v2380_v56 = vmul.f32 %v2379_v31, %v2364_v11  ;;  %v2381_v33 = vmul.f32 %v2379_v31, %v2365_v29  ;;  %v2442_v6 = vld [vmem:[#allocation2 + $0x138] sm:$0xff] }
 0x223   : >> { %v2377_v35 = vadd.f32 %v2375_v23, %v2346_v9  ;;  %v2378_v32 = vadd.f32 %v2376_v4, %v2347_v53  ;;  %v2384_v17 = vstv %s6301_s24  ;;  %v2389_v13 = vmul.f32 %v2374_v46, %v2364_v11  ;;  %s6324_s24 = sld [smem:[#allocation13 + %s2454_s26]]  ;;  %v2443_v11 = vld [vmem:[#allocation2 + $0x140] sm:$0xff] }
 0x224   : >> { %v2358_v50 = vadd.f32 %v2356_v41, %v2354_v57  ;;  %v2359_v63 = vadd.f32 %v2357_v8, %v2355_v24  ;;  %v2385_v25 = vmul.f32 %v2384_v17, %v2362_v61  ;;  %v2386_v60 = vmul.f32 %v2384_v17, %v2363_v51  ;;  %v2446_v4 = vld [vmem:[#allocation3 + $0x138] sm:$0xff] }
 0x225   : >> { %v2382_v0 = vadd.f32 %v2380_v56, %v2377_v35  ;;  %v2383_v27 = vadd.f32 %v2381_v33, %v2378_v32  ;;  %v2390_v28 = vmul.f32 %v2374_v46, %v2365_v29  ;;  %v2393_v2 = vmul.f32 %v2379_v31, %v2362_v61  ;;  %v2445_v32 = vld [vmem:[#allocation2 + $0x141] sm:$0xff] }
 0x226   : >> { %v2391_v10 = vadd.f32 %v2389_v13, %v2358_v50  ;;  %v2394_v5 = vmul.f32 %v2379_v31, %v2363_v51  ;;  %v2397_v62 = vmul.f32 %v2384_v17, %v2366_v40  ;;  %v2398_v18 = vmul.f32 %v2384_v17, %v2367_v38  ;;  %v2444_v51 = vld [vmem:[#allocation2 + $0x139] sm:$0xff]  ;;  %v2447_v40 = vld [vmem:[#allocation3 + $0x140] sm:$0xff] }
 0x227   : >> { %v2387_v34 = vadd.f32 %v2385_v25, %v2382_v0  ;;  %v2388_v30 = vadd.f32 %v2386_v60, %v2383_v27  ;;  %v2392_v21 = vadd.f32 %v2390_v28, %v2359_v63  ;;  %v2415_v15 = vstv %s6306_s29  ;;  %s6330_s29 = sld [smem:[#allocation13 + %s2491_s2]]  ;;  %v2448_v0 = vld [vmem:[#allocation3 + $0x139] sm:$0xff]  ;;  %v2449_v27 = vld [vmem:[#allocation3 + $0x141] sm:$0xff] }
 0x228   : >> { %v2395_v54 = vadd.f32 %v2393_v2, %v2391_v10  ;;  %v2416_v1 = vmul.f32 %v2415_v15, %v2401_v39  ;;  %v2417_v58 = vmul.f32 %v2415_v15, %v2402_v59  ;;  %v2420_v7 = vstv %s6309_s22  ;;  %s6336_s22 = sld [smem:[#allocation13 + %s2495_s16]] }
 0x229   : >> { %v2396_v36 = vadd.f32 %v2394_v5, %v2392_v21  ;;  %v2421_v16 = vmul.f32 %v2420_v7, %v2405_v26  ;;  %v2422_v42 = vmul.f32 %v2420_v7, %v2406_v47  ;;  %v2425_v44 = vstv %s6312_s15  ;;  %s2526_s15 = sld [smem:[#allocation14 + %s4307_s28]]  ;;  %s1908_s28 = sadd.s32 1, %s4307_s28  }
 0x22a   : >> { %v2399_v55 = vadd.f32 %v2397_v62, %v2395_v54  ;;  %v2418_v48 = vadd.f32 %v2416_v1, %v2387_v34  ;;  %v2419_v12 = vadd.f32 %v2417_v58, %v2388_v30  ;;  %v2426_v52 = vmul.f32 %v2425_v44, %v2403_v19  ;;  %v2483_v62 = vld [vmem:[#allocation2 + $0x150] sm:$0xff]  ;;  %p1905_p3 = scmp.ge.s32.totalorder %s1908_s28, 30  }
 0x22b   : >> { %v2400_v43 = vadd.f32 %v2398_v18, %v2396_v36  ;;  %v2427_v20 = vmul.f32 %v2425_v44, %v2404_v37  ;;  %v2430_v49 = vmul.f32 %v2415_v15, %v2405_v26  ;;  %v2431_v22 = vmul.f32 %v2415_v15, %v2406_v47  ;;  %v2484_v15 = vld [vmem:[#allocation2 + $0x158] sm:$0xff]  ;;  %p6965_p0 = scmp.ne.s32.totalorder (%p1905_p3), %s6945_s20, 0 }
 0x22c   : >> { %v2423_v41 = vadd.f32 %v2421_v16, %v2418_v48  ;;  %v2424_v8 = vadd.f32 %v2422_v42, %v2419_v12  ;;  %v2434_v9 = vmul.f32 %v2420_v7, %v2403_v19  ;;  %v2435_v45 = vmul.f32 %v2420_v7, %v2404_v37  ;;  %v2485_v16 = vld [vmem:[#allocation2 + $0x151] sm:$0xff]  ;;  %v2486_v12 = vld [vmem:[#allocation2 + $0x159] sm:$0xff] }
 0x22d   : >> { %v2432_v46 = vadd.f32 %v2430_v49, %v2399_v55  ;;  %v2433_v53 = vadd.f32 %v2431_v22, %v2400_v43  ;;  %v2438_v29 = vmul.f32 %v2425_v44, %v2407_v3  ;;  %v2439_v23 = vmul.f32 %v2425_v44, %v2408_v14  ;;  %v2487_v42 = vld [vmem:[#allocation3 + $0x150] sm:$0xff]  ;;  %v2488_v44 = vld [vmem:[#allocation3 + $0x158] sm:$0xff] }
 0x22e   : >> { %v2428_v31 = vadd.f32 %v2426_v52, %v2423_v41  ;;  %v2429_v57 = vadd.f32 %v2427_v20, %v2424_v8  ;;  %v2456_v24 = vstv %s6318_s23  ;;  %v2461_v61 = vstv %s6320_s1  ;;  %v2489_v22 = vld [vmem:[#allocation3 + $0x151] sm:$0xff]  ;;  %v2490_v41 = vld [vmem:[#allocation3 + $0x159] sm:$0xff] }
 0x22f   : >> { %v2436_v56 = vadd.f32 %v2434_v9, %v2432_v46  ;;  %v2437_v33 = vadd.f32 %v2435_v45, %v2433_v53  ;;  %v2457_v38 = vmul.f32 %v2456_v24, %v2442_v6  ;;  %v2458_v35 = vmul.f32 %v2456_v24, %v2443_v11 }
 0x230   : >> { %v2462_v17 = vmul.f32 %v2461_v61, %v2446_v4  ;;  %v2463_v13 = vmul.f32 %v2461_v61, %v2447_v40  ;;  %v2466_v50 = vstv %s6324_s24  ;;  %v2471_v63 = vmul.f32 %v2456_v24, %v2446_v4 }
 0x231   : >> { %v2440_v25 = vadd.f32 %v2438_v29, %v2436_v56  ;;  %v2441_v60 = vadd.f32 %v2439_v23, %v2437_v33  ;;  %v2459_v28 = vadd.f32 %v2457_v38, %v2428_v31  ;;  %v2460_v2 = vadd.f32 %v2458_v35, %v2429_v57 }
 0x232   : >> { %v2467_v39 = vmul.f32 %v2466_v50, %v2444_v51  ;;  %v2468_v59 = vmul.f32 %v2466_v50, %v2445_v32  ;;  %v2472_v10 = vmul.f32 %v2456_v24, %v2447_v40  ;;  %v2475_v5 = vmul.f32 %v2461_v61, %v2444_v51 }
 0x233   : >> { %v2464_v18 = vadd.f32 %v2462_v17, %v2459_v28  ;;  %v2465_v34 = vadd.f32 %v2463_v13, %v2460_v2  ;;  %v2473_v30 = vadd.f32 %v2471_v63, %v2440_v25  ;;  %v2476_v21 = vmul.f32 %v2461_v61, %v2445_v32 }
 0x234   : >> { %v2474_v54 = vadd.f32 %v2472_v10, %v2441_v60  ;;  %v2479_v26 = vmul.f32 %v2466_v50, %v2448_v0  ;;  %v2480_v47 = vmul.f32 %v2466_v50, %v2449_v27  ;;  %v2497_v1 = vstv %s6330_s29  ;;  %s3791_s29 = sshll.u32 (%p1905_p3), %s4390_s13, 7  ;;  %s4318_s13 = smov (%p1905_p3), [#allocation16]  }
 0x235   : >> { %v2469_v58 = vadd.f32 %v2467_v39, %v2464_v18  ;;  %v2470_v7 = vadd.f32 %v2468_v59, %v2465_v34  ;;  %v2477_v36 = vadd.f32 %v2475_v5, %v2473_v30  ;;  %v2498_v19 = vmul.f32 %v2497_v1, %v2483_v62  ;;  %s6880_s25 = scalar_lea.hbm (%p1905_p3), %s6934_s9, %s3791_s29  ;;  %s4221_s26 = sshll.u32 (%p1905_p3), %s4318_s13, 4  ;;  %s4222_s26 = int_to_ptr.vmem [resolvable:$false] %s4221_s26 }
 0x236   : >> { %v2478_v37 = vadd.f32 %v2476_v21, %v2474_v54  ;;  %v2499_v55 = vmul.f32 %v2497_v1, %v2484_v15  ;;  %v2502_v3 = vstv %s6334_s14  ;;  %v2507_v14 = vstv %s6336_s22  ;;  %s3544_s14 = sshll.u32 (%p1905_p3), %s6161_s27, 4  ;;  %s4223_s23 = scalar_lea.vmem (%p1905_p3), %s4222_s26, 256  ;;  %s6882_s14 = int_to_ptr.vmem [resolvable:$true] %s3544_s14 }
 0x237   : >> { %v2481_v48 = vadd.f32 %v2479_v26, %v2477_v36  ;;  %v2500_v52 = vadd.f32 %v2498_v19, %v2469_v58  ;;  %v2503_v43 = vmul.f32 %v2502_v3, %v2487_v42  ;;  %v2504_v20 = vmul.f32 %v2502_v3, %v2488_v44  ;;  %s4217_s28 = scalar_lea.vmem (%p1905_p3), %s6882_s14, 128  ;;  %p4224_p5 = scmp.lt.s32.totalorder (%p1905_p3), %s6882_s14, %s4222_s26 }
 0x238   : >> { %v2482_v49 = vadd.f32 %v2480_v47, %v2478_v37  ;;  %v2501_v8 = vadd.f32 %v2499_v55, %v2470_v7  ;;  %v2508_v9 = vmul.f32 %v2507_v14, %v2485_v16  ;;  %v2509_v45 = vmul.f32 %v2507_v14, %v2486_v12  ;;  %p4218_p10 = scmp.ne.s32.totalorder (%p1905_p3), %s6882_s14, %s4217_s28  ;;  %p4225_p6 = scmp.lt.s32.totalorder (%p1905_p3), %s4223_s23, %s4217_s28 }
 0x239   : >> { %v2505_v6 = vadd.f32 %v2503_v43, %v2500_v52  ;;  %v2512_v11 = vmul.f32 %v2497_v1, %v2487_v42  ;;  %v2513_v46 = vmul.f32 %v2497_v1, %v2488_v44  ;;  %v2516_v53 = vmul.f32 %v2502_v3, %v2485_v16 }
 0x23a   : >> { %v2506_v29 = vadd.f32 %v2504_v20, %v2501_v8  ;;  %v2517_v23 = vmul.f32 %v2502_v3, %v2486_v12  ;;  %v2520_v57 = vmul.f32 %v2507_v14, %v2489_v22  ;;  %v2521_v24 = vmul.f32 %v2507_v14, %v2490_v41  ;;  %p4219_p2 = pnand (%p1905_p3), %p4218_p10, %p6965_p0  ;;  %p4226_p12 = por (%p1905_p3), %p4225_p6, %p4224_p5 }
 0x23b   : >> { %v2514_v4 = vadd.f32 %v2512_v11, %v2481_v48  ;;  %v2515_v31 = vadd.f32 %v2513_v46, %v2482_v49  ;;  %v2510_v61 = vadd.f32 %v2508_v9, %v2505_v6  ;;  %v2527_v35 = vstv %s2526_s15  ;;  %v2537_v9 = vld [vmem:[%s6930_s5 + $0x8] sm:$0xff] (%p1905_p3) }
 0x23c   : >> { %v2511_v56 = vadd.f32 %v2509_v45, %v2506_v29  ;;  %v4316_v28 = vmov (%p1905_p3), 0.0|0.0   ;;  %v4317_v5 = vmov (%p1905_p3), 0   ;;  %vm2896_vm0 = vcmask (%p1905_p3), 785408   ;;  %v2539_v45 = vld [vmem:[%s6930_s5 + $0x18] sm:$0xff] (%p1905_p3)  ;;  %3051 = vmatprep.mubr.f32.mxu0 (%p1905_p3), %v2537_v9  ;;  %p4220_p11 = pneg (%p1905_p3), %p4219_p2 }
 0x23d   : >> { %v2518_v33 = vadd.f32 %v2516_v53, %v2514_v4  ;;  %v2519_v51 = vadd.f32 %v2517_v23, %v2515_v31  ;;  %3794 = vmatprep.subr.bf16.mxu0 (%p1905_p3), %v4316_v28  ;;  %3842 = vmatprep.subr.bf16.mxu1 (%p1905_p3), %v4316_v28  ;;  %vm3455_vm1 = vcmask (%p1905_p3), 916480  }
 0x23e   : > { %4129 = vset.pattern.permute.xlu0 (%p1905_p3), %v4317_v5  ;;  %4130 = vset.pattern.permute.xlu1 (%p1905_p3), %v4317_v5  ;;  %p4227_p7 = pnand (%p1905_p3), %p4226_p12, %p4220_p11 }
 0x23f   : >> { %v2522_v40 = vadd.f32 %v2520_v57, %v2518_v33  ;;  %v2523_v38 = vadd.f32 %v2521_v24, %v2519_v51  ;;  %3759 = vmatprep.mubr.msk.f32.mxu1 (%p1905_p3), %vm2896_vm0, %v2539_v45  ;;  %v2716_v33 = vld [vmem:[%s6931_s6] sm:$0xff] (%p1905_p3)  ;;  %v2730_v45 = vld [vmem:[%s6931_s6 + $0x70] sm:$0xff] (%p1905_p3) }
 0x240   : > { %2748 = vperm.xlu0 (%p1905_p3), %4129, %v2716_v33   ;;  %v2536_v33 = vld [vmem:[%s6930_s5] sm:$0xff] (%p1905_p3) }
 0x241   : >> { %v2524_v32 = vmax.f32 %v2510_v61, %v2522_v40  ;;  %v2525_v17 = vmax.f32 %v2511_v56, %v2523_v38  ;;  %1907 = sbr.rel (!%p1905_p3) target bundleno = 465 (0x1d1), region = 196 }
 0x243   : >> { %v2528_v13 = vadd.f32 %v2527_v35, %v2524_v32  ;;  %v2529_v50 = vadd.f32 %v2527_v35, %v2525_v17  ;;  %v2717_v35 = vld [vmem:[%s6931_s6 + $0x8] sm:$0xff] (%p1905_p3) }
 0x244   : > { %2753 = vperm.xlu0 (%p1905_p3), %4129, %v2717_v35   ;;  %v2551_v35 = vld [vmem:[%s6930_s5 + $0x78] sm:$0xff] (%p1905_p3) }
 0x245   : >> { %v2530_v63 = vmax.f32 %v2528_v13, 0.0  ;;  %v2531_v25 = vmax.f32 %v2529_v50, 0.0 }
 0x247   : >> { %2534 = vst [vmem:[%s2533_s18] sm:$0xff] %v2530_v63  ;;  %2535 = vst [vmem:[%s2533_s18 + $0x8] sm:$0xff] %v2531_v25  ;;  %v2718_v63 = vld [vmem:[%s6931_s6 + $0x10] sm:$0xff] (%p1905_p3)  ;;  %s3531_s18 = scalar_lea.sflag (%p1905_p3), [#allocation8], %s4513_s19 }
 0x248   : > { %2758 = vperm.xlu1 %4130, %v2718_v63   ;;  %v2550_v63 = vld [vmem:[%s6930_s5 + $0x70] sm:$0xff] }
 0x24e   : > { %v2656_v60 = vld [vmem:[#allocation4] sm:$0xff]  ;;  %v2657_v0 = vld [vmem:[#allocation4 + $0x8] sm:$0xff]  ;;  %v2658_v27 = vld [vmem:[#allocation4 + $0x10] sm:$0xff] }
 0x24f   : > { %v3795_v2 = vpack.c.bf16 %v2657_v0, %v2656_v60  ;;  %v2659_v39 = vld [vmem:[#allocation4 + $0x18] sm:$0xff]  ;;  %v2688_v59 = vld [vmem:[#allocation4 + $0x100] sm:$0xff]  ;;  %v2689_v10 = vld [vmem:[#allocation4 + $0x108] sm:$0xff] }
 0x250   : > { %v3798_v62 = vpack.c.bf16 %v2659_v39, %v2658_v27  ;;  %v3843_v18 = vpack.c.bf16 %v2689_v10, %v2688_v59  ;;  %v2690_v34 = vld [vmem:[#allocation4 + $0x110] sm:$0xff]  ;;  %v2691_v30 = vld [vmem:[#allocation4 + $0x118] sm:$0xff]  ;;  %v2660_v21 = vld [vmem:[#allocation4 + $0x20] sm:$0xff] }
 0x251   : > { %3796 = vmatpush1.bf16.msra.mxu0 %v3795_v2  ;;  %v2661_v15 = vld [vmem:[#allocation4 + $0x28] sm:$0xff]  ;;  %v3846_v54 = vpack.c.bf16 %v2691_v30, %v2690_v34  ;;  %v2692_v26 = vld [vmem:[#allocation4 + $0x120] sm:$0xff]  ;;  %v2662_v58 = vld [vmem:[#allocation4 + $0x30] sm:$0xff] }
 0x252   : > { %3797 = vmatprep.subr.bf16.mxu0 %v4316_v28  ;;  %3844 = vmatpush1.bf16.msra.mxu1 %v3843_v18  ;;  %v2693_v47 = vld [vmem:[#allocation4 + $0x128] sm:$0xff]  ;;  %v3801_v1 = vpack.c.bf16 %v2661_v15, %v2660_v21  ;;  %v2663_v7 = vld [vmem:[#allocation4 + $0x38] sm:$0xff]  ;;  %v2694_v19 = vld [vmem:[#allocation4 + $0x130] sm:$0xff] }
 0x253   : > { %3845 = vmatprep.subr.bf16.mxu1 %v4316_v28  ;;  %v3849_v36 = vpack.c.bf16 %v2693_v47, %v2692_v26  ;;  %v2695_v37 = vld [vmem:[#allocation4 + $0x138] sm:$0xff]  ;;  %v3804_v16 = vpack.c.bf16 %v2663_v7, %v2662_v58  ;;  %v2664_v42 = vld [vmem:[#allocation4 + $0x40] sm:$0xff]  ;;  %v2665_v44 = vld [vmem:[#allocation4 + $0x48] sm:$0xff] }
 0x254   : > { %v3852_v55 = vpack.c.bf16 %v2695_v37, %v2694_v19  ;;  %v2696_v3 = vld [vmem:[#allocation4 + $0x140] sm:$0xff]  ;;  %v2697_v14 = vld [vmem:[#allocation4 + $0x148] sm:$0xff]  ;;  %v3807_v48 = vpack.c.bf16 %v2665_v44, %v2664_v42  ;;  %v2666_v12 = vld [vmem:[#allocation4 + $0x50] sm:$0xff] }
 0x255   : > { %3799 = vmatpush1.bf16.msra.mxu0 %v3798_v62  ;;  %v2667_v52 = vld [vmem:[#allocation4 + $0x58] sm:$0xff]  ;;  %v3855_v43 = vpack.c.bf16 %v2697_v14, %v2696_v3  ;;  %v2698_v20 = vld [vmem:[#allocation4 + $0x150] sm:$0xff]  ;;  %v2668_v41 = vld [vmem:[#allocation4 + $0x60] sm:$0xff] }
 0x256   : > { %3800 = vmatprep.subr.bf16.mxu0 %v4316_v28  ;;  %3847 = vmatpush1.bf16.msra.mxu1 %v3846_v54  ;;  %v2699_v49 = vld [vmem:[#allocation4 + $0x158] sm:$0xff]  ;;  %v3810_v22 = vpack.c.bf16 %v2667_v52, %v2666_v12  ;;  %v2669_v8 = vld [vmem:[#allocation4 + $0x68] sm:$0xff]  ;;  %v2700_v11 = vld [vmem:[#allocation4 + $0x160] sm:$0xff] }
 0x257   : > { %3848 = vmatprep.subr.bf16.mxu1 %v4316_v28  ;;  %v3858_v6 = vpack.c.bf16 %v2699_v49, %v2698_v20  ;;  %v2701_v46 = vld [vmem:[#allocation4 + $0x168] sm:$0xff]  ;;  %v3813_v53 = vpack.c.bf16 %v2669_v8, %v2668_v41  ;;  %v2670_v29 = vld [vmem:[#allocation4 + $0x70] sm:$0xff]  ;;  %v2671_v23 = vld [vmem:[#allocation4 + $0x78] sm:$0xff] }
 0x258   : > { %v3861_v4 = vpack.c.bf16 %v2701_v46, %v2700_v11  ;;  %v2702_v31 = vld [vmem:[#allocation4 + $0x170] sm:$0xff]  ;;  %v2703_v57 = vld [vmem:[#allocation4 + $0x178] sm:$0xff]  ;;  %v3816_v24 = vpack.c.bf16 %v2671_v23, %v2670_v29  ;;  %v2672_v61 = vld [vmem:[#allocation4 + $0x80] sm:$0xff] }
 0x259   : > { %3802 = vmatpush1.bf16.msra.mxu0 %v3801_v1  ;;  %v2673_v56 = vld [vmem:[#allocation4 + $0x88] sm:$0xff]  ;;  %v3864_v51 = vpack.c.bf16 %v2703_v57, %v2702_v31  ;;  %v2704_v40 = vld [vmem:[#allocation4 + $0x180] sm:$0xff]  ;;  %v2674_v17 = vld [vmem:[#allocation4 + $0x90] sm:$0xff] }
 0x25a   : > { %3803 = vmatprep.subr.bf16.mxu0 %v4316_v28  ;;  %3850 = vmatpush1.bf16.msra.mxu1 %v3849_v36  ;;  %v2705_v38 = vld [vmem:[#allocation4 + $0x188] sm:$0xff]  ;;  %v3819_v32 = vpack.c.bf16 %v2673_v56, %v2672_v61  ;;  %v2675_v13 = vld [vmem:[#allocation4 + $0x98] sm:$0xff]  ;;  %v2706_v25 = vld [vmem:[#allocation4 + $0x190] sm:$0xff] }
 0x25b   : > { %3851 = vmatprep.subr.bf16.mxu1 %v4316_v28  ;;  %v3867_v50 = vpack.c.bf16 %v2705_v38, %v2704_v40  ;;  %v2707_v60 = vld [vmem:[#allocation4 + $0x198] sm:$0xff]  ;;  %v2720_v0 = vld [vmem:[%s6931_s6 + $0x20] sm:$0xff]  ;;  %v3822_v27 = vpack.c.bf16 %v2675_v13, %v2674_v17  ;;  %v2719_v2 = vld [vmem:[%s6931_s6 + $0x18] sm:$0xff] }
 0x25c   : > { %v2676_v39 = vld [vmem:[#allocation4 + $0xa0] sm:$0xff]  ;;  %v2677_v59 = vld [vmem:[#allocation4 + $0xa8] sm:$0xff]  ;;  %v3870_v10 = vpack.c.bf16 %v2707_v60, %v2706_v25  ;;  %2768 = vperm.xlu0 %4129, %v2720_v0   ;;  %2763 = vperm.xlu1 %4130, %v2719_v2   ;;  %v2721_v30 = vld [vmem:[%s6931_s6 + $0x28] sm:$0xff] }
 0x25d   : > { %3805 = vmatpush1.bf16.msra.mxu0 %v3804_v16  ;;  %v2708_v5 = vld [vmem:[#allocation4 + $0x1a0] sm:$0xff]  ;;  %v2709_v62 = vld [vmem:[#allocation4 + $0x1a8] sm:$0xff]  ;;  %v3825_v34 = vpack.c.bf16 %v2677_v59, %v2676_v39  ;;  %v2678_v21 = vld [vmem:[#allocation4 + $0xb0] sm:$0xff] }
 0x25e   : > { %3806 = vmatprep.subr.bf16.mxu0 %v4316_v28  ;;  %3853 = vmatpush1.bf16.msra.mxu1 %v3852_v55  ;;  %v2722_v18 = vld [vmem:[%s6931_s6 + $0x30] sm:$0xff]  ;;  %v2679_v15 = vld [vmem:[#allocation4 + $0xb8] sm:$0xff]  ;;  %v3873_v54 = vpack.c.bf16 %v2709_v62, %v2708_v5  ;;  %v2710_v26 = vld [vmem:[#allocation4 + $0x1b0] sm:$0xff] }
 0x25f   : > { %3854 = vmatprep.subr.bf16.mxu1 %v4316_v28  ;;  %v2711_v47 = vld [vmem:[#allocation4 + $0x1b8] sm:$0xff]  ;;  %v2724_v1 = vld [vmem:[%s6931_s6 + $0x40] sm:$0xff]  ;;  %v3828_v58 = vpack.c.bf16 %v2679_v15, %v2678_v21  ;;  %v2723_v7 = vld [vmem:[%s6931_s6 + $0x38] sm:$0xff] }
 0x260   : > { %2778 = vperm.xlu0 %4129, %v2722_v18   ;;  %2773 = vperm.xlu1 %4130, %v2721_v30   ;;  %v2680_v36 = vld [vmem:[#allocation4 + $0xc0] sm:$0xff]  ;;  %v2681_v19 = vld [vmem:[#allocation4 + $0xc8] sm:$0xff]  ;;  %v3876_v37 = vpack.c.bf16 %v2711_v47, %v2710_v26  ;;  %v2725_v3 = vld [vmem:[%s6931_s6 + $0x48] sm:$0xff] }
 0x261   : > { %3808 = vmatpush1.bf16.msra.mxu0 %v3807_v48  ;;  %v2712_v16 = vld [vmem:[#allocation4 + $0x1c0] sm:$0xff]  ;;  %v2713_v42 = vld [vmem:[#allocation4 + $0x1c8] sm:$0xff]  ;;  %v3831_v55 = vpack.c.bf16 %v2681_v19, %v2680_v36  ;;  %v2682_v14 = vld [vmem:[#allocation4 + $0xd0] sm:$0xff] }
 0x262   : > { %3809 = vmatprep.subr.bf16.mxu0 %v4316_v28  ;;  %3856 = vmatpush1.bf16.msra.mxu1 %v3855_v43  ;;  %v2726_v44 = vld [vmem:[%s6931_s6 + $0x50] sm:$0xff]  ;;  %v2683_v48 = vld [vmem:[#allocation4 + $0xd8] sm:$0xff]  ;;  %v3879_v12 = vpack.c.bf16 %v2713_v42, %v2712_v16  ;;  %v2714_v52 = vld [vmem:[#allocation4 + $0x1d0] sm:$0xff] }
 0x263   : > { %3857 = vmatprep.subr.bf16.mxu1 %v4316_v28  ;;  %v2715_v43 = vld [vmem:[#allocation4 + $0x1d8] sm:$0xff]  ;;  %v2728_v20 = vld [vmem:[%s6931_s6 + $0x60] sm:$0xff]  ;;  %v3834_v49 = vpack.c.bf16 %v2683_v48, %v2682_v14  ;;  %v2684_v41 = vld [vmem:[#allocation4 + $0xe0] sm:$0xff] }
 0x264   : > { %2788 = vperm.xlu0 %4129, %v2724_v1   ;;  %2783 = vperm.xlu1 %4130, %v2723_v7   ;;  %v2685_v8 = vld [vmem:[#allocation4 + $0xe8] sm:$0xff]  ;;  %v3882_v9 = vpack.c.bf16 %v2715_v43, %v2714_v52  ;;  %v2729_v11 = vld [vmem:[%s6931_s6 + $0x68] sm:$0xff]  ;;  %v2686_v46 = vld [vmem:[#allocation4 + $0xf0] sm:$0xff] }
 0x265   : > { %3811 = vmatpush1.bf16.msra.mxu0 %v3810_v22  ;;  %v2727_v22 = vld [vmem:[%s6931_s6 + $0x58] sm:$0xff]  ;;  %v2538_v29 = vld [vmem:[%s6930_s5 + $0x10] sm:$0xff]  ;;  %v2541_v40 = vld [vmem:[%s6930_s5 + $0x28] sm:$0xff] }
 0x266   : > { %3812 = vmatprep.subr.bf16.mxu0 %v4316_v28  ;;  %3859 = vmatpush1.bf16.msra.mxu1 %v3858_v6  ;;  %v3837_v6 = vpack.c.bf16 %v2685_v8, %v2684_v41  ;;  %v2543_v23 = vld [vmem:[%s6930_s5 + $0x38] sm:$0xff]  ;;  %v2734_v56 = vld [vmem:[%s6931_s6 + $0x90] sm:$0xff]  ;;  %v2540_v17 = vld [vmem:[%s6930_s5 + $0x20] sm:$0xff] }
 0x267   : > { %3860 = vmatprep.subr.bf16.mxu1 %v4316_v28  ;;  %v2731_v57 = vld [vmem:[%s6931_s6 + $0x78] sm:$0xff]  ;;  %v2546_v38 = vld [vmem:[%s6930_s5 + $0x50] sm:$0xff]  ;;  %v2544_v0 = vld [vmem:[%s6930_s5 + $0x40] sm:$0xff] }
 0x268   : > { %2798 = vperm.xlu0 %4129, %v2726_v44   ;;  %2793 = vperm.xlu1 %4130, %v2725_v3   ;;  %v2547_v61 = vld [vmem:[%s6930_s5 + $0x58] sm:$0xff]  ;;  %v2738_v60 = vld [vmem:[%s6931_s6 + $0xb0] sm:$0xff]  ;;  %v2549_v2 = vld [vmem:[%s6930_s5 + $0x68] sm:$0xff] }
 0x269   : > { %3814 = vmatpush1.bf16.msra.mxu0 %v3813_v53  ;;  %v2687_v53 = vld [vmem:[#allocation4 + $0xf8] sm:$0xff]  ;;  %v2735_v13 = vld [vmem:[%s6931_s6 + $0x98] sm:$0xff]  ;;  %v2554_v39 = vld [vmem:[%s6930_s5 + $0x90] sm:$0xff] }
 0x26a   : > { %3815 = vmatprep.subr.bf16.mxu0 %v4316_v28  ;;  %3862 = vmatpush1.bf16.msra.mxu1 %v3861_v4  ;;  %v2732_v4 = vld [vmem:[%s6931_s6 + $0x80] sm:$0xff]  ;;  %v3840_v31 = vpack.c.bf16 %v2687_v53, %v2686_v46  ;;  %v2555_v25 = vld [vmem:[%s6930_s5 + $0x98] sm:$0xff]  ;;  %v2553_v18 = vld [vmem:[%s6930_s5 + $0x88] sm:$0xff] }
 0x26b   : > { %3863 = vmatprep.subr.bf16.mxu1 %v4316_v28  ;;  %v2559_v59 = vld [vmem:[%s6930_s5 + $0xb8] sm:$0xff]  ;;  %v2548_v5 = vld [vmem:[%s6930_s5 + $0x60] sm:$0xff]  ;;  %v2742_v21 = vld [vmem:[%s6931_s6 + $0xd0] sm:$0xff] }
 0x26c   : > { %2808 = vperm.xlu0 %4129, %v2728_v20   ;;  %2803 = vperm.xlu1 %4130, %v2727_v22   ;;  %v2739_v62 = vld [vmem:[%s6931_s6 + $0xb8] sm:$0xff]  ;;  %v2552_v15 = vld [vmem:[%s6930_s5 + $0x80] sm:$0xff]  ;;  %v2557_v26 = vld [vmem:[%s6930_s5 + $0xa8] sm:$0xff] }
 0x26d   : > { %3817 = vmatpush1.bf16.msra.mxu0 %v3816_v24  ;;  %v2542_v24 = vld [vmem:[%s6930_s5 + $0x30] sm:$0xff]  ;;  %v2563_v30 = vld [vmem:[%s6930_s5 + $0xd8] sm:$0xff]  ;;  %v2556_v7 = vld [vmem:[%s6930_s5 + $0xa0] sm:$0xff] }
 0x26e   : > { %3818 = vmatprep.subr.bf16.mxu0 %v4316_v28  ;;  %3865 = vmatpush1.bf16.msra.mxu1 %v3864_v51  ;;  %v2733_v51 = vld [vmem:[%s6931_s6 + $0x88] sm:$0xff]  ;;  %v2562_v47 = vld [vmem:[%s6930_s5 + $0xd0] sm:$0xff]  ;;  %v2567_v1 = vld [vmem:[%s6930_s5 + $0xf8] sm:$0xff] }
 0x26f   : > { %3866 = vmatprep.subr.bf16.mxu1 %v4316_v28  ;;  %v2743_v36 = vld [vmem:[%s6931_s6 + $0xd8] sm:$0xff]  ;;  %v2561_v19 = vld [vmem:[%s6930_s5 + $0xc8] sm:$0xff]  ;;  %v3449_v42 = vld [vmem:[%s6933_s8] sm:$0xff] }
 0x270   : > { %2818 = vperm.xlu0 %4129, %v2730_v45   ;;  %2813 = vperm.xlu1 %4130, %v2729_v11   ;;  %v2571_v16 = vld [vmem:[%s6930_s5 + $0x118] sm:$0xff]  ;;  %v2560_v44 = vld [vmem:[%s6930_s5 + $0xc0] sm:$0xff]  ;;  %v2565_v3 = vld [vmem:[%s6930_s5 + $0xe8] sm:$0xff] }
 0x271   : > { %3820 = vmatpush1.bf16.msra.mxu0 %v3819_v32  ;;  %v2736_v32 = vld [vmem:[%s6931_s6 + $0xa0] sm:$0xff]  ;;  %v2570_v14 = vld [vmem:[%s6930_s5 + $0x110] sm:$0xff]  ;;  %v2575_v48 = vld [vmem:[%s6930_s5 + $0x138] sm:$0xff] }
 0x272   : > { %3821 = vmatprep.subr.bf16.mxu0 %v4316_v28  ;;  %3868 = vmatpush1.bf16.msra.mxu1 %v3867_v50  ;;  %v2545_v50 = vld [vmem:[%s6930_s5 + $0x48] sm:$0xff]  ;;  %v2574_v43 = vld [vmem:[%s6930_s5 + $0x130] sm:$0xff]  ;;  %v2579_v20 = vld [vmem:[%s6930_s5 + $0x158] sm:$0xff] }
 0x273   : > { %3869 = vmatprep.subr.bf16.mxu1 %v4316_v28  ;;  %v2569_v52 = vld [vmem:[%s6930_s5 + $0x108] sm:$0xff]  ;;  %v2578_v41 = vld [vmem:[%s6930_s5 + $0x150] sm:$0xff]  ;;  %v2583_v8 = vld [vmem:[%s6930_s5 + $0x178] sm:$0xff] }
 0x274   : > { %2828 = vperm.xlu0 %4129, %v2732_v4   ;;  %2823 = vperm.xlu1 %4130, %v2731_v57   ;;  %v2573_v22 = vld [vmem:[%s6930_s5 + $0x128] sm:$0xff]  ;;  %v2587_v11 = vld [vmem:[%s6930_s5 + $0x198] sm:$0xff]  ;;  %v2576_v46 = vld [vmem:[%s6930_s5 + $0x140] sm:$0xff] }
 0x275   : > { %3823 = vmatpush1.bf16.msra.mxu0 %v3822_v27  ;;  %v2737_v27 = vld [vmem:[%s6931_s6 + $0xa8] sm:$0xff]  ;;  %v2580_v4 = vld [vmem:[%s6930_s5 + $0x160] sm:$0xff]  ;;  %v2590_v57 = vld [vmem:[%s6930_s5 + $0x1b0] sm:$0xff] }
 0x276   : > { %3824 = vmatprep.subr.bf16.mxu0 %v4316_v28  ;;  %3871 = vmatpush1.bf16.msra.mxu1 %v3870_v10  ;;  %v2740_v10 = vld [vmem:[%s6931_s6 + $0xc0] sm:$0xff]  ;;  %v2577_v45 = vld [vmem:[%s6930_s5 + $0x148] sm:$0xff] }
 0x277   : > { %3872 = vmatprep.subr.bf16.mxu1 %v4316_v28  ;;  %v2581_v53 = vld [vmem:[%s6930_s5 + $0x168] sm:$0xff] }
 0x278   : > { %2838 = vperm.xlu0 %4129, %v2734_v56   ;;  %2833 = vperm.xlu1 %4130, %v2733_v51   ;;  %v2589_v56 = vld [vmem:[%s6930_s5 + $0x1a8] sm:$0xff]  ;;  %v2599_v51 = vld [vmem:[%s6930_s5 + $0x1f8] sm:$0xff] }
 0x279   : > { %3826 = vmatpush1.bf16.msra.mxu0 %v3825_v34  ;;  %v2558_v34 = vld [vmem:[%s6930_s5 + $0xb0] sm:$0xff] }
 0x27a   : > { %3827 = vmatprep.subr.bf16.mxu0 %v4316_v28  ;;  %3874 = vmatpush1.bf16.msra.mxu1 %v3873_v54  ;;  %v2741_v54 = vld [vmem:[%s6931_s6 + $0xc8] sm:$0xff] }
 0x27b   : > { %3875 = vmatprep.subr.bf16.mxu1 %v4316_v28 }
 0x27c   : > { %2848 = vperm.xlu0 %4129, %v2736_v32   ;;  %2843 = vperm.xlu1 %4130, %v2735_v13   ;;  %v2603_v32 = vld [vmem:[%s6930_s5 + $0x218] sm:$0xff]  ;;  %v2597_v13 = vld [vmem:[%s6930_s5 + $0x1e8] sm:$0xff] }
 0x27d   : > { %3829 = vmatpush1.bf16.msra.mxu0 %v3828_v58  ;;  %v2744_v58 = vld [vmem:[%s6931_s6 + $0xe0] sm:$0xff] }
 0x27e   : > { %3830 = vmatprep.subr.bf16.mxu0 %v4316_v28  ;;  %3877 = vmatpush1.bf16.msra.mxu1 %v3876_v37  ;;  %v2566_v37 = vld [vmem:[%s6930_s5 + $0xf0] sm:$0xff] }
 0x27f   : > { %3878 = vmatprep.subr.bf16.mxu1 %v4316_v28 }
 0x280   : > { %2858 = vperm.xlu0 %4129, %v2738_v60   ;;  %2853 = vperm.xlu1 %4130, %v2737_v27   ;;  %v2601_v60 = vld [vmem:[%s6930_s5 + $0x208] sm:$0xff]  ;;  %v2611_v27 = vld [vmem:[%s6930_s5 + $0x258] sm:$0xff] }
 0x281   : > { %3832 = vmatpush1.bf16.msra.mxu0 %v3831_v55  ;;  %v2745_v55 = vld [vmem:[%s6931_s6 + $0xe8] sm:$0xff] }
 0x282   : > { %3833 = vmatprep.subr.bf16.mxu0 %v4316_v28  ;;  %3880 = vmatpush1.bf16.msra.mxu1 %v3879_v12  ;;  %v2564_v12 = vld [vmem:[%s6930_s5 + $0xe0] sm:$0xff] }
 0x283   : > { %3881 = vmatprep.subr.bf16.mxu1 %v4316_v28 }
 0x284   : > { %2868 = vperm.xlu0 %4129, %v2740_v10   ;;  %2863 = vperm.xlu1 %4130, %v2739_v62   ;;  %v2615_v10 = vld [vmem:[%s6930_s5 + $0x278] sm:$0xff]  ;;  %v2609_v62 = vld [vmem:[%s6930_s5 + $0x248] sm:$0xff] }
 0x285   : > { %3835 = vmatpush1.bf16.msra.mxu0 %v3834_v49  ;;  %v2568_v49 = vld [vmem:[%s6930_s5 + $0x100] sm:$0xff] }
 0x286   : > { %3836 = vmatprep.subr.bf16.mxu0 %v4316_v28  ;;  %3883 = vmatpush1.bf16.msra.mxu1 %v3882_v9  ;;  %v2572_v9 = vld [vmem:[%s6930_s5 + $0x120] sm:$0xff] }
 0x287   : > { %3884 = vmatprep.subr.bf16.mxu1 %v4316_v28 }
 0x288   : > { %2878 = vperm.xlu0 %4129, %v2742_v21   ;;  %2873 = vperm.xlu1 %4130, %v2741_v54   ;;  %v2613_v21 = vld [vmem:[%s6930_s5 + $0x268] sm:$0xff]  ;;  %v2623_v54 = vld [vmem:[%s6930_s5 + $0x2b8] sm:$0xff] }
 0x289   : > { %3838 = vmatpush1.bf16.msra.mxu0 %v3837_v6  ;;  %3267 = vmatmul.mubr.f32.vlgmr.msra.gmra.mrb[0].mxu1 %v2538_v29  ;;  %v2582_v6 = vld [vmem:[%s6930_s5 + $0x170] sm:$0xff] }
 0x28a   : > { %3839 = vmatprep.subr.bf16.mxu0 %v4316_v28  ;;  %3760 = vmatprep.mubr.msk.f32.mxu1 %vm2896_vm0, %v2543_v23  ;;  %v2586_v29 = vld [vmem:[%s6930_s5 + $0x190] sm:$0xff]  ;;  %v2591_v23 = vld [vmem:[%s6930_s5 + $0x1b8] sm:$0xff] }
 0x28c   : > { %2888 = vperm.xlu0 %4129, %v2744_v58   ;;  %2883 = vperm.xlu1 %4130, %v2743_v36   ;;  %v2627_v58 = vld [vmem:[%s6930_s5 + $0x2d8] sm:$0xff]  ;;  %v2621_v36 = vld [vmem:[%s6930_s5 + $0x2a8] sm:$0xff] }
 0x28d   : > { %3841 = vmatpush1.bf16.msra.mxu0 %v3840_v31  ;;  %3272 = vmatmul.mubr.f32.gmra.mrb[2].mxu1 %v2542_v24  ;;  %v2585_v31 = vld [vmem:[%s6930_s5 + $0x188] sm:$0xff]  ;;  %v2595_v24 = vld [vmem:[%s6930_s5 + $0x1d8] sm:$0xff] }
 0x28e   : > { %3761 = vmatprep.mubr.msk.f32.mxu1 %vm2896_vm0, %v2547_v61  ;;  %v2584_v61 = vld [vmem:[%s6930_s5 + $0x180] sm:$0xff] }
 0x290   : > { %3052 = vmatmul.mubr.f32.vlgmr.msra.gmra.mrb[0].mxu0 %v2536_v33  ;;  %3452 = vperm.xlu0 %4129, %v3449_v42   ;;  %v2594_v33 = vld [vmem:[%s6930_s5 + $0x1d0] sm:$0xff]  ;;  %v2625_v42 = vld [vmem:[%s6930_s5 + $0x2c8] sm:$0xff] }
 0x291   : > { %3056 = vmatprep.mubr.f32.mxu0 %v2541_v40  ;;  %3277 = vmatmul.mubr.f32.gmra.mrb[4].mxu1 %v2546_v38  ;;  %v2588_v40 = vld [vmem:[%s6930_s5 + $0x1a0] sm:$0xff]  ;;  %v2593_v38 = vld [vmem:[%s6930_s5 + $0x1c8] sm:$0xff] }
 0x292   : > { %3762 = vmatprep.mubr.msk.f32.mxu1 %vm2896_vm0, %v2551_v35  ;;  %2893 = vperm.xlu1 %4130, %v2745_v55   ;;  %v2598_v35 = vld [vmem:[%s6930_s5 + $0x1f0] sm:$0xff]  ;;  %v2635_v55 = vld [vmem:[%s6930_s5 + $0x318] sm:$0xff] }
 0x294   : > { %3057 = vmatmul.mubr.f32.gmra.mrb[2].mxu0 %v2540_v17  ;;  %v2592_v17 = vld [vmem:[%s6930_s5 + $0x1c0] sm:$0xff] }
 0x295   : > { %3061 = vmatprep.mubr.f32.mxu0 %v2545_v50  ;;  %3282 = vmatmul.mubr.f32.gmra.mrb[6].mxu1 %v2550_v63  ;;  %v2602_v50 = vld [vmem:[%s6930_s5 + $0x210] sm:$0xff]  ;;  %v2607_v63 = vld [vmem:[%s6930_s5 + $0x238] sm:$0xff] }
 0x296   : > { %3763 = vmatprep.mubr.msk.f32.mxu1 %vm2896_vm0, %v2555_v25  ;;  %v2596_v25 = vld [vmem:[%s6930_s5 + $0x1e0] sm:$0xff] }
 0x298   : > { %3062 = vmatmul.mubr.f32.gmra.mrb[4].mxu0 %v2544_v0  ;;  %v2606_v0 = vld [vmem:[%s6930_s5 + $0x230] sm:$0xff] }
 0x299   : > { %3066 = vmatprep.mubr.f32.mxu0 %v2549_v2  ;;  %3287 = vmatmul.mubr.f32.gmra.mrb[8].mxu1 %v2554_v39  ;;  %v2600_v2 = vld [vmem:[%s6930_s5 + $0x200] sm:$0xff]  ;;  %v2605_v39 = vld [vmem:[%s6930_s5 + $0x228] sm:$0xff] }
 0x29a   : > { %3764 = vmatprep.mubr.msk.f32.mxu1 %vm2896_vm0, %v2559_v59  ;;  %v2610_v59 = vld [vmem:[%s6930_s5 + $0x250] sm:$0xff] }
 0x29c   : > { %3067 = vmatmul.mubr.f32.gmra.mrb[6].mxu0 %v2548_v5  ;;  %v2604_v5 = vld [vmem:[%s6930_s5 + $0x220] sm:$0xff] }
 0x29d   : > { %3071 = vmatprep.mubr.f32.mxu0 %v2553_v18  ;;  %3292 = vmatmul.mubr.f32.gmra.mrb[10].mxu1 %v2558_v34  ;;  %v2614_v18 = vld [vmem:[%s6930_s5 + $0x270] sm:$0xff]  ;;  %v2619_v34 = vld [vmem:[%s6930_s5 + $0x298] sm:$0xff] }
 0x29e   : > { %3765 = vmatprep.mubr.msk.f32.mxu1 %vm2896_vm0, %v2563_v30  ;;  %v2608_v30 = vld [vmem:[%s6930_s5 + $0x240] sm:$0xff] }
 0x2a0   : > { %3072 = vmatmul.mubr.f32.gmra.mrb[8].mxu0 %v2552_v15  ;;  %v2618_v15 = vld [vmem:[%s6930_s5 + $0x290] sm:$0xff] }
 0x2a1   : > { %3076 = vmatprep.mubr.f32.mxu0 %v2557_v26  ;;  %3297 = vmatmul.mubr.f32.gmra.mrb[12].mxu1 %v2562_v47  ;;  %v2612_v26 = vld [vmem:[%s6930_s5 + $0x260] sm:$0xff]  ;;  %v2617_v47 = vld [vmem:[%s6930_s5 + $0x288] sm:$0xff] }
 0x2a2   : > { %3766 = vmatprep.mubr.msk.f32.mxu1 %vm2896_vm0, %v2567_v1  ;;  %v2622_v1 = vld [vmem:[%s6930_s5 + $0x2b0] sm:$0xff] }
 0x2a4   : > { %3077 = vmatmul.mubr.f32.gmra.mrb[10].mxu0 %v2556_v7  ;;  %v2616_v7 = vld [vmem:[%s6930_s5 + $0x280] sm:$0xff] }
 0x2a5   : > { %3081 = vmatprep.mubr.f32.mxu0 %v2561_v19  ;;  %3302 = vmatmul.mubr.f32.gmra.mrb[14].mxu1 %v2566_v37  ;;  %v2626_v19 = vld [vmem:[%s6930_s5 + $0x2d0] sm:$0xff]  ;;  %v2631_v37 = vld [vmem:[%s6930_s5 + $0x2f8] sm:$0xff] }
 0x2a6   : > { %3767 = vmatprep.mubr.msk.f32.mxu1 %vm2896_vm0, %v2571_v16  ;;  %v2620_v16 = vld [vmem:[%s6930_s5 + $0x2a0] sm:$0xff] }
 0x2a8   : > { %3082 = vmatmul.mubr.f32.gmra.mrb[12].mxu0 %v2560_v44  ;;  %v2630_v44 = vld [vmem:[%s6930_s5 + $0x2f0] sm:$0xff] }
 0x2a9   : > { %3086 = vmatprep.mubr.f32.mxu0 %v2565_v3  ;;  %3307 = vmatmul.mubr.f32.gmra.mrb[16].mxu1 %v2570_v14  ;;  %v2624_v3 = vld [vmem:[%s6930_s5 + $0x2c0] sm:$0xff]  ;;  %v2629_v14 = vld [vmem:[%s6930_s5 + $0x2e8] sm:$0xff] }
 0x2aa   : > { %3768 = vmatprep.mubr.msk.f32.mxu1 %vm2896_vm0, %v2575_v48  ;;  %v2634_v48 = vld [vmem:[%s6930_s5 + $0x310] sm:$0xff] }
 0x2ac   : > { %3087 = vmatmul.mubr.f32.gmra.mrb[14].mxu0 %v2564_v12  ;;  %v2639_v12 = vld [vmem:[%s6930_s5 + $0x338] sm:$0xff] }
 0x2ad   : > { %3091 = vmatprep.mubr.f32.mxu0 %v2569_v52  ;;  %3312 = vmatmul.mubr.f32.gmra.mrb[18].mxu1 %v2574_v43  ;;  %v2628_v52 = vld [vmem:[%s6930_s5 + $0x2e0] sm:$0xff]  ;;  %v2633_v43 = vld [vmem:[%s6930_s5 + $0x308] sm:$0xff] }
 0x2ae   : > { %3769 = vmatprep.mubr.msk.f32.mxu1 %vm2896_vm0, %v2579_v20  ;;  %v2638_v20 = vld [vmem:[%s6930_s5 + $0x330] sm:$0xff] }
 0x2b0   : > { %3092 = vmatmul.mubr.f32.gmra.mrb[16].mxu0 %v2568_v49  ;;  %v2643_v49 = vld [vmem:[%s6930_s5 + $0x358] sm:$0xff] }
 0x2b1   : > { %3096 = vmatprep.mubr.f32.mxu0 %v2573_v22  ;;  %3317 = vmatmul.mubr.f32.gmra.mrb[20].mxu1 %v2578_v41  ;;  %v2632_v22 = vld [vmem:[%s6930_s5 + $0x300] sm:$0xff]  ;;  %v2637_v41 = vld [vmem:[%s6930_s5 + $0x328] sm:$0xff] }
 0x2b2   : > { %3770 = vmatprep.mubr.msk.f32.mxu1 %vm2896_vm0, %v2583_v8  ;;  %v2642_v8 = vld [vmem:[%s6930_s5 + $0x350] sm:$0xff] }
 0x2b4   : > { %3097 = vmatmul.mubr.f32.gmra.mrb[18].mxu0 %v2572_v9  ;;  %v2647_v9 = vld [vmem:[%s6930_s5 + $0x378] sm:$0xff] }
 0x2b5   : > { %3101 = vmatprep.mubr.f32.mxu0 %v2577_v45  ;;  %3322 = vmatmul.mubr.f32.gmra.mrb[22].mxu1 %v2582_v6  ;;  %v2636_v45 = vld [vmem:[%s6930_s5 + $0x320] sm:$0xff]  ;;  %v2641_v6 = vld [vmem:[%s6930_s5 + $0x348] sm:$0xff] }
 0x2b6   : > { %3771 = vmatprep.mubr.msk.f32.mxu1 %vm2896_vm0, %v2587_v11  ;;  %v2646_v11 = vld [vmem:[%s6930_s5 + $0x370] sm:$0xff] }
 0x2b8   : > { %3102 = vmatmul.mubr.f32.gmra.mrb[20].mxu0 %v2576_v46  ;;  %v2651_v46 = vld [vmem:[%s6930_s5 + $0x398] sm:$0xff] }
 0x2b9   : > { %3106 = vmatprep.mubr.f32.mxu0 %v2581_v53  ;;  %3327 = vmatmul.mubr.f32.gmra.mrb[24].mxu1 %v2586_v29  ;;  %v2640_v53 = vld [vmem:[%s6930_s5 + $0x340] sm:$0xff]  ;;  %v2645_v29 = vld [vmem:[%s6930_s5 + $0x368] sm:$0xff] }
 0x2ba   : > { %3772 = vmatprep.mubr.msk.f32.mxu1 %vm2896_vm0, %v2591_v23  ;;  %v2650_v23 = vld [vmem:[%s6930_s5 + $0x390] sm:$0xff] }
 0x2bc   : > { %3107 = vmatmul.mubr.f32.gmra.mrb[22].mxu0 %v2580_v4  ;;  %v2655_v4 = vld [vmem:[%s6930_s5 + $0x3b8] sm:$0xff] }
 0x2bd   : > { %3111 = vmatprep.mubr.f32.mxu0 %v2585_v31  ;;  %3332 = vmatmul.mubr.f32.gmra.mrb[26].mxu1 %v2590_v57  ;;  %v2644_v31 = vld [vmem:[%s6930_s5 + $0x360] sm:$0xff]  ;;  %v2649_v57 = vld [vmem:[%s6930_s5 + $0x388] sm:$0xff] }
 0x2be   : > { %3773 = vmatprep.mubr.msk.f32.mxu1 %vm2896_vm0, %v2595_v24  ;;  %v2654_v24 = vld [vmem:[%s6930_s5 + $0x3b0] sm:$0xff] }
 0x2c0   : > { %3112 = vmatmul.mubr.f32.gmra.mrb[24].mxu0 %v2584_v61  ;;  %v2648_v61 = vld [vmem:[%s6930_s5 + $0x380] sm:$0xff] }
 0x2c1   : > { %3116 = vmatprep.mubr.f32.mxu0 %v2589_v56  ;;  %3337 = vmatmul.mubr.f32.gmra.mrb[28].mxu1 %v2594_v33  ;;  %v2653_v56 = vld [vmem:[%s6930_s5 + $0x3a8] sm:$0xff]  ;;  %v2652_v33 = vld [vmem:[%s6930_s5 + $0x3a0] sm:$0xff] }
 0x2c2   : > { %3774 = vmatprep.mubr.msk.f32.mxu1 %vm2896_vm0, %v2599_v51 }
 0x2c4   : > { %3117 = vmatmul.mubr.f32.gmra.mrb[26].mxu0 %v2588_v40 }
 0x2c5   : > { %3121 = vmatprep.mubr.f32.mxu0 %v2593_v38  ;;  %3342 = vmatmul.mubr.f32.gmra.mrb[30].mxu1 %v2598_v35  ;;  %v3448_v38 = vld [vmem:[#allocation15 + $0x8] sm:$0xff]  ;;  %v2749_v35 = vpop.permute.xlu0 %2748 }
 0x2c6   : > { %3775 = vmatprep.mubr.msk.f32.mxu1 %vm2896_vm0, %v2603_v32 }
 0x2c8   : > { %3122 = vmatmul.mubr.f32.gmra.mrb[28].mxu0 %v2592_v17 }
 0x2c9   : > { %3126 = vmatprep.mubr.f32.mxu0 %v2597_v13  ;;  %3347 = vmatmul.mubr.f32.gmra.mrb[32].mxu1 %v2602_v50 }
 0x2ca   : > { %3776 = vmatprep.mubr.msk.f32.mxu1 %vm2896_vm0, %v2607_v63 }
 0x2cc   : > { %3127 = vmatmul.mubr.f32.gmra.mrb[30].mxu0 %v2596_v25 }
 0x2cd   : > { %3131 = vmatprep.mubr.f32.mxu0 %v2601_v60  ;;  %3352 = vmatmul.mubr.f32.gmra.mrb[34].mxu1 %v2606_v0 }
 0x2ce   : > { %3777 = vmatprep.mubr.msk.f32.mxu1 %vm2896_vm0, %v2611_v27  ;;  %v2754_v27 = vpop.permute.xlu0 %2753 }
 0x2d0   : > { %3132 = vmatmul.mubr.f32.gmra.mrb[32].mxu0 %v2600_v2 }
 0x2d1   : > { %3136 = vmatprep.mubr.f32.mxu0 %v2605_v39  ;;  %3357 = vmatmul.mubr.f32.gmra.mrb[36].mxu1 %v2610_v59 }
 0x2d2   : > { %3778 = vmatprep.mubr.msk.f32.mxu1 %vm2896_vm0, %v2615_v10  ;;  %v2759_v10 = vpop.permute.xlu1 %2758 }
 0x2d4   : > { %3137 = vmatmul.mubr.f32.gmra.mrb[34].mxu0 %v2604_v5 }
 0x2d5   : > { %3141 = vmatprep.mubr.f32.mxu0 %v2609_v62  ;;  %3362 = vmatmul.mubr.f32.gmra.mrb[38].mxu1 %v2614_v18 }
 0x2d6   : > { %3779 = vmatprep.mubr.msk.f32.mxu1 %vm2896_vm0, %v2619_v34 }
 0x2d8   : > { %3142 = vmatmul.mubr.f32.gmra.mrb[36].mxu0 %v2608_v30 }
 0x2d9   : > { %3146 = vmatprep.mubr.f32.mxu0 %v2613_v21  ;;  %3367 = vmatmul.mubr.f32.gmra.mrb[40].mxu1 %v2618_v15 }
 0x2da   : > { %3780 = vmatprep.mubr.msk.f32.mxu1 %vm2896_vm0, %v2623_v54 }
 0x2dc   : > { %3147 = vmatmul.mubr.f32.gmra.mrb[38].mxu0 %v2612_v26 }
 0x2dd   : > { %3151 = vmatprep.mubr.f32.mxu0 %v2617_v47  ;;  %3372 = vmatmul.mubr.f32.gmra.mrb[42].mxu1 %v2622_v1 }
 0x2de   : > { %3781 = vmatprep.mubr.msk.f32.mxu1 %vm2896_vm0, %v2627_v58 }
 0x2e0   : > { %3152 = vmatmul.mubr.f32.gmra.mrb[40].mxu0 %v2616_v7  ;;  %v2764_v7 = vpop.permute.xlu1 %2763 }
 0x2e1   : > { %3156 = vmatprep.mubr.f32.mxu0 %v2621_v36  ;;  %3377 = vmatmul.mubr.f32.gmra.mrb[44].mxu1 %v2626_v19 }
 0x2e2   : > { %3782 = vmatprep.mubr.msk.f32.mxu1 %vm2896_vm0, %v2631_v37 }
 0x2e4   : > { %3157 = vmatmul.mubr.f32.gmra.mrb[42].mxu0 %v2620_v16 }
 0x2e5   : > { %3161 = vmatprep.mubr.f32.mxu0 %v2625_v42  ;;  %3382 = vmatmul.mubr.f32.gmra.mrb[46].mxu1 %v2630_v44 }
 0x2e6   : > { %3783 = vmatprep.mubr.msk.f32.mxu1 %vm2896_vm0, %v2635_v55  ;;  %v2769_v55 = vpop.permute.xlu0 %2768 }
 0x2e8   : > { %3162 = vmatmul.mubr.f32.gmra.mrb[44].mxu0 %v2624_v3 }
 0x2e9   : > { %3166 = vmatprep.mubr.f32.mxu0 %v2629_v14  ;;  %3387 = vmatmul.mubr.f32.gmra.mrb[48].mxu1 %v2634_v48 }
 0x2ea   : > { %3784 = vmatprep.mubr.msk.f32.mxu1 %vm2896_vm0, %v2639_v12 }
 0x2ec   : > { %3167 = vmatmul.mubr.f32.gmra.mrb[46].mxu0 %v2628_v52 }
 0x2ed   : > { %3171 = vmatprep.mubr.f32.mxu0 %v2633_v43  ;;  %3392 = vmatmul.mubr.f32.gmra.mrb[50].mxu1 %v2638_v20 }
 0x2ee   : > { %3785 = vmatprep.mubr.msk.f32.mxu1 %vm2896_vm0, %v2643_v49 }
 0x2f0   : > { %3172 = vmatmul.mubr.f32.gmra.mrb[48].mxu0 %v2632_v22 }
 0x2f1   : > { %3176 = vmatprep.mubr.f32.mxu0 %v2637_v41  ;;  %3397 = vmatmul.mubr.f32.gmra.mrb[52].mxu1 %v2642_v8  ;;  %v2774_v41 = vpop.permute.xlu1 %2773 }
 0x2f2   : > { %3786 = vmatprep.mubr.msk.f32.mxu1 %vm2896_vm0, %v2647_v9 }
 0x2f4   : > { %3177 = vmatmul.mubr.f32.gmra.mrb[50].mxu0 %v2636_v45 }
 0x2f5   : > { %3181 = vmatprep.mubr.f32.mxu0 %v2641_v6  ;;  %3402 = vmatmul.mubr.f32.gmra.mrb[54].mxu1 %v2646_v11 }
 0x2f6   : > { %3787 = vmatprep.mubr.msk.f32.mxu1 %vm2896_vm0, %v2651_v46 }
 0x2f8   : > { %3182 = vmatmul.mubr.f32.gmra.mrb[52].mxu0 %v2640_v53  ;;  %v2779_v53 = vpop.permute.xlu0 %2778 }
 0x2f9   : > { %3186 = vmatprep.mubr.f32.mxu0 %v2645_v29  ;;  %3407 = vmatmul.mubr.f32.gmra.mrb[56].mxu1 %v2650_v23 }
 0x2fa   : > { %3788 = vmatprep.mubr.msk.f32.mxu1 %vm2896_vm0, %v2655_v4 }
 0x2fc   : > { %3187 = vmatmul.mubr.f32.gmra.mrb[54].mxu0 %v2644_v31 }
 0x2fd   : > { %3191 = vmatprep.mubr.f32.mxu0 %v2649_v57  ;;  %3412 = vmatmul.mubr.f32.gmra.mrb[58].mxu1 %v2654_v24 }
 0x2fe   : > { %3789 = vmatprep.mubr.msk.f32.mxu1 %vm3455_vm1, %v3448_v38 }
 0x300   : > { %3192 = vmatmul.mubr.f32.gmra.mrb[56].mxu0 %v2648_v61 }
 0x301   : > { %3196 = vmatprep.mubr.f32.mxu0 %v2653_v56 }
 0x304   : > { %3197 = vmatmul.mubr.f32.gmra.mrb[58].mxu0 %v2652_v33 }
 0x35c   : > { %v3268_v51 = vpop.f32.mrb[0].mxu1 }
 0x35d   : > { %v3270_v40 = vpop.f32.mrb[1].mxu1 }
 0x360   : > { %v3273_v32 = vpop.f32.mrb[2].mxu1 }
 0x361   : > { %v3275_v17 = vpop.f32.mrb[3].mxu1 }
 0x363   : > { %v3053_v13 = vpop.f32.mrb[0].mxu0 }
 0x364   : > { %v3054_v50 = vadd.f32 %v3053_v13, %v2749_v35  ;;  %v3055_v63 = vpop.f32.mrb[1].mxu0  ;;  %v3278_v25 = vpop.f32.mrb[4].mxu1 }
 0x365   : > { %v3280_v0 = vpop.f32.mrb[5].mxu1 }
 0x366   : > { %v3269_v60 = vadd.f32 %v3268_v51, %v3054_v50  ;;  %v2784_v51 = vpop.permute.xlu1 %2783  ;;  %v2789_v50 = vpop.permute.xlu0 %2788 }
 0x367   : > { %v3058_v2 = vpop.f32.mrb[2].mxu0 }
 0x368   : > { %v3059_v39 = vadd.f32 %v3058_v2, %v2754_v27  ;;  %v3060_v59 = vpop.f32.mrb[3].mxu0  ;;  %v3283_v5 = vpop.f32.mrb[6].mxu1  ;;  %v3417_v30 = vmax.f32 %v3269_v60, 0.0 }
 0x369   : > { %v3285_v18 = vpop.f32.mrb[7].mxu1 }
 0x36a   : > { %v3274_v62 = vadd.f32 %v3273_v32, %v3059_v39 }
 0x36b   : > { %v3063_v34 = vpop.f32.mrb[4].mxu0 }
 0x36c   : > { %v3418_v21 = vmax.f32 %v3274_v62, 0.0  ;;  %v3064_v15 = vadd.f32 %v3063_v34, %v2759_v10  ;;  %v3065_v54 = vpop.f32.mrb[5].mxu0  ;;  %v3288_v26 = vpop.f32.mrb[8].mxu1 }
 0x36d   : > { %v3290_v58 = vpop.f32.mrb[9].mxu1  ;;  %v2799_v54 = vpop.permute.xlu0 %2798 }
 0x36e   : > { %v3885_v47 = vpack.c.bf16 %v3418_v21, %v3417_v30  ;;  %v3279_v1 = vadd.f32 %v3278_v25, %v3064_v15 }
 0x36f   : > { %v3068_v36 = vpop.f32.mrb[6].mxu0 }
 0x370   : > { %v3069_v19 = vadd.f32 %v3068_v36, %v2764_v7  ;;  %v3070_v37 = vpop.f32.mrb[7].mxu0  ;;  %3886 = vmatpush1.bf16.msra.mxu1 %v3885_v47  ;;  %v3293_v16 = vpop.f32.mrb[10].mxu1  ;;  %v3419_v14 = vmax.f32 %v3279_v1, 0.0 }
 0x371   : > { %3887 = vmatprep.subr.bf16.mxu1 %v4316_v28  ;;  %v3295_v44 = vpop.f32.mrb[11].mxu1 }
 0x372   : > { %v3284_v42 = vadd.f32 %v3283_v5, %v3069_v19  ;;  %v2794_v5 = vpop.permute.xlu1 %2793 }
 0x373   : > { %v3073_v3 = vpop.f32.mrb[8].mxu0 }
 0x374   : > { %v3420_v48 = vmax.f32 %v3284_v42, 0.0  ;;  %v3074_v12 = vadd.f32 %v3073_v3, %v2769_v55  ;;  %v3075_v52 = vpop.f32.mrb[9].mxu0  ;;  %v3298_v43 = vpop.f32.mrb[12].mxu1 }
 0x375   : > { %v3300_v22 = vpop.f32.mrb[13].mxu1  ;;  %v2809_v52 = vpop.permute.xlu0 %2808 }
 0x376   : > { %v3888_v20 = vpack.c.bf16 %v3420_v48, %v3419_v14  ;;  %v3289_v49 = vadd.f32 %v3288_v26, %v3074_v12  ;;  %v2804_v42 = vpop.permute.xlu1 %2803 }
 0x377   : > { %v3078_v8 = vpop.f32.mrb[10].mxu0 }
 0x378   : > { %v3079_v9 = vadd.f32 %v3078_v8, %v2774_v41  ;;  %v3080_v45 = vpop.f32.mrb[11].mxu0  ;;  %3889 = vmatpush1.bf16.msra.mxu1 %v3888_v20  ;;  %v3303_v6 = vpop.f32.mrb[14].mxu1  ;;  %v3421_v23 = vmax.f32 %v3289_v49, 0.0 }
 0x379   : > { %3890 = vmatprep.subr.bf16.mxu1 %v4316_v28  ;;  %v3305_v46 = vpop.f32.mrb[15].mxu1 }
 0x37a   : > { %v3294_v11 = vadd.f32 %v3293_v16, %v3079_v9 }
 0x37b   : > { %v3083_v29 = vpop.f32.mrb[12].mxu0 }
 0x37c   : > { %v3422_v4 = vmax.f32 %v3294_v11, 0.0  ;;  %v3084_v31 = vadd.f32 %v3083_v29, %v2779_v53  ;;  %v3085_v57 = vpop.f32.mrb[13].mxu0  ;;  %v3308_v24 = vpop.f32.mrb[16].mxu1 }
 0x37d   : > { %v3310_v33 = vpop.f32.mrb[17].mxu1  ;;  %v2814_v11 = vpop.permute.xlu1 %2813 }
 0x37e   : > { %v3891_v61 = vpack.c.bf16 %v3422_v4, %v3421_v23  ;;  %v3299_v56 = vadd.f32 %v3298_v43, %v3084_v31  ;;  %v2819_v57 = vpop.permute.xlu0 %2818 }
 0x37f   : > { %v3088_v40 = vpop.f32.mrb[14].mxu0 }
 0x380   : > { %v3089_v38 = vadd.f32 %v3088_v40, %v2784_v51  ;;  %v3090_v35 = vpop.f32.mrb[15].mxu0  ;;  %3892 = vmatpush1.bf16.msra.mxu1 %v3891_v61  ;;  %v3313_v32 = vpop.f32.mrb[18].mxu1  ;;  %v3423_v25 = vmax.f32 %v3299_v56, 0.0 }
 0x381   : > { %3893 = vmatprep.subr.bf16.mxu1 %v4316_v28  ;;  %v3315_v13 = vpop.f32.mrb[19].mxu1 }
 0x382   : > { %v3304_v17 = vadd.f32 %v3303_v6, %v3089_v38 }
 0x383   : > { %v3093_v63 = vpop.f32.mrb[16].mxu0 }
 0x384   : > { %v3424_v60 = vmax.f32 %v3304_v17, 0.0  ;;  %v3094_v0 = vadd.f32 %v3093_v63, %v2789_v50  ;;  %v3095_v27 = vpop.f32.mrb[17].mxu0  ;;  %v3318_v2 = vpop.f32.mrb[20].mxu1 }
 0x385   : > { %v3320_v10 = vpop.f32.mrb[21].mxu1  ;;  %v2824_v17 = vpop.permute.xlu1 %2823 }
 0x386   : > { %v3894_v39 = vpack.c.bf16 %v3424_v60, %v3423_v25  ;;  %v3309_v59 = vadd.f32 %v3308_v24, %v3094_v0  ;;  %v2829_v27 = vpop.permute.xlu0 %2828 }
 0x387   : > { %v3098_v62 = vpop.f32.mrb[18].mxu0 }
 0x388   : > { %v3099_v18 = vadd.f32 %v3098_v62, %v2794_v5  ;;  %v3100_v34 = vpop.f32.mrb[19].mxu0  ;;  %3895 = vmatpush1.bf16.msra.mxu1 %v3894_v39  ;;  %v3323_v30 = vpop.f32.mrb[22].mxu1  ;;  %v3425_v47 = vmax.f32 %v3309_v59, 0.0 }
 0x389   : > { %3896 = vmatprep.subr.bf16.mxu1 %v4316_v28  ;;  %v3325_v15 = vpop.f32.mrb[23].mxu1 }
 0x38a   : > { %v3314_v21 = vadd.f32 %v3313_v32, %v3099_v18 }
 0x38b   : > { %v3103_v26 = vpop.f32.mrb[20].mxu0 }
 0x38c   : > { %v3426_v1 = vmax.f32 %v3314_v21, 0.0  ;;  %v3104_v58 = vadd.f32 %v3103_v26, %v2799_v54  ;;  %v3105_v7 = vpop.f32.mrb[21].mxu0  ;;  %v3328_v36 = vpop.f32.mrb[24].mxu1 }
 0x38d   : > { %v3330_v16 = vpop.f32.mrb[25].mxu1  ;;  %v2834_v21 = vpop.permute.xlu1 %2833 }
 0x38e   : > { %v3897_v19 = vpack.c.bf16 %v3426_v1, %v3425_v47  ;;  %v3319_v37 = vadd.f32 %v3318_v2, %v3104_v58  ;;  %v2839_v7 = vpop.permute.xlu0 %2838 }
 0x38f   : > { %v3108_v44 = vpop.f32.mrb[22].mxu0 }
 0x390   : > { %v3109_v55 = vadd.f32 %v3108_v44, %v2804_v42  ;;  %v3110_v3 = vpop.f32.mrb[23].mxu0  ;;  %3898 = vmatpush1.bf16.msra.mxu1 %v3897_v19  ;;  %v3333_v14 = vpop.f32.mrb[26].mxu1  ;;  %v3427_v20 = vmax.f32 %v3319_v37, 0.0 }
 0x391   : > { %3899 = vmatprep.subr.bf16.mxu1 %v4316_v28  ;;  %v3335_v12 = vpop.f32.mrb[27].mxu1 }
 0x392   : > { %v3324_v48 = vadd.f32 %v3323_v30, %v3109_v55 }
 0x393   : > { %v3113_v43 = vpop.f32.mrb[24].mxu0 }
 0x394   : > { %v3428_v49 = vmax.f32 %v3324_v48, 0.0  ;;  %v3114_v22 = vadd.f32 %v3113_v43, %v2809_v52  ;;  %v3115_v41 = vpop.f32.mrb[25].mxu0  ;;  %v3338_v8 = vpop.f32.mrb[28].mxu1 }
 0x395   : > { %v3340_v6 = vpop.f32.mrb[29].mxu1  ;;  %v2844_v48 = vpop.permute.xlu1 %2843 }
 0x396   : > { %v3900_v9 = vpack.c.bf16 %v3428_v49, %v3427_v20  ;;  %v3329_v45 = vadd.f32 %v3328_v36, %v3114_v22  ;;  %v2849_v41 = vpop.permute.xlu0 %2848 }
 0x397   : > { %v3118_v46 = vpop.f32.mrb[26].mxu0 }
 0x398   : > { %v3119_v53 = vadd.f32 %v3118_v46, %v2814_v11  ;;  %v3120_v29 = vpop.f32.mrb[27].mxu0  ;;  %3901 = vmatpush1.bf16.msra.mxu1 %v3900_v9  ;;  %v3343_v23 = vpop.f32.mrb[30].mxu1  ;;  %v3429_v61 = vmax.f32 %v3329_v45, 0.0 }
 0x399   : > { %3902 = vmatprep.subr.bf16.mxu1 %v4316_v28  ;;  %v3345_v31 = vpop.f32.mrb[31].mxu1 }
 0x39a   : > { %v3334_v4 = vadd.f32 %v3333_v14, %v3119_v53 }
 0x39b   : > { %v3123_v24 = vpop.f32.mrb[28].mxu0 }
 0x39c   : > { %v3430_v56 = vmax.f32 %v3334_v4, 0.0  ;;  %v3124_v33 = vadd.f32 %v3123_v24, %v2819_v57  ;;  %v3125_v51 = vpop.f32.mrb[29].mxu0  ;;  %v3348_v40 = vpop.f32.mrb[32].mxu1 }
 0x39d   : > { %v3350_v32 = vpop.f32.mrb[33].mxu1  ;;  %v2854_v4 = vpop.permute.xlu1 %2853 }
 0x39e   : > { %v3903_v38 = vpack.c.bf16 %v3430_v56, %v3429_v61  ;;  %v3339_v35 = vadd.f32 %v3338_v8, %v3124_v33  ;;  %v2859_v51 = vpop.permute.xlu0 %2858 }
 0x39f   : > { %v3128_v13 = vpop.f32.mrb[30].mxu0 }
 0x3a0   : > { %v3129_v50 = vadd.f32 %v3128_v13, %v2824_v17  ;;  %v3130_v63 = vpop.f32.mrb[31].mxu0  ;;  %3904 = vmatpush1.bf16.msra.mxu1 %v3903_v38  ;;  %v3353_v25 = vpop.f32.mrb[34].mxu1  ;;  %v3431_v39 = vmax.f32 %v3339_v35, 0.0 }
 0x3a1   : > { %3905 = vmatprep.subr.bf16.mxu1 %v4316_v28  ;;  %v3355_v0 = vpop.f32.mrb[35].mxu1 }
 0x3a2   : > { %v3344_v60 = vadd.f32 %v3343_v23, %v3129_v50 }
 0x3a3   : > { %v3133_v2 = vpop.f32.mrb[32].mxu0 }
 0x3a4   : > { %v3432_v59 = vmax.f32 %v3344_v60, 0.0  ;;  %v3134_v10 = vadd.f32 %v3133_v2, %v2829_v27  ;;  %v3135_v5 = vpop.f32.mrb[33].mxu0  ;;  %v3358_v62 = vpop.f32.mrb[36].mxu1 }
 0x3a5   : > { %v3360_v30 = vpop.f32.mrb[37].mxu1  ;;  %v2864_v60 = vpop.permute.xlu1 %2863 }
 0x3a6   : > { %v3906_v18 = vpack.c.bf16 %v3432_v59, %v3431_v39  ;;  %v3349_v34 = vadd.f32 %v3348_v40, %v3134_v10  ;;  %v2869_v5 = vpop.permute.xlu0 %2868 }
 0x3a7   : > { %v3138_v15 = vpop.f32.mrb[34].mxu0 }
 0x3a8   : > { %v3139_v54 = vadd.f32 %v3138_v15, %v2834_v21  ;;  %v3140_v26 = vpop.f32.mrb[35].mxu0  ;;  %3907 = vmatpush1.bf16.msra.mxu1 %v3906_v18  ;;  %v3363_v47 = vpop.f32.mrb[38].mxu1  ;;  %v3433_v19 = vmax.f32 %v3349_v34, 0.0 }
 0x3a9   : > { %3908 = vmatprep.subr.bf16.mxu1 %v4316_v28  ;;  %v3365_v58 = vpop.f32.mrb[39].mxu1 }
 0x3aa   : > { %v3354_v1 = vadd.f32 %v3353_v25, %v3139_v54 }
 0x3ab   : > { %v3143_v36 = vpop.f32.mrb[36].mxu0 }
 0x3ac   : > { %v3434_v37 = vmax.f32 %v3354_v1, 0.0  ;;  %v3144_v16 = vadd.f32 %v3143_v36, %v2839_v7  ;;  %v3145_v42 = vpop.f32.mrb[37].mxu0  ;;  %v3368_v44 = vpop.f32.mrb[40].mxu1 }
 0x3ad   : > { %v3370_v14 = vpop.f32.mrb[41].mxu1  ;;  %v2874_v1 = vpop.permute.xlu1 %2873 }
 0x3ae   : > { %v3909_v55 = vpack.c.bf16 %v3434_v37, %v3433_v19  ;;  %v3359_v3 = vadd.f32 %v3358_v62, %v3144_v16  ;;  %v2879_v42 = vpop.permute.xlu0 %2878 }
 0x3af   : > { %v3148_v12 = vpop.f32.mrb[38].mxu0 }
 0x3b0   : > { %v3149_v52 = vadd.f32 %v3148_v12, %v2844_v48  ;;  %v3150_v43 = vpop.f32.mrb[39].mxu0  ;;  %3910 = vmatpush1.bf16.msra.mxu1 %v3909_v55  ;;  %v3373_v20 = vpop.f32.mrb[42].mxu1  ;;  %v3435_v9 = vmax.f32 %v3359_v3, 0.0 }
 0x3b1   : > { %3911 = vmatprep.subr.bf16.mxu1 %v4316_v28  ;;  %v3375_v22 = vpop.f32.mrb[43].mxu1 }
 0x3b2   : > { %v3364_v49 = vadd.f32 %v3363_v47, %v3149_v52 }
 0x3b3   : > { %v3153_v8 = vpop.f32.mrb[40].mxu0 }
 0x3b4   : > { %v3436_v45 = vmax.f32 %v3364_v49, 0.0  ;;  %v3154_v6 = vadd.f32 %v3153_v8, %v2849_v41  ;;  %v3155_v11 = vpop.f32.mrb[41].mxu0  ;;  %v3378_v46 = vpop.f32.mrb[44].mxu1 }
 0x3b5   : > { %v3380_v23 = vpop.f32.mrb[45].mxu1  ;;  %v2884_v49 = vpop.permute.xlu1 %2883 }
 0x3b6   : > { %v3912_v53 = vpack.c.bf16 %v3436_v45, %v3435_v9  ;;  %v3369_v29 = vadd.f32 %v3368_v44, %v3154_v6  ;;  %v2889_v11 = vpop.permute.xlu0 %2888 }
 0x3b7   : > { %v3158_v31 = vpop.f32.mrb[42].mxu0 }
 0x3b8   : > { %v3159_v57 = vadd.f32 %v3158_v31, %v2854_v4  ;;  %v3160_v24 = vpop.f32.mrb[43].mxu0  ;;  %3913 = vmatpush1.bf16.msra.mxu1 %v3912_v53  ;;  %v3383_v61 = vpop.f32.mrb[46].mxu1  ;;  %v3437_v38 = vmax.f32 %v3369_v29, 0.0 }
 0x3b9   : > { %3914 = vmatprep.subr.bf16.mxu1 %v4316_v28  ;;  %v3385_v33 = vpop.f32.mrb[47].mxu1  ;;  %v2894_v24 = vpop.permute.xlu1 %2893 }
 0x3ba   : > { %v3374_v56 = vadd.f32 %v3373_v20, %v3159_v57 }
 0x3bb   : > { %v3163_v40 = vpop.f32.mrb[44].mxu0 }
 0x3bc   : > { %v3438_v35 = vmax.f32 %v3374_v56, 0.0  ;;  %v3164_v32 = vadd.f32 %v3163_v40, %v2859_v51  ;;  %v3165_v17 = vpop.f32.mrb[45].mxu0  ;;  %v3388_v13 = vpop.f32.mrb[48].mxu1 }
 0x3bd   : > { %v3390_v25 = vpop.f32.mrb[49].mxu1  ;;  %v3453_v17 = vpop.permute.xlu0 %3452 }
 0x3be   : > { %v3915_v50 = vpack.c.bf16 %v3438_v35, %v3437_v38  ;;  %v3379_v63 = vadd.f32 %v3378_v46, %v3164_v32  ;;  %v3447_v32 = vld [vmem:[#allocation15] sm:$0xff] }
 0x3bf   : > { %v3168_v0 = vpop.f32.mrb[46].mxu0 }
 0x3c0   : > { %v3169_v27 = vadd.f32 %v3168_v0, %v2864_v60  ;;  %v3170_v2 = vpop.f32.mrb[47].mxu0  ;;  %3916 = vmatpush1.bf16.msra.mxu1 %v3915_v50  ;;  %v3393_v39 = vpop.f32.mrb[50].mxu1  ;;  %v3439_v18 = vmax.f32 %v3379_v63, 0.0 }
 0x3c1   : > { %3917 = vmatprep.subr.bf16.mxu1 %v4316_v28  ;;  %v3395_v10 = vpop.f32.mrb[51].mxu1 }
 0x3c2   : > { %v3384_v59 = vadd.f32 %v3383_v61, %v3169_v27 }
 0x3c3   : > { %v3173_v62 = vpop.f32.mrb[48].mxu0 }
 0x3c4   : > { %v3440_v34 = vmax.f32 %v3384_v59, 0.0  ;;  %v3174_v30 = vadd.f32 %v3173_v62, %v2869_v5  ;;  %v3175_v21 = vpop.f32.mrb[49].mxu0  ;;  %v3398_v15 = vpop.f32.mrb[52].mxu1 }
 0x3c5   : > { %v3400_v47 = vpop.f32.mrb[53].mxu1 }
 0x3c6   : > { %v3918_v54 = vpack.c.bf16 %v3440_v34, %v3439_v18  ;;  %v3389_v26 = vadd.f32 %v3388_v13, %v3174_v30 }
 0x3c7   : > { %v3178_v58 = vpop.f32.mrb[50].mxu0 }
 0x3c8   : > { %v3179_v7 = vadd.f32 %v3178_v58, %v2874_v1  ;;  %v3180_v36 = vpop.f32.mrb[51].mxu0  ;;  %3919 = vmatpush1.bf16.msra.mxu1 %v3918_v54  ;;  %v3403_v19 = vpop.f32.mrb[54].mxu1  ;;  %v3441_v55 = vmax.f32 %v3389_v26, 0.0 }
 0x3c9   : > { %3920 = vmatprep.subr.bf16.mxu1 %v4316_v28  ;;  %v3405_v16 = vpop.f32.mrb[55].mxu1 }
 0x3ca   : > { %v3394_v37 = vadd.f32 %v3393_v39, %v3179_v7 }
 0x3cb   : > { %v3183_v44 = vpop.f32.mrb[52].mxu0 }
 0x3cc   : > { %v3442_v3 = vmax.f32 %v3394_v37, 0.0  ;;  %v3184_v14 = vadd.f32 %v3183_v44, %v2879_v42  ;;  %v3185_v48 = vpop.f32.mrb[53].mxu0  ;;  %v3408_v12 = vpop.f32.mrb[56].mxu1 }
 0x3cd   : > { %v3410_v20 = vpop.f32.mrb[57].mxu1 }
 0x3ce   : > { %v3921_v52 = vpack.c.bf16 %v3442_v3, %v3441_v55  ;;  %v3399_v43 = vadd.f32 %v3398_v15, %v3184_v14 }
 0x3cf   : > { %v3188_v22 = vpop.f32.mrb[54].mxu0 }
 0x3d0   : > { %v3189_v41 = vadd.f32 %v3188_v22, %v2884_v49  ;;  %v3190_v8 = vpop.f32.mrb[55].mxu0  ;;  %3922 = vmatpush1.bf16.msra.mxu1 %v3921_v52  ;;  %v3413_v9 = vpop.f32.mrb[58].mxu1  ;;  %v3443_v53 = vmax.f32 %v3399_v43, 0.0 }
 0x3d1   : > { %3923 = vmatprep.subr.bf16.mxu1 %v4316_v28  ;;  %v3415_v6 = vpop.f32.mrb[59].mxu1 }
 0x3d2   : > { %v3404_v45 = vadd.f32 %v3403_v19, %v3189_v41 }
 0x3d3   : > { %v3193_v46 = vpop.f32.mrb[56].mxu0 }
 0x3d4   : > { %v3444_v29 = vmax.f32 %v3404_v45, 0.0  ;;  %v3194_v23 = vadd.f32 %v3193_v46, %v2889_v11  ;;  %v3195_v4 = vpop.f32.mrb[57].mxu0 }
 0x3d6   : > { %v3924_v31 = vpack.c.bf16 %v3444_v29, %v3443_v53  ;;  %v3409_v57 = vadd.f32 %v3408_v12, %v3194_v23 }
 0x3d7   : > { %v3198_v61 = vpop.f32.mrb[58].mxu0 }
 0x3d8   : > { %v3199_v56 = vadd.f32 %v3198_v61, %v2894_v24  ;;  %v3200_v33 = vpop.f32.mrb[59].mxu0  ;;  %3925 = vmatpush1.bf16.msra.mxu1 %v3924_v31  ;;  %v3445_v40 = vmax.f32 %v3409_v57, 0.0 }
 0x3d9   : > { %3926 = vmatprep.subr.bf16.mxu1 %v4316_v28 }
 0x3da   : > { %v3414_v51 = vadd.f32 %v3413_v9, %v3199_v56 }
 0x3dc   : > { %v3446_v38 = vmax.f32 %v3414_v51, 0.0 }
 0x3de   : > { %v3927_v35 = vpack.c.bf16 %v3446_v38, %v3445_v40 }
 0x3e0   : > { %3928 = vmatpush1.bf16.msra.mxu1 %v3927_v35 }
 0x3e3   : > { %3524 = vmatmul.mubr.f32.vlgmr.msra.gmra.mrb[60].mxu1 %v3447_v32 }
 0x4b6   : > { %v3525_v13 = vpop.f32.mrb[60].mxu1 }
 0x4b7   : > { %v3526_v50 = vadd.f32 %v3525_v13, %v3453_v17  ;;  %v3527_v63 = vpop.f32.mrb[61].mxu1 }
 0x4b9   : > { %3529 = vst [vmem:[%s6161_s27] sm:$0xff] %v3526_v50 }
 0x4ba   : > { %4230 = shalt.err (!%p4227_p7)
}
 0x4bb   : > { %s4231_s19 = scalar_lea.hbm %s6880_s25, 128  ;;  %s4235_s24 = scalar_lea.hbm %s6934_s9, 256 }
 0x4bc   : > { %p4232_p8 = scmp.ne.s32.totalorder %s6880_s25, %s4231_s19  ;;  %p4236_p1 = scmp.lt.u32.totalorder %s6880_s25, %s6934_s9 }
 0x4bd   : > { %p4237_p3 = scmp.lt.u32.totalorder %s4235_s24, %s4231_s19  ;;  %p4239_p2 = scmp.lt.u32.totalorder %s4231_s19, %s6880_s25 }
 0x4be   : > { %p4233_p9 = pnand %p4232_p8, %p6965_p0 }
 0x4bf   : > { %p4238_p10 = por %p4237_p3, %p4236_p1 }
 0x4c0   : > { %p4234_p13 = pneg %p4233_p9 }
 0x4c1   : > { %p4240_p11 = por %p4239_p2, %p4238_p10 }
 0x4c3   : > { %p4241_p5 = pnand %p4240_p11, %p4234_p13 }
 0x4c5   : > { %4244 = shalt.err (!%p4241_p5)
}
 0x4c6   : > { %4011 = dma.vmem_to_hbm [thread:$0]  (%p6965_p0), %s6882_s14, 128, %s6880_s25, %s3531_s18  }
 0x4c7 PF: > { %s3556_s16 = sand.u32 1, %s4291_s30   ;;  %p6966_p6 = scmp.ne.s32.totalorder %s6946_s21, 0 }
 0x4c8   : > { %s3557_s29 = scalar_lea.sflag [#allocation8], %s3556_s16 }
 0x4c9   : > { %p4030_p12 = pnand %p3678_p4, %p6966_p6 }
 0x4cb   : > { %4286 = dma.done.wait (!%p4030_p12), %s3557_s29, 128  }
 0x4cc   : > { %4288 = vsyncadd (!%p4030_p12), %s3557_s29, 4294967168  ;;  %s6967_s12 = sld [smem:[#allocation23_spill]]  ;;  %s6968_s22 = sld [smem:[#allocation24_spill]] }
 0x4cd   : > { %s6969_s30 = smov %s4295_s10  ;;  %s6970_s10 = smov %s4299_s11 }
 0x4d2   : > { %p23_p7 = scmp.ge.s32.totalorder %s6967_s12, 4   ;;  %s6971_s11 = smov %s6968_s22 }
 0x4d4   :  { %25 = sbr.rel (!%p23_p7) target bundleno = 10 (0xa), region = 207 }
 0x4db   :  { %3562 = vsyncpa [#allocation7], 1 }
 0x4dc   :  { %3564 = vsyncpa [#allocation7 + $0x1], 1 }
 0x4dd   :  { %3565 = vsyncpa [#allocation8], 1 }
 0x4de   :  { %3567 = vsyncpa [#allocation8 + $0x1], 1 }
 0x4df   :  { %3568 = vsyncpa [#allocation9], 1 }
 0x4e0   :  { %3570 = vsyncpa [#allocation9 + $0x1], 1 }
 0x4e1   :  { %3571 = vsyncpa [#allocation10], 1 }
 0x4e2   :  { %3573 = vsyncpa [#allocation10 + $0x1], 1 }
 0x4e3   :  { %3574 = vsyncpa [#allocation12], 1 }

</bundles_post_ra>
